<compile_context>
chip_gen: v5e
topology: v5e:2x2
jax: 0.10.0
libtpu: 0.0.40
codegen_flags: <defaults>
</compile_context>

<pallas_src>
import functools

import numpy as np

import jax
import jax.numpy as jnp
from jax import lax
from jax.experimental import pallas as pl
from jax.experimental.pallas import tpu as pltpu

_EPS = 1e-5


# ----------------------------------------------------------------------
# Static (trace-time) helpers
# ----------------------------------------------------------------------
def _reflect(i, n):
    """Index map of torch.nn.ReflectionPad2d (valid for pad < n)."""
    if i < 0:
        return -i
    if i >= n:
        return 2 * n - 2 - i
    return i


def _conv_out(n, k, s, p):
    return (n + 2 * p - k) // s + 1


def _const_index_map(ndim):
    return lambda b: (0,) * ndim


# ----------------------------------------------------------------------
# Conv2dLayer -> (row-gather, width-banded) matmul operands.
# Runs in XLA on the *parameters* only (no activation glue).
# ----------------------------------------------------------------------
def _build_conv_operands(w, b, hin, win, k, s, p, use_in):
    """Lower a reflect-padded conv to constant matrices consumed in-kernel.

    Activations are laid out lane-dense as (H, W*C).  For kernel row dh:
        rows_dh = R[dh] @ X        (R: 0/1, encodes stride + reflect pad on H)
        y      += rows_dh @ A[dh]  (A: banded weights, taps + reflect pad on W)
    The k per-row pieces are concatenated so the kernel issues a single
    matmul with N = Wo*Cout on the lane axis per conv layer.
    """
    cout, cin = int(w.shape[0]), int(w.shape[1])
    ho = _conv_out(hin, k, s, p)
    wo = _conv_out(win, k, s, p)

    R = np.zeros((k, ho, hin), np.float32)
    for dh in range(k):
        for r in range(ho):
            R[dh, r, _reflect(s * r + dh - p, hin)] = 1.0

    a_rows = []
    for dh in range(k):
        a = jnp.zeros((win * cin, wo * cout), jnp.float32)
        for dw in range(k):
            M = np.zeros((win, wo), np.float32)
            for c in range(wo):
                M[_reflect(s * c + dw - p, win), c] += 1.0
            a = a + jnp.kron(jnp.asarray(M), jnp.transpose(w[:, :, dh, dw]))
        a_rows.append(a)
    A = jnp.concatenate(a_rows, axis=0)                      # (k*win*cin, wo*cout)

    bias = jnp.tile(b, wo)[None, :].astype(jnp.float32)      # (1, wo*cout)
    arrays = [jnp.asarray(R, jnp.bfloat16), A.astype(jnp.bfloat16), bias]
    if use_in:
        # U[c, wo*cout + c2] = (c2 == c): channel <-> column bookkeeping used
        # for the InstanceNorm reductions / broadcasts (kept in f32).
        U = np.tile(np.eye(cout, dtype=np.float32), (1, wo))  # (cout, wo*cout)
        arrays.append(jnp.asarray(U))
    return arrays, ho, wo, cout


# ----------------------------------------------------------------------
# In-kernel building blocks (traced inside the single Pallas kernel)
# ----------------------------------------------------------------------
def _lrelu(x):
    return jnp.where(x >= 0.0, x, 0.2 * x)


def _conv_block(act, refs, meta, eps):
    """Conv2dLayer (pad->conv->IN->lrelu) on a lane-dense (Hin, Win*Cin) tile."""
    if meta["use_in"]:
        r_ref, a_ref, b_ref, u_ref = refs
    else:
        r_ref, a_ref, b_ref = refs
        u_ref = None
    k, ho, wo = meta["k"], meta["ho"], meta["wo"]

    xb = act.astype(jnp.bfloat16)
    # k row-gather matmuls (stride + reflect padding folded into constant R),
    # then one banded matmul whose N dim (wo*cout) sits on the lane axis.
    rows = [jnp.dot(r_ref[dh], xb,
                    preferred_element_type=jnp.float32).astype(jnp.bfloat16)
            for dh in range(k)]
    xg = jnp.concatenate(rows, axis=1)                        # (ho, k*win*cin)
    y = jnp.dot(xg, a_ref[...], preferred_element_type=jnp.float32)
    y = y + b_ref[...]

    if meta["use_in"]:
        # InstanceNorm2d(affine=False): per-channel stats over all ho*wo
        # positions.  Channel grouping handled by the 0/1 matrix U (f32 math).
        u = u_ref[...]                                        # (cout, wo*cout)
        inv_n = 1.0 / float(ho * wo)
        csum = jnp.sum(y, axis=0, keepdims=True)              # (1, wo*cout)
        mean_c = lax.dot_general(csum, u, (((1,), (1,)), ((), ())),
                                 preferred_element_type=jnp.float32) * inv_n
        y = y - jnp.dot(mean_c, u, preferred_element_type=jnp.float32)
        ssq = jnp.sum(y * y, axis=0, keepdims=True)
        var_c = lax.dot_general(ssq, u, (((1,), (1,)), ((), ())),
                                preferred_element_type=jnp.float32) * inv_n
        inv_std = lax.rsqrt(var_c + eps)                      # (1, cout)
        y = y * jnp.dot(inv_std, u, preferred_element_type=jnp.float32)

    if meta["use_act"]:
        y = _lrelu(y)
    return y


def _attention_block(act, refs, meta):
    """Self_Attn_FM on the (ho, wo*C) block4 activation, fully in VMEM."""
    wqkv_ref, bqkv_ref, wo_ref, bo_ref, g_ref = refs
    ho, wo = meta["ho"], meta["wo"]
    cf, cl = meta["c_full"], meta["c_lat"]

    # (ho, wo*cf) -> (wo*ho, cf): one row per spatial position.  Any fixed
    # ordering is valid (attention is permutation-equivariant); we use
    # column-block order and invert it at the end.
    feat = jnp.concatenate([act[:, i * cf:(i + 1) * cf] for i in range(wo)],
                           axis=0)
    qkv = jnp.dot(feat.astype(jnp.bfloat16), wqkv_ref[...],
                  preferred_element_type=jnp.float32) + bqkv_ref[...]
    q = qkv[:, 0:cl]
    key = qkv[:, cl:2 * cl]
    v = qkv[:, 2 * cl:3 * cl]

    energy = lax.dot_general(q, key, (((1,), (1,)), ((), ())),
                             preferred_element_type=jnp.float32)   # (N, N)
    energy = energy - jnp.max(energy, axis=-1, keepdims=True)
    attn = jnp.exp(energy)
    attn = attn / jnp.sum(attn, axis=-1, keepdims=True)
    agg = jnp.dot(attn, v, preferred_element_type=jnp.float32)     # (N, cl)
    out = jnp.dot(agg.astype(jnp.bfloat16), wo_ref[...],
                  preferred_element_type=jnp.float32) + bo_ref[...]
    res = g_ref[...] * out + feat                                  # gamma*o + x
    return jnp.concatenate([res[i * ho:(i + 1) * ho, :] for i in range(wo)],
                           axis=1)


def _network_kernel(*refs, plan, eps):
    """The entire discriminator for one sample; everything stays in VMEM."""
    o_ref = refs[-1]
    act = refs[0][0]                       # (H, W*Cin) f32, lane-dense layout
    pos = 1
    for item in plan:
        if item["kind"] == "conv":
            n = 4 if item["use_in"] else 3
            act = _conv_block(act, refs[pos:pos + n], item, eps)
        else:
            n = 5
            act = _attention_block(act, refs[pos:pos + n], item)
        pos += n
    assert pos == len(refs) - 1
    o_ref[0] = act


# ----------------------------------------------------------------------
# Forward pass wrapper (NCHW in / NCHW out, like the PyTorch module)
# ----------------------------------------------------------------------
_LAYER_CFG = (
    # name, kernel, stride, pad, instance_norm, leaky_relu
    ("block1", 7, 1, 3, False, True),
    ("block2", 4, 2, 1, True, True),
    ("block3", 4, 2, 1, True, True),
    ("block4", 4, 2, 1, True, True),
    ("final1", 4, 1, 1, True, True),
    ("final2", 4, 1, 1, False, False),
)


def patch_discriminator70(params, img_A, img_B, *, eps=_EPS):
    """img_A: (B, C_A, H, W), img_B: (B, out_channels, H, W)  (NCHW)."""
    B, _, H, W = img_A.shape
    a = jnp.transpose(img_A[:, 0:1, :, :], (0, 2, 3, 1))      # img_A[:, [0]]
    b = jnp.transpose(img_B, (0, 2, 3, 1))
    x = jnp.concatenate([a, b], axis=-1).astype(jnp.float32)  # (B, H, W, Cin)
    cin = x.shape[-1]
    x2d = x.reshape(B, H, W * cin)                            # lane-dense (H, W*C)

    arrays = [x2d]
    in_specs = [pl.BlockSpec((1, H, W * cin), lambda i: (i, 0, 0))]
    plan = []

    hin, win = H, W
    out_rows = out_cols = None
    for name, k, s, p, use_in, use_act in _LAYER_CFG:
        ops, ho, wo, cout = _build_conv_operands(
            params[name]["w"], params[name]["b"], hin, win, k, s, p, use_in)
        arrays += ops
        in_specs += [pl.BlockSpec(arr.shape, _const_index_map(arr.ndim))
                     for arr in ops]
        plan.append(dict(kind="conv", k=k, ho=ho, wo=wo, cout=cout,
                         use_in=use_in, use_act=use_act))
        hin, win = ho, wo
        out_rows, out_cols = ho, wo * cout

        if name == "block4":                  # Self_Attn_FM right after block4
            att = params["attn"]
            c_lat = int(att["wq"]["w"].shape[0])

            def w1x1(pp):
                return jnp.transpose(
                    pp["w"].reshape(pp["w"].shape[0], pp["w"].shape[1]))

            att_ops = [
                jnp.concatenate([w1x1(att["wq"]), w1x1(att["wk"]),
                                 w1x1(att["wv"])], axis=1).astype(jnp.bfloat16),
                jnp.concatenate([att["wq"]["b"], att["wk"]["b"],
                                 att["wv"]["b"]])[None, :].astype(jnp.float32),
                w1x1(att["wo"]).astype(jnp.bfloat16),
                att["wo"]["b"][None, :].astype(jnp.float32),
                att["gamma"].reshape(1, 1).astype(jnp.float32),
            ]
            arrays += att_ops
            in_specs += [pl.BlockSpec(arr.shape, _const_index_map(arr.ndim))
                         for arr in att_ops]
            plan.append(dict(kind="attn", ho=ho, wo=wo, c_full=cout,
                             c_lat=c_lat))

    kern = functools.partial(_network_kernel, plan=tuple(plan), eps=eps)
    out = pl.pallas_call(
        kern,
        out_shape=jax.ShapeDtypeStruct((B, out_rows, out_cols), jnp.float32),
        grid=(B,),                            # one sample per step: 2 parallel
        in_specs=in_specs,                    # steps feed both TCs on v7x
        out_specs=pl.BlockSpec((1, out_rows, out_cols), lambda i: (i, 0, 0)),
        compiler_params=pltpu.CompilerParams(
            dimension_semantics=("parallel",)),
    )(*arrays)
    # final2 has a single output channel, so (Ho, Wo*1) is already the spatial
    # map; restore the NCHW channel axis.
    return out[:, None, :, :]


# ----------------------------------------------------------------------
# Parameter construction (spectral norm applied once to weights at init)
# ----------------------------------------------------------------------
def _l2n(v):
    return v / (jnp.linalg.norm(v) + 1e-12)


def _spectral_normalize(w, key, n_iter=10):
    """||W||_2 normalization via power iteration.
    # TODO(synk): PyTorch SpectralNorm keeps a persistent `u` buffer and runs
    # one power iteration per forward; here sigma is estimated once at init."""
    wm = w.reshape(w.shape[0], -1)
    u = _l2n(jax.random.normal(key, (wm.shape[0],), jnp.float32))
    v = _l2n(wm.T @ u)
    for _ in range(n_iter):
        v = _l2n(wm.T @ u)
        u = _l2n(wm @ v)
    sigma = jnp.dot(u, wm @ v)
    return w / sigma


def _conv_param(key, cout, cin, k, sn=True, scale=0.05):
    kw, kb, ku = jax.random.split(key, 3)
    w = scale * jax.random.normal(kw, (cout, cin, k, k), jnp.float32)
    if sn:
        w = _spectral_normalize(w, ku)
    b = scale * jax.random.normal(kb, (cout,), jnp.float32)
    return {"w": w, "b": b}


def init_params(key, in_channels=1, out_channels=3, start_channels=4):
    ks = jax.random.split(key, 10)
    sc = start_channels
    return {
        "block1": _conv_param(ks[0], sc * 2, in_channels + out_channels, 7),
        "block2": _conv_param(ks[1], sc * 4, sc * 2, 4),
        "block3": _conv_param(ks[2], sc * 8, sc * 4, 4),
        "block4": _conv_param(ks[3], sc * 16, sc * 8, 4),
        "final1": _conv_param(ks[4], sc * 8, sc * 16, 4),
        "final2": _conv_param(ks[5], 1, sc * 8, 4),
        "attn": {
            "wq": _conv_param(ks[6], sc * 16 // 8, sc * 16, 1, sn=False),
            "wk": _conv_param(ks[7], sc * 16 // 8, sc * 16, 1, sn=False),
            "wv": _conv_param(ks[8], sc * 16 // 8, sc * 16, 1, sn=False),
            "wo": _conv_param(ks[9], sc * 16, sc * 16 // 8, 1, sn=False),
            "gamma": jnp.zeros((), jnp.float32),   # PyTorch inits gamma to 0
        },
    }


# ----------------------------------------------------------------------
# Pure-JAX reference (f32, lax.conv) used only for the numerical check
# ----------------------------------------------------------------------
def reference_forward(params, img_A, img_B, eps=_EPS):
    a = jnp.transpose(img_A[:, 0:1, :, :], (0, 2, 3, 1))
    b = jnp.transpose(img_B, (0, 2, 3, 1))
    x = jnp.concatenate([a, b], axis=-1).astype(jnp.float32)

    def conv(x, p, k, s, pad):
        if pad:
            x = jnp.pad(x, ((0, 0), (pad, pad), (pad, pad), (0, 0)),
                        mode="reflect")
        dn = lax.conv_dimension_numbers(x.shape, p["w"].shape,
                                        ("NHWC", "OIHW", "NHWC"))
        y = lax.conv_general_dilated(x, p["w"], (s, s), "VALID",
                                     dimension_numbers=dn)
        return y + p["b"].reshape(1, 1, 1, -1)

    def inorm(x):
        m = jnp.mean(x, axis=(1, 2), keepdims=True)
        v = jnp.mean((x - m) ** 2, axis=(1, 2), keepdims=True)
        return (x - m) * lax.rsqrt(v + eps)

    def lrelu(x):
        return jnp.where(x >= 0, x, 0.2 * x)

    x = lrelu(conv(x, params["block1"], 7, 1, 3))
    x = lrelu(inorm(conv(x, params["block2"], 4, 2, 1)))
    x = lrelu(inorm(conv(x, params["block3"], 4, 2, 1)))
    x = lrelu(inorm(conv(x, params["block4"], 4, 2, 1)))

    att = params["attn"]
    B, H, W, C = x.shape
    h = x.reshape(B, H * W, C)

    def w1x1(pp):
        return pp["w"].reshape(pp["w"].shape[0], pp["w"].shape[1]).T

    q = h @ w1x1(att["wq"]) + att["wq"]["b"]
    k = h @ w1x1(att["wk"]) + att["wk"]["b"]
    v = h @ w1x1(att["wv"]) + att["wv"]["b"]
    attn = jax.nn.softmax(jnp.einsum("bnc,bmc->bnm", q, k), axis=-1)
    o = jnp.einsum("bnm,bmc->bnc", attn, v) @ w1x1(att["wo"]) + att["wo"]["b"]
    x = att["gamma"] * o.reshape(B, H, W, C) + x

    x = lrelu(inorm(conv(x, params["final1"], 4, 1, 1)))
    x = conv(x, params["final2"], 4, 1, 1)
    return jnp.transpose(x, (0, 3, 1, 2))


# ----------------------------------------------------------------------
if __name__ == "__main__":
    key = jax.random.PRNGKey(0)
    kp, ka, kb = jax.random.split(key, 3)

    B, H, W = 2, 32, 32
    in_channels, out_channels, start_channels = 1, 3, 4

    params = init_params(kp, in_channels, out_channels, start_channels)
    # PyTorch initializes gamma to 0 (attention branch disabled at init); set
    # it nonzero here so the numerical check also exercises the attention path.
    params["attn"]["gamma"] = jnp.asarray(0.25, jnp.float32)

    img_A = jax.random.normal(ka, (B, in_channels, H, W), jnp.float32)
    img_B = jax.random.normal(kb, (B, out_channels, H, W), jnp.float32)

    fwd = jax.jit(patch_discriminator70)
    out = jax.block_until_ready(fwd(params, img_A, img_B))

    assert out.shape == (B, 1, 2, 2), out.shape
    assert bool(jnp.all(jnp.isfinite(out)))

    ref = jax.block_until_ready(jax.jit(reference_forward)(params, img_A, img_B))
    scale = float(jnp.max(jnp.abs(ref)))
    err = float(jnp.max(jnp.abs(out - ref)))
    # bf16 MXU operands (f32 accumulation) -> generous but gross-error-catching
    # tolerance vs. the pure-f32 reference.
    assert err <= 0.1 * scale + 0.05, (err, scale)

    print("KERNEL_OK")
</pallas_src>

<mosaic_0001>
module attributes {stable_mosaic.version = 11 : i64} {
  func.func @_network_kernel(%arg0: i32, %arg1: memref<1x32x128xf32, #tpu.memory_space<vmem>>, %arg2: memref<7x32x32xbf16, #tpu.memory_space<vmem>>, %arg3: memref<896x256xbf16, #tpu.memory_space<vmem>>, %arg4: memref<1x256xf32, #tpu.memory_space<vmem>>, %arg5: memref<4x16x32xbf16, #tpu.memory_space<vmem>>, %arg6: memref<1024x256xbf16, #tpu.memory_space<vmem>>, %arg7: memref<1x256xf32, #tpu.memory_space<vmem>>, %arg8: memref<16x256xf32, #tpu.memory_space<vmem>>, %arg9: memref<4x8x16xbf16, #tpu.memory_space<vmem>>, %arg10: memref<1024x256xbf16, #tpu.memory_space<vmem>>, %arg11: memref<1x256xf32, #tpu.memory_space<vmem>>, %arg12: memref<32x256xf32, #tpu.memory_space<vmem>>, %arg13: memref<4x4x8xbf16, #tpu.memory_space<vmem>>, %arg14: memref<1024x256xbf16, #tpu.memory_space<vmem>>, %arg15: memref<1x256xf32, #tpu.memory_space<vmem>>, %arg16: memref<64x256xf32, #tpu.memory_space<vmem>>, %arg17: memref<64x24xbf16, #tpu.memory_space<vmem>>, %arg18: memref<1x24xf32, #tpu.memory_space<vmem>>, %arg19: memref<8x64xbf16, #tpu.memory_space<vmem>>, %arg20: memref<1x64xf32, #tpu.memory_space<vmem>>, %arg21: memref<1x1xf32, #tpu.memory_space<vmem>>, %arg22: memref<4x3x4xbf16, #tpu.memory_space<vmem>>, %arg23: memref<1024x96xbf16, #tpu.memory_space<vmem>>, %arg24: memref<1x96xf32, #tpu.memory_space<vmem>>, %arg25: memref<32x96xf32, #tpu.memory_space<vmem>>, %arg26: memref<4x2x3xbf16, #tpu.memory_space<vmem>>, %arg27: memref<384x2xbf16, #tpu.memory_space<vmem>>, %arg28: memref<1x2xf32, #tpu.memory_space<vmem>>, %arg29: memref<1x2x2xf32, #tpu.memory_space<vmem>>) attributes {dimension_semantics = [#tpu.dimension_semantics<parallel>], iteration_bounds = array<i64: 2>, scalar_prefetch = 0 : i64, scratch_operands = 0 : i64, tpu.core_type = #tpu.core_type<tc>, window_params = [{transform_indices = @transform_0, window_bounds = array<i64: 1, 32, 128>}, {pipeline_mode = #tpu.pipeline_mode<synchronous>, transform_indices = @transform_1, window_bounds = array<i64: 7, 32, 32>}, {pipeline_mode = #tpu.pipeline_mode<synchronous>, transform_indices = @transform_2, window_bounds = array<i64: 896, 256>}, {pipeline_mode = #tpu.pipeline_mode<synchronous>, transform_indices = @transform_3, window_bounds = array<i64: 1, 256>}, {pipeline_mode = #tpu.pipeline_mode<synchronous>, transform_indices = @transform_4, window_bounds = array<i64: 4, 16, 32>}, {pipeline_mode = #tpu.pipeline_mode<synchronous>, transform_indices = @transform_5, window_bounds = array<i64: 1024, 256>}, {pipeline_mode = #tpu.pipeline_mode<synchronous>, transform_indices = @transform_6, window_bounds = array<i64: 1, 256>}, {pipeline_mode = #tpu.pipeline_mode<synchronous>, transform_indices = @transform_7, window_bounds = array<i64: 16, 256>}, {pipeline_mode = #tpu.pipeline_mode<synchronous>, transform_indices = @transform_8, window_bounds = array<i64: 4, 8, 16>}, {pipeline_mode = #tpu.pipeline_mode<synchronous>, transform_indices = @transform_9, window_bounds = array<i64: 1024, 256>}, {pipeline_mode = #tpu.pipeline_mode<synchronous>, transform_indices = @transform_10, window_bounds = array<i64: 1, 256>}, {pipeline_mode = #tpu.pipeline_mode<synchronous>, transform_indices = @transform_11, window_bounds = array<i64: 32, 256>}, {pipeline_mode = #tpu.pipeline_mode<synchronous>, transform_indices = @transform_12, window_bounds = array<i64: 4, 4, 8>}, {pipeline_mode = #tpu.pipeline_mode<synchronous>, transform_indices = @transform_13, window_bounds = array<i64: 1024, 256>}, {pipeline_mode = #tpu.pipeline_mode<synchronous>, transform_indices = @transform_14, window_bounds = array<i64: 1, 256>}, {pipeline_mode = #tpu.pipeline_mode<synchronous>, transform_indices = @transform_15, window_bounds = array<i64: 64, 256>}, {pipeline_mode = #tpu.pipeline_mode<synchronous>, transform_indices = @transform_16, window_bounds = array<i64: 64, 24>}, {pipeline_mode = #tpu.pipeline_mode<synchronous>, transform_indices = @transform_17, window_bounds = array<i64: 1, 24>}, {pipeline_mode = #tpu.pipeline_mode<synchronous>, transform_indices = @transform_18, window_bounds = array<i64: 8, 64>}, {pipeline_mode = #tpu.pipeline_mode<synchronous>, transform_indices = @transform_19, window_bounds = array<i64: 1, 64>}, {pipeline_mode = #tpu.pipeline_mode<synchronous>, transform_indices = @transform_20, window_bounds = array<i64: 1, 1>}, {pipeline_mode = #tpu.pipeline_mode<synchronous>, transform_indices = @transform_21, window_bounds = array<i64: 4, 3, 4>}, {pipeline_mode = #tpu.pipeline_mode<synchronous>, transform_indices = @transform_22, window_bounds = array<i64: 1024, 96>}, {pipeline_mode = #tpu.pipeline_mode<synchronous>, transform_indices = @transform_23, window_bounds = array<i64: 1, 96>}, {pipeline_mode = #tpu.pipeline_mode<synchronous>, transform_indices = @transform_24, window_bounds = array<i64: 32, 96>}, {pipeline_mode = #tpu.pipeline_mode<synchronous>, transform_indices = @transform_25, window_bounds = array<i64: 4, 2, 3>}, {pipeline_mode = #tpu.pipeline_mode<synchronous>, transform_indices = @transform_26, window_bounds = array<i64: 384, 2>}, {pipeline_mode = #tpu.pipeline_mode<synchronous>, transform_indices = @transform_27, window_bounds = array<i64: 1, 2>}, {transform_indices = @transform_28, window_bounds = array<i64: 1, 2, 2>}]} {
    %c0 = arith.constant 0 : index
    %c0_0 = arith.constant 0 : index
    %c0_1 = arith.constant 0 : index
    %0 = vector.load %arg1[%c0, %c0_0, %c0_1] : memref<1x32x128xf32, #tpu.memory_space<vmem>>, vector<1x32x128xf32>
    %1 = vector.shape_cast %0 : vector<1x32x128xf32> to vector<32x128xf32>
    %2 = arith.truncf %1 : vector<32x128xf32> to vector<32x128xbf16>
    %c0_2 = arith.constant 0 : index
    %c0_3 = arith.constant 0 : index
    %c0_4 = arith.constant 0 : index
    %3 = vector.load %arg2[%c0_2, %c0_3, %c0_4] : memref<7x32x32xbf16, #tpu.memory_space<vmem>>, vector<1x32x32xbf16>
    %4 = vector.shape_cast %3 : vector<1x32x32xbf16> to vector<32x32xbf16>
    %cst = arith.constant dense<0.000000e+00> : vector<32x128xf32>
    %5 = tpu.matmul %4, %2, %cst {dimension_numbers = #tpu.dot_dimension_numbers<[1], [0], [0], [1], [0, 0, 1, 1], [], []>} : vector<32x32xbf16>, vector<32x128xbf16>, vector<32x128xf32> -> vector<32x128xf32>
    %6 = arith.truncf %5 : vector<32x128xf32> to vector<32x128xbf16>
    %c1 = arith.constant 1 : index
    %c0_5 = arith.constant 0 : index
    %c0_6 = arith.constant 0 : index
    %7 = vector.load %arg2[%c1, %c0_5, %c0_6] : memref<7x32x32xbf16, #tpu.memory_space<vmem>>, vector<1x32x32xbf16>
    %8 = vector.shape_cast %7 : vector<1x32x32xbf16> to vector<32x32xbf16>
    %cst_7 = arith.constant dense<0.000000e+00> : vector<32x128xf32>
    %9 = tpu.matmul %8, %2, %cst_7 {dimension_numbers = #tpu.dot_dimension_numbers<[1], [0], [0], [1], [0, 0, 1, 1], [], []>} : vector<32x32xbf16>, vector<32x128xbf16>, vector<32x128xf32> -> vector<32x128xf32>
    %10 = arith.truncf %9 : vector<32x128xf32> to vector<32x128xbf16>
    %c2 = arith.constant 2 : index
    %c0_8 = arith.constant 0 : index
    %c0_9 = arith.constant 0 : index
    %11 = vector.load %arg2[%c2, %c0_8, %c0_9] : memref<7x32x32xbf16, #tpu.memory_space<vmem>>, vector<1x32x32xbf16>
    %12 = vector.shape_cast %11 : vector<1x32x32xbf16> to vector<32x32xbf16>
    %cst_10 = arith.constant dense<0.000000e+00> : vector<32x128xf32>
    %13 = tpu.matmul %12, %2, %cst_10 {dimension_numbers = #tpu.dot_dimension_numbers<[1], [0], [0], [1], [0, 0, 1, 1], [], []>} : vector<32x32xbf16>, vector<32x128xbf16>, vector<32x128xf32> -> vector<32x128xf32>
    %14 = arith.truncf %13 : vector<32x128xf32> to vector<32x128xbf16>
    %c3 = arith.constant 3 : index
    %c0_11 = arith.constant 0 : index
    %c0_12 = arith.constant 0 : index
    %15 = vector.load %arg2[%c3, %c0_11, %c0_12] : memref<7x32x32xbf16, #tpu.memory_space<vmem>>, vector<1x32x32xbf16>
    %16 = vector.shape_cast %15 : vector<1x32x32xbf16> to vector<32x32xbf16>
    %cst_13 = arith.constant dense<0.000000e+00> : vector<32x128xf32>
    %17 = tpu.matmul %16, %2, %cst_13 {dimension_numbers = #tpu.dot_dimension_numbers<[1], [0], [0], [1], [0, 0, 1, 1], [], []>} : vector<32x32xbf16>, vector<32x128xbf16>, vector<32x128xf32> -> vector<32x128xf32>
    %18 = arith.truncf %17 : vector<32x128xf32> to vector<32x128xbf16>
    %c4 = arith.constant 4 : index
    %c0_14 = arith.constant 0 : index
    %c0_15 = arith.constant 0 : index
    %19 = vector.load %arg2[%c4, %c0_14, %c0_15] : memref<7x32x32xbf16, #tpu.memory_space<vmem>>, vector<1x32x32xbf16>
    %20 = vector.shape_cast %19 : vector<1x32x32xbf16> to vector<32x32xbf16>
    %cst_16 = arith.constant dense<0.000000e+00> : vector<32x128xf32>
    %21 = tpu.matmul %20, %2, %cst_16 {dimension_numbers = #tpu.dot_dimension_numbers<[1], [0], [0], [1], [0, 0, 1, 1], [], []>} : vector<32x32xbf16>, vector<32x128xbf16>, vector<32x128xf32> -> vector<32x128xf32>
    %22 = arith.truncf %21 : vector<32x128xf32> to vector<32x128xbf16>
    %c5 = arith.constant 5 : index
    %c0_17 = arith.constant 0 : index
    %c0_18 = arith.constant 0 : index
    %23 = vector.load %arg2[%c5, %c0_17, %c0_18] : memref<7x32x32xbf16, #tpu.memory_space<vmem>>, vector<1x32x32xbf16>
    %24 = vector.shape_cast %23 : vector<1x32x32xbf16> to vector<32x32xbf16>
    %cst_19 = arith.constant dense<0.000000e+00> : vector<32x128xf32>
    %25 = tpu.matmul %24, %2, %cst_19 {dimension_numbers = #tpu.dot_dimension_numbers<[1], [0], [0], [1], [0, 0, 1, 1], [], []>} : vector<32x32xbf16>, vector<32x128xbf16>, vector<32x128xf32> -> vector<32x128xf32>
    %26 = arith.truncf %25 : vector<32x128xf32> to vector<32x128xbf16>
    %c6 = arith.constant 6 : index
    %c0_20 = arith.constant 0 : index
    %c0_21 = arith.constant 0 : index
    %27 = vector.load %arg2[%c6, %c0_20, %c0_21] : memref<7x32x32xbf16, #tpu.memory_space<vmem>>, vector<1x32x32xbf16>
    %28 = vector.shape_cast %27 : vector<1x32x32xbf16> to vector<32x32xbf16>
    %cst_22 = arith.constant dense<0.000000e+00> : vector<32x128xf32>
    %29 = tpu.matmul %28, %2, %cst_22 {dimension_numbers = #tpu.dot_dimension_numbers<[1], [0], [0], [1], [0, 0, 1, 1], [], []>} : vector<32x32xbf16>, vector<32x128xbf16>, vector<32x128xf32> -> vector<32x128xf32>
    %30 = arith.truncf %29 : vector<32x128xf32> to vector<32x128xbf16>
    %31 = tpu.concatenate %6, %10, %14, %18, %22, %26, %30 in 1 : vector<32x128xbf16>, vector<32x128xbf16>, vector<32x128xbf16>, vector<32x128xbf16>, vector<32x128xbf16>, vector<32x128xbf16>, vector<32x128xbf16> -> vector<32x896xbf16>
    %c0_23 = arith.constant 0 : index
    %c0_24 = arith.constant 0 : index
    %32 = vector.load %arg3[%c0_23, %c0_24] : memref<896x256xbf16, #tpu.memory_space<vmem>>, vector<896x256xbf16>
    %cst_25 = arith.constant dense<0.000000e+00> : vector<32x256xf32>
    %33 = tpu.matmul %31, %32, %cst_25 {dimension_numbers = #tpu.dot_dimension_numbers<[1], [0], [0], [1], [0, 0, 1, 1], [], []>} : vector<32x896xbf16>, vector<896x256xbf16>, vector<32x256xf32> -> vector<32x256xf32>
    %c0_26 = arith.constant 0 : index
    %c0_27 = arith.constant 0 : index
    %34 = vector.load %arg4[%c0_26, %c0_27] : memref<1x256xf32, #tpu.memory_space<vmem>>, vector<1x256xf32>
    %35 = vector.broadcast %34 : vector<1x256xf32> to vector<32x256xf32>
    %36 = arith.addf %33, %35 : vector<32x256xf32>
    %cst_28 = arith.constant 0.000000e+00 : f32
    %37 = vector.broadcast %cst_28 : f32 to vector<32x256xf32>
    %38 = arith.cmpf oge, %36, %37 : vector<32x256xf32>
    %cst_29 = arith.constant 2.000000e-01 : f32
    %39 = vector.broadcast %cst_29 : f32 to vector<32x256xf32>
    %40 = arith.mulf %39, %36 : vector<32x256xf32>
    %41 = arith.select %38, %36, %40 : vector<32x256xi1>, vector<32x256xf32>
    %42 = arith.truncf %41 : vector<32x256xf32> to vector<32x256xbf16>
    %c0_30 = arith.constant 0 : index
    %c0_31 = arith.constant 0 : index
    %c0_32 = arith.constant 0 : index
    %43 = vector.load %arg5[%c0_30, %c0_31, %c0_32] : memref<4x16x32xbf16, #tpu.memory_space<vmem>>, vector<1x16x32xbf16>
    %44 = vector.shape_cast %43 : vector<1x16x32xbf16> to vector<16x32xbf16>
    %cst_33 = arith.constant dense<0.000000e+00> : vector<16x256xf32>
    %45 = tpu.matmul %44, %42, %cst_33 {dimension_numbers = #tpu.dot_dimension_numbers<[1], [0], [0], [1], [0, 0, 1, 1], [], []>} : vector<16x32xbf16>, vector<32x256xbf16>, vector<16x256xf32> -> vector<16x256xf32>
    %46 = arith.truncf %45 : vector<16x256xf32> to vector<16x256xbf16>
    %c1_34 = arith.constant 1 : index
    %c0_35 = arith.constant 0 : index
    %c0_36 = arith.constant 0 : index
    %47 = vector.load %arg5[%c1_34, %c0_35, %c0_36] : memref<4x16x32xbf16, #tpu.memory_space<vmem>>, vector<1x16x32xbf16>
    %48 = vector.shape_cast %47 : vector<1x16x32xbf16> to vector<16x32xbf16>
    %cst_37 = arith.constant dense<0.000000e+00> : vector<16x256xf32>
    %49 = tpu.matmul %48, %42, %cst_37 {dimension_numbers = #tpu.dot_dimension_numbers<[1], [0], [0], [1], [0, 0, 1, 1], [], []>} : vector<16x32xbf16>, vector<32x256xbf16>, vector<16x256xf32> -> vector<16x256xf32>
    %50 = arith.truncf %49 : vector<16x256xf32> to vector<16x256xbf16>
    %c2_38 = arith.constant 2 : index
    %c0_39 = arith.constant 0 : index
    %c0_40 = arith.constant 0 : index
    %51 = vector.load %arg5[%c2_38, %c0_39, %c0_40] : memref<4x16x32xbf16, #tpu.memory_space<vmem>>, vector<1x16x32xbf16>
    %52 = vector.shape_cast %51 : vector<1x16x32xbf16> to vector<16x32xbf16>
    %cst_41 = arith.constant dense<0.000000e+00> : vector<16x256xf32>
    %53 = tpu.matmul %52, %42, %cst_41 {dimension_numbers = #tpu.dot_dimension_numbers<[1], [0], [0], [1], [0, 0, 1, 1], [], []>} : vector<16x32xbf16>, vector<32x256xbf16>, vector<16x256xf32> -> vector<16x256xf32>
    %54 = arith.truncf %53 : vector<16x256xf32> to vector<16x256xbf16>
    %c3_42 = arith.constant 3 : index
    %c0_43 = arith.constant 0 : index
    %c0_44 = arith.constant 0 : index
    %55 = vector.load %arg5[%c3_42, %c0_43, %c0_44] : memref<4x16x32xbf16, #tpu.memory_space<vmem>>, vector<1x16x32xbf16>
    %56 = vector.shape_cast %55 : vector<1x16x32xbf16> to vector<16x32xbf16>
    %cst_45 = arith.constant dense<0.000000e+00> : vector<16x256xf32>
    %57 = tpu.matmul %56, %42, %cst_45 {dimension_numbers = #tpu.dot_dimension_numbers<[1], [0], [0], [1], [0, 0, 1, 1], [], []>} : vector<16x32xbf16>, vector<32x256xbf16>, vector<16x256xf32> -> vector<16x256xf32>
    %58 = arith.truncf %57 : vector<16x256xf32> to vector<16x256xbf16>
    %59 = tpu.concatenate %46, %50, %54, %58 in 1 : vector<16x256xbf16>, vector<16x256xbf16>, vector<16x256xbf16>, vector<16x256xbf16> -> vector<16x1024xbf16>
    %c0_46 = arith.constant 0 : index
    %c0_47 = arith.constant 0 : index
    %60 = vector.load %arg6[%c0_46, %c0_47] : memref<1024x256xbf16, #tpu.memory_space<vmem>>, vector<1024x256xbf16>
    %cst_48 = arith.constant dense<0.000000e+00> : vector<16x256xf32>
    %61 = tpu.matmul %59, %60, %cst_48 {dimension_numbers = #tpu.dot_dimension_numbers<[1], [0], [0], [1], [0, 0, 1, 1], [], []>} : vector<16x1024xbf16>, vector<1024x256xbf16>, vector<16x256xf32> -> vector<16x256xf32>
    %c0_49 = arith.constant 0 : index
    %c0_50 = arith.constant 0 : index
    %62 = vector.load %arg7[%c0_49, %c0_50] : memref<1x256xf32, #tpu.memory_space<vmem>>, vector<1x256xf32>
    %63 = vector.broadcast %62 : vector<1x256xf32> to vector<16x256xf32>
    %64 = arith.addf %61, %63 : vector<16x256xf32>
    %c0_51 = arith.constant 0 : index
    %c0_52 = arith.constant 0 : index
    %65 = vector.load %arg8[%c0_51, %c0_52] : memref<16x256xf32, #tpu.memory_space<vmem>>, vector<16x256xf32>
    %cst_53 = arith.constant dense<0.000000e+00> : vector<256xf32>
    %66 = vector.multi_reduction <add>, %64, %cst_53 [0] : vector<16x256xf32> to vector<256xf32>
    %67 = vector.shape_cast %66 : vector<256xf32> to vector<1x256xf32>
    %cst_54 = arith.constant dense<0.000000e+00> : vector<1x16xf32>
    %68 = tpu.matmul %67, %65, %cst_54 {dimension_numbers = #tpu.dot_dimension_numbers<[1], [1], [0], [0], [0, 0, 1, 0], [], []>} : vector<1x256xf32>, vector<16x256xf32>, vector<1x16xf32> -> vector<1x16xf32>
    %cst_55 = arith.constant 3.906250e-03 : f32
    %69 = vector.broadcast %cst_55 : f32 to vector<1x16xf32>
    %70 = arith.mulf %68, %69 : vector<1x16xf32>
    %cst_56 = arith.constant dense<0.000000e+00> : vector<1x256xf32>
    %71 = tpu.matmul %70, %65, %cst_56 {dimension_numbers = #tpu.dot_dimension_numbers<[1], [0], [0], [1], [0, 0, 1, 1], [], []>} : vector<1x16xf32>, vector<16x256xf32>, vector<1x256xf32> -> vector<1x256xf32>
    %72 = vector.broadcast %71 : vector<1x256xf32> to vector<16x256xf32>
    %73 = arith.subf %64, %72 : vector<16x256xf32>
    %74 = arith.mulf %73, %73 : vector<16x256xf32>
    %cst_57 = arith.constant dense<0.000000e+00> : vector<256xf32>
    %75 = vector.multi_reduction <add>, %74, %cst_57 [0] : vector<16x256xf32> to vector<256xf32>
    %76 = vector.shape_cast %75 : vector<256xf32> to vector<1x256xf32>
    %cst_58 = arith.constant dense<0.000000e+00> : vector<1x16xf32>
    %77 = tpu.matmul %76, %65, %cst_58 {dimension_numbers = #tpu.dot_dimension_numbers<[1], [1], [0], [0], [0, 0, 1, 0], [], []>} : vector<1x256xf32>, vector<16x256xf32>, vector<1x16xf32> -> vector<1x16xf32>
    %cst_59 = arith.constant 3.906250e-03 : f32
    %78 = vector.broadcast %cst_59 : f32 to vector<1x16xf32>
    %79 = arith.mulf %77, %78 : vector<1x16xf32>
    %cst_60 = arith.constant 9.99999974E-6 : f32
    %80 = vector.broadcast %cst_60 : f32 to vector<1x16xf32>
    %81 = arith.addf %79, %80 : vector<1x16xf32>
    %82 = math.rsqrt %81 : vector<1x16xf32>
    %cst_61 = arith.constant dense<0.000000e+00> : vector<1x256xf32>
    %83 = tpu.matmul %82, %65, %cst_61 {dimension_numbers = #tpu.dot_dimension_numbers<[1], [0], [0], [1], [0, 0, 1, 1], [], []>} : vector<1x16xf32>, vector<16x256xf32>, vector<1x256xf32> -> vector<1x256xf32>
    %84 = vector.broadcast %83 : vector<1x256xf32> to vector<16x256xf32>
    %85 = arith.mulf %73, %84 : vector<16x256xf32>
    %cst_62 = arith.constant 0.000000e+00 : f32
    %86 = vector.broadcast %cst_62 : f32 to vector<16x256xf32>
    %87 = arith.cmpf oge, %85, %86 : vector<16x256xf32>
    %cst_63 = arith.constant 2.000000e-01 : f32
    %88 = vector.broadcast %cst_63 : f32 to vector<16x256xf32>
    %89 = arith.mulf %88, %85 : vector<16x256xf32>
    %90 = arith.select %87, %85, %89 : vector<16x256xi1>, vector<16x256xf32>
    %91 = arith.truncf %90 : vector<16x256xf32> to vector<16x256xbf16>
    %c0_64 = arith.constant 0 : index
    %c0_65 = arith.constant 0 : index
    %c0_66 = arith.constant 0 : index
    %92 = vector.load %arg9[%c0_64, %c0_65, %c0_66] : memref<4x8x16xbf16, #tpu.memory_space<vmem>>, vector<1x8x16xbf16>
    %93 = vector.shape_cast %92 : vector<1x8x16xbf16> to vector<8x16xbf16>
    %cst_67 = arith.constant dense<0.000000e+00> : vector<8x256xf32>
    %94 = tpu.matmul %93, %91, %cst_67 {dimension_numbers = #tpu.dot_dimension_numbers<[1], [0], [0], [1], [0, 0, 1, 1], [], []>} : vector<8x16xbf16>, vector<16x256xbf16>, vector<8x256xf32> -> vector<8x256xf32>
    %95 = arith.truncf %94 : vector<8x256xf32> to vector<8x256xbf16>
    %c1_68 = arith.constant 1 : index
    %c0_69 = arith.constant 0 : index
    %c0_70 = arith.constant 0 : index
    %96 = vector.load %arg9[%c1_68, %c0_69, %c0_70] : memref<4x8x16xbf16, #tpu.memory_space<vmem>>, vector<1x8x16xbf16>
    %97 = vector.shape_cast %96 : vector<1x8x16xbf16> to vector<8x16xbf16>
    %cst_71 = arith.constant dense<0.000000e+00> : vector<8x256xf32>
    %98 = tpu.matmul %97, %91, %cst_71 {dimension_numbers = #tpu.dot_dimension_numbers<[1], [0], [0], [1], [0, 0, 1, 1], [], []>} : vector<8x16xbf16>, vector<16x256xbf16>, vector<8x256xf32> -> vector<8x256xf32>
    %99 = arith.truncf %98 : vector<8x256xf32> to vector<8x256xbf16>
    %c2_72 = arith.constant 2 : index
    %c0_73 = arith.constant 0 : index
    %c0_74 = arith.constant 0 : index
    %100 = vector.load %arg9[%c2_72, %c0_73, %c0_74] : memref<4x8x16xbf16, #tpu.memory_space<vmem>>, vector<1x8x16xbf16>
    %101 = vector.shape_cast %100 : vector<1x8x16xbf16> to vector<8x16xbf16>
    %cst_75 = arith.constant dense<0.000000e+00> : vector<8x256xf32>
    %102 = tpu.matmul %101, %91, %cst_75 {dimension_numbers = #tpu.dot_dimension_numbers<[1], [0], [0], [1], [0, 0, 1, 1], [], []>} : vector<8x16xbf16>, vector<16x256xbf16>, vector<8x256xf32> -> vector<8x256xf32>
    %103 = arith.truncf %102 : vector<8x256xf32> to vector<8x256xbf16>
    %c3_76 = arith.constant 3 : index
    %c0_77 = arith.constant 0 : index
    %c0_78 = arith.constant 0 : index
    %104 = vector.load %arg9[%c3_76, %c0_77, %c0_78] : memref<4x8x16xbf16, #tpu.memory_space<vmem>>, vector<1x8x16xbf16>
    %105 = vector.shape_cast %104 : vector<1x8x16xbf16> to vector<8x16xbf16>
    %cst_79 = arith.constant dense<0.000000e+00> : vector<8x256xf32>
    %106 = tpu.matmul %105, %91, %cst_79 {dimension_numbers = #tpu.dot_dimension_numbers<[1], [0], [0], [1], [0, 0, 1, 1], [], []>} : vector<8x16xbf16>, vector<16x256xbf16>, vector<8x256xf32> -> vector<8x256xf32>
    %107 = arith.truncf %106 : vector<8x256xf32> to vector<8x256xbf16>
    %108 = tpu.concatenate %95, %99, %103, %107 in 1 : vector<8x256xbf16>, vector<8x256xbf16>, vector<8x256xbf16>, vector<8x256xbf16> -> vector<8x1024xbf16>
    %c0_80 = arith.constant 0 : index
    %c0_81 = arith.constant 0 : index
    %109 = vector.load %arg10[%c0_80, %c0_81] : memref<1024x256xbf16, #tpu.memory_space<vmem>>, vector<1024x256xbf16>
    %cst_82 = arith.constant dense<0.000000e+00> : vector<8x256xf32>
    %110 = tpu.matmul %108, %109, %cst_82 {dimension_numbers = #tpu.dot_dimension_numbers<[1], [0], [0], [1], [0, 0, 1, 1], [], []>} : vector<8x1024xbf16>, vector<1024x256xbf16>, vector<8x256xf32> -> vector<8x256xf32>
    %c0_83 = arith.constant 0 : index
    %c0_84 = arith.constant 0 : index
    %111 = vector.load %arg11[%c0_83, %c0_84] : memref<1x256xf32, #tpu.memory_space<vmem>>, vector<1x256xf32>
    %112 = vector.broadcast %111 : vector<1x256xf32> to vector<8x256xf32>
    %113 = arith.addf %110, %112 : vector<8x256xf32>
    %c0_85 = arith.constant 0 : index
    %c0_86 = arith.constant 0 : index
    %114 = vector.load %arg12[%c0_85, %c0_86] : memref<32x256xf32, #tpu.memory_space<vmem>>, vector<32x256xf32>
    %cst_87 = arith.constant dense<0.000000e+00> : vector<256xf32>
    %115 = vector.multi_reduction <add>, %113, %cst_87 [0] : vector<8x256xf32> to vector<256xf32>
    %116 = vector.shape_cast %115 : vector<256xf32> to vector<1x256xf32>
    %cst_88 = arith.constant dense<0.000000e+00> : vector<1x32xf32>
    %117 = tpu.matmul %116, %114, %cst_88 {dimension_numbers = #tpu.dot_dimension_numbers<[1], [1], [0], [0], [0, 0, 1, 0], [], []>} : vector<1x256xf32>, vector<32x256xf32>, vector<1x32xf32> -> vector<1x32xf32>
    %cst_89 = arith.constant 1.562500e-02 : f32
    %118 = vector.broadcast %cst_89 : f32 to vector<1x32xf32>
    %119 = arith.mulf %117, %118 : vector<1x32xf32>
    %cst_90 = arith.constant dense<0.000000e+00> : vector<1x256xf32>
    %120 = tpu.matmul %119, %114, %cst_90 {dimension_numbers = #tpu.dot_dimension_numbers<[1], [0], [0], [1], [0, 0, 1, 1], [], []>} : vector<1x32xf32>, vector<32x256xf32>, vector<1x256xf32> -> vector<1x256xf32>
    %121 = vector.broadcast %120 : vector<1x256xf32> to vector<8x256xf32>
    %122 = arith.subf %113, %121 : vector<8x256xf32>
    %123 = arith.mulf %122, %122 : vector<8x256xf32>
    %cst_91 = arith.constant dense<0.000000e+00> : vector<256xf32>
    %124 = vector.multi_reduction <add>, %123, %cst_91 [0] : vector<8x256xf32> to vector<256xf32>
    %125 = vector.shape_cast %124 : vector<256xf32> to vector<1x256xf32>
    %cst_92 = arith.constant dense<0.000000e+00> : vector<1x32xf32>
    %126 = tpu.matmul %125, %114, %cst_92 {dimension_numbers = #tpu.dot_dimension_numbers<[1], [1], [0], [0], [0, 0, 1, 0], [], []>} : vector<1x256xf32>, vector<32x256xf32>, vector<1x32xf32> -> vector<1x32xf32>
    %cst_93 = arith.constant 1.562500e-02 : f32
    %127 = vector.broadcast %cst_93 : f32 to vector<1x32xf32>
    %128 = arith.mulf %126, %127 : vector<1x32xf32>
    %cst_94 = arith.constant 9.99999974E-6 : f32
    %129 = vector.broadcast %cst_94 : f32 to vector<1x32xf32>
    %130 = arith.addf %128, %129 : vector<1x32xf32>
    %131 = math.rsqrt %130 : vector<1x32xf32>
    %cst_95 = arith.constant dense<0.000000e+00> : vector<1x256xf32>
    %132 = tpu.matmul %131, %114, %cst_95 {dimension_numbers = #tpu.dot_dimension_numbers<[1], [0], [0], [1], [0, 0, 1, 1], [], []>} : vector<1x32xf32>, vector<32x256xf32>, vector<1x256xf32> -> vector<1x256xf32>
    %133 = vector.broadcast %132 : vector<1x256xf32> to vector<8x256xf32>
    %134 = arith.mulf %122, %133 : vector<8x256xf32>
    %cst_96 = arith.constant 0.000000e+00 : f32
    %135 = vector.broadcast %cst_96 : f32 to vector<8x256xf32>
    %136 = arith.cmpf oge, %134, %135 : vector<8x256xf32>
    %cst_97 = arith.constant 2.000000e-01 : f32
    %137 = vector.broadcast %cst_97 : f32 to vector<8x256xf32>
    %138 = arith.mulf %137, %134 : vector<8x256xf32>
    %139 = arith.select %136, %134, %138 : vector<8x256xi1>, vector<8x256xf32>
    %140 = arith.truncf %139 : vector<8x256xf32> to vector<8x256xbf16>
    %c0_98 = arith.constant 0 : index
    %c0_99 = arith.constant 0 : index
    %c0_100 = arith.constant 0 : index
    %141 = vector.load %arg13[%c0_98, %c0_99, %c0_100] : memref<4x4x8xbf16, #tpu.memory_space<vmem>>, vector<1x4x8xbf16>
    %142 = vector.shape_cast %141 : vector<1x4x8xbf16> to vector<4x8xbf16>
    %cst_101 = arith.constant dense<0.000000e+00> : vector<4x256xf32>
    %143 = tpu.matmul %142, %140, %cst_101 {dimension_numbers = #tpu.dot_dimension_numbers<[1], [0], [0], [1], [0, 0, 1, 1], [], []>} : vector<4x8xbf16>, vector<8x256xbf16>, vector<4x256xf32> -> vector<4x256xf32>
    %144 = arith.truncf %143 : vector<4x256xf32> to vector<4x256xbf16>
    %c1_102 = arith.constant 1 : index
    %c0_103 = arith.constant 0 : index
    %c0_104 = arith.constant 0 : index
    %145 = vector.load %arg13[%c1_102, %c0_103, %c0_104] : memref<4x4x8xbf16, #tpu.memory_space<vmem>>, vector<1x4x8xbf16>
    %146 = vector.shape_cast %145 : vector<1x4x8xbf16> to vector<4x8xbf16>
    %cst_105 = arith.constant dense<0.000000e+00> : vector<4x256xf32>
    %147 = tpu.matmul %146, %140, %cst_105 {dimension_numbers = #tpu.dot_dimension_numbers<[1], [0], [0], [1], [0, 0, 1, 1], [], []>} : vector<4x8xbf16>, vector<8x256xbf16>, vector<4x256xf32> -> vector<4x256xf32>
    %148 = arith.truncf %147 : vector<4x256xf32> to vector<4x256xbf16>
    %c2_106 = arith.constant 2 : index
    %c0_107 = arith.constant 0 : index
    %c0_108 = arith.constant 0 : index
    %149 = vector.load %arg13[%c2_106, %c0_107, %c0_108] : memref<4x4x8xbf16, #tpu.memory_space<vmem>>, vector<1x4x8xbf16>
    %150 = vector.shape_cast %149 : vector<1x4x8xbf16> to vector<4x8xbf16>
    %cst_109 = arith.constant dense<0.000000e+00> : vector<4x256xf32>
    %151 = tpu.matmul %150, %140, %cst_109 {dimension_numbers = #tpu.dot_dimension_numbers<[1], [0], [0], [1], [0, 0, 1, 1], [], []>} : vector<4x8xbf16>, vector<8x256xbf16>, vector<4x256xf32> -> vector<4x256xf32>
    %152 = arith.truncf %151 : vector<4x256xf32> to vector<4x256xbf16>
    %c3_110 = arith.constant 3 : index
    %c0_111 = arith.constant 0 : index
    %c0_112 = arith.constant 0 : index
    %153 = vector.load %arg13[%c3_110, %c0_111, %c0_112] : memref<4x4x8xbf16, #tpu.memory_space<vmem>>, vector<1x4x8xbf16>
    %154 = vector.shape_cast %153 : vector<1x4x8xbf16> to vector<4x8xbf16>
    %cst_113 = arith.constant dense<0.000000e+00> : vector<4x256xf32>
    %155 = tpu.matmul %154, %140, %cst_113 {dimension_numbers = #tpu.dot_dimension_numbers<[1], [0], [0], [1], [0, 0, 1, 1], [], []>} : vector<4x8xbf16>, vector<8x256xbf16>, vector<4x256xf32> -> vector<4x256xf32>
    %156 = arith.truncf %155 : vector<4x256xf32> to vector<4x256xbf16>
    %157 = tpu.concatenate %144, %148, %152, %156 in 1 : vector<4x256xbf16>, vector<4x256xbf16>, vector<4x256xbf16>, vector<4x256xbf16> -> vector<4x1024xbf16>
    %c0_114 = arith.constant 0 : index
    %c0_115 = arith.constant 0 : index
    %158 = vector.load %arg14[%c0_114, %c0_115] : memref<1024x256xbf16, #tpu.memory_space<vmem>>, vector<1024x256xbf16>
    %cst_116 = arith.constant dense<0.000000e+00> : vector<4x256xf32>
    %159 = tpu.matmul %157, %158, %cst_116 {dimension_numbers = #tpu.dot_dimension_numbers<[1], [0], [0], [1], [0, 0, 1, 1], [], []>} : vector<4x1024xbf16>, vector<1024x256xbf16>, vector<4x256xf32> -> vector<4x256xf32>
    %c0_117 = arith.constant 0 : index
    %c0_118 = arith.constant 0 : index
    %160 = vector.load %arg15[%c0_117, %c0_118] : memref<1x256xf32, #tpu.memory_space<vmem>>, vector<1x256xf32>
    %161 = vector.broadcast %160 : vector<1x256xf32> to vector<4x256xf32>
    %162 = arith.addf %159, %161 : vector<4x256xf32>
    %c0_119 = arith.constant 0 : index
    %c0_120 = arith.constant 0 : index
    %163 = vector.load %arg16[%c0_119, %c0_120] : memref<64x256xf32, #tpu.memory_space<vmem>>, vector<64x256xf32>
    %cst_121 = arith.constant dense<0.000000e+00> : vector<256xf32>
    %164 = vector.multi_reduction <add>, %162, %cst_121 [0] : vector<4x256xf32> to vector<256xf32>
    %165 = vector.shape_cast %164 : vector<256xf32> to vector<1x256xf32>
    %cst_122 = arith.constant dense<0.000000e+00> : vector<1x64xf32>
    %166 = tpu.matmul %165, %163, %cst_122 {dimension_numbers = #tpu.dot_dimension_numbers<[1], [1], [0], [0], [0, 0, 1, 0], [], []>} : vector<1x256xf32>, vector<64x256xf32>, vector<1x64xf32> -> vector<1x64xf32>
    %cst_123 = arith.constant 6.250000e-02 : f32
    %167 = vector.broadcast %cst_123 : f32 to vector<1x64xf32>
    %168 = arith.mulf %166, %167 : vector<1x64xf32>
    %cst_124 = arith.constant dense<0.000000e+00> : vector<1x256xf32>
    %169 = tpu.matmul %168, %163, %cst_124 {dimension_numbers = #tpu.dot_dimension_numbers<[1], [0], [0], [1], [0, 0, 1, 1], [], []>} : vector<1x64xf32>, vector<64x256xf32>, vector<1x256xf32> -> vector<1x256xf32>
    %170 = vector.broadcast %169 : vector<1x256xf32> to vector<4x256xf32>
    %171 = arith.subf %162, %170 : vector<4x256xf32>
    %172 = arith.mulf %171, %171 : vector<4x256xf32>
    %cst_125 = arith.constant dense<0.000000e+00> : vector<256xf32>
    %173 = vector.multi_reduction <add>, %172, %cst_125 [0] : vector<4x256xf32> to vector<256xf32>
    %174 = vector.shape_cast %173 : vector<256xf32> to vector<1x256xf32>
    %cst_126 = arith.constant dense<0.000000e+00> : vector<1x64xf32>
    %175 = tpu.matmul %174, %163, %cst_126 {dimension_numbers = #tpu.dot_dimension_numbers<[1], [1], [0], [0], [0, 0, 1, 0], [], []>} : vector<1x256xf32>, vector<64x256xf32>, vector<1x64xf32> -> vector<1x64xf32>
    %cst_127 = arith.constant 6.250000e-02 : f32
    %176 = vector.broadcast %cst_127 : f32 to vector<1x64xf32>
    %177 = arith.mulf %175, %176 : vector<1x64xf32>
    %cst_128 = arith.constant 9.99999974E-6 : f32
    %178 = vector.broadcast %cst_128 : f32 to vector<1x64xf32>
    %179 = arith.addf %177, %178 : vector<1x64xf32>
    %180 = math.rsqrt %179 : vector<1x64xf32>
    %cst_129 = arith.constant dense<0.000000e+00> : vector<1x256xf32>
    %181 = tpu.matmul %180, %163, %cst_129 {dimension_numbers = #tpu.dot_dimension_numbers<[1], [0], [0], [1], [0, 0, 1, 1], [], []>} : vector<1x64xf32>, vector<64x256xf32>, vector<1x256xf32> -> vector<1x256xf32>
    %182 = vector.broadcast %181 : vector<1x256xf32> to vector<4x256xf32>
    %183 = arith.mulf %171, %182 : vector<4x256xf32>
    %cst_130 = arith.constant 0.000000e+00 : f32
    %184 = vector.broadcast %cst_130 : f32 to vector<4x256xf32>
    %185 = arith.cmpf oge, %183, %184 : vector<4x256xf32>
    %cst_131 = arith.constant 2.000000e-01 : f32
    %186 = vector.broadcast %cst_131 : f32 to vector<4x256xf32>
    %187 = arith.mulf %186, %183 : vector<4x256xf32>
    %188 = arith.select %185, %183, %187 : vector<4x256xi1>, vector<4x256xf32>
    %189 = vector.extract_strided_slice %188 {offsets = [0, 0], sizes = [4, 64], strides = [1, 1]} : vector<4x256xf32> to vector<4x64xf32>
    %190 = vector.extract_strided_slice %188 {offsets = [0, 64], sizes = [4, 64], strides = [1, 1]} : vector<4x256xf32> to vector<4x64xf32>
    %191 = vector.extract_strided_slice %188 {offsets = [0, 128], sizes = [4, 64], strides = [1, 1]} : vector<4x256xf32> to vector<4x64xf32>
    %192 = vector.extract_strided_slice %188 {offsets = [0, 192], sizes = [4, 64], strides = [1, 1]} : vector<4x256xf32> to vector<4x64xf32>
    %193 = tpu.concatenate %189, %190, %191, %192 in 0 : vector<4x64xf32>, vector<4x64xf32>, vector<4x64xf32>, vector<4x64xf32> -> vector<16x64xf32>
    %194 = arith.truncf %193 : vector<16x64xf32> to vector<16x64xbf16>
    %c0_132 = arith.constant 0 : index
    %c0_133 = arith.constant 0 : index
    %195 = vector.load %arg17[%c0_132, %c0_133] : memref<64x24xbf16, #tpu.memory_space<vmem>>, vector<64x24xbf16>
    %cst_134 = arith.constant dense<0.000000e+00> : vector<16x24xf32>
    %196 = tpu.matmul %194, %195, %cst_134 {dimension_numbers = #tpu.dot_dimension_numbers<[1], [0], [0], [1], [0, 0, 1, 1], [], []>} : vector<16x64xbf16>, vector<64x24xbf16>, vector<16x24xf32> -> vector<16x24xf32>
    %c0_135 = arith.constant 0 : index
    %c0_136 = arith.constant 0 : index
    %197 = vector.load %arg18[%c0_135, %c0_136] : memref<1x24xf32, #tpu.memory_space<vmem>>, vector<1x24xf32>
    %198 = vector.broadcast %197 : vector<1x24xf32> to vector<16x24xf32>
    %199 = arith.addf %196, %198 : vector<16x24xf32>
    %200 = vector.extract_strided_slice %199 {offsets = [0, 0], sizes = [16, 8], strides = [1, 1]} : vector<16x24xf32> to vector<16x8xf32>
    %201 = vector.extract_strided_slice %199 {offsets = [0, 8], sizes = [16, 8], strides = [1, 1]} : vector<16x24xf32> to vector<16x8xf32>
    %202 = vector.extract_strided_slice %199 {offsets = [0, 16], sizes = [16, 8], strides = [1, 1]} : vector<16x24xf32> to vector<16x8xf32>
    %cst_137 = arith.constant dense<0.000000e+00> : vector<16x16xf32>
    %203 = tpu.matmul %200, %201, %cst_137 {dimension_numbers = #tpu.dot_dimension_numbers<[1], [1], [0], [0], [0, 0, 1, 0], [], []>} : vector<16x8xf32>, vector<16x8xf32>, vector<16x16xf32> -> vector<16x16xf32>
    %cst_138 = arith.constant dense<0xFF800000> : vector<16xf32>
    %204 = vector.multi_reduction <maximumf>, %203, %cst_138 [1] : vector<16x16xf32> to vector<16xf32>
    %205 = vector.shape_cast %204 : vector<16xf32> to vector<16x1xf32>
    %206 = vector.broadcast %205 : vector<16x1xf32> to vector<16x16xf32>
    %207 = arith.subf %203, %206 : vector<16x16xf32>
    %208 = math.exp %207 : vector<16x16xf32>
    %cst_139 = arith.constant dense<0.000000e+00> : vector<16xf32>
    %209 = vector.multi_reduction <add>, %208, %cst_139 [1] : vector<16x16xf32> to vector<16xf32>
    %210 = vector.shape_cast %209 : vector<16xf32> to vector<16x1xf32>
    %211 = vector.broadcast %210 : vector<16x1xf32> to vector<16x16xf32>
    %212 = arith.divf %208, %211 : vector<16x16xf32>
    %cst_140 = arith.constant dense<0.000000e+00> : vector<16x8xf32>
    %213 = tpu.matmul %212, %202, %cst_140 {dimension_numbers = #tpu.dot_dimension_numbers<[1], [0], [0], [1], [0, 0, 1, 1], [], []>} : vector<16x16xf32>, vector<16x8xf32>, vector<16x8xf32> -> vector<16x8xf32>
    %214 = arith.truncf %213 : vector<16x8xf32> to vector<16x8xbf16>
    %c0_141 = arith.constant 0 : index
    %c0_142 = arith.constant 0 : index
    %215 = vector.load %arg19[%c0_141, %c0_142] : memref<8x64xbf16, #tpu.memory_space<vmem>>, vector<8x64xbf16>
    %cst_143 = arith.constant dense<0.000000e+00> : vector<16x64xf32>
    %216 = tpu.matmul %214, %215, %cst_143 {dimension_numbers = #tpu.dot_dimension_numbers<[1], [0], [0], [1], [0, 0, 1, 1], [], []>} : vector<16x8xbf16>, vector<8x64xbf16>, vector<16x64xf32> -> vector<16x64xf32>
    %c0_144 = arith.constant 0 : index
    %c0_145 = arith.constant 0 : index
    %217 = vector.load %arg20[%c0_144, %c0_145] : memref<1x64xf32, #tpu.memory_space<vmem>>, vector<1x64xf32>
    %218 = vector.broadcast %217 : vector<1x64xf32> to vector<16x64xf32>
    %219 = arith.addf %216, %218 : vector<16x64xf32>
    %c0_146 = arith.constant 0 : index
    %c0_147 = arith.constant 0 : index
    %220 = vector.load %arg21[%c0_146, %c0_147] : memref<1x1xf32, #tpu.memory_space<vmem>>, vector<1x1xf32>
    %221 = vector.broadcast %220 : vector<1x1xf32> to vector<16x64xf32>
    %222 = arith.mulf %221, %219 : vector<16x64xf32>
    %223 = arith.addf %222, %193 : vector<16x64xf32>
    %224 = vector.extract_strided_slice %223 {offsets = [0, 0], sizes = [4, 64], strides = [1, 1]} : vector<16x64xf32> to vector<4x64xf32>
    %225 = vector.extract_strided_slice %223 {offsets = [4, 0], sizes = [4, 64], strides = [1, 1]} : vector<16x64xf32> to vector<4x64xf32>
    %226 = vector.extract_strided_slice %223 {offsets = [8, 0], sizes = [4, 64], strides = [1, 1]} : vector<16x64xf32> to vector<4x64xf32>
    %227 = vector.extract_strided_slice %223 {offsets = [12, 0], sizes = [4, 64], strides = [1, 1]} : vector<16x64xf32> to vector<4x64xf32>
    %228 = tpu.concatenate %224, %225, %226, %227 in 1 : vector<4x64xf32>, vector<4x64xf32>, vector<4x64xf32>, vector<4x64xf32> -> vector<4x256xf32>
    %229 = arith.truncf %228 : vector<4x256xf32> to vector<4x256xbf16>
    %c0_148 = arith.constant 0 : index
    %c0_149 = arith.constant 0 : index
    %c0_150 = arith.constant 0 : index
    %230 = vector.load %arg22[%c0_148, %c0_149, %c0_150] : memref<4x3x4xbf16, #tpu.memory_space<vmem>>, vector<1x3x4xbf16>
    %231 = vector.shape_cast %230 : vector<1x3x4xbf16> to vector<3x4xbf16>
    %cst_151 = arith.constant dense<0.000000e+00> : vector<3x256xf32>
    %232 = tpu.matmul %231, %229, %cst_151 {dimension_numbers = #tpu.dot_dimension_numbers<[1], [0], [0], [1], [0, 0, 1, 1], [], []>} : vector<3x4xbf16>, vector<4x256xbf16>, vector<3x256xf32> -> vector<3x256xf32>
    %233 = arith.truncf %232 : vector<3x256xf32> to vector<3x256xbf16>
    %c1_152 = arith.constant 1 : index
    %c0_153 = arith.constant 0 : index
    %c0_154 = arith.constant 0 : index
    %234 = vector.load %arg22[%c1_152, %c0_153, %c0_154] : memref<4x3x4xbf16, #tpu.memory_space<vmem>>, vector<1x3x4xbf16>
    %235 = vector.shape_cast %234 : vector<1x3x4xbf16> to vector<3x4xbf16>
    %cst_155 = arith.constant dense<0.000000e+00> : vector<3x256xf32>
    %236 = tpu.matmul %235, %229, %cst_155 {dimension_numbers = #tpu.dot_dimension_numbers<[1], [0], [0], [1], [0, 0, 1, 1], [], []>} : vector<3x4xbf16>, vector<4x256xbf16>, vector<3x256xf32> -> vector<3x256xf32>
    %237 = arith.truncf %236 : vector<3x256xf32> to vector<3x256xbf16>
    %c2_156 = arith.constant 2 : index
    %c0_157 = arith.constant 0 : index
    %c0_158 = arith.constant 0 : index
    %238 = vector.load %arg22[%c2_156, %c0_157, %c0_158] : memref<4x3x4xbf16, #tpu.memory_space<vmem>>, vector<1x3x4xbf16>
    %239 = vector.shape_cast %238 : vector<1x3x4xbf16> to vector<3x4xbf16>
    %cst_159 = arith.constant dense<0.000000e+00> : vector<3x256xf32>
    %240 = tpu.matmul %239, %229, %cst_159 {dimension_numbers = #tpu.dot_dimension_numbers<[1], [0], [0], [1], [0, 0, 1, 1], [], []>} : vector<3x4xbf16>, vector<4x256xbf16>, vector<3x256xf32> -> vector<3x256xf32>
    %241 = arith.truncf %240 : vector<3x256xf32> to vector<3x256xbf16>
    %c3_160 = arith.constant 3 : index
    %c0_161 = arith.constant 0 : index
    %c0_162 = arith.constant 0 : index
    %242 = vector.load %arg22[%c3_160, %c0_161, %c0_162] : memref<4x3x4xbf16, #tpu.memory_space<vmem>>, vector<1x3x4xbf16>
    %243 = vector.shape_cast %242 : vector<1x3x4xbf16> to vector<3x4xbf16>
    %cst_163 = arith.constant dense<0.000000e+00> : vector<3x256xf32>
    %244 = tpu.matmul %243, %229, %cst_163 {dimension_numbers = #tpu.dot_dimension_numbers<[1], [0], [0], [1], [0, 0, 1, 1], [], []>} : vector<3x4xbf16>, vector<4x256xbf16>, vector<3x256xf32> -> vector<3x256xf32>
    %245 = arith.truncf %244 : vector<3x256xf32> to vector<3x256xbf16>
    %246 = tpu.concatenate %233, %237, %241, %245 in 1 : vector<3x256xbf16>, vector<3x256xbf16>, vector<3x256xbf16>, vector<3x256xbf16> -> vector<3x1024xbf16>
    %c0_164 = arith.constant 0 : index
    %c0_165 = arith.constant 0 : index
    %247 = vector.load %arg23[%c0_164, %c0_165] : memref<1024x96xbf16, #tpu.memory_space<vmem>>, vector<1024x96xbf16>
    %cst_166 = arith.constant dense<0.000000e+00> : vector<3x96xf32>
    %248 = tpu.matmul %246, %247, %cst_166 {dimension_numbers = #tpu.dot_dimension_numbers<[1], [0], [0], [1], [0, 0, 1, 1], [], []>} : vector<3x1024xbf16>, vector<1024x96xbf16>, vector<3x96xf32> -> vector<3x96xf32>
    %c0_167 = arith.constant 0 : index
    %c0_168 = arith.constant 0 : index
    %249 = vector.load %arg24[%c0_167, %c0_168] : memref<1x96xf32, #tpu.memory_space<vmem>>, vector<1x96xf32>
    %250 = vector.broadcast %249 : vector<1x96xf32> to vector<3x96xf32>
    %251 = arith.addf %248, %250 : vector<3x96xf32>
    %c0_169 = arith.constant 0 : index
    %c0_170 = arith.constant 0 : index
    %252 = vector.load %arg25[%c0_169, %c0_170] : memref<32x96xf32, #tpu.memory_space<vmem>>, vector<32x96xf32>
    %cst_171 = arith.constant dense<0.000000e+00> : vector<96xf32>
    %253 = vector.multi_reduction <add>, %251, %cst_171 [0] : vector<3x96xf32> to vector<96xf32>
    %254 = vector.shape_cast %253 : vector<96xf32> to vector<1x96xf32>
    %cst_172 = arith.constant dense<0.000000e+00> : vector<1x32xf32>
    %255 = tpu.matmul %254, %252, %cst_172 {dimension_numbers = #tpu.dot_dimension_numbers<[1], [1], [0], [0], [0, 0, 1, 0], [], []>} : vector<1x96xf32>, vector<32x96xf32>, vector<1x32xf32> -> vector<1x32xf32>
    %cst_173 = arith.constant 0.111111112 : f32
    %256 = vector.broadcast %cst_173 : f32 to vector<1x32xf32>
    %257 = arith.mulf %255, %256 : vector<1x32xf32>
    %cst_174 = arith.constant dense<0.000000e+00> : vector<1x96xf32>
    %258 = tpu.matmul %257, %252, %cst_174 {dimension_numbers = #tpu.dot_dimension_numbers<[1], [0], [0], [1], [0, 0, 1, 1], [], []>} : vector<1x32xf32>, vector<32x96xf32>, vector<1x96xf32> -> vector<1x96xf32>
    %259 = vector.broadcast %258 : vector<1x96xf32> to vector<3x96xf32>
    %260 = arith.subf %251, %259 : vector<3x96xf32>
    %261 = arith.mulf %260, %260 : vector<3x96xf32>
    %cst_175 = arith.constant dense<0.000000e+00> : vector<96xf32>
    %262 = vector.multi_reduction <add>, %261, %cst_175 [0] : vector<3x96xf32> to vector<96xf32>
    %263 = vector.shape_cast %262 : vector<96xf32> to vector<1x96xf32>
    %cst_176 = arith.constant dense<0.000000e+00> : vector<1x32xf32>
    %264 = tpu.matmul %263, %252, %cst_176 {dimension_numbers = #tpu.dot_dimension_numbers<[1], [1], [0], [0], [0, 0, 1, 0], [], []>} : vector<1x96xf32>, vector<32x96xf32>, vector<1x32xf32> -> vector<1x32xf32>
    %cst_177 = arith.constant 0.111111112 : f32
    %265 = vector.broadcast %cst_177 : f32 to vector<1x32xf32>
    %266 = arith.mulf %264, %265 : vector<1x32xf32>
    %cst_178 = arith.constant 9.99999974E-6 : f32
    %267 = vector.broadcast %cst_178 : f32 to vector<1x32xf32>
    %268 = arith.addf %266, %267 : vector<1x32xf32>
    %269 = math.rsqrt %268 : vector<1x32xf32>
    %cst_179 = arith.constant dense<0.000000e+00> : vector<1x96xf32>
    %270 = tpu.matmul %269, %252, %cst_179 {dimension_numbers = #tpu.dot_dimension_numbers<[1], [0], [0], [1], [0, 0, 1, 1], [], []>} : vector<1x32xf32>, vector<32x96xf32>, vector<1x96xf32> -> vector<1x96xf32>
    %271 = vector.broadcast %270 : vector<1x96xf32> to vector<3x96xf32>
    %272 = arith.mulf %260, %271 : vector<3x96xf32>
    %cst_180 = arith.constant 0.000000e+00 : f32
    %273 = vector.broadcast %cst_180 : f32 to vector<3x96xf32>
    %274 = arith.cmpf oge, %272, %273 : vector<3x96xf32>
    %cst_181 = arith.constant 2.000000e-01 : f32
    %275 = vector.broadcast %cst_181 : f32 to vector<3x96xf32>
    %276 = arith.mulf %275, %272 : vector<3x96xf32>
    %277 = arith.select %274, %272, %276 : vector<3x96xi1>, vector<3x96xf32>
    %278 = arith.truncf %277 : vector<3x96xf32> to vector<3x96xbf16>
    %c0_182 = arith.constant 0 : index
    %c0_183 = arith.constant 0 : index
    %c0_184 = arith.constant 0 : index
    %279 = vector.load %arg26[%c0_182, %c0_183, %c0_184] : memref<4x2x3xbf16, #tpu.memory_space<vmem>>, vector<1x2x3xbf16>
    %280 = vector.shape_cast %279 : vector<1x2x3xbf16> to vector<2x3xbf16>
    %cst_185 = arith.constant dense<0.000000e+00> : vector<2x96xf32>
    %281 = tpu.matmul %280, %278, %cst_185 {dimension_numbers = #tpu.dot_dimension_numbers<[1], [0], [0], [1], [0, 0, 1, 1], [], []>} : vector<2x3xbf16>, vector<3x96xbf16>, vector<2x96xf32> -> vector<2x96xf32>
    %282 = arith.truncf %281 : vector<2x96xf32> to vector<2x96xbf16>
    %c1_186 = arith.constant 1 : index
    %c0_187 = arith.constant 0 : index
    %c0_188 = arith.constant 0 : index
    %283 = vector.load %arg26[%c1_186, %c0_187, %c0_188] : memref<4x2x3xbf16, #tpu.memory_space<vmem>>, vector<1x2x3xbf16>
    %284 = vector.shape_cast %283 : vector<1x2x3xbf16> to vector<2x3xbf16>
    %cst_189 = arith.constant dense<0.000000e+00> : vector<2x96xf32>
    %285 = tpu.matmul %284, %278, %cst_189 {dimension_numbers = #tpu.dot_dimension_numbers<[1], [0], [0], [1], [0, 0, 1, 1], [], []>} : vector<2x3xbf16>, vector<3x96xbf16>, vector<2x96xf32> -> vector<2x96xf32>
    %286 = arith.truncf %285 : vector<2x96xf32> to vector<2x96xbf16>
    %c2_190 = arith.constant 2 : index
    %c0_191 = arith.constant 0 : index
    %c0_192 = arith.constant 0 : index
    %287 = vector.load %arg26[%c2_190, %c0_191, %c0_192] : memref<4x2x3xbf16, #tpu.memory_space<vmem>>, vector<1x2x3xbf16>
    %288 = vector.shape_cast %287 : vector<1x2x3xbf16> to vector<2x3xbf16>
    %cst_193 = arith.constant dense<0.000000e+00> : vector<2x96xf32>
    %289 = tpu.matmul %288, %278, %cst_193 {dimension_numbers = #tpu.dot_dimension_numbers<[1], [0], [0], [1], [0, 0, 1, 1], [], []>} : vector<2x3xbf16>, vector<3x96xbf16>, vector<2x96xf32> -> vector<2x96xf32>
    %290 = arith.truncf %289 : vector<2x96xf32> to vector<2x96xbf16>
    %c3_194 = arith.constant 3 : index
    %c0_195 = arith.constant 0 : index
    %c0_196 = arith.constant 0 : index
    %291 = vector.load %arg26[%c3_194, %c0_195, %c0_196] : memref<4x2x3xbf16, #tpu.memory_space<vmem>>, vector<1x2x3xbf16>
    %292 = vector.shape_cast %291 : vector<1x2x3xbf16> to vector<2x3xbf16>
    %cst_197 = arith.constant dense<0.000000e+00> : vector<2x96xf32>
    %293 = tpu.matmul %292, %278, %cst_197 {dimension_numbers = #tpu.dot_dimension_numbers<[1], [0], [0], [1], [0, 0, 1, 1], [], []>} : vector<2x3xbf16>, vector<3x96xbf16>, vector<2x96xf32> -> vector<2x96xf32>
    %294 = arith.truncf %293 : vector<2x96xf32> to vector<2x96xbf16>
    %295 = tpu.concatenate %282, %286, %290, %294 in 1 : vector<2x96xbf16>, vector<2x96xbf16>, vector<2x96xbf16>, vector<2x96xbf16> -> vector<2x384xbf16>
    %c0_198 = arith.constant 0 : index
    %c0_199 = arith.constant 0 : index
    %296 = vector.load %arg27[%c0_198, %c0_199] : memref<384x2xbf16, #tpu.memory_space<vmem>>, vector<384x2xbf16>
    %cst_200 = arith.constant dense<0.000000e+00> : vector<2x2xf32>
    %297 = tpu.matmul %295, %296, %cst_200 {dimension_numbers = #tpu.dot_dimension_numbers<[1], [0], [0], [1], [0, 0, 1, 1], [], []>} : vector<2x384xbf16>, vector<384x2xbf16>, vector<2x2xf32> -> vector<2x2xf32>
    %c0_201 = arith.constant 0 : index
    %c0_202 = arith.constant 0 : index
    %298 = vector.load %arg28[%c0_201, %c0_202] : memref<1x2xf32, #tpu.memory_space<vmem>>, vector<1x2xf32>
    %299 = vector.broadcast %298 : vector<1x2xf32> to vector<2x2xf32>
    %300 = arith.addf %297, %299 : vector<2x2xf32>
    %c0_203 = arith.constant 0 : index
    %c0_204 = arith.constant 0 : index
    %c0_205 = arith.constant 0 : index
    %301 = vector.load %arg29[%c0_203, %c0_204, %c0_205] : memref<1x2x2xf32, #tpu.memory_space<vmem>>, vector<1x2x2xf32>
    %302 = vector.shape_cast %301 : vector<1x2x2xf32> to vector<2x2xf32>
    %303 = vector.shape_cast %300 : vector<2x2xf32> to vector<1x2x2xf32>
    tpu.vector_store %arg29[%c0_203, %c0_204, %c0_205], %303 {strides = array<i32>} : memref<1x2x2xf32, #tpu.memory_space<vmem>>, vector<1x2x2xf32>,
    return
  }
  func.func @transform_0(%arg0: i32) -> (i32, i32, i32) {
    %c0_i32 = arith.constant 0 : i32
    %c0_i32_0 = arith.constant 0 : i32
    %c0_i32_1 = arith.constant 0 : i32
    return %arg0, %c0_i32, %c0_i32_0 : i32, i32, i32
  }
  func.func @transform_1(%arg0: i32) -> (i32, i32, i32) {
    %c0_i32 = arith.constant 0 : i32
    %c0_i32_0 = arith.constant 0 : i32
    %c0_i32_1 = arith.constant 0 : i32
    %c0_i32_2 = arith.constant 0 : i32
    return %c0_i32, %c0_i32_0, %c0_i32_1 : i32, i32, i32
  }
  func.func @transform_2(%arg0: i32) -> (i32, i32) {
    %c0_i32 = arith.constant 0 : i32
    %c0_i32_0 = arith.constant 0 : i32
    %c0_i32_1 = arith.constant 0 : i32
    return %c0_i32, %c0_i32_0 : i32, i32
  }
  func.func @transform_3(%arg0: i32) -> (i32, i32) {
    %c0_i32 = arith.constant 0 : i32
    %c0_i32_0 = arith.constant 0 : i32
    %c0_i32_1 = arith.constant 0 : i32
    return %c0_i32, %c0_i32_0 : i32, i32
  }
  func.func @transform_4(%arg0: i32) -> (i32, i32, i32) {
    %c0_i32 = arith.constant 0 : i32
    %c0_i32_0 = arith.constant 0 : i32
    %c0_i32_1 = arith.constant 0 : i32
    %c0_i32_2 = arith.constant 0 : i32
    return %c0_i32, %c0_i32_0, %c0_i32_1 : i32, i32, i32
  }
  func.func @transform_5(%arg0: i32) -> (i32, i32) {
    %c0_i32 = arith.constant 0 : i32
    %c0_i32_0 = arith.constant 0 : i32
    %c0_i32_1 = arith.constant 0 : i32
    return %c0_i32, %c0_i32_0 : i32, i32
  }
  func.func @transform_6(%arg0: i32) -> (i32, i32) {
    %c0_i32 = arith.constant 0 : i32
    %c0_i32_0 = arith.constant 0 : i32
    %c0_i32_1 = arith.constant 0 : i32
    return %c0_i32, %c0_i32_0 : i32, i32
  }
  func.func @transform_7(%arg0: i32) -> (i32, i32) {
    %c0_i32 = arith.constant 0 : i32
    %c0_i32_0 = arith.constant 0 : i32
    %c0_i32_1 = arith.constant 0 : i32
    return %c0_i32, %c0_i32_0 : i32, i32
  }
  func.func @transform_8(%arg0: i32) -> (i32, i32, i32) {
    %c0_i32 = arith.constant 0 : i32
    %c0_i32_0 = arith.constant 0 : i32
    %c0_i32_1 = arith.constant 0 : i32
    %c0_i32_2 = arith.constant 0 : i32
    return %c0_i32, %c0_i32_0, %c0_i32_1 : i32, i32, i32
  }
  func.func @transform_9(%arg0: i32) -> (i32, i32) {
    %c0_i32 = arith.constant 0 : i32
    %c0_i32_0 = arith.constant 0 : i32
    %c0_i32_1 = arith.constant 0 : i32
    return %c0_i32, %c0_i32_0 : i32, i32
  }
  func.func @transform_10(%arg0: i32) -> (i32, i32) {
    %c0_i32 = arith.constant 0 : i32
    %c0_i32_0 = arith.constant 0 : i32
    %c0_i32_1 = arith.constant 0 : i32
    return %c0_i32, %c0_i32_0 : i32, i32
  }
  func.func @transform_11(%arg0: i32) -> (i32, i32) {
    %c0_i32 = arith.constant 0 : i32
    %c0_i32_0 = arith.constant 0 : i32
    %c0_i32_1 = arith.constant 0 : i32
    return %c0_i32, %c0_i32_0 : i32, i32
  }
  func.func @transform_12(%arg0: i32) -> (i32, i32, i32) {
    %c0_i32 = arith.constant 0 : i32
    %c0_i32_0 = arith.constant 0 : i32
    %c0_i32_1 = arith.constant 0 : i32
    %c0_i32_2 = arith.constant 0 : i32
    return %c0_i32, %c0_i32_0, %c0_i32_1 : i32, i32, i32
  }
  func.func @transform_13(%arg0: i32) -> (i32, i32) {
    %c0_i32 = arith.constant 0 : i32
    %c0_i32_0 = arith.constant 0 : i32
    %c0_i32_1 = arith.constant 0 : i32
    return %c0_i32, %c0_i32_0 : i32, i32
  }
  func.func @transform_14(%arg0: i32) -> (i32, i32) {
    %c0_i32 = arith.constant 0 : i32
    %c0_i32_0 = arith.constant 0 : i32
    %c0_i32_1 = arith.constant 0 : i32
    return %c0_i32, %c0_i32_0 : i32, i32
  }
  func.func @transform_15(%arg0: i32) -> (i32, i32) {
    %c0_i32 = arith.constant 0 : i32
    %c0_i32_0 = arith.constant 0 : i32
    %c0_i32_1 = arith.constant 0 : i32
    return %c0_i32, %c0_i32_0 : i32, i32
  }
  func.func @transform_16(%arg0: i32) -> (i32, i32) {
    %c0_i32 = arith.constant 0 : i32
    %c0_i32_0 = arith.constant 0 : i32
    %c0_i32_1 = arith.constant 0 : i32
    return %c0_i32, %c0_i32_0 : i32, i32
  }
  func.func @transform_17(%arg0: i32) -> (i32, i32) {
    %c0_i32 = arith.constant 0 : i32
    %c0_i32_0 = arith.constant 0 : i32
    %c0_i32_1 = arith.constant 0 : i32
    return %c0_i32, %c0_i32_0 : i32, i32
  }
  func.func @transform_18(%arg0: i32) -> (i32, i32) {
    %c0_i32 = arith.constant 0 : i32
    %c0_i32_0 = arith.constant 0 : i32
    %c0_i32_1 = arith.constant 0 : i32
    return %c0_i32, %c0_i32_0 : i32, i32
  }
  func.func @transform_19(%arg0: i32) -> (i32, i32) {
    %c0_i32 = arith.constant 0 : i32
    %c0_i32_0 = arith.constant 0 : i32
    %c0_i32_1 = arith.constant 0 : i32
    return %c0_i32, %c0_i32_0 : i32, i32
  }
  func.func @transform_20(%arg0: i32) -> (i32, i32) {
    %c0_i32 = arith.constant 0 : i32
    %c0_i32_0 = arith.constant 0 : i32
    %c0_i32_1 = arith.constant 0 : i32
    return %c0_i32, %c0_i32_0 : i32, i32
  }
  func.func @transform_21(%arg0: i32) -> (i32, i32, i32) {
    %c0_i32 = arith.constant 0 : i32
    %c0_i32_0 = arith.constant 0 : i32
    %c0_i32_1 = arith.constant 0 : i32
    %c0_i32_2 = arith.constant 0 : i32
    return %c0_i32, %c0_i32_0, %c0_i32_1 : i32, i32, i32
  }
  func.func @transform_22(%arg0: i32) -> (i32, i32) {
    %c0_i32 = arith.constant 0 : i32
    %c0_i32_0 = arith.constant 0 : i32
    %c0_i32_1 = arith.constant 0 : i32
    return %c0_i32, %c0_i32_0 : i32, i32
  }
  func.func @transform_23(%arg0: i32) -> (i32, i32) {
    %c0_i32 = arith.constant 0 : i32
    %c0_i32_0 = arith.constant 0 : i32
    %c0_i32_1 = arith.constant 0 : i32
    return %c0_i32, %c0_i32_0 : i32, i32
  }
  func.func @transform_24(%arg0: i32) -> (i32, i32) {
    %c0_i32 = arith.constant 0 : i32
    %c0_i32_0 = arith.constant 0 : i32
    %c0_i32_1 = arith.constant 0 : i32
    return %c0_i32, %c0_i32_0 : i32, i32
  }
  func.func @transform_25(%arg0: i32) -> (i32, i32, i32) {
    %c0_i32 = arith.constant 0 : i32
    %c0_i32_0 = arith.constant 0 : i32
    %c0_i32_1 = arith.constant 0 : i32
    %c0_i32_2 = arith.constant 0 : i32
    return %c0_i32, %c0_i32_0, %c0_i32_1 : i32, i32, i32
  }
  func.func @transform_26(%arg0: i32) -> (i32, i32) {
    %c0_i32 = arith.constant 0 : i32
    %c0_i32_0 = arith.constant 0 : i32
    %c0_i32_1 = arith.constant 0 : i32
    return %c0_i32, %c0_i32_0 : i32, i32
  }
  func.func @transform_27(%arg0: i32) -> (i32, i32) {
    %c0_i32 = arith.constant 0 : i32
    %c0_i32_0 = arith.constant 0 : i32
    %c0_i32_1 = arith.constant 0 : i32
    return %c0_i32, %c0_i32_0 : i32, i32
  }
  func.func @transform_28(%arg0: i32) -> (i32, i32, i32) {
    %c0_i32 = arith.constant 0 : i32
    %c0_i32_0 = arith.constant 0 : i32
    %c0_i32_1 = arith.constant 0 : i32
    return %arg0, %c0_i32, %c0_i32_0 : i32, i32, i32
  }
}

</mosaic_0001>

<bundles_post_ra>
// kernel: tile.33
= control target key start
LH: loop header
LB: loop body
LE: loop exit
PB: predicated region body
PF: predicated region fallthrough
CT: control target
= control target key end

     0   :  { %s40_s0 = inlined_call_operand.vmem [shape: f32[8], index: 0, kind: input, shape index: {}]   ;;  %s41_s1 = inlined_call_operand.vmem [shape: f32[32,8], index: 1, kind: output, shape index: {}]  }
   0x1   :  { %v4_v0 = vld [vmem:[%s40_s0] ss:$0 sm:$0xff] }
   0x2   :  { %5 = vst [vmem:[%s41_s1] sm:$0xff] %v4_v0 }
   0x3   :  { %12 = vst [vmem:[%s41_s1 + $0x8] sm:$0xff] %v4_v0 }
   0x4   :  { %13 = vst [vmem:[%s41_s1 + $0x10] sm:$0xff] %v4_v0 }
   0x5   :  { %14 = vst [vmem:[%s41_s1 + $0x18] sm:$0xff] %v4_v0 }

// kernel: tile.34
= control target key start
LH: loop header
LB: loop body
LE: loop exit
PB: predicated region body
PF: predicated region fallthrough
CT: control target
= control target key end

     0   :  { %s7_s6 = smov 3  ;;  %s21_s9 = smov 3  ;;  %vm4_vm0 = vcmask 64512   ;;  %vm11_vm1 = vcmask 1048512   ;;  %vm18_vm2 = vcmask 982912   ;;  %vm25_vm3 = vcmask 917312   ;;  %s233_s0 = inlined_call_operand.vmem [shape: f32[32,8], index: 0, kind: input, shape index: {}]   ;;  %s234_s1 = inlined_call_operand.vmem [shape: f32[1,256], index: 1, kind: output, shape index: {}]  }
   0x1   :  { %v123_v0 = vld [vmem:[%s233_s0 + $0xf] ss:$16 sm:%s7_s6]   ;;  %s154_s10 = smov 120   ;;  %v125_v1 = vld [vmem:[%s233_s0 + $0xd] ss:$16 sm:%s21_s9]   ;;  %s155_s13 = smov 104  }
   0x2   :  { %9 = vrot.lane.b32.xlu0 %v123_v0, %s154_s10  ;;  %23 = vrot.lane.b32.xlu1 %v125_v1, %s155_s13  ;;  %s14_s14 = smov 3  ;;  %s28_s15 = smov 3  ;;  %vm32_vm4 = vcmask 851712   ;;  %vm39_vm5 = vcmask 786112   ;;  %vm46_vm6 = vcmask 720512   ;;  %vm53_vm7 = vcmask 654912  }
   0x3   :  { %v124_v2 = vld [vmem:[%s233_s0 + $0xe] ss:$16 sm:%s14_s14]   ;;  %v126_v3 = vld [vmem:[%s233_s0 + $0xc] ss:$16 sm:%s28_s15]   ;;  %s35_s20 = smov 3  ;;  %s156_s23 = smov 112  }
   0x4   :  { %v127_v4 = vld [vmem:[%s233_s0 + $0xb] ss:$16 sm:%s35_s20]   ;;  %s157_s24 = smov 88   ;;  %s158_s25 = smov 96   ;;  %vm60_vm8 = vcmask 589312   ;;  %vm67_vm9 = vcmask 523712  }
   0x5   :  { %37 = vrot.lane.b32.xlu2 %v127_v4, %s157_s24  ;;  %s49_s26 = smov 3  ;;  %s42_s27 = smov 3  ;;  %vm74_vm10 = vcmask 458112   ;;  %vm81_vm11 = vcmask 392512   ;;  %vm88_vm12 = vcmask 326912   ;;  %vm95_vm13 = vcmask 261312  }
   0x6   :  { %s56_s28 = smov 3  ;;  %v129_v5 = vld [vmem:[%s233_s0 + $0x9] ss:$16 sm:%s49_s26]   ;;  %v128_v6 = vld [vmem:[%s233_s0 + $0xa] ss:$16 sm:%s42_s27]   ;;  %s159_s6 = smov 72  }
   0x7   :  { %v130_v7 = vld [vmem:[%s233_s0 + $0x8] ss:$16 sm:%s56_s28]   ;;  %s160_s7 = smov 80   ;;  %s161_s8 = smov 64   ;;  %vm102_vm14 = vcmask 195712   ;;  %vm109_vm15 = vcmask 130112  }
   0x8   :  { %s70_s9 = smov 3  ;;  %s63_s10 = smov 3 }
   0x9   :  { %s77_s11 = smov 3  ;;  %v132_v8 = vld [vmem:[%s233_s0 + $0x6] ss:$16 sm:%s70_s9]   ;;  %v131_v9 = vld [vmem:[%s233_s0 + $0x7] ss:$16 sm:%s63_s10]   ;;  %s162_s18 = smov 48  }
   0xa   :  { %16 = vrot.lane.b32.xlu0 %v124_v2, %s156_s23  ;;  %30 = vrot.lane.b32.xlu1 %v126_v3, %s158_s25  ;;  %v133_v10 = vld [vmem:[%s233_s0 + $0x5] ss:$16 sm:%s77_s11]   ;;  %s163_s19 = smov 56   ;;  %s164_s20 = smov 40  }
   0xb   :  { %s91_s21 = smov 3  ;;  %s84_s22 = smov 3 }
   0xc   :  { %s98_s23 = smov 3  ;;  %v135_v11 = vld [vmem:[%s233_s0 + $0x3] ss:$16 sm:%s91_s21]   ;;  %v134_v12 = vld [vmem:[%s233_s0 + $0x4] ss:$16 sm:%s84_s22]   ;;  %s165_s30 = smov 24  }
   0xd   :  { %44 = vrot.lane.b32.xlu2 %v128_v6, %s160_s7  ;;  %v136_v13 = vld [vmem:[%s233_s0 + $0x2] ss:$16 sm:%s98_s23]   ;;  %s166_s2 = smov 32   ;;  %s167_s3 = smov 16  }
   0xe   :  { %s105_s4 = smov 3  ;;  %s168_s7 = smov 8  }
   0xf   :  { %v137_v14 = vld [vmem:[%s233_s0 + $0x1] ss:$16 sm:%s105_s4]  }
  0x12   :  { %51 = vrot.lane.b32.xlu0 %v129_v5, %s159_s6  ;;  %58 = vrot.lane.b32.xlu1 %v130_v7, %s161_s8  ;;  %s2_s8 = smov 3 }
  0x13   :  { %v3_v15 = vld [vmem:[%s233_s0] ss:$16 sm:%s2_s8]  }
  0x14   :  { %5 = vst.msk [vmem:[#allocation0] ss:$8 sm:$0x3] %vm4_vm0, %v3_v15  }
  0x15   :  { %65 = vrot.lane.b32.xlu2 %v131_v9, %s163_s19 }
  0x1a   :  { %72 = vrot.lane.b32.xlu0 %v132_v8, %s162_s18  ;;  %79 = vrot.lane.b32.xlu1 %v133_v10, %s164_s20 }
  0x1d   :  { %86 = vrot.lane.b32.xlu2 %v134_v12, %s166_s2 }
  0x22   :  { %93 = vrot.lane.b32.xlu0 %v135_v11, %s165_s30  ;;  %100 = vrot.lane.b32.xlu1 %v136_v13, %s167_s3 }
  0x25   :  { %107 = vrot.lane.b32.xlu2 %v137_v14, %s168_s7 }
  0x5f   :  { %v38_v16 = vpop.permute.xlu2 %37  }
  0x67   :  { %v45_v17 = vpop.permute.xlu2 %44  }
  0x6f   :  { %v66_v19 = vpop.permute.xlu2 %65  }
  0x74   :  { %v10_v18 = vpop.permute.xlu0 %9   ;;  %v24_v20 = vpop.permute.xlu1 %23  }
  0x75   :  { %12 = vst.msk [vmem:[#allocation0] ss:$8 sm:$0x3] %vm11_vm1, %v10_v18  }
  0x77   :  { %v87_v22 = vpop.permute.xlu2 %86  }
  0x7c   :  { %v17_v21 = vpop.permute.xlu0 %16   ;;  %v31_v23 = vpop.permute.xlu1 %30  }
  0x7d   :  { %19 = vst.msk [vmem:[#allocation0] ss:$8 sm:$0x3] %vm18_vm2, %v17_v21  }
  0x7e   :  { %26 = vst.msk [vmem:[#allocation0] ss:$8 sm:$0x3] %vm25_vm3, %v24_v20  }
  0x7f   :  { %33 = vst.msk [vmem:[#allocation0] ss:$8 sm:$0x3] %vm32_vm4, %v31_v23   ;;  %v108_v25 = vpop.permute.xlu2 %107  }
  0x80   :  { %40 = vst.msk [vmem:[#allocation0] ss:$8 sm:$0x3] %vm39_vm5, %v38_v16  }
  0x81   :  { %47 = vst.msk [vmem:[#allocation0] ss:$8 sm:$0x3] %vm46_vm6, %v45_v17  }
  0x84   :  { %v52_v24 = vpop.permute.xlu0 %51   ;;  %v59_v26 = vpop.permute.xlu1 %58  }
  0x85   :  { %54 = vst.msk [vmem:[#allocation0] ss:$8 sm:$0x3] %vm53_vm7, %v52_v24  }
  0x86   :  { %61 = vst.msk [vmem:[#allocation0] ss:$8 sm:$0x3] %vm60_vm8, %v59_v26  }
  0x87   :  { %68 = vst.msk [vmem:[#allocation0] ss:$8 sm:$0x3] %vm67_vm9, %v66_v19  }
  0x8c   :  { %v73_v27 = vpop.permute.xlu0 %72   ;;  %v80_v28 = vpop.permute.xlu1 %79  }
  0x8d   :  { %75 = vst.msk [vmem:[#allocation0] ss:$8 sm:$0x3] %vm74_vm10, %v73_v27  }
  0x8e   :  { %82 = vst.msk [vmem:[#allocation0] ss:$8 sm:$0x3] %vm81_vm11, %v80_v28  }
  0x8f   :  { %89 = vst.msk [vmem:[#allocation0] ss:$8 sm:$0x3] %vm88_vm12, %v87_v22  }
  0x94   :  { %v94_v29 = vpop.permute.xlu0 %93   ;;  %v101_v30 = vpop.permute.xlu1 %100  }
  0x95   :  { %96 = vst.msk [vmem:[#allocation0] ss:$8 sm:$0x3] %vm95_vm13, %v94_v29  }
  0x96   :  { %103 = vst.msk [vmem:[#allocation0] ss:$8 sm:$0x3] %vm102_vm14, %v101_v30  }
  0x97   :  { %110 = vst.msk [vmem:[#allocation0] ss:$8 sm:$0x3] %vm109_vm15, %v108_v25  }
  0x9e   :  { %v113_v31 = vld [vmem:[#allocation0] sm:$0x1]  ;;  %v118_v32 = vld [vmem:[#allocation0 + $0x8] sm:$0x1] }
  0x9f   :  { %116 = vst [vmem:[%s234_s1] sm:$0x1] %v113_v31 }
  0xa0   :  { %138 = vst [vmem:[%s234_s1 + $0x1] sm:$0x1] %v118_v32 }

// kernel: tile.38
= control target key start
LH: loop header
LB: loop body
LE: loop exit
PB: predicated region body
PF: predicated region fallthrough
CT: control target
= control target key end

     0   :  { %s28_s0 = inlined_call_operand.vmem [shape: f32[16], index: 0, kind: input, shape index: {}]   ;;  %s29_s1 = inlined_call_operand.vmem [shape: f32[16,16], index: 1, kind: output, shape index: {}]  }
   0x1   :  { %v4_v0 = vld [vmem:[%s28_s0] ss:$0 sm:$0xff] }
   0x2   :  { %5 = vst [vmem:[%s29_s1] sm:$0xff] %v4_v0 }
   0x3   :  { %8 = vst [vmem:[%s29_s1 + $0x8] sm:$0xff] %v4_v0 }

// kernel: tile.39
= control target key start
LH: loop header
LB: loop body
LE: loop exit
PB: predicated region body
PF: predicated region fallthrough
CT: control target
= control target key end

     0   :  { %s7_s6 = smov 3  ;;  %s21_s9 = smov 3  ;;  %vm4_vm0 = vcmask 130048   ;;  %vm11_vm1 = vcmask 1048448   ;;  %vm18_vm2 = vcmask 917248   ;;  %vm25_vm3 = vcmask 786048   ;;  %s129_s0 = inlined_call_operand.vmem [shape: f32[16,16], index: 0, kind: input, shape index: {}]   ;;  %s130_s1 = inlined_call_operand.vmem [shape: f32[1,256], index: 1, kind: output, shape index: {}]  }
   0x1   :  { %v67_v0 = vld [vmem:[%s129_s0 + $0x7] ss:$8 sm:%s7_s6]   ;;  %s82_s10 = smov 112   ;;  %v69_v1 = vld [vmem:[%s129_s0 + $0x5] ss:$8 sm:%s21_s9]   ;;  %s83_s13 = smov 80  }
   0x2   :  { %9 = vrot.lane.b32.xlu0 %v67_v0, %s82_s10  ;;  %23 = vrot.lane.b32.xlu1 %v69_v1, %s83_s13  ;;  %s14_s14 = smov 3  ;;  %s28_s15 = smov 3  ;;  %vm32_vm4 = vcmask 654848   ;;  %vm39_vm5 = vcmask 523648   ;;  %vm46_vm6 = vcmask 392448   ;;  %vm53_vm7 = vcmask 261248  }
   0x3   :  { %s35_s16 = smov 3  ;;  %v68_v3 = vld [vmem:[%s129_s0 + $0x6] ss:$8 sm:%s14_s14]   ;;  %s84_s21 = smov 48   ;;  %v70_v4 = vld [vmem:[%s129_s0 + $0x4] ss:$8 sm:%s28_s15]  }
   0x4   :  { %v71_v2 = vld [vmem:[%s129_s0 + $0x3] ss:$8 sm:%s35_s16]   ;;  %s42_s24 = smov 3  ;;  %s85_s25 = smov 96  }
   0x5   :  { %37 = vrot.lane.b32.xlu2 %v71_v2, %s84_s21  ;;  %s86_s26 = smov 64   ;;  %s49_s27 = smov 3  ;;  %v72_v5 = vld [vmem:[%s129_s0 + $0x2] ss:$8 sm:%s42_s24]  }
   0x6   :  { %v73_v6 = vld [vmem:[%s129_s0 + $0x1] ss:$8 sm:%s49_s27]   ;;  %s87_s3 = smov 32   ;;  %s88_s4 = smov 16  }
   0x7   :  { %s2_s5 = smov 3 }
   0x8   :  { %v3_v7 = vld [vmem:[%s129_s0] ss:$8 sm:%s2_s5]  }
   0x9   :  { %5 = vst.msk [vmem:[#allocation0] ss:$8 sm:$0x3] %vm4_vm0, %v3_v7  }
   0xa   :  { %16 = vrot.lane.b32.xlu0 %v68_v3, %s85_s25  ;;  %30 = vrot.lane.b32.xlu1 %v70_v4, %s86_s26 }
   0xd   :  { %44 = vrot.lane.b32.xlu2 %v72_v5, %s87_s3 }
  0x12   :  { %51 = vrot.lane.b32.xlu0 %v73_v6, %s88_s4 }
  0x5f   :  { %v38_v8 = vpop.permute.xlu2 %37  }
  0x67   :  { %v45_v9 = vpop.permute.xlu2 %44  }
  0x74   :  { %v10_v10 = vpop.permute.xlu0 %9   ;;  %v24_v11 = vpop.permute.xlu1 %23  }
  0x75   :  { %12 = vst.msk [vmem:[#allocation0] ss:$8 sm:$0x3] %vm11_vm1, %v10_v10  }
  0x7c   :  { %v17_v12 = vpop.permute.xlu0 %16   ;;  %v31_v13 = vpop.permute.xlu1 %30  }
  0x7d   :  { %19 = vst.msk [vmem:[#allocation0] ss:$8 sm:$0x3] %vm18_vm2, %v17_v12  }
  0x7e   :  { %26 = vst.msk [vmem:[#allocation0] ss:$8 sm:$0x3] %vm25_vm3, %v24_v11  }
  0x7f   :  { %33 = vst.msk [vmem:[#allocation0] ss:$8 sm:$0x3] %vm32_vm4, %v31_v13  }
  0x80   :  { %40 = vst.msk [vmem:[#allocation0] ss:$8 sm:$0x3] %vm39_vm5, %v38_v8  }
  0x81   :  { %47 = vst.msk [vmem:[#allocation0] ss:$8 sm:$0x3] %vm46_vm6, %v45_v9  }
  0x84   :  { %v52_v14 = vpop.permute.xlu0 %51  }
  0x85   :  { %54 = vst.msk [vmem:[#allocation0] ss:$8 sm:$0x3] %vm53_vm7, %v52_v14  }
  0x8c   :  { %v57_v15 = vld [vmem:[#allocation0] sm:$0x1]  ;;  %v62_v16 = vld [vmem:[#allocation0 + $0x8] sm:$0x1] }
  0x8d   :  { %60 = vst [vmem:[%s130_s1] sm:$0x1] %v57_v15 }
  0x8e   :  { %74 = vst [vmem:[%s130_s1 + $0x1] sm:$0x1] %v62_v16 }

// kernel: tile.43
= control target key start
LH: loop header
LB: loop body
LE: loop exit
PB: predicated region body
PF: predicated region fallthrough
CT: control target
= control target key end

     0   :  { %s22_s0 = inlined_call_operand.vmem [shape: f32[32], index: 0, kind: input, shape index: {}]   ;;  %s23_s1 = inlined_call_operand.vmem [shape: f32[8,32], index: 1, kind: output, shape index: {}]  }
   0x1   :  { %v4_v0 = vld [vmem:[%s22_s0] ss:$0 sm:$0xff] }
   0x2   :  { %5 = vst [vmem:[%s23_s1] sm:$0xff] %v4_v0 }

// kernel: tile.44
= control target key start
LH: loop header
LB: loop body
LE: loop exit
PB: predicated region body
PF: predicated region fallthrough
CT: control target
= control target key end

     0   :  { %s7_s6 = smov 3  ;;  %s46_s9 = smov 96   ;;  %vm4_vm0 = vcmask 261120   ;;  %vm11_vm1 = vcmask 1048320   ;;  %vm18_vm2 = vcmask 785920   ;;  %vm25_vm3 = vcmask 523520   ;;  %s77_s0 = inlined_call_operand.vmem [shape: f32[8,32], index: 0, kind: input, shape index: {}]   ;;  %s78_s1 = inlined_call_operand.vmem [shape: f32[1,256], index: 1, kind: output, shape index: {}]  }
   0x1   :  { %v39_v0 = vld [vmem:[%s77_s0 + $0x3] ss:$4 sm:%s7_s6]   ;;  %s21_s10 = smov 3  ;;  %s14_s13 = smov 3 }
   0x2   :  { %9 = vrot.lane.b32.xlu0 %v39_v0, %s46_s9  ;;  %v41_v1 = vld [vmem:[%s77_s0 + $0x1] ss:$4 sm:%s21_s10]   ;;  %s47_s14 = smov 32   ;;  %s48_s17 = smov 64  }
   0x3   :  { %23 = vrot.lane.b32.xlu1 %v41_v1, %s47_s14  ;;  %v40_v2 = vld [vmem:[%s77_s0 + $0x2] ss:$4 sm:%s14_s13]   ;;  %s2_s18 = smov 3 }
   0x4   :  { %v3_v3 = vld [vmem:[%s77_s0] ss:$4 sm:%s2_s18]  }
   0x5   :  { %5 = vst.msk [vmem:[#allocation0] ss:$8 sm:$0x3] %vm4_vm0, %v3_v3  }
   0xa   :  { %16 = vrot.lane.b32.xlu0 %v40_v2, %s48_s17 }
  0x74   :  { %v10_v4 = vpop.permute.xlu0 %9  }
  0x75   :  { %12 = vst.msk [vmem:[#allocation0] ss:$8 sm:$0x3] %vm11_vm1, %v10_v4   ;;  %v24_v5 = vpop.permute.xlu1 %23  }
  0x7c   :  { %v17_v6 = vpop.permute.xlu0 %16  }
  0x7d   :  { %19 = vst.msk [vmem:[#allocation0] ss:$8 sm:$0x3] %vm18_vm2, %v17_v6  }
  0x7e   :  { %26 = vst.msk [vmem:[#allocation0] ss:$8 sm:$0x3] %vm25_vm3, %v24_v5  }
  0x85   :  { %v29_v7 = vld [vmem:[#allocation0] sm:$0x1]  ;;  %v34_v8 = vld [vmem:[#allocation0 + $0x8] sm:$0x1] }
  0x86   :  { %32 = vst [vmem:[%s78_s1] sm:$0x1] %v29_v7 }
  0x87   :  { %42 = vst [vmem:[%s78_s1 + $0x1] sm:$0x1] %v34_v8 }

// kernel: tile.48
= control target key start
LH: loop header
LB: loop body
LE: loop exit
PB: predicated region body
PF: predicated region fallthrough
CT: control target
= control target key end

     0   :  { %s22_s0 = inlined_call_operand.vmem [shape: f32[64], index: 0, kind: input, shape index: {}]   ;;  %s23_s1 = inlined_call_operand.vmem [shape: f32[4,64], index: 1, kind: output, shape index: {}]  }
   0x1   :  { %v4_v0 = vld [vmem:[%s22_s0] ss:$0 sm:$0xff] }
   0x2   :  { %5 = vst [vmem:[%s23_s1] sm:$0xf] %v4_v0 }

// kernel: tile.49
= control target key start
LH: loop header
LB: loop body
LE: loop exit
PB: predicated region body
PF: predicated region fallthrough
CT: control target
= control target key end

     0   :  { %s6_s8 = smov 3  ;;  %vm8_vm0 = vcmask 523264   ;;  %s31_s9 = smov 64   ;;  %vm15_vm1 = vcmask 1048064   ;;  %s51_s0 = inlined_call_operand.vmem [shape: f32[4,64], index: 0, kind: input, shape index: {}]   ;;  %s52_s1 = inlined_call_operand.vmem [shape: f32[1,256], index: 1, kind: output, shape index: {}]  }
   0x1   :  { %v4_v0 = vld [vmem:[%s51_s0] sm:$0xf]  ;;  %s11_s0 = smov 3 }
   0x2   :  { %5 = vst [vmem:[#allocation1] sm:$0xf] %v4_v0 }
   0x9   :  { %v12_v1 = vld [vmem:[#allocation1 + $0x1] ss:$2 sm:%s11_s0]   ;;  %v7_v2 = vld [vmem:[#allocation1] ss:$2 sm:%s6_s8]  }
   0xa   :  { %13 = vrot.lane.b32.xlu0 %v12_v1, %s31_s9  ;;  %9 = vst.msk [vmem:[#allocation0] ss:$8 sm:$0x3] %vm8_vm0, %v7_v2  }
  0x7c   :  { %v14_v3 = vpop.permute.xlu0 %13  }
  0x7d   :  { %16 = vst.msk [vmem:[#allocation0] ss:$8 sm:$0x3] %vm15_vm1, %v14_v3  }
  0x84   :  { %v19_v4 = vld [vmem:[#allocation0] sm:$0x1]  ;;  %v24_v5 = vld [vmem:[#allocation0 + $0x8] sm:$0x1] }
  0x85   :  { %22 = vst [vmem:[%s52_s1] sm:$0x1] %v19_v4 }
  0x86   :  { %29 = vst [vmem:[%s52_s1 + $0x1] sm:$0x1] %v24_v5 }

// kernel: tile.54
= control target key start
LH: loop header
LB: loop body
LE: loop exit
PB: predicated region body
PF: predicated region fallthrough
CT: control target
= control target key end

     0   :  { %s30_s8 = smov 32   ;;  %vm7_vm0 = vcmask 261120   ;;  %vm13_vm1 = vcmask 785920   ;;  %vm19_vm2 = vcmask 523520   ;;  %s47_s0 = inlined_call_operand.vmem [shape: f32[3,32], index: 0, kind: input, shape index: {}]   ;;  %s48_s1 = inlined_call_operand.vmem [shape: f32[1,96], index: 1, kind: output, shape index: {}]  }
   0x1   :  { %v4_v0 = vld [vmem:[%s47_s0] sm:$0xf]  ;;  %s29_s0 = smov 64  }
   0x2   :  { %5 = vst [vmem:[#allocation1] sm:$0xf] %v4_v0 }
   0x9   :  { %v10_v1 = vld [vmem:[#allocation1 + $0x2] sm:$0x1]   ;;  %v16_v2 = vld [vmem:[#allocation1 + $0x1] sm:$0x1]   ;;  %v6_v3 = vld [vmem:[#allocation1] sm:$0x1]  }
   0xa   :  { %11 = vrot.lane.b32.xlu0 %v10_v1, %s29_s0  ;;  %8 = vst.msk [vmem:[#allocation0] sm:$0x1] %vm7_vm0, %v6_v3  }
  0x12   :  { %17 = vrot.lane.b32.xlu0 %v16_v2, %s30_s8 }
  0x7c   :  { %v12_v4 = vpop.permute.xlu0 %11  }
  0x7d   :  { %14 = vst.msk [vmem:[#allocation0] sm:$0x1] %vm13_vm1, %v12_v4  }
  0x84   :  { %v18_v5 = vpop.permute.xlu0 %17  }
  0x85   :  { %20 = vst.msk [vmem:[#allocation0] sm:$0x1] %vm19_vm2, %v18_v5  }
  0x8c   :  { %v23_v6 = vld [vmem:[#allocation0] sm:$0x1] }
  0x8d   :  { %26 = vst [vmem:[%s48_s1] sm:$0x1] %v23_v6 }

// kernel: patch_discriminator70.1
= control target key start
LH: loop header
LB: loop body
LE: loop exit
PB: predicated region body
PF: predicated region fallthrough
CT: control target
= control target key end

     0   :  { %s15366_s0 = inlined_call_operand.vmem [shape: f32[2,32,128], index: 0, kind: input, shape index: {}]   ;;  %s15367_s1 = inlined_call_operand.vmem [shape: bf16[7,32,32], index: 1, kind: input, shape index: {}]   ;;  %s15368_s2 = inlined_call_operand.vmem [shape: bf16[896,256], index: 2, kind: input, shape index: {}]   ;;  %s15369_s3 = inlined_call_operand.vmem [shape: f32[1,256], index: 3, kind: input, shape index: {}]   ;;  %s15370_s4 = inlined_call_operand.vmem [shape: bf16[4,16,32], index: 4, kind: input, shape index: {}]   ;;  %s15371_s5 = inlined_call_operand.vmem [shape: bf16[1024,256], index: 5, kind: input, shape index: {}]   ;;  %s15372_s6 = inlined_call_operand.vmem [shape: f32[1,256], index: 6, kind: input, shape index: {}]   ;;  %s15373_s7 = inlined_call_operand.vmem [shape: f32[16,256], index: 7, kind: input, shape index: {}]   ;;  %s15374_s8 = inlined_call_operand.vmem [shape: bf16[4,8,16], index: 8, kind: input, shape index: {}]   ;;  %s15375_s9 = inlined_call_operand.vmem [shape: bf16[1024,256], index: 9, kind: input, shape index: {}]   ;;  %s15376_s10 = inlined_call_operand.vmem [shape: f32[1,256], index: 10, kind: input, shape index: {}]   ;;  %s15377_s11 = inlined_call_operand.vmem [shape: f32[32,256], index: 11, kind: input, shape index: {}]   ;;  %s15378_s12 = inlined_call_operand.vmem [shape: bf16[4,4,8], index: 12, kind: input, shape index: {}]   ;;  %s15379_s13 = inlined_call_operand.vmem [shape: bf16[1024,256], index: 13, kind: input, shape index: {}]   ;;  %s15380_s14 = inlined_call_operand.vmem [shape: f32[1,256], index: 14, kind: input, shape index: {}]   ;;  %s15381_s15 = inlined_call_operand.vmem [shape: f32[64,256], index: 15, kind: input, shape index: {}]   ;;  %s15382_s16 = inlined_call_operand.vmem [shape: bf16[64,24], index: 16, kind: input, shape index: {}]   ;;  %s15383_s17 = inlined_call_operand.vmem [shape: f32[1,24], index: 17, kind: input, shape index: {}]   ;;  %s15384_s18 = inlined_call_operand.vmem [shape: bf16[8,64], index: 18, kind: input, shape index: {}]   ;;  %s15385_s19 = inlined_call_operand.vmem [shape: f32[1,64], index: 19, kind: input, shape index: {}]   ;;  %s15386_s20 = inlined_call_operand.<no memory space> [shape: f32[1,1], index: 20, kind: input, shape index: {}]   ;;  %s15387_s21 = inlined_call_operand.vmem [shape: bf16[4,3,4], index: 21, kind: input, shape index: {}]   ;;  %s15388_s22 = inlined_call_operand.vmem [shape: bf16[1024,96], index: 22, kind: input, shape index: {}]   ;;  %s15389_s23 = inlined_call_operand.vmem [shape: f32[1,96], index: 23, kind: input, shape index: {}]   ;;  %s15390_s24 = inlined_call_operand.vmem [shape: f32[32,96], index: 24, kind: input, shape index: {}]   ;;  %s15391_s25 = inlined_call_operand.vmem [shape: bf16[4,2,3], index: 25, kind: input, shape index: {}]   ;;  %s15392_s26 = inlined_call_operand.vmem [shape: bf16[384,2], index: 26, kind: input, shape index: {}]   ;;  %s15393_s27 = inlined_call_operand.vmem [shape: f32[1,2], index: 27, kind: input, shape index: {}]   ;;  %s15394_s28 = inlined_call_operand.hbm [shape: f32[2,2,2], index: 28, kind: output, shape index: {}]  }
   0x1   :  { %15421 = sst [smem:[#allocation13_spill]] %s15366_s0  ;;  %v33_v0 = vstv %s15386_s20 }
   0x2   :  { %15422 = sst [smem:[#allocation14_spill]] %s15367_s1  ;;  %34 = vst [vmem:[#allocation2] sm:$0x1] %v33_v0 }
   0x3   :  { %15423 = sst [smem:[#allocation15_spill]] %s15368_s2 }
   0x4   :  { %15424 = sst [smem:[#allocation16_spill]] %s15369_s3 }
   0x5   :  { %15425 = sst [smem:[#allocation17_spill]] %s15370_s4 }
   0x6   :  { %15426 = sst [smem:[#allocation18_spill]] %s15371_s5 }
   0x7   :  { %15427 = sst [smem:[#allocation19_spill]] %s15372_s6 }
   0x8   :  { %15428 = sst [smem:[#allocation20_spill]] %s15373_s7 }
   0x9   :  { %15429 = sst [smem:[#allocation21_spill]] %s15374_s8 }
   0xa   :  { %15430 = sst [smem:[#allocation22_spill]] %s15375_s9 }
   0xb   :  { %15431 = sst [smem:[#allocation23_spill]] %s15376_s10 }
   0xc   :  { %15432 = sst [smem:[#allocation24_spill]] %s15377_s11 }
   0xd   :  { %15433 = sst [smem:[#allocation25_spill]] %s15378_s12 }
   0xe   :  { %35 = vsyncpa [#allocation4], 0 }
   0xf   :  { %37 = vsyncpa [#allocation4 + $0x1], 0  ;;  %s11457_s9 = smov 0   ;;  %s11459_s30 = smov 0  }
  0x10   :  { %s11461_s3 = smov 0   ;;  %s11463_s6 = smov 0  }
  0x11 LB: > { %15434 = sst [smem:[#allocation6_spill]] %s11288_s9  ;;  %s11478_s20 = sadd.s32 4294967295, %s11300_s6   ;;  %s11300_s6 = sphi %s11463_s6, %s15462_s6   ;;  %s11296_s3 = sphi %s11461_s3, %s15467_s3   ;;  %s11292_s30 = sphi %s11459_s30, %s15466_s30   ;;  %s11288_s9 = sphi %s11457_s9, %s15465_s9  }
  0x12   : > { %15435 = sst [smem:[#allocation7_spill]] %s11296_s3  ;;  %s7996_s10 = sadd.s32 4294967294, %s11300_s6  }
  0x13   : > { %15436 = sst [smem:[#allocation8_spill]] %s11300_s6  ;;  %s11482_s0 = sadd.s32 1, %s11300_s6  }
  0x14   : > { %15437 = sst [smem:[#allocation9_spill]] %s11482_s0  ;;  %s643_s11 = sadd.s32 1, %s11296_s3 }
  0x15   : > { %s640_s29 = ssub.s32 %s11300_s6, %s11482_s0  ;;  %p653_p0 = scmp.ne.s32.totalorder %s11296_s3, %s11292_s30 }
  0x16   : > { %p641_p1 = scmp.eq.s32.totalorder %s640_s29, 0  ;;  %p654_p2 = scmp.eq.s32.totalorder %s11478_s20, 1 }
  0x17   : > { %p659_p3 = scmp.ne.s32.totalorder %s11292_s30, %s11288_s9  ;;  %p660_p4 = scmp.eq.s32.totalorder %s7996_s10, 1 }
  0x18   : > { %s11493_s2 = scalar_select %p641_p1, %s11296_s3, %s643_s11  }
  0x19   : > { %p11495_p5 = por %p654_p2, %p653_p0  ;;  %p11499_p6 = por %p660_p4, %p659_p3 }
  0x1a   : > { %15438 = sst [smem:[#allocation10_spill]] %s11493_s2  ;;  %p7999_p7 = scmp.ge.s32.totalorder %s11300_s6, 1 }
  0x1b   : > { %s15439_s7 = scalar_select %p11495_p5, 1, 0 }
  0x1c   : > { %s15441_s12 = scalar_select %p11499_p6, 1, 0 }
  0x1d   : > { %15440 = sst [smem:[#allocation11_spill]] %s15439_s7  ;;  %p767_p8 = scmp.lt.s32.totalorder %s11300_s6, 3 }
  0x1e   : > { %15442 = sst [smem:[#allocation12_spill]] %s15441_s12 }
  0x1f   : > { %p768_p9 = pnand %p7999_p7, %p767_p8 }
  0x20   : > { %p841_p10 = scmp.lt.s32.totalorder (!%p768_p9), %s11478_s20, 1  ;;  %s15443_s10 = sld [smem:[#allocation13_spill]] (!%p768_p9) }
  0x21   : > { %771 = sbr.rel (%p768_p9) target bundleno = 5712 (0x1650), region = 132  ;;  %s15444_s3 = sld [smem:[#allocation14_spill]] (!%p768_p9) }
  0x22   : > { %s15447_s8 = sld [smem:[#allocation16_spill]] (!%p768_p9)  ;;  %s11303_s6 = smov (!%p768_p9), 120  }
  0x23   : > { %s15448_s5 = sld [smem:[#allocation17_spill]] (!%p768_p9)  ;;  %s11307_s7 = smov (!%p768_p9), 96  }
  0x24   : > { %s15450_s2 = sld [smem:[#allocation19_spill]] (!%p768_p9)  ;;  %s11308_s9 = smov (!%p768_p9), 32  }
  0x25   : > { %s15451_s29 = sld [smem:[#allocation20_spill]] (!%p768_p9)  ;;  %s11258_s12 = scalar_lea.hbm (!%p768_p9), %s15394_s28, 4 }
  0x26   : > { %s842_s1 = scalar_select %p841_p10, %s11478_s20, 1  ;;  %vm867_vm0 = vcmask 261120   ;;  %vm3477_vm9 = vcmask 130048  }
  0x27   : > { %s15445_s0 = smov %s15444_s3  ;;  %v10556_v7 = vld [vmem:[%s15444_s3] sm:$0xff]  ;;  %s15455_s3 = sld [smem:[#allocation23_spill]] }
  0x28   : > { %s10555_s4 = sshll.u32 %s842_s1, 5  ;;  %v10557_v8 = vld [vmem:[%s15445_s0 + $0x8] sm:$0xff]  ;;  %v10558_v9 = vld [vmem:[%s15445_s0 + $0x10] sm:$0xff]  ;;  %v10560_v11 = vld [vmem:[%s15445_s0 + $0x20] sm:$0xff]  ;;  %s15449_s1 = sld [smem:[#allocation18_spill]] }
  0x29   : > { %s845_s11 = scalar_lea.vmem %s15443_s10, %s10555_s4  ;;  %v10562_v10 = vld [vmem:[%s15445_s0 + $0x30] sm:$0xff]  ;;  %v10564_v12 = vld [vmem:[%s15445_s0 + $0x40] sm:$0xff]  ;;  %v10559_v13 = vld [vmem:[%s15445_s0 + $0x18] sm:$0xff]  ;;  %s15446_s4 = sld [smem:[#allocation15_spill]] }
  0x2a   : > { %v849_v1 = vld [vmem:[%s845_s11 + $0x10] sm:$0xff]  ;;  %v850_v2 = vld [vmem:[%s845_s11 + $0x18] sm:$0xff]  ;;  %v847_v3 = vld [vmem:[%s845_s11] sm:$0xff]  ;;  %s11302_s10 = smov 64  }
  0x2b   : > { %v852_v4 = vpack.c.bf16 %v850_v2, %v849_v1  ;;  %v848_v5 = vld [vmem:[%s845_s11 + $0x8] sm:$0xff]  ;;  %v10563_v14 = vld [vmem:[%s15445_s0 + $0x38] sm:$0xff]  ;;  %v10566_v17 = vld [vmem:[%s15445_s0 + $0x50] sm:$0xff] }
  0x2c   : > { %v851_v6 = vpack.c.bf16 %v848_v5, %v847_v3  ;;  %v10561_v15 = vld [vmem:[%s15445_s0 + $0x28] sm:$0xff]  ;;  %v10568_v50 = vld [vmem:[%s15445_s0 + $0x60] sm:$0xff]  ;;  %v10567_v52 = vld [vmem:[%s15445_s0 + $0x58] sm:$0xff] }
  0x2d   : > { %880 = vmatpush.bf16.msra.mxu0 %v852_v4  ;;  %11162 = vmatpush.bf16.msra.mxu2 %v852_v4  ;;  %v10565_v16 = vld [vmem:[%s15445_s0 + $0x48] sm:$0xff] }
  0x2e   : > { %924 = vmatpush.bf16.msra.mxu1 %v852_v4  ;;  %1012 = vmatpush.bf16.msra.mxu3 %v852_v4  ;;  %v10569_v53 = vld [vmem:[%s15445_s0 + $0x68] sm:$0xff]  ;;  %s11304_s0 = smov 112  }
  0x2f   : > { %v8155_v18 = vld [vmem:[%s15446_s4 + $0x70] sm:$0xf]  ;;  %v10585_v19 = vld [vmem:[%s15446_s4 + $0x74] sm:$0xf0]  ;;  %v8147_v23 = vld [vmem:[%s15446_s4 + $0x60] sm:$0xf] }
  0x30   : > { %v8219_v20 = vld [vmem:[%s15446_s4 + $0xf0] sm:$0xf]  ;;  %v8156_v21 = vor.u32 %v10585_v19, %v8155_v18  ;;  %v10601_v22 = vld [vmem:[%s15446_s4 + $0xf4] sm:$0xf0]  ;;  %v10583_v24 = vld [vmem:[%s15446_s4 + $0x64] sm:$0xf0] }
  0x31   : > { %881 = vmatpush.bf16.msra.mxu0 %v851_v6  ;;  %11163 = vmatpush.bf16.msra.mxu2 %v851_v6  ;;  %v8220_v25 = vor.u32 %v10601_v22, %v8219_v20  ;;  %v8211_v26 = vld [vmem:[%s15446_s4 + $0xe0] sm:$0xf]  ;;  %v10599_v27 = vld [vmem:[%s15446_s4 + $0xe4] sm:$0xf0]  ;;  %v8347_v28 = vld [vmem:[%s15446_s4 + $0x1f0] sm:$0xf]  ;;  %v8148_v29 = vor.u32 %v10583_v24, %v8147_v23 }
  0x32   : > { %925 = vmatpush.bf16.msra.mxu1 %v851_v6  ;;  %1013 = vmatpush.bf16.msra.mxu3 %v851_v6  ;;  %v10633_v30 = vld [vmem:[%s15446_s4 + $0x1f4] sm:$0xf0]  ;;  %v8212_v31 = vor.u32 %v10599_v27, %v8211_v26  ;;  %v8139_v33 = vld [vmem:[%s15446_s4 + $0x50] sm:$0xf]  ;;  %v8339_v35 = vld [vmem:[%s15446_s4 + $0x1e0] sm:$0xf] }
  0x33   : > { %v8348_v32 = vor.u32 %v10633_v30, %v8347_v28  ;;  %v10581_v34 = vld [vmem:[%s15446_s4 + $0x54] sm:$0xf0]  ;;  %v8203_v36 = vld [vmem:[%s15446_s4 + $0xd0] sm:$0xf]  ;;  %v10631_v38 = vld [vmem:[%s15446_s4 + $0x1e4] sm:$0xf0] }
  0x34   : > { %8011 = vmatmul.msk.bf16.vlgmr.msra.gmra.mxu0 %vm867_vm0, %v10556_v7  ;;  %8012 = vmatmul.msk.bf16.vlgmr.msra.gmra.mxu2 %vm867_vm0, %v10557_v8  ;;  %v10597_v37 = vld [vmem:[%s15446_s4 + $0xd4] sm:$0xf0]  ;;  %v8340_v39 = vor.u32 %v10631_v38, %v8339_v35  ;;  %v8140_v40 = vor.u32 %v10581_v34, %v8139_v33  ;;  %v8331_v41 = vld [vmem:[%s15446_s4 + $0x1d0] sm:$0xf]  ;;  %v8131_v44 = vld [vmem:[%s15446_s4 + $0x40] sm:$0xf] }
  0x35   : > { %968 = vmatpush.bf16.msrb.mxu2 %v852_v4  ;;  %1056 = vmatpush.bf16.msrb.mxu0 %v852_v4  ;;  %v10629_v42 = vld [vmem:[%s15446_s4 + $0x1d4] sm:$0xf0]  ;;  %v8204_v43 = vor.u32 %v10597_v37, %v8203_v36  ;;  %v10579_v45 = vld [vmem:[%s15446_s4 + $0x44] sm:$0xf0]  ;;  %v8195_v46 = vld [vmem:[%s15446_s4 + $0xc0] sm:$0xf] }
  0x36   : > { %8025 = vmatmul.msk.bf16.vlgmr.msra.gmra.mxu1 %vm867_vm0, %v10558_v9  ;;  %8053 = vmatmul.msk.bf16.vlgmr.msra.gmra.mxu3 %vm867_vm0, %v10562_v10  ;;  %v10595_v47 = vld [vmem:[%s15446_s4 + $0xc4] sm:$0xf0]  ;;  %v8332_v48 = vor.u32 %v10629_v42, %v8331_v41  ;;  %v8132_v49 = vor.u32 %v10579_v45, %v8131_v44  ;;  %v8123_v54 = vld [vmem:[%s15446_s4 + $0x30] sm:$0xf]  ;;  %v10577_v55 = vld [vmem:[%s15446_s4 + $0x34] sm:$0xf0] }
  0x37   : > { %1100 = vmatpush.bf16.msrb.mxu1 %v852_v4  ;;  %1923 = vmatpush.bf16.msrb.mxu3 %v8156_v21  ;;  %v8196_v51 = vor.u32 %v10595_v47, %v8195_v46  ;;  %v8187_v56 = vld [vmem:[%s15446_s4 + $0xb0] sm:$0xf]  ;;  %v8124_v57 = vor.u32 %v10577_v55, %v8123_v54  ;;  %v10593_v58 = vld [vmem:[%s15446_s4 + $0xb4] sm:$0xf0]  ;;  %v8323_v60 = vld [vmem:[%s15446_s4 + $0x1c0] sm:$0xf] }
  0x38   : > { %v8188_v59 = vor.u32 %v10593_v58, %v8187_v56  ;;  %v10627_v61 = vld [vmem:[%s15446_s4 + $0x1c4] sm:$0xf0]  ;;  %v8115_v63 = vld [vmem:[%s15446_s4 + $0x20] sm:$0xf]  ;;  %v8283_v5 = vld [vmem:[%s15446_s4 + $0x170] sm:$0xf] }
  0x39   : > { %969 = vmatpush.bf16.msrb.mxu2 %v851_v6  ;;  %1057 = vmatpush.bf16.msrb.mxu0 %v851_v6  ;;  %v8324_v62 = vor.u32 %v10627_v61, %v8323_v60  ;;  %v10575_v0 = vld [vmem:[%s15446_s4 + $0x24] sm:$0xf0]  ;;  %v8179_v1 = vld [vmem:[%s15446_s4 + $0xa0] sm:$0xf]  ;;  %v8315_v7 = vld [vmem:[%s15446_s4 + $0x1b0] sm:$0xf] }
  0x3a   : > { %v8116_v2 = vor.u32 %v10575_v0, %v8115_v63  ;;  %v10591_v3 = vld [vmem:[%s15446_s4 + $0xa4] sm:$0xf0]  ;;  %v10625_v9 = vld [vmem:[%s15446_s4 + $0x1b4] sm:$0xf0]  ;;  %v8307_v19 = vld [vmem:[%s15446_s4 + $0x1a0] sm:$0xf] }
  0x3b   : > { %1101 = vmatpush.bf16.msrb.mxu1 %v851_v6  ;;  %1924 = vmatpush.bf16.msrb.mxu3 %v8148_v29  ;;  %v8316_v10 = vor.u32 %v10625_v9, %v8315_v7  ;;  %v10615_v18 = vld [vmem:[%s15446_s4 + $0x164] sm:$0xf0]  ;;  %v8099_v23 = vld [vmem:[%s15446_s4] sm:$0xf]  ;;  %v8267_v29 = vld [vmem:[%s15446_s4 + $0x150] sm:$0xf] }
  0x3c   : > { %v10623_v21 = vld [vmem:[%s15446_s4 + $0x1a4] sm:$0xf0]  ;;  %v10613_v30 = vld [vmem:[%s15446_s4 + $0x154] sm:$0xf0]  ;;  %v8411_v35 = vld [vmem:[%s15446_s4 + $0x270] sm:$0xf] }
  0x3d   : > { %1144 = vmatpush.bf16.msra.mxu2 %v852_v4  ;;  %1942 = vmatpush.bf16.msra.mxu0 %v8220_v25  ;;  %v8180_v4 = vor.u32 %v10591_v3, %v8179_v1  ;;  %v8308_v22 = vor.u32 %v10623_v21, %v8307_v19  ;;  %v10571_v24 = vld [vmem:[%s15446_s4 + $0x4] sm:$0xf0]  ;;  %v8163_v25 = vld [vmem:[%s15446_s4 + $0x80] sm:$0xf]  ;;  %v10621_v33 = vld [vmem:[%s15446_s4 + $0x194] sm:$0xf0] }
  0x3e   : > { %v8100_v26 = vor.u32 %v10571_v24, %v8099_v23  ;;  %v10587_v27 = vld [vmem:[%s15446_s4 + $0x84] sm:$0xf0]  ;;  %v10649_v36 = vld [vmem:[%s15446_s4 + $0x274] sm:$0xf0]  ;;  %v8475_v37 = vld [vmem:[%s15446_s4 + $0x2f0] sm:$0xf] }
  0x3f   : > { %1925 = vmatpush.bf16.msrb.mxu3 %v8140_v40  ;;  %v8164_v28 = vor.u32 %v10587_v27, %v8163_v25  ;;  %v8412_v38 = vor.u32 %v10649_v36, %v8411_v35  ;;  %v8259_v41 = vld [vmem:[%s15446_s4 + $0x140] sm:$0xf]  ;;  %v10611_v42 = vld [vmem:[%s15446_s4 + $0x144] sm:$0xf0]  ;;  %v10609_v54 = vld [vmem:[%s15446_s4 + $0x134] sm:$0xf0] }
  0x40   : > { %v8260_v44 = vor.u32 %v10611_v42, %v8259_v41  ;;  %v10619_v45 = vld [vmem:[%s15446_s4 + $0x184] sm:$0xf0]  ;;  %v8403_v47 = vld [vmem:[%s15446_s4 + $0x260] sm:$0xf]  ;;  %v10584_v55 = vld [vmem:[%s15446_s4 + $0x74] sm:$0xf] }
  0x41   : > { %1145 = vmatpush.bf16.msra.mxu2 %v851_v6  ;;  %1943 = vmatpush.bf16.msra.mxu0 %v8212_v31  ;;  %v10617_v6 = vld [vmem:[%s15446_s4 + $0x174] sm:$0xf0]  ;;  %v8299_v31 = vld [vmem:[%s15446_s4 + $0x190] sm:$0xf]  ;;  %v8243_v1 = vld [vmem:[%s15446_s4 + $0x120] sm:$0xf] }
  0x42   : > { %v8284_v8 = vor.u32 %v10617_v6, %v8283_v5  ;;  %v8300_v34 = vor.u32 %v10621_v33, %v8299_v31  ;;  %v10645_v60 = vld [vmem:[%s15446_s4 + $0x254] sm:$0xf0]  ;;  %v8459_v61 = vld [vmem:[%s15446_s4 + $0x2d0] sm:$0xf]  ;;  %v10582_v3 = vld [vmem:[%s15446_s4 + $0x64] sm:$0xf] }
  0x43   : > { %1926 = vmatpush.bf16.msrb.mxu3 %v8132_v49  ;;  %v8467_v49 = vld [vmem:[%s15446_s4 + $0x2e0] sm:$0xf]  ;;  %v10661_v63 = vld [vmem:[%s15446_s4 + $0x2d4] sm:$0xf0]  ;;  %v8149_v5 = vld [vmem:[%s15446_s4 + $0x68] sm:$0xf0] }
  0x44   : > { %8039 = vmatmul.msk.bf16.vlgmr.msrb.gmra.mxu2 %vm867_vm0, %v10560_v11  ;;  %8067 = vmatmul.msk.bf16.vlgmr.msrb.gmra.mxu0 %vm867_vm0, %v10564_v12  ;;  %v8107_v11 = vld [vmem:[%s15446_s4 + $0x10] sm:$0xf]  ;;  %v10573_v12 = vld [vmem:[%s15446_s4 + $0x14] sm:$0xf0]  ;;  %v8460_v0 = vor.u32 %v10661_v63, %v8459_v61  ;;  %v8152_v6 = vor.u32 %v10582_v3, %v8149_v5  ;;  %v8387_v7 = vld [vmem:[%s15446_s4 + $0x240] sm:$0xf] }
  0x45   : > { %1980 = vmatpush.bf16.msrb.mxu2 %v8348_v32  ;;  %1944 = vmatpush.bf16.msra.mxu0 %v8204_v43  ;;  %v8268_v32 = vor.u32 %v10613_v30, %v8267_v29  ;;  %v8291_v43 = vld [vmem:[%s15446_s4 + $0x180] sm:$0xf]  ;;  %v8379_v19 = vld [vmem:[%s15446_s4 + $0x230] sm:$0xf]  ;;  %v10657_v23 = vld [vmem:[%s15446_s4 + $0x2b4] sm:$0xf0] }
  0x46   : > { %8026 = vmatmul.msk.bf16.gmra.mxu1 %vm867_vm0, %v10559_v13  ;;  %8054 = vmatmul.msk.bf16.gmra.mxu3 %vm867_vm0, %v10563_v14  ;;  %v8171_v13 = vld [vmem:[%s15446_s4 + $0x90] sm:$0xf]  ;;  %v8108_v14 = vor.u32 %v10573_v12, %v8107_v11  ;;  %v8292_v46 = vor.u32 %v10619_v45, %v8291_v43  ;;  %v8451_v9 = vld [vmem:[%s15446_s4 + $0x2c0] sm:$0xf]  ;;  %v10659_v11 = vld [vmem:[%s15446_s4 + $0x2c4] sm:$0xf0] }
  0x47   : > { %1927 = vmatpush.bf16.msrb.mxu3 %v8124_v57  ;;  %1961 = vmatpush.bf16.msra.mxu1 %v8284_v8  ;;  %v8157_v57 = vld [vmem:[%s15446_s4 + $0x78] sm:$0xf0]  ;;  %v10643_v8 = vld [vmem:[%s15446_s4 + $0x244] sm:$0xf0]  ;;  %v8452_v12 = vor.u32 %v10659_v11, %v8451_v9  ;;  %v8443_v21 = vld [vmem:[%s15446_s4 + $0x2b0] sm:$0xf] }
  0x48   : > { %v8160_v58 = vor.u32 %v10584_v55, %v8157_v57  ;;  %v8444_v25 = vor.u32 %v10657_v23, %v8443_v21  ;;  %v10603_v27 = vld [vmem:[%s15446_s4 + $0x104] sm:$0xf0]  ;;  %v8133_v31 = vld [vmem:[%s15446_s4 + $0x48] sm:$0xf0]  ;;  %v8371_v33 = vld [vmem:[%s15446_s4 + $0x220] sm:$0xf] }
  0x49   : > { %1981 = vmatpush.bf16.msrb.mxu2 %v8340_v39  ;;  %1945 = vmatpush.bf16.msra.mxu0 %v8196_v51  ;;  %v10665_v39 = vld [vmem:[%s15446_s4 + $0x2f4] sm:$0xf0]  ;;  %v10663_v51 = vld [vmem:[%s15446_s4 + $0x2e4] sm:$0xf0]  ;;  %v8435_v35 = vld [vmem:[%s15446_s4 + $0x2a0] sm:$0xf] }
  0x4a   : > { %v8476_v40 = vor.u32 %v10665_v39, %v8475_v37  ;;  %v10655_v37 = vld [vmem:[%s15446_s4 + $0x2a4] sm:$0xf0]  ;;  %v8539_v39 = vld [vmem:[%s15446_s4 + $0x370] sm:$0xf]  ;;  %v10576_v41 = vld [vmem:[%s15446_s4 + $0x34] sm:$0xf] }
  0x4b   : > { %1928 = vmatpush.bf16.msrb.mxu3 %v8116_v2  ;;  %v10607_v2 = vld [vmem:[%s15446_s4 + $0x124] sm:$0xf0]  ;;  %v8125_v43 = vld [vmem:[%s15446_s4 + $0x38] sm:$0xf0]  ;;  %v10600_v21 = vld [vmem:[%s15446_s4 + $0xf4] sm:$0xf] }
  0x4c   : > { %v10679_v57 = vld [vmem:[%s15446_s4 + $0x364] sm:$0xf0]  ;;  %v10616_v23 = vld [vmem:[%s15446_s4 + $0x174] sm:$0xf] }
  0x4d   : > { %1982 = vmatpush.bf16.msrb.mxu2 %v8332_v48  ;;  %1946 = vmatpush.bf16.msra.mxu0 %v8188_v59  ;;  %v10647_v48 = vld [vmem:[%s15446_s4 + $0x264] sm:$0xf0]  ;;  %v8395_v59 = vld [vmem:[%s15446_s4 + $0x250] sm:$0xf] }
  0x4e   : > { %v10635_v3 = vld [vmem:[%s15446_s4 + $0x204] sm:$0xf0] }
  0x4f   : > { %1929 = vmatpush.bf16.msrb.mxu3 %v8108_v14  ;;  %v10605_v14 = vld [vmem:[%s15446_s4 + $0x114] sm:$0xf0] }
  0x51   : > { %1983 = vmatpush.bf16.msrb.mxu2 %v8324_v62  ;;  %1947 = vmatpush.bf16.msra.mxu0 %v8180_v4  ;;  %v8396_v62 = vor.u32 %v10645_v60, %v8395_v59  ;;  %v8244_v4 = vor.u32 %v10607_v2, %v8243_v1  ;;  %v8355_v2 = vld [vmem:[%s15446_s4 + $0x200] sm:$0xf] }
  0x53   : > { %1930 = vmatpush.bf16.msrb.mxu3 %v8100_v26  ;;  %v8227_v26 = vld [vmem:[%s15446_s4 + $0x100] sm:$0xf] }
  0x54   : > { %8040 = vmatmul.msk.bf16.gmra.mxu2 %vm867_vm0, %v10561_v15  ;;  %8068 = vmatmul.msk.bf16.gmra.mxu0 %vm867_vm0, %v10565_v16  ;;  %v10589_v15 = vld [vmem:[%s15446_s4 + $0x94] sm:$0xf0]  ;;  %v8228_v30 = vor.u32 %v10603_v27, %v8227_v26  ;;  %v8285_v26 = vld [vmem:[%s15446_s4 + $0x178] sm:$0xf0] }
  0x55   : > { %1984 = vmatpush.bf16.msrb.mxu2 %v8316_v10  ;;  %v8172_v16 = vor.u32 %v10589_v15, %v8171_v13  ;;  %v8388_v10 = vor.u32 %v10643_v8, %v8387_v7  ;;  %v8235_v13 = vld [vmem:[%s15446_s4 + $0x110] sm:$0xf]  ;;  %v10580_v15 = vld [vmem:[%s15446_s4 + $0x54] sm:$0xf]  ;;  %v8356_v7 = vor.u32 %v10635_v3, %v8355_v2  ;;  %v10651_v8 = vld [vmem:[%s15446_s4 + $0x284] sm:$0xf0] }
  0x56   : > { %8081 = vmatmul.msk.bf16.vlgmr.msrb.gmra.mxu1 %vm867_vm0, %v10566_v17  ;;  %v8275_v17 = vld [vmem:[%s15446_s4 + $0x160] sm:$0xf] }
  0x57   : > { %v8276_v20 = vor.u32 %v10615_v18, %v8275_v17  ;;  %1948 = vmatpush.bf16.msra.mxu0 %v8172_v16  ;;  %1999 = vmatpush.bf16.msra.mxu3 %v8412_v38  ;;  %v8236_v16 = vor.u32 %v10605_v14, %v8235_v13  ;;  %v8141_v17 = vld [vmem:[%s15446_s4 + $0x58] sm:$0xf0]  ;;  %v8436_v38 = vor.u32 %v10655_v37, %v8435_v35  ;;  %v10677_v13 = vld [vmem:[%s15446_s4 + $0x354] sm:$0xf0]  ;;  %v10572_v14 = vld [vmem:[%s15446_s4 + $0x14] sm:$0xf] }
  0x58   : > { %v8144_v18 = vor.u32 %v10580_v15, %v8141_v17  ;;  %v8109_v17 = vld [vmem:[%s15446_s4 + $0x18] sm:$0xf0]  ;;  %v8101_v35 = vld [vmem:[%s15446_s4 + $0x8] sm:$0xf0] }
  0x59   : > { %1962 = vmatpush.bf16.msra.mxu1 %v8276_v20  ;;  %1985 = vmatpush.bf16.msrb.mxu2 %v8308_v22  ;;  %v10641_v20 = vld [vmem:[%s15446_s4 + $0x234] sm:$0xf0] }
  0x5a   : > { %v8380_v22 = vor.u32 %v10641_v20, %v8379_v19  ;;  %v8112_v20 = vor.u32 %v10572_v14, %v8109_v17 }
  0x5b   : > { %1949 = vmatpush.bf16.msra.mxu0 %v8164_v28  ;;  %v10578_v28 = vld [vmem:[%s15446_s4 + $0x44] sm:$0xf] }
  0x5d   : > { %1963 = vmatpush.bf16.msra.mxu1 %v8268_v32  ;;  %1986 = vmatpush.bf16.msrb.mxu2 %v8300_v34  ;;  %v8136_v32 = vor.u32 %v10578_v28, %v8133_v31  ;;  %v10639_v34 = vld [vmem:[%s15446_s4 + $0x224] sm:$0xf0] }
  0x5e   : > { %v8372_v36 = vor.u32 %v10639_v34, %v8371_v33  ;;  %v10675_v31 = vld [vmem:[%s15446_s4 + $0x344] sm:$0xf0] }
  0x5f   : > { %2018 = vmatpush.bf16.msrb.mxu0 %v8476_v40  ;;  %v10681_v40 = vld [vmem:[%s15446_s4 + $0x374] sm:$0xf0] }
  0x60   : > { %v8540_v42 = vor.u32 %v10681_v40, %v8539_v39  ;;  %v8213_v39 = vld [vmem:[%s15446_s4 + $0xe8] sm:$0xf0]  ;;  %v10614_v40 = vld [vmem:[%s15446_s4 + $0x164] sm:$0xf] }
  0x61   : > { %1964 = vmatpush.bf16.msra.mxu1 %v8260_v44  ;;  %1987 = vmatpush.bf16.msrb.mxu2 %v8292_v46  ;;  %v8128_v46 = vor.u32 %v10576_v41, %v8125_v43 }
  0x64   : > { %8095 = vmatmul.msk.bf16.vlgmr.msra.gmra.mxu2 %vm867_vm0, %v10568_v50  ;;  %v8404_v50 = vor.u32 %v10647_v48, %v8403_v47  ;;  %v8363_v47 = vld [vmem:[%s15446_s4 + $0x210] sm:$0xf]  ;;  %v10637_v48 = vld [vmem:[%s15446_s4 + $0x214] sm:$0xf0] }
  0x65   : > { %2056 = vmatpush.bf16.msra.mxu2 %v8160_v58  ;;  %v10574_v58 = vld [vmem:[%s15446_s4 + $0x24] sm:$0xf] }
  0x66   : > { %8082 = vmatmul.msk.bf16.gmra.mxu1 %vm867_vm0, %v10567_v52  ;;  %v8468_v52 = vor.u32 %v10663_v51, %v8467_v49  ;;  %2000 = vmatpush.bf16.msra.mxu3 %v8404_v50  ;;  %v8427_v49 = vld [vmem:[%s15446_s4 + $0x290] sm:$0xf] }
  0x68   : > { %2019 = vmatpush.bf16.msrb.mxu0 %v8468_v52  ;;  %v8364_v52 = vor.u32 %v10637_v48, %v8363_v47  ;;  %v8507_v47 = vld [vmem:[%s15446_s4 + $0x330] sm:$0xf]  ;;  %v10673_v48 = vld [vmem:[%s15446_s4 + $0x334] sm:$0xf0] }
  0x69   : > { %2057 = vmatpush.bf16.msra.mxu2 %v8152_v6 }
  0x6a   : > { %2001 = vmatpush.bf16.msra.mxu3 %v8396_v62  ;;  %v8117_v62 = vld [vmem:[%s15446_s4 + $0x28] sm:$0xf0] }
  0x6b   : > { %v8120_v1 = vor.u32 %v10574_v58, %v8117_v62  ;;  %v10612_v58 = vld [vmem:[%s15446_s4 + $0x154] sm:$0xf] }
  0x6c   : > { %2020 = vmatpush.bf16.msrb.mxu0 %v8460_v0 }
  0x6d   : > { %2058 = vmatpush.bf16.msra.mxu2 %v8144_v18 }
  0x6e   : > { %2002 = vmatpush.bf16.msra.mxu3 %v8388_v10 }
  0x70   : > { %2021 = vmatpush.bf16.msrb.mxu0 %v8452_v12  ;;  %v8523_v12 = vld [vmem:[%s15446_s4 + $0x350] sm:$0xf] }
  0x71   : > { %2059 = vmatpush.bf16.msra.mxu2 %v8136_v32  ;;  %v10570_v32 = vld [vmem:[%s15446_s4 + $0x4] sm:$0xf] }
  0x72   : > { %2003 = vmatpush.bf16.msra.mxu3 %v8380_v22  ;;  %v8221_v22 = vld [vmem:[%s15446_s4 + $0xf8] sm:$0xf0]  ;;  %v8104_v37 = vor.u32 %v10570_v32, %v8101_v35 }
  0x73   : > { %v8189_v32 = vld [vmem:[%s15446_s4 + $0xb8] sm:$0xf0] }
  0x74   : > { %8096 = vmatmul.msk.bf16.gmra.mxu2 %vm867_vm0, %v10569_v53  ;;  %v8251_v53 = vld [vmem:[%s15446_s4 + $0x130] sm:$0xf]  ;;  %2022 = vmatpush.bf16.msrb.mxu0 %v8444_v25  ;;  %v8224_v25 = vor.u32 %v10600_v21, %v8221_v22  ;;  %v10669_v22 = vld [vmem:[%s15446_s4 + $0x314] sm:$0xf0] }
  0x75   : > { %v8252_v56 = vor.u32 %v10609_v54, %v8251_v53  ;;  %v10653_v53 = vld [vmem:[%s15446_s4 + $0x294] sm:$0xf0]  ;;  %2060 = vmatpush.bf16.msra.mxu2 %v8128_v46  ;;  %v8491_v21 = vld [vmem:[%s15446_s4 + $0x310] sm:$0xf] }
  0x76   : > { %2004 = vmatpush.bf16.msra.mxu3 %v8372_v36  ;;  %v8428_v55 = vor.u32 %v10653_v53, %v8427_v49  ;;  %v10648_v49 = vld [vmem:[%s15446_s4 + $0x274] sm:$0xf]  ;;  %v8413_v53 = vld [vmem:[%s15446_s4 + $0x278] sm:$0xf0] }
  0x77   : > { %1965 = vmatpush.bf16.msra.mxu1 %v8252_v56  ;;  %v8531_v56 = vld [vmem:[%s15446_s4 + $0x360] sm:$0xf] }
  0x78   : > { %2023 = vmatpush.bf16.msrb.mxu0 %v8436_v38  ;;  %v8532_v61 = vor.u32 %v10679_v57, %v8531_v56  ;;  %v10598_v38 = vld [vmem:[%s15446_s4 + $0xe4] sm:$0xf]  ;;  %v8416_v56 = vor.u32 %v10648_v49, %v8413_v53  ;;  %v10596_v57 = vld [vmem:[%s15446_s4 + $0xd4] sm:$0xf] }
  0x79   : > { %2061 = vmatpush.bf16.msra.mxu2 %v8120_v1  ;;  %v8216_v41 = vor.u32 %v10598_v38, %v8213_v39  ;;  %v10646_v1 = vld [vmem:[%s15446_s4 + $0x264] sm:$0xf]  ;;  %v8253_v38 = vld [vmem:[%s15446_s4 + $0x138] sm:$0xf0] }
  0x7a   : > { %2005 = vmatpush.bf16.msra.mxu3 %v8364_v52  ;;  %v8508_v52 = vor.u32 %v10673_v48, %v8507_v47  ;;  %v10642_v47 = vld [vmem:[%s15446_s4 + $0x244] sm:$0xf] }
  0x7b   : > { %1966 = vmatpush.bf16.msra.mxu1 %v8244_v4  ;;  %v8419_v4 = vld [vmem:[%s15446_s4 + $0x280] sm:$0xf] }
  0x7c   : > { %2024 = vmatpush.bf16.msrb.mxu0 %v8428_v55  ;;  %v8420_v11 = vor.u32 %v10651_v8, %v8419_v4 }
  0x7d   : > { %2062 = vmatpush.bf16.msra.mxu2 %v8112_v20 }
  0x7e   : > { %2006 = vmatpush.bf16.msra.mxu3 %v8356_v7 }
  0x7f   : > { %1967 = vmatpush.bf16.msra.mxu1 %v8236_v16  ;;  %v8524_v16 = vor.u32 %v10677_v13, %v8523_v12  ;;  %v10610_v12 = vld [vmem:[%s15446_s4 + $0x144] sm:$0xf] }
  0x80   : > { %2025 = vmatpush.bf16.msrb.mxu0 %v8420_v11  ;;  %v8197_v11 = vld [vmem:[%s15446_s4 + $0xc8] sm:$0xf0] }
  0x81   : > { %2063 = vmatpush.bf16.msra.mxu2 %v8104_v37 }
  0x83   : > { %1968 = vmatpush.bf16.msra.mxu1 %v8228_v30  ;;  %v8515_v30 = vld [vmem:[%s15446_s4 + $0x340] sm:$0xf] }
  0x84   : > { %v8516_v34 = vor.u32 %v10675_v31, %v8515_v30  ;;  %v10592_v31 = vld [vmem:[%s15446_s4 + $0xb4] sm:$0xf] }
  0x85   : > { %v8192_v37 = vor.u32 %v10592_v31, %v8189_v32  ;;  %v10602_v31 = vld [vmem:[%s15446_s4 + $0x104] sm:$0xf]  ;;  %v8229_v32 = vld [vmem:[%s15446_s4 + $0x108] sm:$0xf0] }
  0x87   : > { %2037 = vmatpush.bf16.msrb.mxu1 %v8540_v42  ;;  %v8277_v42 = vld [vmem:[%s15446_s4 + $0x168] sm:$0xf0] }
  0x88   : > { %v8280_v46 = vor.u32 %v10614_v40, %v8277_v42  ;;  %v8483_v42 = vld [vmem:[%s15446_s4 + $0x300] sm:$0xf] }
  0x8b   : > { %2038 = vmatpush.bf16.msrb.mxu1 %v8532_v61  ;;  %v8269_v61 = vld [vmem:[%s15446_s4 + $0x158] sm:$0xf0] }
  0x8c   : > { %v8272_v62 = vor.u32 %v10612_v58, %v8269_v61  ;;  %v8245_v58 = vld [vmem:[%s15446_s4 + $0x128] sm:$0xf0]  ;;  %v10632_v61 = vld [vmem:[%s15446_s4 + $0x1f4] sm:$0xf] }
  0x8f   : > { %2039 = vmatpush.bf16.msrb.mxu1 %v8524_v16  ;;  %v8261_v16 = vld [vmem:[%s15446_s4 + $0x148] sm:$0xf0] }
  0x90   : > { %v8264_v20 = vor.u32 %v10610_v12, %v8261_v16  ;;  %v10638_v16 = vld [vmem:[%s15446_s4 + $0x224] sm:$0xf] }
  0x93   : > { %2040 = vmatpush.bf16.msrb.mxu1 %v8516_v34 }
  0x97   : > { %2041 = vmatpush.bf16.msrb.mxu1 %v8508_v52 }
  0xb1   : > { %v883_v24 = vpop.f32.mrf.mxu0 }
  0xb2   : > { %v893_v50 = vpack.c.bf16 %v883_v24, %v883_v24 }
  0xb3   : > { %v927_v29 = vpop.f32.mrf.mxu1 }
  0xb4   : > { %v937_v44 = vpack.c.bf16 %v927_v29, %v927_v29  ;;  %v1165_v5 = vunpack.c.l.b16 %v893_v50  ;;  %v8288_v29 = vor.u32 %v10616_v23, %v8285_v26  ;;  %v10644_v23 = vld [vmem:[%s15446_s4 + $0x254] sm:$0xf]  ;;  %v8397_v26 = vld [vmem:[%s15446_s4 + $0x258] sm:$0xf0] }
  0xb5   : > { %v8400_v30 = vor.u32 %v10644_v23, %v8397_v26  ;;  %v10586_v23 = vld [vmem:[%s15446_s4 + $0x84] sm:$0xf] }
  0xb6   : > { %v1177_v63 = vunpack.c.l.b16 %v937_v44 }
  0xb7   : > { %v11866_v45 = vpop.f32.mrf.mxu2 }
  0xb8   : > { %v895_v50 = vpack.c.bf16 %v11866_v45, %v11866_v45  ;;  %v8205_v45 = vld [vmem:[%s15446_s4 + $0xd8] sm:$0xf0] }
  0xb9   : > { %v1015_v51 = vpop.f32.mrf.mxu3  ;;  %v885_v54 = vpop.f32.mrf.mxu0 }
  0xba   : > { %v894_v59 = vpack.c.bf16 %v885_v54, %v885_v54  ;;  %v1025_v9 = vpack.c.bf16 %v1015_v51, %v1015_v51  ;;  %v1167_v2 = vunpack.c.l.b16 %v895_v50 }
  0xbb   : > { %v929_v60 = vpop.f32.mrf.mxu1 }
  0xbc   : > { %v938_v0 = vpack.c.bf16 %v929_v60, %v929_v60  ;;  %v1166_v6 = vunpack.c.l.b16 %v894_v59  ;;  %v1201_v27 = vunpack.c.l.b16 %v1025_v9  ;;  %v8208_v60 = vor.u32 %v10596_v57, %v8205_v45 }
  0xbe   : > { %v1178_v10 = vunpack.c.l.b16 %v938_v0  ;;  %v11913_v15 = vpack.c.b16 %v1166_v6, %v1165_v5  ;;  %v10671_v0 = vld [vmem:[%s15446_s4 + $0x324] sm:$0xf0]  ;;  %v8405_v6 = vld [vmem:[%s15446_s4 + $0x268] sm:$0xf0] }
  0xbf   : > { %v890_v19 = vpop.f32.mrf.mxu2  ;;  %v8408_v9 = vor.u32 %v10646_v1, %v8405_v6 }
  0xc0   : > { %v11918_v18 = vpack.c.b16 %v1178_v10, %v1177_v63  ;;  %1931 = vmatmul.bf16.vlgmr.msrb.gmra.mxu3 %v11913_v15  ;;  %v896_v51 = vpack.c.bf16 %v890_v19, %v890_v19  ;;  %v8499_v63 = vld [vmem:[%s15446_s4 + $0x320] sm:$0xf]  ;;  %v10594_v10 = vld [vmem:[%s15446_s4 + $0xc4] sm:$0xf] }
  0xc1   : > { %v1017_v24 = vpop.f32.mrf.mxu3  ;;  %2075 = vmatpush.bf16.msrb.mxu3 %v8224_v25  ;;  %v11960_v44 = vpop.f32.mrf.mxu0  ;;  %v8500_v5 = vor.u32 %v10671_v0, %v8499_v63  ;;  %v8200_v14 = vor.u32 %v10594_v10, %v8197_v11  ;;  %v8492_v25 = vor.u32 %v10669_v22, %v8491_v21  ;;  %v10640_v63 = vld [vmem:[%s15446_s4 + $0x234] sm:$0xf]  ;;  %v8237_v10 = vld [vmem:[%s15446_s4 + $0x118] sm:$0xf0]  ;;  %v8373_v22 = vld [vmem:[%s15446_s4 + $0x228] sm:$0xf0] }
  0xc2   : > { %v1026_v28 = vpack.c.bf16 %v1017_v24, %v1017_v24  ;;  %1950 = vmatmul.bf16.vlgmr.msra.gmra.mxu0 %v11918_v18  ;;  %v1168_v3 = vunpack.c.l.b16 %v896_v51  ;;  %v8389_v51 = vld [vmem:[%s15446_s4 + $0x248] sm:$0xf0]  ;;  %v1069_v0 = vpack.c.bf16 %v11960_v44, %v11960_v44  ;;  %v10588_v44 = vld [vmem:[%s15446_s4 + $0x94] sm:$0xf] }
  0xc3   : > { %v932_v33 = vpop.f32.mrf.mxu1  ;;  %2094 = vmatpush.bf16.msra.mxu0 %v8288_v29  ;;  %2042 = vmatpush.bf16.msrb.mxu1 %v8500_v5  ;;  %v8392_v53 = vor.u32 %v10642_v47, %v8389_v51 }
  0xc4   : > { %v1202_v36 = vunpack.c.l.b16 %v1026_v28  ;;  %v939_v54 = vpack.c.bf16 %v932_v33, %v932_v33  ;;  %v12022_v24 = vpack.c.b16 %v1168_v3, %v1167_v2  ;;  %v10608_v33 = vld [vmem:[%s15446_s4 + $0x134] sm:$0xf]  ;;  %v8381_v3 = vld [vmem:[%s15446_s4 + $0x238] sm:$0xf0] }
  0xc5   : > { %2076 = vmatpush.bf16.msrb.mxu3 %v8216_v41  ;;  %v8256_v41 = vor.u32 %v10608_v33, %v8253_v38  ;;  %v8384_v6 = vor.u32 %v10640_v63, %v8381_v3  ;;  %v10636_v38 = vld [vmem:[%s15446_s4 + $0x214] sm:$0xf]  ;;  %v8357_v63 = vld [vmem:[%s15446_s4 + $0x208] sm:$0xf0] }
  0xc6   : > { %v11958_v43 = vpack.c.b16 %v1202_v36, %v1201_v27  ;;  %v1179_v7 = vunpack.c.l.b16 %v939_v54  ;;  %v10590_v54 = vld [vmem:[%s15446_s4 + $0xa4] sm:$0xf] }
  0xc7   : > { %v971_v55 = vpop.f32.mrf.mxu2  ;;  %2095 = vmatpush.bf16.msra.mxu0 %v8280_v46  ;;  %2043 = vmatpush.bf16.msrb.mxu1 %v8492_v25  ;;  %v10667_v46 = vld [vmem:[%s15446_s4 + $0x304] sm:$0xf0]  ;;  %v8165_v25 = vld [vmem:[%s15446_s4 + $0x88] sm:$0xf0] }
  0xc8   : > { %1988 = vmatmul.bf16.vlgmr.msrb.gmra.mxu2 %v11958_v43  ;;  %v981_v13 = vpack.c.bf16 %v971_v55, %v971_v55  ;;  %v8484_v50 = vor.u32 %v10667_v46, %v8483_v42  ;;  %v8181_v55 = vld [vmem:[%s15446_s4 + $0xa8] sm:$0xf0] }
  0xc9   : > { %v1020_v59 = vpop.f32.mrf.mxu3  ;;  %2132 = vmatpush.bf16.msrb.mxu2 %v8416_v56  ;;  %2077 = vmatpush.bf16.msrb.mxu3 %v8208_v60  ;;  %v12029_v29 = vpop.f32.mrf.mxu0  ;;  %v10606_v56 = vld [vmem:[%s15446_s4 + $0x124] sm:$0xf]  ;;  %v8184_v45 = vor.u32 %v10590_v54, %v8181_v55  ;;  %v8541_v54 = vld [vmem:[%s15446_s4 + $0x378] sm:$0xf0] }
  0xca   : > { %v1027_v17 = vpack.c.bf16 %v1020_v59, %v1020_v59  ;;  %v1189_v34 = vunpack.c.l.b16 %v981_v13  ;;  %v8248_v60 = vor.u32 %v10606_v56, %v8245_v58  ;;  %v1070_v1 = vpack.c.bf16 %v12029_v29, %v12029_v29  ;;  %v10630_v13 = vld [vmem:[%s15446_s4 + $0x1e4] sm:$0xf] }
  0xcb   : > { %v934_v4 = vpop.f32.mrf.mxu1  ;;  %2096 = vmatpush.bf16.msra.mxu0 %v8272_v62  ;;  %2044 = vmatpush.bf16.msrb.mxu1 %v8484_v50  ;;  %v8349_v62 = vld [vmem:[%s15446_s4 + $0x1f8] sm:$0xf0]  ;;  %v8376_v29 = vor.u32 %v10638_v16, %v8373_v22  ;;  %v10680_v50 = vld [vmem:[%s15446_s4 + $0x374] sm:$0xf]  ;;  %v10626_v56 = vld [vmem:[%s15446_s4 + $0x1c4] sm:$0xf] }
  0xcc   : > { %v940_v8 = vpack.c.bf16 %v934_v4, %v934_v4  ;;  %v1203_v39 = vunpack.c.l.b16 %v1027_v17  ;;  %v8352_v2 = vor.u32 %v10632_v61, %v8349_v62  ;;  %v1213_v17 = vunpack.c.l.b16 %v1069_v0  ;;  %v10634_v58 = vld [vmem:[%s15446_s4 + $0x204] sm:$0xf]  ;;  %v8309_v22 = vld [vmem:[%s15446_s4 + $0x1a8] sm:$0xf0] }
  0xcd   : > { %2133 = vmatpush.bf16.msrb.mxu2 %v8408_v9  ;;  %2078 = vmatpush.bf16.msrb.mxu3 %v8200_v14  ;;  %v8341_v14 = vld [vmem:[%s15446_s4 + $0x1e8] sm:$0xf0]  ;;  %v8544_v55 = vor.u32 %v10680_v50, %v8541_v54  ;;  %v10662_v0 = vld [vmem:[%s15446_s4 + $0x2e4] sm:$0xf]  ;;  %v8360_v3 = vor.u32 %v10634_v58, %v8357_v63 }
  0xce   : > { %v1180_v19 = vunpack.c.l.b16 %v940_v8  ;;  %v10604_v8 = vld [vmem:[%s15446_s4 + $0x114] sm:$0xf]  ;;  %v8344_v21 = vor.u32 %v10630_v13, %v8341_v14 }
  0xcf   : > { %v973_v27 = vpop.f32.mrf.mxu2  ;;  %2097 = vmatpush.bf16.msra.mxu0 %v8264_v20  ;;  %v8240_v12 = vor.u32 %v10604_v8, %v8237_v10  ;;  %v10624_v8 = vld [vmem:[%s15446_s4 + $0x1b4] sm:$0xf] }
  0xd0   : > { %v12027_v28 = vpack.c.b16 %v1180_v19, %v1179_v7  ;;  %v982_v35 = vpack.c.bf16 %v973_v27, %v973_v27  ;;  %1936 = vmatmul.bf16.gmra.mxu3 %v12022_v24  ;;  %v8173_v7 = vld [vmem:[%s15446_s4 + $0x98] sm:$0xf0]  ;;  %v1214_v19 = vunpack.c.l.b16 %v1070_v1  ;;  %v8469_v1 = vld [vmem:[%s15446_s4 + $0x2e8] sm:$0xf0] }
  0xd1   : > { %v1022_v36 = vpop.f32.mrf.mxu3  ;;  %2134 = vmatpush.bf16.msrb.mxu2 %v8400_v30  ;;  %2079 = vmatpush.bf16.msrb.mxu3 %v8192_v37  ;;  %v8176_v9 = vor.u32 %v10588_v44, %v8173_v7  ;;  %v12103_v11 = vpop.f32.mrf.mxu0  ;;  %v8168_v30 = vor.u32 %v10586_v23, %v8165_v25  ;;  %v8333_v37 = vld [vmem:[%s15446_s4 + $0x1d8] sm:$0xf0] }
  0xd2   : > { %v1028_v40 = vpack.c.bf16 %v1022_v36, %v1022_v36  ;;  %1955 = vmatmul.bf16.gmra.mxu0 %v12027_v28  ;;  %v1190_v48 = vunpack.c.l.b16 %v982_v35  ;;  %v10628_v36 = vld [vmem:[%s15446_s4 + $0x1d4] sm:$0xf]  ;;  %v1071_v10 = vpack.c.bf16 %v12103_v11, %v12103_v11 }
  0xd3   : > { %v1103_v49 = vpop.f32.mrf.mxu1  ;;  %2098 = vmatpush.bf16.msra.mxu0 %v8256_v41  ;;  %v8365_v41 = vld [vmem:[%s15446_s4 + $0x218] sm:$0xf0]  ;;  %v10676_v11 = vld [vmem:[%s15446_s4 + $0x354] sm:$0xf] }
  0xd4   : > { %v1204_v52 = vunpack.c.l.b16 %v1028_v40  ;;  %v12066_v57 = vpack.c.b16 %v1190_v48, %v1189_v34  ;;  %v1113_v4 = vpack.c.bf16 %v1103_v49, %v1103_v49  ;;  %v8232_v34 = vor.u32 %v10602_v31, %v8229_v32  ;;  %v10664_v48 = vld [vmem:[%s15446_s4 + $0x2f4] sm:$0xf]  ;;  %v8477_v49 = vld [vmem:[%s15446_s4 + $0x2f8] sm:$0xf0] }
  0xd5   : > { %2135 = vmatpush.bf16.msrb.mxu2 %v8392_v53  ;;  %2080 = vmatpush.bf16.msrb.mxu3 %v8184_v45  ;;  %v8336_v40 = vor.u32 %v10628_v36, %v8333_v37  ;;  %v8368_v47 = vor.u32 %v10636_v38, %v8365_v41  ;;  %v8480_v53 = vor.u32 %v10664_v48, %v8477_v49  ;;  %v8325_v45 = vld [vmem:[%s15446_s4 + $0x1c8] sm:$0xf0]  ;;  %v8301_v36 = vld [vmem:[%s15446_s4 + $0x198] sm:$0xf0] }
  0xd6   : > { %v12071_v59 = vpack.c.b16 %v1204_v52, %v1203_v39  ;;  %1969 = vmatmul.bf16.vlgmr.msra.gmra.mxu1 %v12066_v57  ;;  %v1225_v26 = vunpack.c.l.b16 %v1113_v4  ;;  %v12138_v39 = vpack.c.b16 %v1214_v19, %v1213_v17  ;;  %v8328_v62 = vor.u32 %v10626_v56, %v8325_v45  ;;  %v10660_v17 = vld [vmem:[%s15446_s4 + $0x2d4] sm:$0xf]  ;;  %v8461_v19 = vld [vmem:[%s15446_s4 + $0x2d8] sm:$0xf0] }
  0xd7   : > { %v976_v5 = vpop.f32.mrf.mxu2  ;;  %2099 = vmatpush.bf16.msra.mxu0 %v8248_v60  ;;  %2113 = vmatpush.bf16.msra.mxu1 %v8352_v2  ;;  %v8472_v4 = vor.u32 %v10662_v0, %v8469_v1  ;;  %v8509_v45 = vld [vmem:[%s15446_s4 + $0x338] sm:$0xf0]  ;;  %v8437_v1 = vld [vmem:[%s15446_s4 + $0x2a8] sm:$0xf0] }
  0xd8   : > { %1993 = vmatmul.bf16.gmra.mxu2 %v12071_v59  ;;  %v983_v33 = vpack.c.bf16 %v976_v5, %v976_v5  ;;  %v10678_v5 = vld [vmem:[%s15446_s4 + $0x364] sm:$0xf] }
  0xd9   : > { %2136 = vmatpush.bf16.msrb.mxu2 %v8384_v6  ;;  %2081 = vmatpush.bf16.msrb.mxu3 %v8176_v9  ;;  %v1066_v2 = vpop.f32.mrf.mxu0  ;;  %v8533_v6 = vld [vmem:[%s15446_s4 + $0x368] sm:$0xf0]  ;;  %v8317_v9 = vld [vmem:[%s15446_s4 + $0x1b8] sm:$0xf0] }
  0xda   : > { %v1191_v51 = vunpack.c.l.b16 %v983_v33  ;;  %v8536_v7 = vor.u32 %v10678_v5, %v8533_v6  ;;  %v8320_v13 = vor.u32 %v10624_v8, %v8317_v9  ;;  %v10652_v8 = vld [vmem:[%s15446_s4 + $0x294] sm:$0xf]  ;;  %v8429_v9 = vld [vmem:[%s15446_s4 + $0x298] sm:$0xf0] }
  0xdb   : > { %v1105_v20 = vpop.f32.mrf.mxu1  ;;  %2100 = vmatpush.bf16.msra.mxu0 %v8240_v12  ;;  %2114 = vmatpush.bf16.msra.mxu1 %v8344_v21  ;;  %v1072_v12 = vpack.c.bf16 %v1066_v2, %v1066_v2  ;;  %v10622_v21 = vld [vmem:[%s15446_s4 + $0x1a4] sm:$0xf] }
  0xdc   : > { %v1114_v27 = vpack.c.bf16 %v1105_v20, %v1105_v20  ;;  %v8464_v20 = vor.u32 %v10660_v17, %v8461_v19  ;;  %v8312_v25 = vor.u32 %v10622_v21, %v8309_v22  ;;  %v10670_v2 = vld [vmem:[%s15446_s4 + $0x324] sm:$0xf]  ;;  %v8485_v19 = vld [vmem:[%s15446_s4 + $0x308] sm:$0xf0] }
  0xdd   : > { %2137 = vmatpush.bf16.msrb.mxu2 %v8376_v29  ;;  %2082 = vmatpush.bf16.msrb.mxu3 %v8168_v30  ;;  %v10674_v29 = vld [vmem:[%s15446_s4 + $0x344] sm:$0xf]  ;;  %v1215_v30 = vunpack.c.l.b16 %v1071_v10  ;;  %v1216_v31 = vunpack.c.l.b16 %v1072_v12  ;;  %v10668_v10 = vld [vmem:[%s15446_s4 + $0x314] sm:$0xf]  ;;  %v8432_v12 = vor.u32 %v10652_v8, %v8429_v9 }
  0xde   : > { %v1226_v35 = vunpack.c.l.b16 %v1114_v27  ;;  %v8453_v27 = vld [vmem:[%s15446_s4 + $0x2c8] sm:$0xf0]  ;;  %v10666_v17 = vld [vmem:[%s15446_s4 + $0x304] sm:$0xf] }
  0xdf   : > { %v978_v46 = vpop.f32.mrf.mxu2  ;;  %2101 = vmatpush.bf16.msra.mxu0 %v8232_v34  ;;  %2115 = vmatpush.bf16.msra.mxu1 %v8336_v40  ;;  %v8517_v34 = vld [vmem:[%s15446_s4 + $0x348] sm:$0xf0]  ;;  %v12231_v48 = vpack.c.b16 %v1216_v31, %v1215_v30 }
  0xe0   : > { %v12143_v42 = vpack.c.b16 %v1226_v35, %v1225_v26  ;;  %v984_v52 = vpack.c.bf16 %v978_v46, %v978_v46  ;;  %2007 = vmatmul.bf16.vlgmr.msra.gmra.mxu3 %v12138_v39  ;;  %v10658_v26 = vld [vmem:[%s15446_s4 + $0x2c4] sm:$0xf]  ;;  %v10620_v35 = vld [vmem:[%s15446_s4 + $0x194] sm:$0xf]  ;;  %v8520_v40 = vor.u32 %v10674_v29, %v8517_v34 }
  0xe1   : > { %2138 = vmatpush.bf16.msrb.mxu2 %v8368_v47  ;;  %2151 = vmatpush.bf16.msra.mxu3 %v8480_v53  ;;  %v8456_v33 = vor.u32 %v10658_v26, %v8453_v27  ;;  %v8304_v46 = vor.u32 %v10620_v35, %v8301_v36  ;;  %v10672_v53 = vld [vmem:[%s15446_s4 + $0x334] sm:$0xf] }
  0xe2   : > { %2026 = vmatmul.bf16.vlgmr.msrb.gmra.mxu0 %v12143_v42  ;;  %v1192_v60 = vunpack.c.l.b16 %v984_v52  ;;  %v8445_v52 = vld [vmem:[%s15446_s4 + $0x2b8] sm:$0xf0]  ;;  %v8512_v58 = vor.u32 %v10672_v53, %v8509_v45 }
  0xe3   : > { %v1108_v61 = vpop.f32.mrf.mxu1  ;;  %2170 = vmatpush.bf16.msrb.mxu0 %v8544_v55  ;;  %2116 = vmatpush.bf16.msra.mxu1 %v8328_v62  ;;  %v10654_v62 = vld [vmem:[%s15446_s4 + $0x2a4] sm:$0xf] }
  0xe4   : > { %v12183_v44 = vpack.c.b16 %v1192_v60, %v1191_v51  ;;  %v1115_v14 = vpack.c.bf16 %v1108_v61, %v1108_v61  ;;  %v10656_v51 = vld [vmem:[%s15446_s4 + $0x2b4] sm:$0xf]  ;;  %v10618_v60 = vld [vmem:[%s15446_s4 + $0x184] sm:$0xf]  ;;  %v8293_v61 = vld [vmem:[%s15446_s4 + $0x188] sm:$0xf0] }
  0xe5   : > { %2139 = vmatpush.bf16.msrb.mxu2 %v8360_v3  ;;  %2152 = vmatpush.bf16.msra.mxu3 %v8472_v4  ;;  %v8448_v56 = vor.u32 %v10656_v51, %v8445_v52  ;;  %v8296_v0 = vor.u32 %v10618_v60, %v8293_v61  ;;  %v8501_v3 = vld [vmem:[%s15446_s4 + $0x328] sm:$0xf0]  ;;  %v8440_v4 = vor.u32 %v10654_v62, %v8437_v1 }
  0xe6   : > { %1974 = vmatmul.bf16.gmra.mxu1 %v12183_v44  ;;  %v1227_v37 = vunpack.c.l.b16 %v1115_v14  ;;  %v8504_v5 = vor.u32 %v10670_v2, %v8501_v3  ;;  %v8421_v14 = vld [vmem:[%s15446_s4 + $0x288] sm:$0xf0] }
  0xe7   : > { %v1147_v16 = vpop.f32.mrf.mxu2  ;;  %2171 = vmatpush.bf16.msrb.mxu0 %v8536_v7  ;;  %2117 = vmatpush.bf16.msra.mxu1 %v8320_v13  ;;  %v8493_v13 = vld [vmem:[%s15446_s4 + $0x318] sm:$0xf0] }
  0xe8   : > { %2064 = vmatmul.bf16.vlgmr.msra.gmra.mxu2 %v11913_v15  ;;  %v8525_v15 = vld [vmem:[%s15446_s4 + $0x358] sm:$0xf0]  ;;  %v1157_v41 = vpack.c.bf16 %v1147_v16, %v1147_v16  ;;  %v8496_v16 = vor.u32 %v10668_v10, %v8493_v13 }
  0xe9   : > { %v8528_v23 = vor.u32 %v10676_v11, %v8525_v15  ;;  %2153 = vmatpush.bf16.msra.mxu3 %v8464_v20  ;;  %v8488_v20 = vor.u32 %v10666_v17, %v8485_v19 }
  0xea   : > { %v1237_v54 = vunpack.c.l.b16 %v1157_v41 }
  0xeb   : > { %v1110_v32 = vpop.f32.mrf.mxu1  ;;  %2172 = vmatpush.bf16.msrb.mxu0 %v8528_v23  ;;  %2118 = vmatpush.bf16.msra.mxu1 %v8312_v25 }
  0xec   : > { %v1116_v38 = vpack.c.bf16 %v1110_v32, %v1110_v32 }
  0xed   : > { %2154 = vmatpush.bf16.msra.mxu3 %v8456_v33 }
  0xee   : > { %v1228_v47 = vunpack.c.l.b16 %v1116_v38 }
  0xef   : > { %v1149_v49 = vpop.f32.mrf.mxu2  ;;  %2173 = vmatpush.bf16.msrb.mxu0 %v8520_v40  ;;  %2119 = vmatpush.bf16.msra.mxu1 %v8304_v46 }
  0xf0   : > { %v12233_v50 = vpack.c.b16 %v1228_v47, %v1227_v37  ;;  %v1158_v55 = vpack.c.bf16 %v1149_v49, %v1149_v49  ;;  %2012 = vmatmul.bf16.gmra.mxu3 %v12231_v48 }
  0xf1   : > { %2155 = vmatpush.bf16.msra.mxu3 %v8448_v56 }
  0xf2   : > { %2031 = vmatmul.bf16.gmra.mxu0 %v12233_v50  ;;  %v1238_v63 = vunpack.c.l.b16 %v1158_v55 }
  0xf3   : > { %2174 = vmatpush.bf16.msrb.mxu0 %v8512_v58  ;;  %2120 = vmatpush.bf16.msra.mxu1 %v8296_v0 }
  0xf4   : > { %v1241_v6 = vpack.c.b16 %v1238_v63, %v1237_v54 }
  0xf5   : > { %2156 = vmatpush.bf16.msra.mxu3 %v8440_v4 }
  0xf6   : > { %2045 = vmatmul.bf16.vlgmr.msrb.gmra.mxu1 %v1241_v6 }
  0xf7   : > { %v1152_v7 = vpop.f32.mrf.mxu2  ;;  %2175 = vmatpush.bf16.msrb.mxu0 %v8504_v5 }
  0xf8   : > { %2069 = vmatmul.bf16.gmra.mxu2 %v12022_v24  ;;  %v10650_v24 = vld [vmem:[%s15446_s4 + $0x284] sm:$0xf]  ;;  %v1159_v15 = vpack.c.bf16 %v1152_v7, %v1152_v7  ;;  %s15453_s4 = sld [smem:[#allocation21_spill]] }
  0xf9   : > { %2157 = vmatpush.bf16.msra.mxu3 %v8432_v12  ;;  %v8424_v11 = vor.u32 %v10650_v24, %v8421_v14 }
  0xfa   : > { %v1239_v22 = vunpack.c.l.b16 %v1159_v15 }
  0xfb   : > { %2176 = vmatpush.bf16.msrb.mxu0 %v8496_v16 }
  0xfd   : > { %2158 = vmatpush.bf16.msra.mxu3 %v8424_v11 }
  0xff   : > { %v1154_v21 = vpop.f32.mrf.mxu2  ;;  %2177 = vmatpush.bf16.msrb.mxu0 %v8488_v20 }
 0x100   : > { %v1160_v23 = vpack.c.bf16 %v1154_v21, %v1154_v21  ;;  %2083 = vmatmul.bf16.vlgmr.msrb.gmra.mxu3 %v11918_v18  ;;  %v12305_v18 = vld [vmem:[%s15447_s8] sm:$0x3] }
 0x102   : > { %2102 = vmatmul.bf16.vlgmr.msra.gmra.mxu0 %v12066_v57  ;;  %v1240_v25 = vunpack.c.l.b16 %v1160_v23  ;;  %v1359_v57 = vperm.slane %v12305_v18, 0 }
 0x104   : > { %v1242_v26 = vpack.c.b16 %v1240_v25, %v1239_v22 }
 0x106   : > { %2050 = vmatmul.bf16.gmra.mxu1 %v1242_v26 }
 0x108   : > { %2140 = vmatmul.bf16.vlgmr.msrb.gmra.mxu2 %v12138_v39 }
 0x110   : > { %2088 = vmatmul.bf16.gmra.mxu3 %v12027_v28 }
 0x112   : > { %2107 = vmatmul.bf16.gmra.mxu0 %v12183_v44 }
 0x116   : > { %2121 = vmatmul.bf16.vlgmr.msra.gmra.mxu1 %v11958_v43 }
 0x118   : > { %2145 = vmatmul.bf16.gmra.mxu2 %v12231_v48 }
 0x120   : > { %2159 = vmatmul.bf16.vlgmr.msra.gmra.mxu3 %v12143_v42 }
 0x122   : > { %2178 = vmatmul.bf16.vlgmr.msrb.gmra.mxu0 %v1241_v6 }
 0x126   : > { %2126 = vmatmul.bf16.gmra.mxu1 %v12071_v59 }
 0x130   : > { %2164 = vmatmul.bf16.gmra.mxu3 %v12233_v50 }
 0x132   : > { %2183 = vmatmul.bf16.gmra.mxu0 %v1242_v26 }
 0x13f   : > { %v1951_v28 = vpop.f32.mrf.mxu0 }
 0x143   : > { %v1932_v39 = vpop.f32.mrf.mxu3 }
 0x144   : > { %v1933_v43 = vadd.f32 %v1932_v39, %v1359_v57 }
 0x146   : > { %v1952_v27 = vadd.f32 %v1951_v28, %v1933_v43 }
 0x147   : > { %v1953_v44 = vpop.f32.mrf.mxu0 }
 0x14b   : > { %v1989_v29 = vpop.f32.mrf.mxu2  ;;  %v1934_v42 = vpop.f32.mrf.mxu3 }
 0x14c   : > { %v1935_v55 = vadd.f32 %v1934_v42, %v1359_v57 }
 0x14e   : > { %v1954_v61 = vadd.f32 %v1953_v44, %v1935_v55 }
 0x14f   : > { %v1956_v30 = vpop.f32.mrf.mxu0 }
 0x153   : > { %v1937_v31 = vpop.f32.mrf.mxu3  ;;  %v1970_v59 = vpop.f32.mrf.mxu1 }
 0x154   : > { %v1991_v32 = vpop.f32.mrf.mxu2  ;;  %v1938_v53 = vadd.f32 %v1937_v31, %v1359_v57  ;;  %v1971_v3 = vadd.f32 %v1970_v59, %v1952_v27 }
 0x156   : > { %v1957_v45 = vadd.f32 %v1956_v30, %v1938_v53  ;;  %v1990_v10 = vadd.f32 %v1989_v29, %v1971_v3 }
 0x157   : > { %v1958_v33 = vpop.f32.mrf.mxu0 }
 0x15b   : > { %v1939_v34 = vpop.f32.mrf.mxu3  ;;  %v1972_v35 = vpop.f32.mrf.mxu1 }
 0x15c   : > { %v1994_v36 = vpop.f32.mrf.mxu2  ;;  %v1940_v56 = vadd.f32 %v1939_v34, %v1359_v57  ;;  %v1973_v0 = vadd.f32 %v1972_v35, %v1954_v61 }
 0x15e   : > { %v1959_v1 = vadd.f32 %v1958_v33, %v1940_v56  ;;  %v1992_v6 = vadd.f32 %v1991_v32, %v1973_v0 }
 0x15f   : > { %v2027_v37 = vpop.f32.mrf.mxu0 }
 0x163   : > { %v1975_v38 = vpop.f32.mrf.mxu1  ;;  %v2008_v40 = vpop.f32.mrf.mxu3 }
 0x164   : > { %v1996_v46 = vpop.f32.mrf.mxu2  ;;  %v1976_v62 = vadd.f32 %v1975_v38, %v1957_v45  ;;  %v2009_v24 = vadd.f32 %v2008_v40, %v1990_v10  ;;  %v12329_v40 = vld [vmem:[%s15448_s5] sm:$0xff] }
 0x166   : > { %v1995_v4 = vadd.f32 %v1994_v36, %v1976_v62  ;;  %v2028_v15 = vadd.f32 %v2027_v37, %v2009_v24 }
 0x167   : > { %v2029_v41 = vpop.f32.mrf.mxu0 }
 0x16b   : > { %v1977_v47 = vpop.f32.mrf.mxu1  ;;  %v2010_v48 = vpop.f32.mrf.mxu3 }
 0x16c   : > { %v12308_v50 = vpop.f32.mrf.mxu2  ;;  %v1978_v5 = vadd.f32 %v1977_v47, %v1959_v1  ;;  %v2011_v12 = vadd.f32 %v2010_v48, %v1992_v6 }
 0x16e   : > { %v1997_v13 = vadd.f32 %v1996_v46, %v1978_v5  ;;  %v2030_v11 = vadd.f32 %v2029_v41, %v2011_v12 }
 0x16f   : > { %v2032_v49 = vpop.f32.mrf.mxu0 }
 0x173   : > { %v2013_v51 = vpop.f32.mrf.mxu3  ;;  %v2046_v52 = vpop.f32.mrf.mxu1 }
 0x174   : > { %v12310_v63 = vpop.f32.mrf.mxu2  ;;  %v2014_v7 = vadd.f32 %v2013_v51, %v1995_v4  ;;  %v2047_v26 = vadd.f32 %v2046_v52, %v2028_v15  ;;  %v1360_v51 = vperm.slane %v12305_v18, 1 }
 0x176   : > { %v2033_v16 = vadd.f32 %v2032_v49, %v2014_v7  ;;  %v2197_v27 = vmul.f32 0.2, %v2047_v26  ;;  %vm2189_vm4 = vcmp.ge.f32.partialorder %v2047_v26, 0.0  ;;  %v12336_v49 = vld [vmem:[%s15448_s5 + $0x8] sm:$0xff] }
 0x177   : > { %v2034_v54 = vpop.f32.mrf.mxu0 }
 0x178   : > { %v2205_v33 = vsel %vm2189_vm4, %v2047_v26, %v2197_v27 }
 0x17b   : > { %v2015_v58 = vpop.f32.mrf.mxu3  ;;  %v2048_v60 = vpop.f32.mrf.mxu1 }
 0x17c   : > { %v2016_v14 = vadd.f32 %v2015_v58, %v1997_v13  ;;  %v2070_v19 = vpop.f32.mrf.mxu2  ;;  %v2049_v22 = vadd.f32 %v2048_v60, %v2030_v11  ;;  %v2066_v60 = vadd.f32 %v12308_v50, %v1360_v51 }
 0x17d   : > { %v2071_v52 = vadd.f32 %v2070_v19, %v1360_v51 }
 0x17e   : > { %v2035_v21 = vadd.f32 %v2034_v54, %v2016_v14  ;;  %v2199_v39 = vmul.f32 0.2, %v2049_v22  ;;  %vm2191_vm3 = vcmp.ge.f32.partialorder %v2049_v22, 0.0  ;;  %v2068_v54 = vadd.f32 %v12310_v63, %v1360_v51 }
 0x17f   : > { %v12312_v2 = vpop.f32.mrf.mxu0 }
 0x180   : > { %v2207_v59 = vsel %vm2191_vm3, %v2049_v22, %v2199_v39  ;;  %v10731_v39 = vld [vmem:[%s15449_s1 + $0x164] sm:$0xf0] }
 0x181   : > { %v12321_v35 = vpack.c.bf16 %v2207_v59, %v2205_v33  ;;  %v8745_v59 = vld [vmem:[%s15449_s1 + $0x150] sm:$0xf] }
 0x183   : > { %v2051_v8 = vpop.f32.mrf.mxu1  ;;  %v12314_v9 = vpop.f32.mrf.mxu3 }
 0x184   : > { %v2052_v20 = vadd.f32 %v2051_v8, %v2033_v16  ;;  %v2072_v30 = vpop.f32.mrf.mxu2  ;;  %v2085_v62 = vadd.f32 %v12314_v9, %v2066_v60  ;;  %v10749_v60 = vld [vmem:[%s15449_s1 + $0x1f4] sm:$0xf0] }
 0x185   : > { %v2073_v61 = vadd.f32 %v2072_v30, %v1360_v51  ;;  %v8737_v51 = vld [vmem:[%s15449_s1 + $0x140] sm:$0xf] }
 0x186   : > { %v2201_v28 = vmul.f32 0.2, %v2052_v20  ;;  %vm2193_vm1 = vcmp.ge.f32.partialorder %v2052_v20, 0.0  ;;  %v2104_v6 = vadd.f32 %v12312_v2, %v2085_v62  ;;  %v12348_v2 = vld [vmem:[%s15448_s5 + $0x18] sm:$0xff]  ;;  %v10715_v62 = vld [vmem:[%s15449_s1 + $0xe4] sm:$0xf0] }
 0x187   : > { %v2105_v17 = vpop.f32.mrf.mxu0 }
 0x188   : > { %v2209_v29 = vsel %vm2193_vm1, %v2052_v20, %v2201_v28 }
 0x18b   : > { %v2053_v23 = vpop.f32.mrf.mxu1  ;;  %v2086_v25 = vpop.f32.mrf.mxu3 }
 0x18c   : > { %v2054_v57 = vadd.f32 %v2053_v23, %v2035_v21  ;;  %v2141_v37 = vpop.f32.mrf.mxu2  ;;  %v2087_v45 = vadd.f32 %v2086_v25, %v2068_v54  ;;  %v8761_v23 = vld [vmem:[%s15449_s1 + $0x170] sm:$0xf]  ;;  %v10733_v25 = vld [vmem:[%s15449_s1 + $0x174] sm:$0xf0] }
 0x18d   : > { %v8762_v28 = vor.u32 %v10733_v25, %v8761_v23  ;;  %v12385_v54 = vld [vmem:[%s15448_s5 + $0x10] sm:$0xff]  ;;  %v8609_v23 = vld [vmem:[%s15449_s1 + $0x40] sm:$0xf]  ;;  %v10695_v25 = vld [vmem:[%s15449_s1 + $0x44] sm:$0xf0] }
 0x18e   : > { %vm2195_vm2 = vcmp.ge.f32.partialorder %v2054_v57, 0.0  ;;  %v2203_v43 = vmul.f32 0.2, %v2054_v57  ;;  %v2106_v1 = vadd.f32 %v2105_v17, %v2087_v45  ;;  %v8633_v45 = vld [vmem:[%s15449_s1 + $0x70] sm:$0xf] }
 0x18f   : > { %v2108_v44 = vpop.f32.mrf.mxu0 }
 0x190   : > { %v2211_v42 = vsel %vm2195_vm2, %v2054_v57, %v2203_v43  ;;  %v8753_v57 = vld [vmem:[%s15449_s1 + $0x160] sm:$0xf] }
 0x191   : > { %v12316_v31 = vpack.c.bf16 %v2211_v42, %v2209_v29  ;;  %v8754_v42 = vor.u32 %v10731_v39, %v8753_v57  ;;  %v10743_v39 = vld [vmem:[%s15449_s1 + $0x1c4] sm:$0xf0] }
 0x193   : > { %v2089_v32 = vpop.f32.mrf.mxu3  ;;  %2233 = vmatpush.bf16.msrb.mxu1 %v12316_v31  ;;  %2274 = vmatpush.bf16.msrb.mxu3 %v12316_v31  ;;  %v2122_v34 = vpop.f32.mrf.mxu1 }
 0x194   : > { %2356 = vmatpush.bf16.msra.mxu0 %v12316_v31  ;;  %v2143_v48 = vpop.f32.mrf.mxu2  ;;  %v2090_v56 = vadd.f32 %v2089_v32, %v2071_v52  ;;  %v2123_v10 = vadd.f32 %v2122_v34, %v2104_v6  ;;  %v10729_v32 = vld [vmem:[%s15449_s1 + $0x154] sm:$0xf0]  ;;  %v10727_v52 = vld [vmem:[%s15449_s1 + $0x144] sm:$0xf0] }
 0x195   : > { %v10699_v6 = vld [vmem:[%s15449_s1 + $0x64] sm:$0xf0] }
 0x196   : > { %v2109_v0 = vadd.f32 %v2108_v44, %v2090_v56  ;;  %v2142_v19 = vadd.f32 %v2141_v37, %v2123_v10  ;;  %v8825_v56 = vld [vmem:[%s15449_s1 + $0x1f0] sm:$0xf]  ;;  %v8721_v10 = vld [vmem:[%s15449_s1 + $0x120] sm:$0xf] }
 0x197   : > { %v2110_v36 = vpop.f32.mrf.mxu0  ;;  %2234 = vmatpush.bf16.msrb.mxu1 %v12321_v35  ;;  %2275 = vmatpush.bf16.msrb.mxu3 %v12321_v35 }
 0x198   : > { %2357 = vmatpush.bf16.msra.mxu0 %v12321_v35 }
 0x19a   : > { %8549 = vmatmul.msk.bf16.vlgmr.msrb.gmra.mxu1 %vm867_vm0, %v12329_v40  ;;  %8557 = vmatmul.msk.bf16.vlgmr.msrb.gmra.mxu3 %vm867_vm0, %v12336_v49 }
 0x19b   : > { %v2091_v38 = vpop.f32.mrf.mxu3  ;;  %v2124_v41 = vpop.f32.mrf.mxu1  ;;  %8573 = vmatmul.msk.bf16.vlgmr.msra.gmra.mxu0 %vm867_vm0, %v12348_v2 }
 0x19c   : > { %v2146_v3 = vpop.f32.mrf.mxu2  ;;  %v2092_v18 = vadd.f32 %v2091_v38, %v2073_v61  ;;  %v2125_v5 = vadd.f32 %v2124_v41, %v2106_v1  ;;  %3222 = vmatpush.bf16.msrb.mxu0 %v8762_v28  ;;  %v8746_v38 = vor.u32 %v10729_v32, %v8745_v59  ;;  %v8689_v61 = vld [vmem:[%s15449_s1 + $0xe0] sm:$0xf]  ;;  %v8729_v1 = vld [vmem:[%s15449_s1 + $0x130] sm:$0xf] }
 0x19d   : > { %v8801_v28 = vld [vmem:[%s15449_s1 + $0x1c0] sm:$0xf]  ;;  %v8793_v59 = vld [vmem:[%s15449_s1 + $0x1b0] sm:$0xf] }
 0x19e   : > { %v2111_v12 = vadd.f32 %v2110_v36, %v2092_v18  ;;  %v2144_v24 = vadd.f32 %v2143_v48, %v2125_v5  ;;  %v8625_v5 = vld [vmem:[%s15449_s1 + $0x60] sm:$0xf] }
 0x19f   : > { %v2179_v46 = vpop.f32.mrf.mxu0 }
 0x1a0   : > { %3223 = vmatpush.bf16.msrb.mxu0 %v8754_v42  ;;  %v10693_v42 = vld [vmem:[%s15449_s1 + $0x34] sm:$0xf0] }
 0x1a3   : > { %v2160_v47 = vpop.f32.mrf.mxu3  ;;  %v2127_v53 = vpop.f32.mrf.mxu1 }
 0x1a4   : > { %v2128_v4 = vadd.f32 %v2127_v53, %v2109_v0  ;;  %v2148_v9 = vpop.f32.mrf.mxu2  ;;  %v2161_v11 = vadd.f32 %v2160_v47, %v2142_v19  ;;  %v10717_v47 = vld [vmem:[%s15449_s1 + $0xf4] sm:$0xf0]  ;;  %3224 = vmatpush.bf16.msrb.mxu0 %v8746_v38  ;;  %v8738_v0 = vor.u32 %v10727_v52, %v8737_v51  ;;  %v8593_v38 = vld [vmem:[%s15449_s1 + $0x20] sm:$0xf] }
 0x1a5   : > { %v10745_v19 = vld [vmem:[%s15449_s1 + $0x1d4] sm:$0xf0] }
 0x1a6   : > { %v2147_v13 = vadd.f32 %v2146_v3, %v2128_v4  ;;  %v2180_v43 = vadd.f32 %v2179_v46, %v2161_v11  ;;  %v8697_v46 = vld [vmem:[%s15449_s1 + $0xf0] sm:$0xf]  ;;  %v10725_v3 = vld [vmem:[%s15449_s1 + $0x134] sm:$0xf0]  ;;  %v8826_v4 = vor.u32 %v10749_v60, %v8825_v56  ;;  %v10711_v11 = vld [vmem:[%s15449_s1 + $0xc4] sm:$0xf0] }
 0x1a7   : > { %v2181_v55 = vpop.f32.mrf.mxu0  ;;  %v8705_v56 = vld [vmem:[%s15449_s1 + $0x100] sm:$0xf] }
 0x1a8   : > { %v2198_v33 = vmul.f32 0.2, %v2180_v43  ;;  %vm2190_vm8 = vcmp.ge.f32.partialorder %v2180_v43, 0.0  ;;  %3225 = vmatpush.bf16.msrb.mxu0 %v8738_v0  ;;  %v10797_v0 = vld [vmem:[%s15449_s1 + $0x374] sm:$0xf0] }
 0x1aa   : > { %v2206_v48 = vsel %vm2190_vm8, %v2180_v43, %v2198_v33  ;;  %v8665_v43 = vld [vmem:[%s15449_s1 + $0xb0] sm:$0xf]  ;;  %v10741_v33 = vld [vmem:[%s15449_s1 + $0x1b4] sm:$0xf0]  ;;  %vm5027_vm8 = vcmask 64512  }
 0x1ab   : > { %v2162_v58 = vpop.f32.mrf.mxu3  ;;  %v2129_v7 = vpop.f32.mrf.mxu1 }
 0x1ac   : > { %v2130_v14 = vadd.f32 %v2129_v7, %v2111_v12  ;;  %v2163_v16 = vadd.f32 %v2162_v58, %v2144_v24  ;;  %v10701_v58 = vld [vmem:[%s15449_s1 + $0x74] sm:$0xf0]  ;;  %v8690_v7 = vor.u32 %v10715_v62, %v8689_v61  ;;  %v10723_v12 = vld [vmem:[%s15449_s1 + $0x124] sm:$0xf0]  ;;  %v9017_v62 = vld [vmem:[%s15449_s1 + $0x370] sm:$0xf] }
 0x1ad   : > { %v8634_v18 = vor.u32 %v10701_v58, %v8633_v45  ;;  %v10719_v45 = vld [vmem:[%s15449_s1 + $0x104] sm:$0xf0]  ;;  %v8769_v58 = vld [vmem:[%s15449_s1 + $0x180] sm:$0xf] }
 0x1ae   : > { %v2149_v20 = vadd.f32 %v2148_v9, %v2130_v14  ;;  %v2182_v15 = vadd.f32 %v2181_v55, %v2163_v16  ;;  %v8698_v55 = vor.u32 %v10717_v47, %v8697_v46  ;;  %v8809_v14 = vld [vmem:[%s15449_s1 + $0x1d0] sm:$0xf]  ;;  %v8673_v9 = vld [vmem:[%s15449_s1 + $0xc0] sm:$0xf]  ;;  %v8794_v46 = vor.u32 %v10741_v33, %v8793_v59  ;;  %v10735_v61 = vld [vmem:[%s15449_s1 + $0x184] sm:$0xf0] }
 0x1af   : > { %v2184_v8 = vpop.f32.mrf.mxu0  ;;  %v8706_v60 = vor.u32 %v10719_v45, %v8705_v56  ;;  %v10791_v33 = vld [vmem:[%s15449_s1 + $0x344] sm:$0xf0]  ;;  %v10805_v56 = vld [vmem:[%s15449_s1 + $0x3b4] sm:$0xf0] }
 0x1b0   : > { %v2200_v29 = vmul.f32 0.2, %v2182_v15  ;;  %vm2192_vm7 = vcmp.ge.f32.partialorder %v2182_v15, 0.0 }
 0x1b2   : > { %v2208_v41 = vsel %vm2192_vm7, %v2182_v15, %v2200_v29  ;;  %v10721_v15 = vld [vmem:[%s15449_s1 + $0x114] sm:$0xf0]  ;;  %v8601_v29 = vld [vmem:[%s15449_s1 + $0x30] sm:$0xf]  ;;  %vm5031_vm7 = vcmask 1043456  }
 0x1b3   : > { %v2165_v63 = vpop.f32.mrf.mxu3  ;;  %v2214_v53 = vpack.c.bf16 %v2208_v41, %v2206_v48  ;;  %v10691_v41 = vld [vmem:[%s15449_s1 + $0x24] sm:$0xf0]  ;;  %v8785_v48 = vld [vmem:[%s15449_s1 + $0x1a0] sm:$0xf] }
 0x1b4   : > { %v2166_v50 = vadd.f32 %v2165_v63, %v2147_v13  ;;  %v8730_v63 = vor.u32 %v10725_v3, %v8729_v1  ;;  %v8626_v13 = vor.u32 %v10699_v6, %v8625_v5  ;;  %v8594_v51 = vor.u32 %v10691_v41, %v8593_v38  ;;  %v10689_v6 = vld [vmem:[%s15449_s1 + $0x14] sm:$0xf0]  ;;  %v8873_v41 = vld [vmem:[%s15449_s1 + $0x250] sm:$0xf] }
 0x1b5   : > { %v8770_v1 = vor.u32 %v10735_v61, %v8769_v58  ;;  %v9018_v3 = vor.u32 %v10797_v0, %v9017_v62  ;;  %v8865_v58 = vld [vmem:[%s15449_s1 + $0x240] sm:$0xf]  ;;  %v10775_v0 = vld [vmem:[%s15449_s1 + $0x2c4] sm:$0xf0] }
 0x1b6   : > { %v2185_v17 = vadd.f32 %v2184_v8, %v2166_v50  ;;  %v10713_v8 = vld [vmem:[%s15449_s1 + $0xd4] sm:$0xf0]  ;;  %3226 = vmatpush.bf16.msrb.mxu0 %v8730_v63  ;;  %v9009_v63 = vld [vmem:[%s15449_s1 + $0x360] sm:$0xf] }
 0x1b7   : > { %v2186_v26 = vpop.f32.mrf.mxu0  ;;  %v10697_v50 = vld [vmem:[%s15449_s1 + $0x54] sm:$0xf0]  ;;  %v8929_v61 = vld [vmem:[%s15449_s1 + $0x2c0] sm:$0xf] }
 0x1b8   : > { %v2202_v44 = vmul.f32 0.2, %v2185_v17  ;;  %vm2194_vm5 = vcmp.ge.f32.partialorder %v2185_v17, 0.0 }
 0x1ba   : > { %v2210_v34 = vsel %vm2194_vm5, %v2185_v17, %v2202_v44  ;;  %v8722_v17 = vor.u32 %v10723_v12, %v8721_v10  ;;  %v10709_v44 = vld [vmem:[%s15449_s1 + $0xb4] sm:$0xf0]  ;;  %v10795_v10 = vld [vmem:[%s15449_s1 + $0x364] sm:$0xf0]  ;;  %v9073_v12 = vld [vmem:[%s15449_s1 + $0x3e0] sm:$0xf] }
 0x1bb   : > { %v2167_v21 = vpop.f32.mrf.mxu3  ;;  %v8666_v32 = vor.u32 %v10709_v44, %v8665_v43  ;;  %v8881_v43 = vld [vmem:[%s15449_s1 + $0x260] sm:$0xf] }
 0x1bc   : > { %v2168_v22 = vadd.f32 %v2167_v21, %v2149_v20  ;;  %v8713_v20 = vld [vmem:[%s15449_s1 + $0x110] sm:$0xf]  ;;  %3227 = vmatpush.bf16.msrb.mxu0 %v8722_v17 }
 0x1bd   : > { %v8714_v57 = vor.u32 %v10721_v15, %v8713_v20  ;;  %v8889_v17 = vld [vmem:[%s15449_s1 + $0x270] sm:$0xf]  ;;  %v10765_v20 = vld [vmem:[%s15449_s1 + $0x274] sm:$0xf0] }
 0x1be   : > { %v2187_v27 = vadd.f32 %v2186_v26, %v2168_v22  ;;  %v8810_v22 = vor.u32 %v10745_v19, %v8809_v14  ;;  %v8674_v26 = vor.u32 %v10711_v11, %v8673_v9  ;;  %v8577_v14 = vld [vmem:[%s15449_s1] sm:$0xf]  ;;  %v10703_v9 = vld [vmem:[%s15449_s1 + $0x84] sm:$0xf0]  ;;  %v8953_v15 = vld [vmem:[%s15449_s1 + $0x2f0] sm:$0xf] }
 0x1bf   : > { %v8641_v19 = vld [vmem:[%s15449_s1 + $0x80] sm:$0xf] }
 0x1c0   : > { %vm2196_vm6 = vcmp.ge.f32.partialorder %v2187_v27, 0.0  ;;  %v2204_v30 = vmul.f32 0.2, %v2187_v27  ;;  %3228 = vmatpush.bf16.msrb.mxu0 %v8714_v57  ;;  %v8642_v11 = vor.u32 %v10703_v9, %v8641_v19  ;;  %v9065_v57 = vld [vmem:[%s15449_s1 + $0x3d0] sm:$0xf] }
 0x1c1   : > { %v10755_v19 = vld [vmem:[%s15449_s1 + $0x224] sm:$0xf0]  ;;  %v8913_v9 = vld [vmem:[%s15449_s1 + $0x2a0] sm:$0xf] }
 0x1c2   : > { %v2212_v36 = vsel %vm2196_vm6, %v2187_v27, %v2204_v30  ;;  %v8610_v27 = vor.u32 %v10695_v25, %v8609_v23  ;;  %v8802_v30 = vor.u32 %v10743_v39, %v8801_v28  ;;  %v9001_v23 = vld [vmem:[%s15449_s1 + $0x350] sm:$0xf]  ;;  %v10793_v25 = vld [vmem:[%s15449_s1 + $0x354] sm:$0xf0] }
 0x1c3   : > { %v2216_v37 = vpack.c.bf16 %v2212_v36, %v2210_v34  ;;  %v8657_v34 = vld [vmem:[%s15449_s1 + $0xa0] sm:$0xf]  ;;  %v10707_v36 = vld [vmem:[%s15449_s1 + $0xa4] sm:$0xf0]  ;;  %v9002_v28 = vor.u32 %v10793_v25, %v9001_v23  ;;  %v10809_v39 = vld [vmem:[%s15449_s1 + $0x3d4] sm:$0xf0] }
 0x1c4   : > { %v8658_v47 = vor.u32 %v10707_v36, %v8657_v34  ;;  %3229 = vmatpush.bf16.msrb.mxu0 %v8706_v60  ;;  %v9066_v44 = vor.u32 %v10809_v39, %v9065_v57  ;;  %v9057_v34 = vld [vmem:[%s15449_s1 + $0x3c0] sm:$0xf]  ;;  %v10759_v60 = vld [vmem:[%s15449_s1 + $0x244] sm:$0xf0]  ;;  %v8841_v57 = vld [vmem:[%s15449_s1 + $0x210] sm:$0xf] }
 0x1c5   : > { %2247 = vmatpush.bf16.msra.mxu2 %v2216_v37  ;;  %2288 = vmatpush.bf16.msra.mxu1 %v2216_v37  ;;  %v8866_v62 = vor.u32 %v10759_v60, %v8865_v58  ;;  %v9025_v23 = vld [vmem:[%s15449_s1 + $0x380] sm:$0xf]  ;;  %v10753_v39 = vld [vmem:[%s15449_s1 + $0x214] sm:$0xf0] }
 0x1c6   : > { %2329 = vmatpush.bf16.msra.mxu3 %v2216_v37 }
 0x1c8   : > { %3278 = vmatpush.bf16.msra.mxu0 %v9018_v3  ;;  %v8977_v3 = vld [vmem:[%s15449_s1 + $0x320] sm:$0xf] }
 0x1c9   : > { %2248 = vmatpush.bf16.msra.mxu2 %v2214_v53  ;;  %2289 = vmatpush.bf16.msra.mxu1 %v2214_v53 }
 0x1ca   : > { %2330 = vmatpush.bf16.msra.mxu3 %v2214_v53 }
 0x1cc   : > { %8550 = vmatmul.msk.bf16.vlgmr.msra.gmra.mxu2 %vm867_vm0, %v12329_v40  ;;  %8558 = vmatmul.msk.bf16.vlgmr.msra.gmra.mxu1 %vm867_vm0, %v12336_v49  ;;  %v10747_v40 = vld [vmem:[%s15449_s1 + $0x1e4] sm:$0xf0]  ;;  %v8681_v49 = vld [vmem:[%s15449_s1 + $0xd0] sm:$0xf] }
 0x1cd   : > { %2315 = vmatpush.bf16.msrb.mxu2 %v12316_v31  ;;  %2370 = vmatpush.bf16.msrb.mxu1 %v2216_v37  ;;  %v8817_v31 = vld [vmem:[%s15449_s1 + $0x1e0] sm:$0xf]  ;;  %v8682_v16 = vor.u32 %v10713_v8, %v8681_v49  ;;  %v8602_v37 = vor.u32 %v10693_v42, %v8601_v29  ;;  %v10779_v42 = vld [vmem:[%s15449_s1 + $0x2e4] sm:$0xf0] }
 0x1ce   : > { %3208 = vmatpush.bf16.msrb.mxu3 %v8698_v55  ;;  %v8818_v24 = vor.u32 %v10747_v40, %v8817_v31  ;;  %v8585_v31 = vld [vmem:[%s15449_s1 + $0x10] sm:$0xf]  ;;  %v10705_v40 = vld [vmem:[%s15449_s1 + $0x94] sm:$0xf0]  ;;  %v8945_v29 = vld [vmem:[%s15449_s1 + $0x2e0] sm:$0xf] }
 0x1cf   : > { %8566 = vmatmul.msk.bf16.vlgmr.msra.gmra.mxu3 %vm867_vm0, %v12385_v54  ;;  %v8586_v49 = vor.u32 %v10689_v6, %v8585_v31  ;;  %v8946_v59 = vor.u32 %v10779_v42, %v8945_v29  ;;  %v8833_v42 = vld [vmem:[%s15449_s1 + $0x200] sm:$0xf] }
 0x1d1   : > { %2316 = vmatpush.bf16.msrb.mxu2 %v12321_v35  ;;  %2371 = vmatpush.bf16.msrb.mxu1 %v2214_v53  ;;  %v8617_v35 = vld [vmem:[%s15449_s1 + $0x50] sm:$0xf] }
 0x1d2   : > { %3209 = vmatpush.bf16.msrb.mxu3 %v8690_v7  ;;  %v8618_v21 = vor.u32 %v10697_v50, %v8617_v35  ;;  %v8777_v53 = vld [vmem:[%s15449_s1 + $0x190] sm:$0xf]  ;;  %v10687_v35 = vld [vmem:[%s15449_s1 + $0x4] sm:$0xf0] }
 0x1d3   : > { %v8649_v7 = vld [vmem:[%s15449_s1 + $0x90] sm:$0xf] }
 0x1d4   : > { %v8650_v8 = vor.u32 %v10705_v40, %v8649_v7  ;;  %v8857_v7 = vld [vmem:[%s15449_s1 + $0x230] sm:$0xf]  ;;  %v10757_v40 = vld [vmem:[%s15449_s1 + $0x234] sm:$0xf0] }
 0x1d5   : > { %3194 = vmatpush.bf16.msra.mxu2 %v8634_v18  ;;  %3236 = vmatpush.bf16.msra.mxu1 %v8826_v4  ;;  %v9081_v18 = vld [vmem:[%s15449_s1 + $0x3f0] sm:$0xf]  ;;  %v10813_v4 = vld [vmem:[%s15449_s1 + $0x3f4] sm:$0xf0] }
 0x1d6   : > { %3210 = vmatpush.bf16.msrb.mxu3 %v8682_v16  ;;  %v9082_v5 = vor.u32 %v10813_v4, %v9081_v18  ;;  %v8578_v16 = vor.u32 %v10687_v35, %v8577_v14  ;;  %v10787_v18 = vld [vmem:[%s15449_s1 + $0x324] sm:$0xf0]  ;;  %v9041_v4 = vld [vmem:[%s15449_s1 + $0x3a0] sm:$0xf]  ;;  %v10801_v35 = vld [vmem:[%s15449_s1 + $0x394] sm:$0xf0] }
 0x1d7   : > { %v8978_v31 = vor.u32 %v10787_v18, %v8977_v3 }
 0x1d9   : > { %3195 = vmatpush.bf16.msra.mxu2 %v8626_v13  ;;  %3237 = vmatpush.bf16.msra.mxu1 %v8818_v24  ;;  %v9010_v13 = vor.u32 %v10795_v10, %v9009_v63  ;;  %v10811_v24 = vld [vmem:[%s15449_s1 + $0x3e4] sm:$0xf0]  ;;  %v10773_v63 = vld [vmem:[%s15449_s1 + $0x2b4] sm:$0xf0] }
 0x1da   : > { %3211 = vmatpush.bf16.msrb.mxu3 %v8674_v26  ;;  %v9074_v50 = vor.u32 %v10811_v24, %v9073_v12  ;;  %v8969_v12 = vld [vmem:[%s15449_s1 + $0x310] sm:$0xf] }
 0x1db   : > { %3279 = vmatpush.bf16.msra.mxu0 %v9010_v13  ;;  %v10785_v13 = vld [vmem:[%s15449_s1 + $0x314] sm:$0xf0]  ;;  %v9033_v24 = vld [vmem:[%s15449_s1 + $0x390] sm:$0xf] }
 0x1dc   : > { %8565 = vmatmul.msk.bf16.vlgmr.msrb.gmra.mxu2 %vm867_vm0, %v12385_v54  ;;  %8574 = vmatmul.msk.bf16.vlgmr.msrb.gmra.mxu1 %vm867_vm0, %v12348_v2  ;;  %v10739_v2 = vld [vmem:[%s15449_s1 + $0x1a4] sm:$0xf0]  ;;  %v10737_v54 = vld [vmem:[%s15449_s1 + $0x194] sm:$0xf0]  ;;  %v8970_v14 = vor.u32 %v10785_v13, %v8969_v12 }
 0x1dd   : > { %3196 = vmatpush.bf16.msra.mxu2 %v8618_v21  ;;  %3238 = vmatpush.bf16.msra.mxu1 %v8810_v22  ;;  %v8786_v52 = vor.u32 %v10739_v2, %v8785_v48  ;;  %v8778_v55 = vor.u32 %v10737_v54, %v8777_v53  ;;  %v8890_v21 = vor.u32 %v10765_v20, %v8889_v17  ;;  %v10781_v22 = vld [vmem:[%s15449_s1 + $0x2f4] sm:$0xf0]  ;;  %v9049_v54 = vld [vmem:[%s15449_s1 + $0x3b0] sm:$0xf]  ;;  %v10771_v17 = vld [vmem:[%s15449_s1 + $0x2a4] sm:$0xf0] }
 0x1de   : > { %3212 = vmatpush.bf16.msrb.mxu3 %v8666_v32  ;;  %v8954_v26 = vor.u32 %v10781_v22, %v8953_v15  ;;  %v8993_v32 = vld [vmem:[%s15449_s1 + $0x340] sm:$0xf]  ;;  %v10777_v2 = vld [vmem:[%s15449_s1 + $0x2d4] sm:$0xf0]  ;;  %v9050_v45 = vor.u32 %v10805_v56, %v9049_v54  ;;  %v8914_v15 = vor.u32 %v10771_v17, %v8913_v9  ;;  %v10783_v22 = vld [vmem:[%s15449_s1 + $0x304] sm:$0xf0] }
 0x1df   : > { %3280 = vmatpush.bf16.msra.mxu0 %v9002_v28  ;;  %v8994_v36 = vor.u32 %v10791_v33, %v8993_v32  ;;  %v10789_v53 = vld [vmem:[%s15449_s1 + $0x334] sm:$0xf0]  ;;  %v8897_v32 = vld [vmem:[%s15449_s1 + $0x280] sm:$0xf]  ;;  %v10767_v33 = vld [vmem:[%s15449_s1 + $0x284] sm:$0xf0] }
 0x1e0   : > { %v8763_v54 = vld [vmem:[%s15449_s1 + $0x178] sm:$0xf0]  ;;  %v10744_v9 = vld [vmem:[%s15449_s1 + $0x1d4] sm:$0xf] }
 0x1e1   : > { %3197 = vmatpush.bf16.msra.mxu2 %v8610_v27  ;;  %3239 = vmatpush.bf16.msra.mxu1 %v8802_v30  ;;  %v10763_v27 = vld [vmem:[%s15449_s1 + $0x264] sm:$0xf0]  ;;  %v8827_v56 = vld [vmem:[%s15449_s1 + $0x1f8] sm:$0xf0] }
 0x1e2   : > { %3213 = vmatpush.bf16.msrb.mxu3 %v8658_v47  ;;  %v8882_v30 = vor.u32 %v10763_v27, %v8881_v43  ;;  %v8937_v47 = vld [vmem:[%s15449_s1 + $0x2d0] sm:$0xf]  ;;  %v8842_v27 = vor.u32 %v10753_v39, %v8841_v57 }
 0x1e3   : > { %3281 = vmatpush.bf16.msra.mxu0 %v8994_v36  ;;  %v8905_v43 = vld [vmem:[%s15449_s1 + $0x290] sm:$0xf] }
 0x1e5   : > { %3198 = vmatpush.bf16.msra.mxu2 %v8602_v37  ;;  %3240 = vmatpush.bf16.msra.mxu1 %v8794_v46  ;;  %v10807_v37 = vld [vmem:[%s15449_s1 + $0x3c4] sm:$0xf0]  ;;  %v10761_v46 = vld [vmem:[%s15449_s1 + $0x254] sm:$0xf0] }
 0x1e6   : > { %3214 = vmatpush.bf16.msrb.mxu3 %v8650_v8  ;;  %v9058_v38 = vor.u32 %v10807_v37, %v9057_v34  ;;  %v8874_v48 = vor.u32 %v10761_v46, %v8873_v41  ;;  %v8858_v8 = vor.u32 %v10757_v40, %v8857_v7  ;;  %v8898_v34 = vor.u32 %v10767_v33, %v8897_v32  ;;  %v10700_v7 = vld [vmem:[%s15449_s1 + $0x74] sm:$0xf] }
 0x1e9   : > { %3199 = vmatpush.bf16.msra.mxu2 %v8594_v51  ;;  %3241 = vmatpush.bf16.msra.mxu1 %v8786_v52  ;;  %v8938_v51 = vor.u32 %v10777_v2, %v8937_v47  ;;  %v8985_v52 = vld [vmem:[%s15449_s1 + $0x330] sm:$0xf]  ;;  %v10732_v2 = vld [vmem:[%s15449_s1 + $0x174] sm:$0xf] }
 0x1ea   : > { %3215 = vmatpush.bf16.msrb.mxu3 %v8642_v11  ;;  %v8766_v60 = vor.u32 %v10732_v2, %v8763_v54  ;;  %v10740_v54 = vld [vmem:[%s15449_s1 + $0x1b4] sm:$0xf] }
 0x1ed   : > { %3242 = vmatpush.bf16.msra.mxu1 %v8778_v55  ;;  %3200 = vmatpush.bf16.msra.mxu2 %v8586_v49  ;;  %v8986_v55 = vor.u32 %v10789_v53, %v8985_v52  ;;  %v8921_v49 = vld [vmem:[%s15449_s1 + $0x2b0] sm:$0xf] }
 0x1ee   : > { %3264 = vmatpush.bf16.msra.mxu3 %v8954_v26  ;;  %v8922_v10 = vor.u32 %v10773_v63, %v8921_v49  ;;  %v10799_v26 = vld [vmem:[%s15449_s1 + $0x384] sm:$0xf0]  ;;  %v8635_v49 = vld [vmem:[%s15449_s1 + $0x78] sm:$0xf0] }
 0x1ef   : > { %3282 = vmatpush.bf16.msra.mxu0 %v8986_v55  ;;  %v9026_v28 = vor.u32 %v10799_v26, %v9025_v23  ;;  %v10748_v55 = vld [vmem:[%s15449_s1 + $0x1f4] sm:$0xf]  ;;  %v8699_v63 = vld [vmem:[%s15449_s1 + $0xf8] sm:$0xf0]  ;;  %v8638_v17 = vor.u32 %v10700_v7, %v8635_v49  ;;  %v10714_v26 = vld [vmem:[%s15449_s1 + $0xe4] sm:$0xf] }
 0x1f0   : > { %v10722_v7 = vld [vmem:[%s15449_s1 + $0x124] sm:$0xf] }
 0x1f1   : > { %3243 = vmatpush.bf16.msra.mxu1 %v8770_v1  ;;  %3201 = vmatpush.bf16.msra.mxu2 %v8578_v16  ;;  %v8930_v1 = vor.u32 %v10775_v0, %v8929_v61  ;;  %v8849_v16 = vld [vmem:[%s15449_s1 + $0x220] sm:$0xf]  ;;  %v8830_v61 = vor.u32 %v10748_v55, %v8827_v56  ;;  %v10730_v0 = vld [vmem:[%s15449_s1 + $0x164] sm:$0xf]  ;;  %v8795_v55 = vld [vmem:[%s15449_s1 + $0x1b8] sm:$0xf0] }
 0x1f2   : > { %3265 = vmatpush.bf16.msra.mxu3 %v8946_v59  ;;  %v8850_v11 = vor.u32 %v10755_v19, %v8849_v16  ;;  %v8747_v19 = vld [vmem:[%s15449_s1 + $0x158] sm:$0xf0] }
 0x1f3   : > { %3283 = vmatpush.bf16.msra.mxu0 %v8978_v31  ;;  %v10746_v31 = vld [vmem:[%s15449_s1 + $0x1e4] sm:$0xf] }
 0x1f5   : > { %3292 = vmatpush.bf16.msrb.mxu1 %v9082_v5  ;;  %3250 = vmatpush.bf16.msrb.mxu2 %v8890_v21  ;;  %v10803_v5 = vld [vmem:[%s15449_s1 + $0x3a4] sm:$0xf0]  ;;  %v8961_v21 = vld [vmem:[%s15449_s1 + $0x300] sm:$0xf] }
 0x1f6   : > { %3266 = vmatpush.bf16.msra.mxu3 %v8938_v51  ;;  %v9042_v6 = vor.u32 %v10803_v5, %v9041_v4  ;;  %v8962_v25 = vor.u32 %v10783_v22, %v8961_v21  ;;  %v8755_v4 = vld [vmem:[%s15449_s1 + $0x168] sm:$0xf0]  ;;  %v10698_v21 = vld [vmem:[%s15449_s1 + $0x64] sm:$0xf] }
 0x1f7   : > { %3284 = vmatpush.bf16.msra.mxu0 %v8970_v14  ;;  %v8819_v5 = vld [vmem:[%s15449_s1 + $0x1e8] sm:$0xf0]  ;;  %v8758_v12 = vor.u32 %v10730_v0, %v8755_v4 }
 0x1f8   : > { %v8822_v13 = vor.u32 %v10746_v31, %v8819_v5  ;;  %v8611_v0 = vld [vmem:[%s15449_s1 + $0x48] sm:$0xf0] }
 0x1f9   : > { %3293 = vmatpush.bf16.msrb.mxu1 %v9074_v50  ;;  %3251 = vmatpush.bf16.msrb.mxu2 %v8882_v30  ;;  %v9034_v50 = vor.u32 %v10801_v35, %v9033_v24  ;;  %v10751_v30 = vld [vmem:[%s15449_s1 + $0x204] sm:$0xf0]  ;;  %v10728_v24 = vld [vmem:[%s15449_s1 + $0x154] sm:$0xf]  ;;  %v8675_v4 = vld [vmem:[%s15449_s1 + $0xc8] sm:$0xf0] }
 0x1fa   : > { %3267 = vmatpush.bf16.msra.mxu3 %v8930_v1  ;;  %v8834_v59 = vor.u32 %v10751_v30, %v8833_v42  ;;  %v8750_v57 = vor.u32 %v10728_v24, %v8747_v19  ;;  %v8803_v42 = vld [vmem:[%s15449_s1 + $0x1c8] sm:$0xf0]  ;;  %v8603_v19 = vld [vmem:[%s15449_s1 + $0x38] sm:$0xf0] }
 0x1fb   : > { %3285 = vmatpush.bf16.msra.mxu0 %v8962_v25  ;;  %v8627_v25 = vld [vmem:[%s15449_s1 + $0x68] sm:$0xf0] }
 0x1fc   : > { %v8630_v32 = vor.u32 %v10698_v21, %v8627_v25 }
 0x1fd   : > { %3294 = vmatpush.bf16.msrb.mxu1 %v9066_v44  ;;  %3252 = vmatpush.bf16.msrb.mxu2 %v8874_v48  ;;  %v10769_v44 = vld [vmem:[%s15449_s1 + $0x294] sm:$0xf0] }
 0x1fe   : > { %3268 = vmatpush.bf16.msra.mxu3 %v8922_v10  ;;  %v8906_v29 = vor.u32 %v10769_v44, %v8905_v43  ;;  %v10726_v43 = vld [vmem:[%s15449_s1 + $0x144] sm:$0xf] }
 0x201   : > { %3295 = vmatpush.bf16.msrb.mxu1 %v9058_v38  ;;  %3253 = vmatpush.bf16.msrb.mxu2 %v8866_v62 }
 0x202   : > { %3269 = vmatpush.bf16.msra.mxu3 %v8914_v15 }
 0x205   : > { %3296 = vmatpush.bf16.msrb.mxu1 %v9050_v45  ;;  %3254 = vmatpush.bf16.msrb.mxu2 %v8858_v8  ;;  %v10716_v8 = vld [vmem:[%s15449_s1 + $0xf4] sm:$0xf] }
 0x206   : > { %3270 = vmatpush.bf16.msra.mxu3 %v8906_v29  ;;  %v10742_v29 = vld [vmem:[%s15449_s1 + $0x1c4] sm:$0xf] }
 0x209   : > { %3297 = vmatpush.bf16.msrb.mxu1 %v9042_v6  ;;  %3255 = vmatpush.bf16.msrb.mxu2 %v8850_v11  ;;  %v8811_v11 = vld [vmem:[%s15449_s1 + $0x1d8] sm:$0xf0] }
 0x20a   : > { %3271 = vmatpush.bf16.msra.mxu3 %v8898_v34  ;;  %v8814_v39 = vor.u32 %v10744_v9, %v8811_v11  ;;  %v10696_v34 = vld [vmem:[%s15449_s1 + $0x54] sm:$0xf]  ;;  %v8667_v11 = vld [vmem:[%s15449_s1 + $0xb8] sm:$0xf0] }
 0x20b   : > { %v10708_v9 = vld [vmem:[%s15449_s1 + $0xb4] sm:$0xf] }
 0x20d   : > { %3298 = vmatpush.bf16.msrb.mxu1 %v9034_v50  ;;  %3256 = vmatpush.bf16.msrb.mxu2 %v8842_v27  ;;  %v8739_v27 = vld [vmem:[%s15449_s1 + $0x148] sm:$0xf0] }
 0x211   : > { %3299 = vmatpush.bf16.msrb.mxu1 %v9026_v28  ;;  %3257 = vmatpush.bf16.msrb.mxu2 %v8834_v59  ;;  %v8691_v28 = vld [vmem:[%s15449_s1 + $0xe8] sm:$0xf0] }
 0x212   : > { %v8694_v33 = vor.u32 %v10714_v26, %v8691_v28  ;;  %v8715_v26 = vld [vmem:[%s15449_s1 + $0x118] sm:$0xf0]  ;;  %v10736_v28 = vld [vmem:[%s15449_s1 + $0x194] sm:$0xf] }
 0x217   : > { %v2236_v20 = vpop.f32.mrf.mxu1 }
 0x218   : > { %v2359_v62 = vpop.f32.mrf.mxu0 }
 0x21d   : > { %v2277_v37 = vpop.f32.mrf.mxu3 }
 0x21f   : > { %v2238_v36 = vpop.f32.mrf.mxu1 }
 0x220   : > { %v2361_v59 = vpop.f32.mrf.mxu0 }
 0x225   : > { %v2279_v47 = vpop.f32.mrf.mxu3 }
 0x249   : > { %v2291_v38 = vpop.f32.mrf.mxu1 }
 0x24a   : > { %v2296_v41 = vpack.c.bf16 %v2291_v38, %v2277_v37  ;;  %v10712_v37 = vld [vmem:[%s15449_s1 + $0xd4] sm:$0xf]  ;;  %v8683_v38 = vld [vmem:[%s15449_s1 + $0xd8] sm:$0xf0] }
 0x24c   : > { %v2392_v51 = vunpack.c.l.b16 %v2296_v41  ;;  %v2393_v52 = vunpack.c.h.b16 %v2296_v41 }
 0x24f   : > { %v2250_v46 = vpop.f32.mrf.mxu2 }
 0x250   : > { %v2255_v1 = vpack.c.bf16 %v2250_v46, %v2236_v20  ;;  %v8702_v20 = vor.u32 %v10716_v8, %v8699_v63  ;;  %v8742_v46 = vor.u32 %v10726_v43, %v8739_v27  ;;  %v8723_v8 = vld [vmem:[%s15449_s1 + $0x128] sm:$0xf0]  ;;  %v10738_v63 = vld [vmem:[%s15449_s1 + $0x1a4] sm:$0xf]  ;;  %v8670_v43 = vor.u32 %v10708_v9, %v8667_v11  ;;  %v10808_v9 = vld [vmem:[%s15449_s1 + $0x3d4] sm:$0xf] }
 0x251   : > { %v2293_v48 = vpop.f32.mrf.mxu1  ;;  %v9067_v11 = vld [vmem:[%s15449_s1 + $0x3d8] sm:$0xf0] }
 0x252   : > { %v2297_v53 = vpack.c.bf16 %v2293_v48, %v2279_v47  ;;  %v2382_v14 = vunpack.c.l.b16 %v2255_v1  ;;  %v2383_v35 = vunpack.c.h.b16 %v2255_v1  ;;  %v2332_v15 = vpop.f32.mrf.mxu3  ;;  %v8806_v47 = vor.u32 %v10742_v29, %v8803_v42  ;;  %v10724_v48 = vld [vmem:[%s15449_s1 + $0x134] sm:$0xf]  ;;  %v10710_v1 = vld [vmem:[%s15449_s1 + $0xc4] sm:$0xf]  ;;  %v8595_v42 = vld [vmem:[%s15449_s1 + $0x28] sm:$0xf0] }
 0x253   : > { %v8678_v24 = vor.u32 %v10710_v1, %v8675_v4 }
 0x254   : > { %v2394_v45 = vunpack.c.l.b16 %v2297_v53  ;;  %v2395_v58 = vunpack.c.h.b16 %v2297_v53  ;;  %v8731_v53 = vld [vmem:[%s15449_s1 + $0x138] sm:$0xf0] }
 0x255   : > { %v8734_v5 = vor.u32 %v10724_v48, %v8731_v53  ;;  %v8587_v53 = vld [vmem:[%s15449_s1 + $0x18] sm:$0xf0] }
 0x256   : > { %v12768_v3 = vpack.c.b16 %v2394_v45, %v2392_v51  ;;  %v12770_v18 = vpack.c.b16 %v2395_v58, %v2393_v52  ;;  %v8686_v45 = vor.u32 %v10712_v37, %v8683_v38  ;;  %v10694_v58 = vld [vmem:[%s15449_s1 + $0x44] sm:$0xf]  ;;  %v8771_v38 = vld [vmem:[%s15449_s1 + $0x188] sm:$0xf0] }
 0x257   : > { %v2252_v6 = vpop.f32.mrf.mxu2  ;;  %v10734_v37 = vld [vmem:[%s15449_s1 + $0x184] sm:$0xf] }
 0x258   : > { %v2256_v40 = vpack.c.bf16 %v2252_v6, %v2238_v36  ;;  %3230 = vmatmul.bf16.vlgmr.msrb.gmra.mxu0 %v12768_v3  ;;  %3244 = vmatmul.bf16.vlgmr.msra.gmra.mxu1 %v12770_v18  ;;  %v8619_v36 = vld [vmem:[%s15449_s1 + $0x58] sm:$0xf0]  ;;  %v8798_v6 = vor.u32 %v10740_v54, %v8795_v55  ;;  %v10704_v54 = vld [vmem:[%s15449_s1 + $0x94] sm:$0xf] }
 0x259   : > { %3334 = vmatpush.bf16.msrb.mxu0 %v8766_v60  ;;  %3348 = vmatpush.bf16.msra.mxu1 %v8830_v61  ;;  %v2373_v10 = vpop.f32.mrf.mxu1  ;;  %v8622_v56 = vor.u32 %v10696_v34, %v8619_v36  ;;  %v10718_v34 = vld [vmem:[%s15449_s1 + $0x104] sm:$0xf]  ;;  %v8707_v36 = vld [vmem:[%s15449_s1 + $0x108] sm:$0xf0]  ;;  %v8651_v55 = vld [vmem:[%s15449_s1 + $0x98] sm:$0xf0] }
 0x25a   : > { %v2384_v50 = vunpack.c.l.b16 %v2256_v40  ;;  %v2385_v16 = vunpack.c.h.b16 %v2256_v40  ;;  %v2378_v44 = vpack.c.bf16 %v2373_v10, %v2359_v62  ;;  %v2334_v31 = vpop.f32.mrf.mxu3  ;;  %v8787_v10 = vld [vmem:[%s15449_s1 + $0x1a8] sm:$0xf0]  ;;  %v8654_v4 = vor.u32 %v10704_v54, %v8651_v55  ;;  %v10786_v54 = vld [vmem:[%s15449_s1 + $0x324] sm:$0xf] }
 0x25b   : > { %v8979_v55 = vld [vmem:[%s15449_s1 + $0x328] sm:$0xf0] }
 0x25c   : > { %v12810_v22 = vpack.c.b16 %v2384_v50, %v2382_v14  ;;  %v12812_v23 = vpack.c.b16 %v2385_v16, %v2383_v35  ;;  %v2412_v2 = vunpack.c.l.b16 %v2378_v44  ;;  %v2413_v51 = vunpack.c.h.b16 %v2378_v44  ;;  %v10692_v14 = vld [vmem:[%s15449_s1 + $0x34] sm:$0xf]  ;;  %v10690_v44 = vld [vmem:[%s15449_s1 + $0x24] sm:$0xf] }
 0x25d   : > { %3335 = vmatpush.bf16.msrb.mxu0 %v8758_v12  ;;  %3349 = vmatpush.bf16.msra.mxu1 %v8822_v13  ;;  %v8614_v13 = vor.u32 %v10694_v58, %v8611_v0  ;;  %v10810_v0 = vld [vmem:[%s15449_s1 + $0x3e4] sm:$0xf] }
 0x25e   : > { %3202 = vmatmul.bf16.vlgmr.msra.gmra.mxu2 %v12810_v22  ;;  %3216 = vmatmul.bf16.vlgmr.msrb.gmra.mxu3 %v12812_v23 }
 0x25f   : > { %3306 = vmatpush.bf16.msra.mxu2 %v8638_v17  ;;  %3320 = vmatpush.bf16.msrb.mxu3 %v8702_v20  ;;  %v2318_v30 = vpop.f32.mrf.mxu2  ;;  %v8726_v17 = vor.u32 %v10722_v7, %v8723_v8  ;;  %v8790_v20 = vor.u32 %v10738_v63, %v8787_v10  ;;  %v10702_v7 = vld [vmem:[%s15449_s1 + $0x84] sm:$0xf]  ;;  %v8643_v8 = vld [vmem:[%s15449_s1 + $0x88] sm:$0xf0]  ;;  %v10764_v63 = vld [vmem:[%s15449_s1 + $0x274] sm:$0xf] }
 0x260   : > { %v2337_v60 = vpack.c.bf16 %v2332_v15, %v2318_v30  ;;  %v10720_v15 = vld [vmem:[%s15449_s1 + $0x114] sm:$0xf]  ;;  %v10706_v30 = vld [vmem:[%s15449_s1 + $0xa4] sm:$0xf]  ;;  %v8891_v10 = vld [vmem:[%s15449_s1 + $0x278] sm:$0xf0] }
 0x261   : > { %3336 = vmatpush.bf16.msrb.mxu0 %v8750_v57  ;;  %3350 = vmatpush.bf16.msra.mxu1 %v8814_v39  ;;  %v2375_v41 = vpop.f32.mrf.mxu1  ;;  %v8779_v57 = vld [vmem:[%s15449_s1 + $0x198] sm:$0xf0]  ;;  %v8606_v39 = vor.u32 %v10692_v14, %v8603_v19 }
 0x262   : > { %v2379_v52 = vpack.c.bf16 %v2375_v41, %v2361_v59  ;;  %v2402_v35 = vunpack.c.l.b16 %v2337_v60  ;;  %v2403_v50 = vunpack.c.h.b16 %v2337_v60  ;;  %v8659_v59 = vld [vmem:[%s15449_s1 + $0xa8] sm:$0xf0]  ;;  %v10796_v41 = vld [vmem:[%s15449_s1 + $0x374] sm:$0xf]  ;;  %v9003_v19 = vld [vmem:[%s15449_s1 + $0x358] sm:$0xf0] }
 0x263   : > { %3307 = vmatpush.bf16.msra.mxu2 %v8630_v32  ;;  %3321 = vmatpush.bf16.msrb.mxu3 %v8694_v33  ;;  %v8718_v32 = vor.u32 %v10720_v15, %v8715_v26  ;;  %v8782_v33 = vor.u32 %v10736_v28, %v8779_v57  ;;  %v8662_v48 = vor.u32 %v10706_v30, %v8659_v59  ;;  %v10762_v15 = vld [vmem:[%s15449_s1 + $0x264] sm:$0xf]  ;;  %v8995_v57 = vld [vmem:[%s15449_s1 + $0x348] sm:$0xf0]  ;;  %v10760_v30 = vld [vmem:[%s15449_s1 + $0x254] sm:$0xf] }
 0x264   : > { %v2414_v61 = vunpack.c.l.b16 %v2379_v52  ;;  %v2415_v62 = vunpack.c.h.b16 %v2379_v52  ;;  %v10688_v52 = vld [vmem:[%s15449_s1 + $0x14] sm:$0xf]  ;;  %v9070_v26 = vor.u32 %v10808_v9, %v9067_v11  ;;  %v10790_v28 = vld [vmem:[%s15449_s1 + $0x344] sm:$0xf]  ;;  %v8875_v59 = vld [vmem:[%s15449_s1 + $0x258] sm:$0xf0] }
 0x265   : > { %3337 = vmatpush.bf16.msrb.mxu0 %v8742_v46  ;;  %3351 = vmatpush.bf16.msra.mxu1 %v8806_v47  ;;  %v9019_v46 = vld [vmem:[%s15449_s1 + $0x378] sm:$0xf0]  ;;  %v8598_v47 = vor.u32 %v10690_v44, %v8595_v42  ;;  %v8590_v1 = vor.u32 %v10688_v52, %v8587_v53  ;;  %v10798_v9 = vld [vmem:[%s15449_s1 + $0x384] sm:$0xf]  ;;  %v9027_v11 = vld [vmem:[%s15449_s1 + $0x388] sm:$0xf0] }
 0x266   : > { %v12876_v40 = vpack.c.b16 %v2414_v61, %v2412_v2  ;;  %v12878_v49 = vpack.c.b16 %v2415_v62, %v2413_v51  ;;  %v10812_v2 = vld [vmem:[%s15449_s1 + $0x3f4] sm:$0xf]  ;;  %v9083_v51 = vld [vmem:[%s15449_s1 + $0x3f8] sm:$0xf0]  ;;  %v9022_v58 = vor.u32 %v10796_v41, %v9019_v46  ;;  %v10794_v61 = vld [vmem:[%s15449_s1 + $0x364] sm:$0xf] }
 0x267   : > { %3308 = vmatpush.bf16.msra.mxu2 %v8622_v56  ;;  %3322 = vmatpush.bf16.msrb.mxu3 %v8686_v45  ;;  %v2320_v12 = vpop.f32.mrf.mxu2  ;;  %v8710_v56 = vor.u32 %v10718_v34, %v8707_v36  ;;  %v8774_v45 = vor.u32 %v10734_v37, %v8771_v38  ;;  %v9086_v60 = vor.u32 %v10812_v2, %v9083_v51  ;;  %v9011_v62 = vld [vmem:[%s15449_s1 + $0x368] sm:$0xf0]  ;;  %v10788_v37 = vld [vmem:[%s15449_s1 + $0x334] sm:$0xf]  ;;  %v8987_v38 = vld [vmem:[%s15449_s1 + $0x338] sm:$0xf0] }
 0x268   : > { %v2338_v16 = vpack.c.bf16 %v2334_v31, %v2320_v12  ;;  %3286 = vmatmul.bf16.vlgmr.msra.gmra.mxu0 %v12876_v40  ;;  %3300 = vmatmul.bf16.vlgmr.msrb.gmra.mxu1 %v12878_v49  ;;  %v9075_v31 = vld [vmem:[%s15449_s1 + $0x3e8] sm:$0xf0]  ;;  %v10780_v12 = vld [vmem:[%s15449_s1 + $0x2f4] sm:$0xf]  ;;  %v8998_v34 = vor.u32 %v10790_v28, %v8995_v57  ;;  %v9051_v46 = vld [vmem:[%s15449_s1 + $0x3b8] sm:$0xf0]  ;;  %v8990_v52 = vor.u32 %v10788_v37, %v8987_v38 }
 0x269   : > { %3338 = vmatpush.bf16.msrb.mxu0 %v8734_v5  ;;  %3352 = vmatpush.bf16.msra.mxu1 %v8798_v6  ;;  %v10686_v5 = vld [vmem:[%s15449_s1 + $0x4] sm:$0xf]  ;;  %v8579_v6 = vld [vmem:[%s15449_s1 + $0x8] sm:$0xf0]  ;;  %v9078_v14 = vor.u32 %v10810_v0, %v9075_v31  ;;  %v10804_v41 = vld [vmem:[%s15449_s1 + $0x3b4] sm:$0xf] }
 0x26a   : > { %v2404_v21 = vunpack.c.l.b16 %v2338_v16  ;;  %v2405_v25 = vunpack.c.h.b16 %v2338_v16  ;;  %v8646_v16 = vor.u32 %v10702_v7, %v8643_v8  ;;  %v10774_v2 = vld [vmem:[%s15449_s1 + $0x2c4] sm:$0xf]  ;;  %v8931_v51 = vld [vmem:[%s15449_s1 + $0x2c8] sm:$0xf0]  ;;  %v9054_v53 = vor.u32 %v10804_v41, %v9051_v46  ;;  %v10772_v0 = vld [vmem:[%s15449_s1 + $0x2b4] sm:$0xf] }
 0x26b   : > { %3309 = vmatpush.bf16.msra.mxu2 %v8614_v13  ;;  %3323 = vmatpush.bf16.msrb.mxu3 %v8678_v24  ;;  %v8955_v13 = vld [vmem:[%s15449_s1 + $0x2f8] sm:$0xf0]  ;;  %v9014_v24 = vor.u32 %v10794_v61, %v9011_v62  ;;  %v10756_v61 = vld [vmem:[%s15449_s1 + $0x234] sm:$0xf] }
 0x26c   : > { %v12918_v27 = vpack.c.b16 %v2404_v21, %v2402_v35  ;;  %v12920_v29 = vpack.c.b16 %v2405_v25, %v2403_v50  ;;  %v10792_v35 = vld [vmem:[%s15449_s1 + $0x354] sm:$0xf]  ;;  %v8582_v50 = vor.u32 %v10686_v5, %v8579_v6  ;;  %v8883_v21 = vld [vmem:[%s15449_s1 + $0x268] sm:$0xf0]  ;;  %v10778_v25 = vld [vmem:[%s15449_s1 + $0x2e4] sm:$0xf] }
 0x26d   : > { %3339 = vmatpush.bf16.msrb.mxu0 %v8726_v17  ;;  %3353 = vmatpush.bf16.msra.mxu1 %v8790_v20  ;;  %v8894_v17 = vor.u32 %v10764_v63, %v8891_v10  ;;  %v8958_v20 = vor.u32 %v10780_v12, %v8955_v13  ;;  %v8886_v44 = vor.u32 %v10762_v15, %v8883_v21  ;;  %v8859_v62 = vld [vmem:[%s15449_s1 + $0x238] sm:$0xf0]  ;;  %v10784_v5 = vld [vmem:[%s15449_s1 + $0x314] sm:$0xf]  ;;  %v10754_v12 = vld [vmem:[%s15449_s1 + $0x224] sm:$0xf] }
 0x26e   : > { %3258 = vmatmul.bf16.vlgmr.msrb.gmra.mxu2 %v12918_v27  ;;  %3272 = vmatmul.bf16.vlgmr.msra.gmra.mxu3 %v12920_v29  ;;  %v8971_v6 = vld [vmem:[%s15449_s1 + $0x318] sm:$0xf0]  ;;  %v10800_v7 = vld [vmem:[%s15449_s1 + $0x394] sm:$0xf]  ;;  %v8862_v63 = vor.u32 %v10756_v61, %v8859_v62  ;;  %v8851_v13 = vld [vmem:[%s15449_s1 + $0x228] sm:$0xf0] }
 0x26f   : > { %3310 = vmatpush.bf16.msra.mxu2 %v8606_v39  ;;  %3324 = vmatpush.bf16.msrb.mxu3 %v8670_v43  ;;  %v10806_v39 = vld [vmem:[%s15449_s1 + $0x3c4] sm:$0xf]  ;;  %v9059_v43 = vld [vmem:[%s15449_s1 + $0x3c8] sm:$0xf0]  ;;  %v9035_v8 = vld [vmem:[%s15449_s1 + $0x398] sm:$0xf0] }
 0x270   : > { %v9062_v36 = vor.u32 %v10806_v39, %v9059_v43  ;;  %v10752_v15 = vld [vmem:[%s15449_s1 + $0x214] sm:$0xf]  ;;  %v8843_v21 = vld [vmem:[%s15449_s1 + $0x218] sm:$0xf0]  ;;  %v10750_v39 = vld [vmem:[%s15449_s1 + $0x204] sm:$0xf] }
 0x271   : > { %3340 = vmatpush.bf16.msrb.mxu0 %v8718_v32  ;;  %3354 = vmatpush.bf16.msra.mxu1 %v8782_v33  ;;  %v10776_v32 = vld [vmem:[%s15449_s1 + $0x2d4] sm:$0xf]  ;;  %v8939_v33 = vld [vmem:[%s15449_s1 + $0x2d8] sm:$0xf0]  ;;  %v8846_v28 = vor.u32 %v10752_v15, %v8843_v21  ;;  %v8835_v43 = vld [vmem:[%s15449_s1 + $0x208] sm:$0xf0] }
 0x273   : > { %3311 = vmatpush.bf16.msra.mxu2 %v8598_v47  ;;  %3325 = vmatpush.bf16.msrb.mxu3 %v8662_v48  ;;  %v8878_v47 = vor.u32 %v10760_v30, %v8875_v59  ;;  %v8942_v48 = vor.u32 %v10776_v32, %v8939_v33  ;;  %v8838_v30 = vor.u32 %v10750_v39, %v8835_v43  ;;  %v13172_v33 = vld [vmem:[%s15450_s2] sm:$0x3]  ;;  %s15452_s2 = sld [smem:[#allocation22_spill]] }
 0x274   : > { %v2550_v38 = vperm.slane %v13172_v33, 0 }
 0x275   : > { %3341 = vmatpush.bf16.msrb.mxu0 %v8710_v56  ;;  %3355 = vmatpush.bf16.msra.mxu1 %v8774_v45  ;;  %v10802_v56 = vld [vmem:[%s15449_s1 + $0x3a4] sm:$0xf]  ;;  %v9043_v45 = vld [vmem:[%s15449_s1 + $0x3a8] sm:$0xf0] }
 0x276   : > { %v9046_v31 = vor.u32 %v10802_v56, %v9043_v45 }
 0x277   : > { %3312 = vmatpush.bf16.msra.mxu2 %v8590_v1  ;;  %3326 = vmatpush.bf16.msrb.mxu3 %v8654_v4  ;;  %v8923_v1 = vld [vmem:[%s15449_s1 + $0x2b8] sm:$0xf0]  ;;  %v8982_v4 = vor.u32 %v10786_v54, %v8979_v55 }
 0x278   : > { %3342 = vmatmul.bf16.vlgmr.msrb.gmra.mxu0 %v12768_v3  ;;  %3356 = vmatmul.bf16.vlgmr.msra.gmra.mxu1 %v12770_v18  ;;  %v8947_v3 = vld [vmem:[%s15449_s1 + $0x2e8] sm:$0xf0]  ;;  %v9006_v18 = vor.u32 %v10792_v35, %v9003_v19  ;;  %v8926_v10 = vor.u32 %v10772_v0, %v8923_v1  ;;  %v8974_v35 = vor.u32 %v10784_v5, %v8971_v6 }
 0x279   : > { %3390 = vmatpush.bf16.msra.mxu0 %v9022_v58  ;;  %3404 = vmatpush.bf16.msrb.mxu1 %v9086_v60  ;;  %v8950_v42 = vor.u32 %v10778_v25, %v8947_v3  ;;  %v8934_v60 = vor.u32 %v10774_v2, %v8931_v51  ;;  %v8963_v19 = vld [vmem:[%s15449_s1 + $0x308] sm:$0xf0]  ;;  %v10768_v25 = vld [vmem:[%s15449_s1 + $0x294] sm:$0xf]  ;;  %v8907_v3 = vld [vmem:[%s15449_s1 + $0x298] sm:$0xf0] }
 0x27a   : > { %v8910_v57 = vor.u32 %v10768_v25, %v8907_v3 }
 0x27b   : > { %3313 = vmatpush.bf16.msra.mxu2 %v8582_v50  ;;  %3327 = vmatpush.bf16.msrb.mxu3 %v8646_v16  ;;  %v9038_v50 = vor.u32 %v10800_v7, %v9035_v8  ;;  %v10782_v16 = vld [vmem:[%s15449_s1 + $0x304] sm:$0xf] }
 0x27d   : > { %3391 = vmatpush.bf16.msra.mxu0 %v9014_v24  ;;  %3405 = vmatpush.bf16.msrb.mxu1 %v9078_v14  ;;  %v10770_v24 = vld [vmem:[%s15449_s1 + $0x2a4] sm:$0xf]  ;;  %v8915_v14 = vld [vmem:[%s15449_s1 + $0x2a8] sm:$0xf0] }
 0x27e   : > { %3314 = vmatmul.bf16.vlgmr.msra.gmra.mxu2 %v12810_v22  ;;  %3328 = vmatmul.bf16.vlgmr.msrb.gmra.mxu3 %v12812_v23  ;;  %v10758_v22 = vld [vmem:[%s15449_s1 + $0x244] sm:$0xf]  ;;  %v8867_v23 = vld [vmem:[%s15449_s1 + $0x248] sm:$0xf0] }
 0x27f   : > { %3362 = vmatpush.bf16.msrb.mxu2 %v8894_v17  ;;  %3376 = vmatpush.bf16.msra.mxu3 %v8958_v20  ;;  %v8870_v58 = vor.u32 %v10758_v22, %v8867_v23  ;;  %v8854_v17 = vor.u32 %v10754_v12, %v8851_v13  ;;  %v8918_v20 = vor.u32 %v10770_v24, %v8915_v14  ;;  %v3418_v22 = vld [vmem:[%s15451_s29] sm:$0xff] }
 0x281   : > { %3392 = vmatpush.bf16.msra.mxu0 %v9006_v18  ;;  %3406 = vmatpush.bf16.msrb.mxu1 %v9070_v26  ;;  %v8966_v18 = vor.u32 %v10782_v16, %v8963_v19  ;;  %v9030_v26 = vor.u32 %v10798_v9, %v9027_v11  ;;  %v2551_v9 = vperm.slane %v13172_v33, 1 }
 0x283   : > { %3363 = vmatpush.bf16.msrb.mxu2 %v8886_v44  ;;  %3377 = vmatpush.bf16.msra.mxu3 %v8950_v42  ;;  %v10766_v44 = vld [vmem:[%s15449_s1 + $0x284] sm:$0xf]  ;;  %v8899_v42 = vld [vmem:[%s15449_s1 + $0x288] sm:$0xf0]  ;;  %s15454_s1 = sld [smem:[#allocation24_spill]] }
 0x284   : > { %v8902_v59 = vor.u32 %v10766_v44, %v8899_v42 }
 0x285   : > { %3393 = vmatpush.bf16.msra.mxu0 %v8998_v34  ;;  %3407 = vmatpush.bf16.msrb.mxu1 %v9062_v36 }
 0x287   : > { %3364 = vmatpush.bf16.msrb.mxu2 %v8878_v47  ;;  %3378 = vmatpush.bf16.msra.mxu3 %v8942_v48 }
 0x289   : > { %3394 = vmatpush.bf16.msra.mxu0 %v8990_v52  ;;  %3408 = vmatpush.bf16.msrb.mxu1 %v9054_v53 }
 0x28b   : > { %3365 = vmatpush.bf16.msrb.mxu2 %v8870_v58  ;;  %3379 = vmatpush.bf16.msra.mxu3 %v8934_v60 }
 0x28d   : > { %3395 = vmatpush.bf16.msra.mxu0 %v8982_v4  ;;  %3409 = vmatpush.bf16.msrb.mxu1 %v9046_v31 }
 0x28f   : > { %3366 = vmatpush.bf16.msrb.mxu2 %v8862_v63  ;;  %3380 = vmatpush.bf16.msra.mxu3 %v8926_v10 }
 0x291   : > { %3396 = vmatpush.bf16.msra.mxu0 %v8974_v35  ;;  %3410 = vmatpush.bf16.msrb.mxu1 %v9038_v50 }
 0x293   : > { %3367 = vmatpush.bf16.msrb.mxu2 %v8854_v17  ;;  %3381 = vmatpush.bf16.msra.mxu3 %v8918_v20  ;;  %v3421_v20 = vld [vmem:[%s15451_s29 + $0x18] sm:$0xff] }
 0x295   : > { %3397 = vmatpush.bf16.msra.mxu0 %v8966_v18  ;;  %3411 = vmatpush.bf16.msrb.mxu1 %v9030_v26  ;;  %v3419_v26 = vld [vmem:[%s15451_s29 + $0x8] sm:$0xff] }
 0x297   : > { %3368 = vmatpush.bf16.msrb.mxu2 %v8846_v28  ;;  %3382 = vmatpush.bf16.msra.mxu3 %v8910_v57 }
 0x298   : > { %3398 = vmatmul.bf16.vlgmr.msra.gmra.mxu0 %v12876_v40  ;;  %3412 = vmatmul.bf16.vlgmr.msrb.gmra.mxu1 %v12878_v49 }
 0x29b   : > { %3369 = vmatpush.bf16.msrb.mxu2 %v8838_v30  ;;  %3383 = vmatpush.bf16.msra.mxu3 %v8902_v59 }
 0x29e   : > { %3370 = vmatmul.bf16.vlgmr.msrb.gmra.mxu2 %v12918_v27  ;;  %3384 = vmatmul.bf16.vlgmr.msra.gmra.mxu3 %v12920_v29  ;;  %v3420_v27 = vld [vmem:[%s15451_s29 + $0x10] sm:$0xff] }
 0x29f   : > { %3450 = vmatpush.xpose.msra.mxu2 %v3420_v27  ;;  %3559 = vmatpush.xpose.msrb.mxu0 %v3420_v27 }
 0x2a0   : > { %3470 = vmatpush.xpose.msrb.mxu3 %v3421_v20 }
 0x2a3   : > { %3451 = vmatpush.xpose.msra.mxu2 %v3418_v22  ;;  %3560 = vmatpush.xpose.msrb.mxu0 %v3418_v22 }
 0x2a4   : > { %3471 = vmatpush.xpose.msrb.mxu3 %v3419_v26 }
 0x2a7   : > { %3495 = vmatpush.msrb.mxu2 %v3420_v27  ;;  %3579 = vmatpush.xpose.msra.mxu0 %v3421_v20 }
 0x2a8   : > { %3515 = vmatpush.msra.mxu3 %v3421_v20 }
 0x2a9   : > { %3496 = vmatpush.msrb.mxu2 %v3418_v22 }
 0x2aa   : > { %3516 = vmatpush.msra.mxu3 %v3419_v26 }
 0x2ab   : > { %3580 = vmatpush.xpose.msra.mxu0 %v3419_v26 }
 0x2d5   : > { %v3231_v32 = vpop.f32.mrf.mxu0  ;;  %v3245_v34 = vpop.f32.mrf.mxu1 }
 0x2dd   : > { %v3233_v41 = vpop.f32.mrf.mxu0  ;;  %v3247_v47 = vpop.f32.mrf.mxu1 }
 0x2e1   : > { %v3203_v36 = vpop.f32.mrf.mxu2  ;;  %v3217_v37 = vpop.f32.mrf.mxu3 }
 0x2e2   : > { %v3204_v40 = vadd.f32 %v3203_v36, %v2550_v38 }
 0x2e4   : > { %v3218_v29 = vadd.f32 %v3217_v37, %v3204_v40 }
 0x2e5   : > { %v3287_v54 = vpop.f32.mrf.mxu0  ;;  %v3301_v45 = vpop.f32.mrf.mxu1 }
 0x2e6   : > { %v3232_v23 = vadd.f32 %v3231_v32, %v3218_v29 }
 0x2e8   : > { %v3246_v53 = vadd.f32 %v3245_v34, %v3232_v23 }
 0x2e9   : > { %v3205_v49 = vpop.f32.mrf.mxu2  ;;  %v3219_v46 = vpop.f32.mrf.mxu3 }
 0x2ea   : > { %v3206_v48 = vadd.f32 %v3205_v49, %v2550_v38 }
 0x2ec   : > { %v3220_v2 = vadd.f32 %v3219_v46, %v3206_v48 }
 0x2ed   : > { %v3289_v31 = vpop.f32.mrf.mxu0  ;;  %v3303_v6 = vpop.f32.mrf.mxu1 }
 0x2ee   : > { %v3234_v55 = vadd.f32 %v3233_v41, %v3220_v2 }
 0x2f0   : > { %v3248_v60 = vadd.f32 %v3247_v47, %v3234_v55 }
 0x2f1   : > { %v3259_v51 = vpop.f32.mrf.mxu2  ;;  %v3273_v52 = vpop.f32.mrf.mxu3 }
 0x2f2   : > { %v3260_v56 = vadd.f32 %v3259_v51, %v3246_v53 }
 0x2f4   : > { %v3274_v58 = vadd.f32 %v3273_v52, %v3260_v56 }
 0x2f5   : > { %v3343_v16 = vpop.f32.mrf.mxu0  ;;  %v3357_v11 = vpop.f32.mrf.mxu1 }
 0x2f6   : > { %v3288_v1 = vadd.f32 %v3287_v54, %v3274_v58 }
 0x2f8   : > { %v13181_v7 = vadd.f32 %v3301_v45, %v3288_v1 }
 0x2f9   : > { %v3261_v61 = vpop.f32.mrf.mxu2  ;;  %v3275_v0 = vpop.f32.mrf.mxu3 }
 0x2fa   : > { %v3262_v62 = vadd.f32 %v3261_v61, %v3248_v60 }
 0x2fc   : > { %v3276_v4 = vadd.f32 %v3275_v0, %v3262_v62 }
 0x2fd   : > { %v3345_v3 = vpop.f32.mrf.mxu0  ;;  %v3359_v28 = vpop.f32.mrf.mxu1 }
 0x2fe   : > { %v3290_v5 = vadd.f32 %v3289_v31, %v3276_v4 }
 0x300   : > { %v13183_v8 = vadd.f32 %v3303_v6, %v3290_v5 }
 0x301   : > { %v3315_v35 = vpop.f32.mrf.mxu2  ;;  %v3329_v50 = vpop.f32.mrf.mxu3 }
 0x302   : > { %v3422_v63 = vadd.f32 %v13183_v8, %v13181_v7  ;;  %v3316_v17 = vadd.f32 %v3315_v35, %v2551_v9 }
 0x304   : > { %v3423_v10 = vrot.slane %v3422_v63, 4  ;;  %v3330_v25 = vadd.f32 %v3329_v50, %v3316_v17 }
 0x306   : > { %v3424_v12 = vadd.f32 %v3423_v10, %v3422_v63  ;;  %v3344_v57 = vadd.f32 %v3343_v16, %v3330_v25 }
 0x308   : > { %v3425_v13 = vrot.slane %v3424_v12, 2  ;;  %v3358_v42 = vadd.f32 %v3357_v11, %v3344_v57 }
 0x309   : > { %v3317_v15 = vpop.f32.mrf.mxu2  ;;  %v3331_v21 = vpop.f32.mrf.mxu3 }
 0x30a   : > { %v3426_v24 = vadd.f32 %v3425_v13, %v3424_v12  ;;  %v3318_v18 = vadd.f32 %v3317_v15, %v2551_v9 }
 0x30c   : > { %v3427_v14 = vrot.slane %v3426_v24, 1  ;;  %v3332_v39 = vadd.f32 %v3331_v21, %v3318_v18 }
 0x30e   : > { %v3428_v19 = vadd.f32 %v3427_v14, %v3426_v24  ;;  %v3346_v59 = vadd.f32 %v3345_v3, %v3332_v39 }
 0x310   : > { %3452 = vmatmul.f32.vlgmr.msra.gmra.mxu2 %v3428_v19  ;;  %v3360_v36 = vadd.f32 %v3359_v28, %v3346_v59 }
 0x311   : > { %3614 = vmatpush.msra.mxu2 %v3420_v27 }
 0x313   : > { %3615 = vmatpush.msra.mxu2 %v3418_v22 }
 0x315   : > { %v3399_v30 = vpop.f32.mrf.mxu0  ;;  %v3413_v33 = vpop.f32.mrf.mxu1 }
 0x31d   : > { %v3401_v46 = vpop.f32.mrf.mxu0  ;;  %v3415_v29 = vpop.f32.mrf.mxu1 }
 0x321   : > { %v3371_v43 = vpop.f32.mrf.mxu2  ;;  %v3385_v44 = vpop.f32.mrf.mxu3 }
 0x322   : > { %v3372_v32 = vadd.f32 %v3371_v43, %v3358_v42 }
 0x324   : > { %v3386_v34 = vadd.f32 %v3385_v44, %v3372_v32 }
 0x326   : > { %v3400_v41 = vadd.f32 %v3399_v30, %v3386_v34 }
 0x328   : > { %v3414_v47 = vadd.f32 %v3413_v33, %v3400_v41 }
 0x329   : > { %v3373_v37 = vpop.f32.mrf.mxu2  ;;  %v3387_v40 = vpop.f32.mrf.mxu3 }
 0x32a   : > { %v3374_v38 = vadd.f32 %v3373_v37, %v3360_v36 }
 0x32c   : > { %v3388_v49 = vadd.f32 %v3387_v40, %v3374_v38 }
 0x32e   : > { %v3402_v27 = vadd.f32 %v3401_v46, %v3388_v49 }
 0x330   : > { %v3416_v48 = vadd.f32 %v3415_v29, %v3402_v27 }
 0x332   : > { %v3429_v22 = vadd.f32 %v3416_v48, %v3414_v47 }
 0x334   : > { %v3430_v23 = vrot.slane %v3429_v22, 4 }
 0x336   : > { %v3431_v2 = vadd.f32 %v3430_v23, %v3429_v22 }
 0x338   : > { %v3432_v51 = vrot.slane %v3431_v2, 2 }
 0x33a   : > { %v3433_v52 = vadd.f32 %v3432_v51, %v3431_v2  ;;  %v9160_v2 = vld [vmem:[%s15452_s2 + $0x70] sm:$0xf]  ;;  %v10829_v51 = vld [vmem:[%s15452_s2 + $0x74] sm:$0xf0] }
 0x33c   : > { %v3434_v53 = vrot.slane %v3433_v52, 1 }
 0x33e   : > { %v3435_v54 = vadd.f32 %v3434_v53, %v3433_v52  ;;  %v9224_v53 = vld [vmem:[%s15452_s2 + $0xf0] sm:$0xf] }
 0x340   : > { %3472 = vmatmul.f32.vlgmr.msrb.gmra.mxu3 %v3435_v54  ;;  %v10845_v54 = vld [vmem:[%s15452_s2 + $0xf4] sm:$0xf0] }
 0x341   : > { %3634 = vmatpush.msrb.mxu3 %v3421_v20 }
 0x343   : > { %3635 = vmatpush.msrb.mxu3 %v3419_v26 }
 0x393   : > { %v3453_v55 = vpop.f32.mrf.mxu2 }
 0x3c3   : > { %v3473_v56 = vpop.f32.mrf.mxu3 }
 0x3c4   : > { %v3474_v45 = vadd.f32 %v3473_v56, %v3453_v55  ;;  %v9288_v55 = vld [vmem:[%s15452_s2 + $0x170] sm:$0xf]  ;;  %v10861_v56 = vld [vmem:[%s15452_s2 + $0x174] sm:$0xf0] }
 0x3c6   : > { %v3476_v58 = vmul.f32 0.00390625, %v3474_v45  ;;  %v9352_v45 = vld [vmem:[%s15452_s2 + $0x1f0] sm:$0xf] }
 0x3c8   : > { %9087 = vmatmul.msk.f32.vlgmr.msrb.gmra.mxu2 %vm3477_vm9, %v3476_v58  ;;  %9088 = vmatmul.msk.f32.vlgmr.msra.gmra.mxu3 %vm3477_vm9, %v3476_v58  ;;  %v10877_v58 = vld [vmem:[%s15452_s2 + $0x1f4] sm:$0xf0] }
 0x44b   : > { %v3498_v60 = vpop.f32.mrf.mxu2  ;;  %v3518_v61 = vpop.f32.mrf.mxu3 }
 0x44c   : > { %v3521_v62 = vperm.slane %v3498_v60, 0  ;;  %v3522_v0 = vperm.slane %v3518_v61, 0  ;;  %v3660_v60 = vld [vmem:[%s15453_s4] sm:$0xf]  ;;  %v9093_v61 = vld [vmem:[%s15453_s4 + $0x4] sm:$0xf] }
 0x44e   : > { %v3523_v1 = vsub.f32 %v13181_v7, %v3521_v62  ;;  %v3525_v4 = vsub.f32 %v13183_v8, %v3521_v62  ;;  %v3524_v31 = vsub.f32 %v3414_v47, %v3522_v0  ;;  %v3526_v5 = vsub.f32 %v3416_v48, %v3522_v0 }
 0x44f   : > { %v9161_v62 = vor.u32 %v10829_v51, %v9160_v2  ;;  %v9225_v0 = vor.u32 %v10845_v54, %v9224_v53  ;;  %v10819_v2 = vld [vmem:[%s15452_s2 + $0x24] sm:$0xf0]  ;;  %v9184_v51 = vld [vmem:[%s15452_s2 + $0xa0] sm:$0xf] }
 0x450   : > { %v3527_v6 = vmul.f32 %v3523_v1, %v3523_v1  ;;  %v3529_v63 = vmul.f32 %v3525_v4, %v3525_v4  ;;  %v3528_v10 = vmul.f32 %v3524_v31, %v3524_v31  ;;  %v3530_v12 = vmul.f32 %v3526_v5, %v3526_v5 }
 0x452   : > { %v3531_v13 = vadd.f32 %v3529_v63, %v3527_v6  ;;  %v3538_v24 = vadd.f32 %v3530_v12, %v3528_v10  ;;  %v9289_v6 = vor.u32 %v10861_v56, %v9288_v55  ;;  %v9353_v63 = vor.u32 %v10877_v58, %v9352_v45  ;;  %v9280_v10 = vld [vmem:[%s15452_s2 + $0x160] sm:$0xf]  ;;  %v10859_v12 = vld [vmem:[%s15452_s2 + $0x164] sm:$0xf0] }
 0x453   : > { %v9248_v55 = vld [vmem:[%s15452_s2 + $0x120] sm:$0xf]  ;;  %v10851_v56 = vld [vmem:[%s15452_s2 + $0x124] sm:$0xf0] }
 0x454   : > { %v3532_v14 = vrot.slane %v3531_v13, 4  ;;  %v3539_v35 = vrot.slane %v3538_v24, 4  ;;  %v9312_v45 = vld [vmem:[%s15452_s2 + $0x1a0] sm:$0xf]  ;;  %v10867_v58 = vld [vmem:[%s15452_s2 + $0x1a4] sm:$0xf0] }
 0x456   : > { %v3533_v50 = vadd.f32 %v3532_v14, %v3531_v13  ;;  %v3540_v16 = vadd.f32 %v3539_v35, %v3538_v24  ;;  %v9344_v13 = vld [vmem:[%s15452_s2 + $0x1e0] sm:$0xf]  ;;  %v10875_v24 = vld [vmem:[%s15452_s2 + $0x1e4] sm:$0xf0] }
 0x458   : > { %v3534_v19 = vrot.slane %v3533_v50, 2  ;;  %v3541_v11 = vrot.slane %v3540_v16, 2 }
 0x45a   : > { %v3535_v9 = vadd.f32 %v3534_v19, %v3533_v50  ;;  %v3542_v20 = vadd.f32 %v3541_v11, %v3540_v16  ;;  %v9144_v50 = vld [vmem:[%s15452_s2 + $0x50] sm:$0xf]  ;;  %v10825_v16 = vld [vmem:[%s15452_s2 + $0x54] sm:$0xf0]  ;;  %v9281_v11 = vor.u32 %v10859_v12, %v9280_v10 }
 0x45b   : > { %v9208_v19 = vld [vmem:[%s15452_s2 + $0xd0] sm:$0xf]  ;;  %v10865_v12 = vld [vmem:[%s15452_s2 + $0x194] sm:$0xf0] }
 0x45c   : > { %v3536_v17 = vrot.slane %v3535_v9, 1  ;;  %v3543_v8 = vrot.slane %v3542_v20, 1  ;;  %v9304_v10 = vld [vmem:[%s15452_s2 + $0x190] sm:$0xf] }
 0x45e   : > { %v3537_v7 = vadd.f32 %v3536_v17, %v3535_v9  ;;  %v3544_v15 = vadd.f32 %v3543_v8, %v3542_v20  ;;  %v10841_v9 = vld [vmem:[%s15452_s2 + $0xd4] sm:$0xf0]  ;;  %v9345_v17 = vor.u32 %v10875_v24, %v9344_v13  ;;  %v9272_v20 = vld [vmem:[%s15452_s2 + $0x150] sm:$0xf]  ;;  %v9104_v13 = vld [vmem:[%s15452_s2] sm:$0xf] }
 0x45f   : > { %v9336_v8 = vld [vmem:[%s15452_s2 + $0x1d0] sm:$0xf] }
 0x460   : > { %3561 = vmatmul.f32.vlgmr.msrb.gmra.mxu0 %v3537_v7  ;;  %v10857_v7 = vld [vmem:[%s15452_s2 + $0x154] sm:$0xf0] }
 0x468   : > { %3581 = vmatmul.f32.vlgmr.msra.gmra.mxu0 %v3544_v15  ;;  %v10873_v15 = vld [vmem:[%s15452_s2 + $0x1d4] sm:$0xf0] }
 0x4dd   : > { %v3562_v21 = vpop.f32.mrf.mxu0 }
 0x4e5   : > { %v3582_v25 = vpop.f32.mrf.mxu0 }
 0x4e6   : > { %v3583_v3 = vadd.f32 %v3582_v25, %v3562_v21  ;;  %v9145_v21 = vor.u32 %v10825_v16, %v9144_v50  ;;  %v9209_v25 = vor.u32 %v10841_v9, %v9208_v19  ;;  %v9168_v50 = vld [vmem:[%s15452_s2 + $0x80] sm:$0xf]  ;;  %v10831_v16 = vld [vmem:[%s15452_s2 + $0x84] sm:$0xf0]  ;;  %v9416_v19 = vld [vmem:[%s15452_s2 + $0x270] sm:$0xf] }
 0x4e7   : > { %v10893_v9 = vld [vmem:[%s15452_s2 + $0x274] sm:$0xf0] }
 0x4e8   : > { %v3585_v18 = vmul.f32 0.00390625, %v3583_v3  ;;  %v9136_v3 = vld [vmem:[%s15452_s2 + $0x40] sm:$0xf] }
 0x4ea   : > { %v3586_v26 = vadd.f32 1e-05, %v3585_v18  ;;  %v10823_v18 = vld [vmem:[%s15452_s2 + $0x44] sm:$0xf0] }
 0x4ec   : > { %11222 = vrsqrt.f32 %v3586_v26  ;;  %vm3593_vm11 = vweird.f32 %v3586_v26 }
 0x4f2   : > { %v11223_v28 = vpop.eup %11222 }
 0x4f3   : > { %v3588_v57 = vmul.f32 %v11223_v28, %v3586_v26  ;;  %vm3594_vm10 = vweird.f32 %v11223_v28  ;;  %v9200_v26 = vld [vmem:[%s15452_s2 + $0xc0] sm:$0xf] }
 0x4f4   : > { %vm3595_vm12 = vmor %vm3593_vm11, %vm3594_vm10  ;;  %vm6242_vm10 = vcmask 523264  }
 0x4f5   : > { %v3589_v39 = vmul.f32 %v11223_v28, %v3588_v57  ;;  %v9273_v57 = vor.u32 %v10857_v7, %v9272_v20  ;;  %v9305_v20 = vor.u32 %v10865_v12, %v9304_v10  ;;  %v10909_v7 = vld [vmem:[%s15452_s2 + $0x2f4] sm:$0xf0]  ;;  %v9384_v10 = vld [vmem:[%s15452_s2 + $0x230] sm:$0xf] }
 0x4f6   : > { %v10885_v12 = vld [vmem:[%s15452_s2 + $0x234] sm:$0xf0] }
 0x4f7   : > { %v3590_v43 = vmul.f32 0.5, %v3589_v39  ;;  %v9337_v39 = vor.u32 %v10873_v15, %v9336_v8  ;;  %v9232_v8 = vld [vmem:[%s15452_s2 + $0x100] sm:$0xf]  ;;  %v10847_v15 = vld [vmem:[%s15452_s2 + $0x104] sm:$0xf0] }
 0x4f9   : > { %v3591_v44 = vsub.f32 1.5, %v3590_v43  ;;  %v9264_v43 = vld [vmem:[%s15452_s2 + $0x140] sm:$0xf] }
 0x4fb   : > { %v3592_v42 = vmul.f32 %v11223_v28, %v3591_v44  ;;  %v10855_v44 = vld [vmem:[%s15452_s2 + $0x144] sm:$0xf0] }
 0x4fd   : > { %v3596_v30 = vsel %vm3595_vm12, %v11223_v28, %v3592_v42  ;;  %v10839_v28 = vld [vmem:[%s15452_s2 + $0xc4] sm:$0xf0]  ;;  %v9328_v42 = vld [vmem:[%s15452_s2 + $0x1c0] sm:$0xf] }
 0x4fe   : > { %9089 = vmatmul.msk.f32.vlgmr.msra.gmra.mxu2 %vm3477_vm9, %v3596_v30  ;;  %9090 = vmatmul.msk.f32.vlgmr.msrb.gmra.mxu3 %vm3477_vm9, %v3596_v30  ;;  %v10871_v30 = vld [vmem:[%s15452_s2 + $0x1c4] sm:$0xf0] }
 0x581   : > { %v3617_v59 = vpop.f32.mrf.mxu2  ;;  %v3637_v32 = vpop.f32.mrf.mxu3 }
 0x582   : > { %v3640_v33 = vperm.slane %v3617_v59, 0  ;;  %v3641_v34 = vperm.slane %v3637_v32, 0  ;;  %v9137_v59 = vor.u32 %v10823_v18, %v9136_v3  ;;  %v9201_v32 = vor.u32 %v10839_v28, %v9200_v26  ;;  %v9544_v3 = vld [vmem:[%s15452_s2 + $0x370] sm:$0xf]  ;;  %v10925_v28 = vld [vmem:[%s15452_s2 + $0x374] sm:$0xf0] }
 0x583   : > { %v9169_v26 = vor.u32 %v10831_v16, %v9168_v50  ;;  %v9385_v50 = vor.u32 %v10885_v12, %v9384_v10  ;;  %v9154_v10 = vld [vmem:[%s15452_s2 + $0x68] sm:$0xf0]  ;;  %v10842_v12 = vld [vmem:[%s15452_s2 + $0xe4] sm:$0xf] }
 0x584   : > { %v3642_v36 = vmul.f32 %v3640_v33, %v3523_v1  ;;  %v3644_v37 = vmul.f32 %v3640_v33, %v3525_v4  ;;  %v3643_v38 = vmul.f32 %v3641_v34, %v3524_v31  ;;  %v3645_v40 = vmul.f32 %v3641_v34, %v3526_v5  ;;  %v9152_v1 = vld [vmem:[%s15452_s2 + $0x60] sm:$0xf]  ;;  %v10827_v4 = vld [vmem:[%s15452_s2 + $0x64] sm:$0xf0]  ;;  %v9128_v33 = vld [vmem:[%s15452_s2 + $0x30] sm:$0xf] }
 0x585   : > { %v9216_v31 = vld [vmem:[%s15452_s2 + $0xe0] sm:$0xf]  ;;  %v10843_v5 = vld [vmem:[%s15452_s2 + $0xe4] sm:$0xf0]  ;;  %v9153_v14 = vor.u32 %v10827_v4, %v9152_v1  ;;  %v10821_v34 = vld [vmem:[%s15452_s2 + $0x34] sm:$0xf0] }
 0x586   : > { %vm3646_vm13 = vcmp.ge.f32.partialorder %v3642_v36, 0.0  ;;  %vm3648_vm14 = vcmp.ge.f32.partialorder %v3644_v37, 0.0  ;;  %v3650_v41 = vmul.f32 0.2, %v3642_v36  ;;  %v3652_v49 = vmul.f32 0.2, %v3644_v37 }
 0x587   : > { %vm3647_vm15 = vcmp.ge.f32.partialorder %v3643_v38, 0.0  ;;  %vm3649_vm1 = vcmp.ge.f32.partialorder %v3645_v40, 0.0  ;;  %v3651_v46 = vmul.f32 0.2, %v3643_v38  ;;  %v3653_v27 = vmul.f32 0.2, %v3645_v40 }
 0x588   : > { %v3654_v29 = vsel %vm3646_vm13, %v3642_v36, %v3650_v41  ;;  %v3656_v47 = vsel %vm3648_vm14, %v3644_v37, %v3652_v49  ;;  %v9217_v35 = vor.u32 %v10843_v5, %v9216_v31  ;;  %v9192_v36 = vld [vmem:[%s15452_s2 + $0xb0] sm:$0xf]  ;;  %v10837_v37 = vld [vmem:[%s15452_s2 + $0xb4] sm:$0xf0]  ;;  %v9249_v31 = vor.u32 %v10851_v56, %v9248_v55 }
 0x589   : > { %v3655_v48 = vsel %vm3647_vm15, %v3643_v38, %v3651_v46  ;;  %v3657_v22 = vsel %vm3649_vm1, %v3645_v40, %v3653_v27  ;;  %v3658_v23 = vpack.c.bf16 %v3656_v47, %v3654_v29  ;;  %v9265_v38 = vor.u32 %v10855_v44, %v9264_v43  ;;  %v9256_v41 = vld [vmem:[%s15452_s2 + $0x130] sm:$0xf]  ;;  %v10853_v49 = vld [vmem:[%s15452_s2 + $0x134] sm:$0xf0]  ;;  %v9096_v29 = vld [vmem:[%s15453_s4 + $0x8] sm:$0xf] }
 0x58a   : > { %v3659_v52 = vpack.c.bf16 %v3657_v22, %v3655_v48  ;;  %v9329_v40 = vor.u32 %v10871_v30, %v9328_v42  ;;  %v9320_v46 = vld [vmem:[%s15452_s2 + $0x1b0] sm:$0xf]  ;;  %v10869_v27 = vld [vmem:[%s15452_s2 + $0x1b4] sm:$0xf0]  ;;  %v9099_v47 = vld [vmem:[%s15453_s4 + $0xc] sm:$0xf]  ;;  %v9129_v48 = vor.u32 %v10821_v34, %v9128_v33  ;;  %v9193_v22 = vor.u32 %v10837_v37, %v9192_v36 }
 0x58b   : > { %3671 = vmatpush.bf16.msrb.mxu0 %v3658_v23  ;;  %3703 = vmatpush.bf16.msrb.mxu2 %v3658_v23  ;;  %v9257_v53 = vor.u32 %v10853_v49, %v9256_v41  ;;  %v9321_v54 = vor.u32 %v10869_v27, %v9320_v46  ;;  %v9176_v1 = vld [vmem:[%s15452_s2 + $0x90] sm:$0xf]  ;;  %v10833_v4 = vld [vmem:[%s15452_s2 + $0x94] sm:$0xf0]  ;;  %v9313_v5 = vor.u32 %v10867_v58, %v9312_v45  ;;  %v9408_v42 = vld [vmem:[%s15452_s2 + $0x260] sm:$0xf] }
 0x58c   : > { %3684 = vmatpush.bf16.msra.mxu1 %v3659_v52  ;;  %3716 = vmatpush.bf16.msra.mxu3 %v3659_v52  ;;  %v9417_v43 = vor.u32 %v10893_v9, %v9416_v19  ;;  %v10891_v30 = vld [vmem:[%s15452_s2 + $0x264] sm:$0xf0]  ;;  %v9233_v33 = vor.u32 %v10847_v15, %v9232_v8  ;;  %v9545_v36 = vor.u32 %v10925_v28, %v9544_v3  ;;  %v9600_v41 = vld [vmem:[%s15452_s2 + $0x3e0] sm:$0xf]  ;;  %v9512_v8 = vld [vmem:[%s15452_s2 + $0x330] sm:$0xf] }
 0x58d   : > { %v10939_v49 = vld [vmem:[%s15452_s2 + $0x3e4] sm:$0xf0]  ;;  %v9409_v46 = vor.u32 %v10891_v30, %v9408_v42  ;;  %v9392_v45 = vld [vmem:[%s15452_s2 + $0x240] sm:$0xf]  ;;  %v10917_v15 = vld [vmem:[%s15452_s2 + $0x334] sm:$0xf0] }
 0x58e   : > { %9091 = vmatmul.msk.bf16.vlgmr.msrb.gmra.mxu0 %vm3477_vm9, %v3660_v60  ;;  %9094 = vmatmul.msk.bf16.vlgmr.msrb.gmra.mxu2 %vm3477_vm9, %v9093_v61  ;;  %v10887_v58 = vld [vmem:[%s15452_s2 + $0x244] sm:$0xf0]  ;;  %v9376_v19 = vld [vmem:[%s15452_s2 + $0x220] sm:$0xf]  ;;  %v10933_v3 = vld [vmem:[%s15452_s2 + $0x3b4] sm:$0xf0] }
 0x58f   : > { %3735 = vmatpush.bf16.msra.mxu0 %v3658_v23  ;;  %3767 = vmatpush.bf16.msra.mxu2 %v3658_v23  ;;  %v9120_v23 = vld [vmem:[%s15452_s2 + $0x20] sm:$0xf]  ;;  %v10883_v9 = vld [vmem:[%s15452_s2 + $0x224] sm:$0xf0]  ;;  %v10881_v28 = vld [vmem:[%s15452_s2 + $0x214] sm:$0xf0] }
 0x590   : > { %3748 = vmatpush.bf16.msrb.mxu1 %v3659_v52  ;;  %3780 = vmatpush.bf16.msrb.mxu3 %v3659_v52  ;;  %v10835_v52 = vld [vmem:[%s15452_s2 + $0xa4] sm:$0xf0]  ;;  %v9504_v42 = vld [vmem:[%s15452_s2 + $0x320] sm:$0xf] }
 0x591   : > { %9092 = vmatmul.msk.bf16.vlgmr.msra.gmra.mxu1 %vm3477_vm9, %v3660_v60  ;;  %9095 = vmatmul.msk.bf16.vlgmr.msra.gmra.mxu3 %vm3477_vm9, %v9093_v61  ;;  %v9121_v60 = vor.u32 %v10819_v2, %v9120_v23  ;;  %v9185_v61 = vor.u32 %v10835_v52, %v9184_v51  ;;  %v9601_v2 = vor.u32 %v10939_v49, %v9600_v41  ;;  %v9528_v51 = vld [vmem:[%s15452_s2 + $0x350] sm:$0xf]  ;;  %v10921_v52 = vld [vmem:[%s15452_s2 + $0x354] sm:$0xf0]  ;;  %v10915_v30 = vld [vmem:[%s15452_s2 + $0x324] sm:$0xf0] }
 0x592   : > { %v10895_v41 = vld [vmem:[%s15452_s2 + $0x284] sm:$0xf0] }
 0x593   : > { %4589 = vmatpush.bf16.msrb.mxu0 %v9161_v62  ;;  %4615 = vmatpush.bf16.msrb.mxu2 %v9289_v6  ;;  %v9112_v62 = vld [vmem:[%s15452_s2 + $0x10] sm:$0xf] }
 0x594   : > { %4602 = vmatpush.bf16.msra.mxu1 %v9225_v0  ;;  %4628 = vmatpush.bf16.msra.mxu3 %v9353_v63  ;;  %v10817_v0 = vld [vmem:[%s15452_s2 + $0x14] sm:$0xf0]  ;;  %v9240_v6 = vld [vmem:[%s15452_s2 + $0x110] sm:$0xf] }
 0x595   : > { %v10849_v63 = vld [vmem:[%s15452_s2 + $0x114] sm:$0xf0]  ;;  %v9113_v24 = vor.u32 %v10817_v0, %v9112_v62  ;;  %v9529_v62 = vor.u32 %v10921_v52, %v9528_v51  ;;  %v9552_v52 = vld [vmem:[%s15452_s2 + $0x380] sm:$0xf] }
 0x597   : > { %4590 = vmatpush.bf16.msrb.mxu0 %v9153_v14  ;;  %4616 = vmatpush.bf16.msrb.mxu2 %v9281_v11  ;;  %v9177_v14 = vor.u32 %v10833_v4, %v9176_v1  ;;  %v9480_v11 = vld [vmem:[%s15452_s2 + $0x2f0] sm:$0xf]  ;;  %v9520_v1 = vld [vmem:[%s15452_s2 + $0x340] sm:$0xf]  ;;  %v10919_v4 = vld [vmem:[%s15452_s2 + $0x344] sm:$0xf0] }
 0x598   : > { %4603 = vmatpush.bf16.msra.mxu1 %v9217_v35  ;;  %4629 = vmatpush.bf16.msra.mxu3 %v9345_v17  ;;  %v10815_v35 = vld [vmem:[%s15452_s2 + $0x4] sm:$0xf0]  ;;  %v9241_v17 = vor.u32 %v10849_v63, %v9240_v6  ;;  %v9481_v44 = vor.u32 %v10909_v7, %v9480_v11  ;;  %v9393_v6 = vor.u32 %v10887_v58, %v9392_v45  ;;  %v9440_v11 = vld [vmem:[%s15452_s2 + $0x2a0] sm:$0xf]  ;;  %v10828_v45 = vld [vmem:[%s15452_s2 + $0x74] sm:$0xf] }
 0x599   : > { %v9105_v18 = vor.u32 %v10815_v35, %v9104_v13  ;;  %v9448_v13 = vld [vmem:[%s15452_s2 + $0x2b0] sm:$0xf] }
 0x59b   : > { %4591 = vmatpush.bf16.msrb.mxu0 %v9145_v21  ;;  %4617 = vmatpush.bf16.msrb.mxu2 %v9273_v57  ;;  %v9296_v21 = vld [vmem:[%s15452_s2 + $0x180] sm:$0xf]  ;;  %v9608_v57 = vld [vmem:[%s15452_s2 + $0x3f0] sm:$0xf] }
 0x59c   : > { %4604 = vmatpush.bf16.msra.mxu1 %v9209_v25  ;;  %4630 = vmatpush.bf16.msra.mxu3 %v9337_v39  ;;  %v10863_v25 = vld [vmem:[%s15452_s2 + $0x184] sm:$0xf0]  ;;  %v10941_v39 = vld [vmem:[%s15452_s2 + $0x3f4] sm:$0xf0] }
 0x59d   : > { %v9297_v34 = vor.u32 %v10863_v25, %v9296_v21  ;;  %v9609_v37 = vor.u32 %v10941_v39, %v9608_v57  ;;  %v9576_v21 = vld [vmem:[%s15452_s2 + $0x3b0] sm:$0xf]  ;;  %v9513_v25 = vor.u32 %v10917_v15, %v9512_v8  ;;  %v10824_v8 = vld [vmem:[%s15452_s2 + $0x54] sm:$0xf]  ;;  %v9146_v15 = vld [vmem:[%s15452_s2 + $0x58] sm:$0xf0] }
 0x59e   : > { %9097 = vmatmul.msk.bf16.vlgmr.msra.gmra.mxu0 %vm3477_vm9, %v9096_v29  ;;  %9100 = vmatmul.msk.bf16.vlgmr.msra.gmra.mxu2 %vm3477_vm9, %v9099_v47  ;;  %v9432_v57 = vld [vmem:[%s15452_s2 + $0x290] sm:$0xf] }
 0x59f   : > { %4592 = vmatpush.bf16.msrb.mxu0 %v9137_v59  ;;  %4618 = vmatpush.bf16.msrb.mxu2 %v9265_v38  ;;  %v9472_v59 = vld [vmem:[%s15452_s2 + $0x2e0] sm:$0xf] }
 0x5a0   : > { %4605 = vmatpush.bf16.msra.mxu1 %v9201_v32  ;;  %4631 = vmatpush.bf16.msra.mxu3 %v9329_v40  ;;  %v10907_v32 = vld [vmem:[%s15452_s2 + $0x2e4] sm:$0xf0]  ;;  %v9536_v38 = vld [vmem:[%s15452_s2 + $0x360] sm:$0xf] }
 0x5a1   : > { %9098 = vmatmul.msk.bf16.vlgmr.msrb.gmra.mxu1 %vm3477_vm9, %v9096_v29  ;;  %9101 = vmatmul.msk.bf16.vlgmr.msrb.gmra.mxu3 %vm3477_vm9, %v9099_v47  ;;  %v10923_v40 = vld [vmem:[%s15452_s2 + $0x364] sm:$0xf0]  ;;  %v9473_v27 = vor.u32 %v10907_v32, %v9472_v59  ;;  %v9400_v29 = vld [vmem:[%s15452_s2 + $0x250] sm:$0xf]  ;;  %v10889_v47 = vld [vmem:[%s15452_s2 + $0x254] sm:$0xf0]  ;;  %v9505_v32 = vor.u32 %v10915_v30, %v9504_v42 }
 0x5a2   : > { %v9537_v23 = vor.u32 %v10923_v40, %v9536_v38  ;;  %v9401_v55 = vor.u32 %v10889_v47, %v9400_v29  ;;  %v9568_v59 = vld [vmem:[%s15452_s2 + $0x3a0] sm:$0xf]  ;;  %v9560_v29 = vld [vmem:[%s15452_s2 + $0x390] sm:$0xf]  ;;  %v10929_v47 = vld [vmem:[%s15452_s2 + $0x394] sm:$0xf0] }
 0x5a3   : > { %4593 = vmatpush.bf16.msrb.mxu0 %v9129_v48  ;;  %4619 = vmatpush.bf16.msrb.mxu2 %v9257_v53  ;;  %v9464_v48 = vld [vmem:[%s15452_s2 + $0x2d0] sm:$0xf]  ;;  %v9424_v38 = vld [vmem:[%s15452_s2 + $0x280] sm:$0xf] }
 0x5a4   : > { %4606 = vmatpush.bf16.msra.mxu1 %v9193_v22  ;;  %4632 = vmatpush.bf16.msra.mxu3 %v9321_v54  ;;  %v10905_v22 = vld [vmem:[%s15452_s2 + $0x2d4] sm:$0xf0]  ;;  %v9592_v53 = vld [vmem:[%s15452_s2 + $0x3d0] sm:$0xf]  ;;  %v9425_v49 = vor.u32 %v10895_v41, %v9424_v38 }
 0x5a5   : > { %v10937_v54 = vld [vmem:[%s15452_s2 + $0x3d4] sm:$0xf0]  ;;  %v9465_v56 = vor.u32 %v10905_v22, %v9464_v48  ;;  %v9561_v22 = vor.u32 %v10929_v47, %v9560_v29 }
 0x5a6   : > { %v9593_v0 = vor.u32 %v10937_v54, %v9592_v53  ;;  %v10927_v53 = vld [vmem:[%s15452_s2 + $0x384] sm:$0xf0] }
 0x5a7   : > { %4594 = vmatpush.bf16.msrb.mxu0 %v9121_v60  ;;  %4620 = vmatpush.bf16.msrb.mxu2 %v9249_v31  ;;  %v9456_v60 = vld [vmem:[%s15452_s2 + $0x2c0] sm:$0xf]  ;;  %v9553_v54 = vor.u32 %v10927_v53, %v9552_v52  ;;  %v10820_v52 = vld [vmem:[%s15452_s2 + $0x34] sm:$0xf]  ;;  %v9130_v53 = vld [vmem:[%s15452_s2 + $0x38] sm:$0xf0] }
 0x5a8   : > { %4607 = vmatpush.bf16.msra.mxu1 %v9185_v61  ;;  %4633 = vmatpush.bf16.msra.mxu3 %v9313_v5  ;;  %v10903_v61 = vld [vmem:[%s15452_s2 + $0x2c4] sm:$0xf0]  ;;  %v9584_v31 = vld [vmem:[%s15452_s2 + $0x3c0] sm:$0xf] }
 0x5a9   : > { %v10935_v5 = vld [vmem:[%s15452_s2 + $0x3c4] sm:$0xf0]  ;;  %v9457_v63 = vor.u32 %v10903_v61, %v9456_v60  ;;  %v9162_v60 = vld [vmem:[%s15452_s2 + $0x78] sm:$0xf0]  ;;  %v10844_v61 = vld [vmem:[%s15452_s2 + $0xf4] sm:$0xf] }
 0x5aa   : > { %v9585_v35 = vor.u32 %v10935_v5, %v9584_v31  ;;  %v10826_v5 = vld [vmem:[%s15452_s2 + $0x64] sm:$0xf] }
 0x5ab   : > { %4595 = vmatpush.bf16.msrb.mxu0 %v9113_v24  ;;  %4621 = vmatpush.bf16.msrb.mxu2 %v9241_v17  ;;  %v10901_v24 = vld [vmem:[%s15452_s2 + $0x2b4] sm:$0xf0]  ;;  %v10899_v17 = vld [vmem:[%s15452_s2 + $0x2a4] sm:$0xf0] }
 0x5ac   : > { %4608 = vmatpush.bf16.msra.mxu1 %v9177_v14  ;;  %4634 = vmatpush.bf16.msra.mxu3 %v9305_v20  ;;  %v9521_v14 = vor.u32 %v10919_v4, %v9520_v1  ;;  %v9449_v16 = vor.u32 %v10901_v24, %v9448_v13  ;;  %v9377_v20 = vor.u32 %v10883_v9, %v9376_v19  ;;  %v9218_v13 = vld [vmem:[%s15452_s2 + $0xe8] sm:$0xf0] }
 0x5ad   : > { %v9441_v7 = vor.u32 %v10899_v17, %v9440_v11  ;;  %v9165_v4 = vor.u32 %v10828_v45, %v9162_v60  ;;  %v9157_v17 = vor.u32 %v10826_v5, %v9154_v10  ;;  %v9133_v5 = vor.u32 %v10820_v52, %v9130_v53  ;;  %v9482_v52 = vld [vmem:[%s15452_s2 + $0x2f8] sm:$0xf0]  ;;  %v10848_v53 = vld [vmem:[%s15452_s2 + $0x114] sm:$0xf] }
 0x5af   : > { %4596 = vmatpush.bf16.msrb.mxu0 %v9105_v18  ;;  %4622 = vmatpush.bf16.msrb.mxu2 %v9233_v33  ;;  %v9577_v18 = vor.u32 %v10933_v3, %v9576_v21  ;;  %v10931_v33 = vld [vmem:[%s15452_s2 + $0x3a4] sm:$0xf0]  ;;  %v10840_v21 = vld [vmem:[%s15452_s2 + $0xd4] sm:$0xf] }
 0x5b0   : > { %4609 = vmatpush.bf16.msra.mxu1 %v9169_v26  ;;  %4635 = vmatpush.bf16.msra.mxu3 %v9297_v34  ;;  %v9368_v26 = vld [vmem:[%s15452_s2 + $0x210] sm:$0xf]  ;;  %v9569_v34 = vor.u32 %v10931_v33, %v9568_v59  ;;  %v10874_v59 = vld [vmem:[%s15452_s2 + $0x1e4] sm:$0xf] }
 0x5b1   : > { %v9369_v39 = vor.u32 %v10881_v28, %v9368_v26  ;;  %v10822_v33 = vld [vmem:[%s15452_s2 + $0x44] sm:$0xf] }
 0x5b3   : > { %4641 = vmatpush.bf16.msra.mxu0 %v9417_v43  ;;  %4667 = vmatpush.bf16.msra.mxu2 %v9545_v36  ;;  %v10897_v43 = vld [vmem:[%s15452_s2 + $0x294] sm:$0xf0]  ;;  %v9360_v36 = vld [vmem:[%s15452_s2 + $0x200] sm:$0xf] }
 0x5b4   : > { %4654 = vmatpush.bf16.msrb.mxu1 %v9481_v44  ;;  %4680 = vmatpush.bf16.msrb.mxu3 %v9609_v37  ;;  %v9433_v44 = vor.u32 %v10897_v43, %v9432_v57  ;;  %v10879_v37 = vld [vmem:[%s15452_s2 + $0x204] sm:$0xf0]  ;;  %v9149_v57 = vor.u32 %v10824_v8, %v9146_v15  ;;  %v9282_v43 = vld [vmem:[%s15452_s2 + $0x168] sm:$0xf0] }
 0x5b5   : > { %v9361_v40 = vor.u32 %v10879_v37, %v9360_v36  ;;  %v10838_v36 = vld [vmem:[%s15452_s2 + $0xc4] sm:$0xf]  ;;  %v9202_v37 = vld [vmem:[%s15452_s2 + $0xc8] sm:$0xf0] }
 0x5b7   : > { %4642 = vmatpush.bf16.msra.mxu0 %v9409_v46  ;;  %4668 = vmatpush.bf16.msra.mxu2 %v9537_v23  ;;  %v9496_v46 = vld [vmem:[%s15452_s2 + $0x310] sm:$0xf]  ;;  %v9488_v23 = vld [vmem:[%s15452_s2 + $0x300] sm:$0xf] }
 0x5b8   : > { %4655 = vmatpush.bf16.msrb.mxu1 %v9473_v27  ;;  %4681 = vmatpush.bf16.msrb.mxu3 %v9601_v2  ;;  %v10913_v27 = vld [vmem:[%s15452_s2 + $0x314] sm:$0xf0]  ;;  %v10911_v2 = vld [vmem:[%s15452_s2 + $0x304] sm:$0xf0] }
 0x5b9   : > { %v9497_v48 = vor.u32 %v10913_v27, %v9496_v46  ;;  %v9489_v51 = vor.u32 %v10911_v2, %v9488_v23  ;;  %v10856_v46 = vld [vmem:[%s15452_s2 + $0x154] sm:$0xf]  ;;  %v9338_v2 = vld [vmem:[%s15452_s2 + $0x1d8] sm:$0xf0] }
 0x5ba   : > { %v10872_v23 = vld [vmem:[%s15452_s2 + $0x1d4] sm:$0xf] }
 0x5bb   : > { %4643 = vmatpush.bf16.msra.mxu0 %v9401_v55  ;;  %4669 = vmatpush.bf16.msra.mxu2 %v9529_v62  ;;  %v9226_v62 = vld [vmem:[%s15452_s2 + $0xf8] sm:$0xf0]  ;;  %v9341_v60 = vor.u32 %v10872_v23, %v9338_v2 }
 0x5bc   : > { %4656 = vmatpush.bf16.msrb.mxu1 %v9465_v56  ;;  %4682 = vmatpush.bf16.msrb.mxu3 %v9593_v0  ;;  %v9229_v31 = vor.u32 %v10844_v61, %v9226_v62  ;;  %v10854_v61 = vld [vmem:[%s15452_s2 + $0x144] sm:$0xf]  ;;  %v9266_v62 = vld [vmem:[%s15452_s2 + $0x148] sm:$0xf0] }
 0x5bf   : > { %4644 = vmatpush.bf16.msra.mxu0 %v9393_v6  ;;  %4670 = vmatpush.bf16.msra.mxu2 %v9521_v14 }
 0x5c0   : > { %4657 = vmatpush.bf16.msrb.mxu1 %v9457_v63  ;;  %4683 = vmatpush.bf16.msrb.mxu3 %v9585_v35  ;;  %v10860_v35 = vld [vmem:[%s15452_s2 + $0x174] sm:$0xf] }
 0x5c3   : > { %4645 = vmatpush.bf16.msra.mxu0 %v9385_v50  ;;  %4671 = vmatpush.bf16.msra.mxu2 %v9513_v25  ;;  %v9290_v50 = vld [vmem:[%s15452_s2 + $0x178] sm:$0xf0] }
 0x5c4   : > { %4658 = vmatpush.bf16.msrb.mxu1 %v9449_v16  ;;  %4684 = vmatpush.bf16.msrb.mxu3 %v9577_v18  ;;  %v10876_v16 = vld [vmem:[%s15452_s2 + $0x1f4] sm:$0xf]  ;;  %v9210_v25 = vld [vmem:[%s15452_s2 + $0xd8] sm:$0xf0]  ;;  %v9293_v26 = vor.u32 %v10860_v35, %v9290_v50 }
 0x5c5   : > { %v9213_v30 = vor.u32 %v10840_v21, %v9210_v25 }
 0x5c7   : > { %4646 = vmatpush.bf16.msra.mxu0 %v9377_v20  ;;  %4672 = vmatpush.bf16.msra.mxu2 %v9505_v32  ;;  %v9221_v20 = vor.u32 %v10842_v12, %v9218_v13  ;;  %v9346_v32 = vld [vmem:[%s15452_s2 + $0x1e8] sm:$0xf0]  ;;  %v10818_v12 = vld [vmem:[%s15452_s2 + $0x24] sm:$0xf] }
 0x5c8   : > { %4659 = vmatpush.bf16.msrb.mxu1 %v9441_v7  ;;  %4685 = vmatpush.bf16.msrb.mxu3 %v9569_v34  ;;  %v9354_v7 = vld [vmem:[%s15452_s2 + $0x1f8] sm:$0xf0]  ;;  %v9138_v34 = vld [vmem:[%s15452_s2 + $0x48] sm:$0xf0] }
 0x5c9   : > { %v9357_v28 = vor.u32 %v10876_v16, %v9354_v7  ;;  %v9141_v47 = vor.u32 %v10822_v33, %v9138_v34  ;;  %v9122_v13 = vld [vmem:[%s15452_s2 + $0x28] sm:$0xf0]  ;;  %v9269_v16 = vor.u32 %v10854_v61, %v9266_v62  ;;  %v9322_v7 = vld [vmem:[%s15452_s2 + $0x1b8] sm:$0xf0]  ;;  %v10890_v62 = vld [vmem:[%s15452_s2 + $0x264] sm:$0xf] }
 0x5ca   : > { %v9125_v21 = vor.u32 %v10818_v12, %v9122_v13  ;;  %v9250_v34 = vld [vmem:[%s15452_s2 + $0x128] sm:$0xf0]  ;;  %v10846_v13 = vld [vmem:[%s15452_s2 + $0x104] sm:$0xf] }
 0x5cb   : > { %4647 = vmatpush.bf16.msra.mxu0 %v9369_v39  ;;  %4673 = vmatpush.bf16.msra.mxu2 %v9497_v48  ;;  %v10858_v39 = vld [vmem:[%s15452_s2 + $0x164] sm:$0xf]  ;;  %v9205_v48 = vor.u32 %v10838_v36, %v9202_v37  ;;  %v9314_v37 = vld [vmem:[%s15452_s2 + $0x1a8] sm:$0xf0] }
 0x5cc   : > { %4660 = vmatpush.bf16.msrb.mxu1 %v9433_v44  ;;  %4686 = vmatpush.bf16.msrb.mxu3 %v9561_v22  ;;  %v9285_v41 = vor.u32 %v10858_v39, %v9282_v43  ;;  %v9274_v22 = vld [vmem:[%s15452_s2 + $0x158] sm:$0xf0]  ;;  %v10866_v36 = vld [vmem:[%s15452_s2 + $0x1a4] sm:$0xf]  ;;  %v9474_v12 = vld [vmem:[%s15452_s2 + $0x2e8] sm:$0xf0] }
 0x5cd   : > { %v9178_v39 = vld [vmem:[%s15452_s2 + $0x98] sm:$0xf0] }
 0x5cf   : > { %4648 = vmatpush.bf16.msra.mxu0 %v9361_v40  ;;  %4674 = vmatpush.bf16.msra.mxu2 %v9489_v51 }
 0x5d0   : > { %4661 = vmatpush.bf16.msrb.mxu1 %v9425_v49  ;;  %4687 = vmatpush.bf16.msrb.mxu3 %v9553_v54  ;;  %v9349_v49 = vor.u32 %v10874_v59, %v9346_v32  ;;  %v10836_v54 = vld [vmem:[%s15452_s2 + $0xb4] sm:$0xf]  ;;  %v10850_v59 = vld [vmem:[%s15452_s2 + $0x124] sm:$0xf] }
 0x60b   : > { %v3673_v55 = vpop.f32.mrf.mxu0 }
 0x60e   : > { %v3686_v56 = vpop.f32.mrf.mxu1 }
 0x60f   : > { %v3690_v58 = vpack.c.bf16 %v3686_v56, %v3673_v55  ;;  %v9194_v55 = vld [vmem:[%s15452_s2 + $0xb8] sm:$0xf0] }
 0x610   : > { %v9197_v10 = vor.u32 %v10836_v54, %v9194_v55  ;;  %v9242_v54 = vld [vmem:[%s15452_s2 + $0x118] sm:$0xf0]  ;;  %v10864_v55 = vld [vmem:[%s15452_s2 + $0x194] sm:$0xf] }
 0x611   : > { %v3788_v0 = vunpack.c.l.b16 %v3690_v58  ;;  %v3789_v1 = vunpack.c.h.b16 %v3690_v58  ;;  %v3705_v24 = vpop.f32.mrf.mxu2  ;;  %v9277_v58 = vor.u32 %v10856_v46, %v9274_v22  ;;  %v10830_v46 = vld [vmem:[%s15452_s2 + $0x84] sm:$0xf]  ;;  %v9317_v22 = vor.u32 %v10866_v36, %v9314_v37 }
 0x613   : > { %v13619_v6 = vpack.c.b16 %v3788_v0, %v3788_v0  ;;  %v13621_v63 = vpack.c.b16 %v3789_v1, %v3789_v1  ;;  %v3675_v9 = vpop.f32.mrf.mxu0  ;;  %v10870_v0 = vld [vmem:[%s15452_s2 + $0x1c4] sm:$0xf]  ;;  %v9330_v1 = vld [vmem:[%s15452_s2 + $0x1c8] sm:$0xf0] }
 0x614   : > { %v3718_v14 = vpop.f32.mrf.mxu3  ;;  %v10852_v9 = vld [vmem:[%s15452_s2 + $0x134] sm:$0xf] }
 0x615   : > { %4597 = vmatmul.bf16.vlgmr.msrb.gmra.mxu0 %v13619_v6  ;;  %4610 = vmatmul.bf16.vlgmr.msra.gmra.mxu1 %v13621_v63  ;;  %v3722_v19 = vpack.c.bf16 %v3718_v14, %v3705_v24  ;;  %v10834_v24 = vld [vmem:[%s15452_s2 + $0xa4] sm:$0xf]  ;;  %v9186_v14 = vld [vmem:[%s15452_s2 + $0xa8] sm:$0xf0] }
 0x616   : > { %4693 = vmatpush.bf16.msrb.mxu0 %v9165_v4  ;;  %4706 = vmatpush.bf16.msra.mxu1 %v9229_v31  ;;  %v3688_v11 = vpop.f32.mrf.mxu1  ;;  %v9189_v25 = vor.u32 %v10834_v24, %v9186_v14  ;;  %v9234_v24 = vld [vmem:[%s15452_s2 + $0x108] sm:$0xf0]  ;;  %v10862_v14 = vld [vmem:[%s15452_s2 + $0x184] sm:$0xf] }
 0x617   : > { %v3795_v3 = vunpack.c.l.b16 %v3722_v19  ;;  %v3796_v18 = vunpack.c.h.b16 %v3722_v19  ;;  %v9333_v19 = vor.u32 %v10870_v0, %v9330_v1  ;;  %v9410_v0 = vld [vmem:[%s15452_s2 + $0x268] sm:$0xf0]  ;;  %v10906_v1 = vld [vmem:[%s15452_s2 + $0x2e4] sm:$0xf] }
 0x619   : > { %v13664_v44 = vpack.c.b16 %v3795_v3, %v3795_v3  ;;  %v13666_v42 = vpack.c.b16 %v3796_v18, %v3796_v18  ;;  %v3707_v38 = vpop.f32.mrf.mxu2  ;;  %v10816_v3 = vld [vmem:[%s15452_s2 + $0x14] sm:$0xf] }
 0x61a   : > { %4694 = vmatpush.bf16.msrb.mxu0 %v9157_v17  ;;  %4707 = vmatpush.bf16.msra.mxu1 %v9221_v20  ;;  %v9258_v17 = vld [vmem:[%s15452_s2 + $0x138] sm:$0xf0]  ;;  %v10868_v20 = vld [vmem:[%s15452_s2 + $0x1b4] sm:$0xf] }
 0x61b   : > { %4623 = vmatmul.bf16.vlgmr.msrb.gmra.mxu2 %v13664_v44  ;;  %4636 = vmatmul.bf16.vlgmr.msra.gmra.mxu3 %v13666_v42  ;;  %v3737_v27 = vpop.f32.mrf.mxu0  ;;  %v9261_v43 = vor.u32 %v10852_v9, %v9258_v17  ;;  %v9610_v9 = vld [vmem:[%s15452_s2 + $0x3f8] sm:$0xf0]  ;;  %v9477_v17 = vor.u32 %v10906_v1, %v9474_v12  ;;  %v10932_v1 = vld [vmem:[%s15452_s2 + $0x3b4] sm:$0xf] }
 0x61c   : > { %4719 = vmatpush.bf16.msrb.mxu2 %v9293_v26  ;;  %4732 = vmatpush.bf16.msra.mxu3 %v9357_v28  ;;  %v3720_v40 = vpop.f32.mrf.mxu3  ;;  %v9114_v28 = vld [vmem:[%s15452_s2 + $0x18] sm:$0xf0] }
 0x61d   : > { %v9117_v38 = vor.u32 %v10816_v3, %v9114_v28  ;;  %v9538_v28 = vld [vmem:[%s15452_s2 + $0x368] sm:$0xf0] }
 0x61e   : > { %4695 = vmatpush.bf16.msrb.mxu0 %v9149_v57  ;;  %4708 = vmatpush.bf16.msra.mxu1 %v9213_v30  ;;  %v3750_v29 = vpop.f32.mrf.mxu1  ;;  %v10832_v57 = vld [vmem:[%s15452_s2 + $0x94] sm:$0xf]  ;;  %v9325_v30 = vor.u32 %v10868_v20, %v9322_v7  ;;  %v9237_v7 = vor.u32 %v10846_v13, %v9234_v24  ;;  %v9370_v24 = vld [vmem:[%s15452_s2 + $0x218] sm:$0xf0] }
 0x61f   : > { %v3754_v51 = vpack.c.bf16 %v3750_v29, %v3737_v27  ;;  %v9181_v40 = vor.u32 %v10832_v57, %v9178_v39  ;;  %v9170_v27 = vld [vmem:[%s15452_s2 + $0x88] sm:$0xf0]  ;;  %v10892_v29 = vld [vmem:[%s15452_s2 + $0x274] sm:$0xf]  ;;  %v10938_v57 = vld [vmem:[%s15452_s2 + $0x3e4] sm:$0xf] }
 0x620   : > { %4720 = vmatpush.bf16.msrb.mxu2 %v9285_v41  ;;  %4733 = vmatpush.bf16.msra.mxu3 %v9349_v49  ;;  %v10814_v41 = vld [vmem:[%s15452_s2 + $0x4] sm:$0xf]  ;;  %v9106_v49 = vld [vmem:[%s15452_s2 + $0x8] sm:$0xf0]  ;;  %v10888_v20 = vld [vmem:[%s15452_s2 + $0x254] sm:$0xf] }
 0x621   : > { %v3802_v56 = vunpack.c.l.b16 %v3754_v51  ;;  %v3803_v45 = vunpack.c.h.b16 %v3754_v51  ;;  %v3769_v35 = vpop.f32.mrf.mxu2  ;;  %v10908_v51 = vld [vmem:[%s15452_s2 + $0x2f4] sm:$0xf] }
 0x622   : > { %4696 = vmatpush.bf16.msrb.mxu0 %v9141_v47  ;;  %4709 = vmatpush.bf16.msra.mxu1 %v9205_v48  ;;  %v9418_v47 = vld [vmem:[%s15452_s2 + $0x278] sm:$0xf0]  ;;  %v9253_v48 = vor.u32 %v10850_v59, %v9250_v34  ;;  %v9485_v61 = vor.u32 %v10908_v51, %v9482_v52  ;;  %v10902_v59 = vld [vmem:[%s15452_s2 + $0x2c4] sm:$0xf]  ;;  %v9458_v34 = vld [vmem:[%s15452_s2 + $0x2c8] sm:$0xf0] }
 0x623   : > { %v13724_v4 = vpack.c.b16 %v3802_v56, %v3802_v56  ;;  %v13726_v31 = vpack.c.b16 %v3803_v45, %v3803_v45  ;;  %v3739_v8 = vpop.f32.mrf.mxu0  ;;  %v9306_v56 = vld [vmem:[%s15452_s2 + $0x198] sm:$0xf0]  ;;  %v9109_v45 = vor.u32 %v10814_v41, %v9106_v49  ;;  %v10936_v41 = vld [vmem:[%s15452_s2 + $0x3d4] sm:$0xf]  ;;  %v10934_v51 = vld [vmem:[%s15452_s2 + $0x3c4] sm:$0xf] }
 0x624   : > { %4721 = vmatpush.bf16.msrb.mxu2 %v9277_v58  ;;  %4734 = vmatpush.bf16.msra.mxu3 %v9341_v60  ;;  %v3782_v50 = vpop.f32.mrf.mxu3  ;;  %v9173_v58 = vor.u32 %v10830_v46, %v9170_v27  ;;  %v9421_v60 = vor.u32 %v10892_v29, %v9418_v47  ;;  %v9594_v49 = vld [vmem:[%s15452_s2 + $0x3d8] sm:$0xf0]  ;;  %v9461_v27 = vor.u32 %v10902_v59, %v9458_v34  ;;  %v10884_v29 = vld [vmem:[%s15452_s2 + $0x234] sm:$0xf]  ;;  %v9586_v52 = vld [vmem:[%s15452_s2 + $0x3c8] sm:$0xf0] }
 0x625   : > { %v3786_v11 = vpack.c.bf16 %v3782_v50, %v3769_v35  ;;  %4649 = vmatmul.bf16.vlgmr.msra.gmra.mxu0 %v13724_v4  ;;  %4662 = vmatmul.bf16.vlgmr.msrb.gmra.mxu1 %v13726_v31  ;;  %v9298_v35 = vld [vmem:[%s15452_s2 + $0x188] sm:$0xf0]  ;;  %v10924_v50 = vld [vmem:[%s15452_s2 + $0x374] sm:$0xf]  ;;  %v9386_v47 = vld [vmem:[%s15452_s2 + $0x238] sm:$0xf0] }
 0x626   : > { %v3752_v15 = vpop.f32.mrf.mxu1  ;;  %4697 = vmatpush.bf16.msrb.mxu0 %v9133_v5  ;;  %4710 = vmatpush.bf16.msra.mxu1 %v9197_v10  ;;  %v9245_v5 = vor.u32 %v10848_v53, %v9242_v54  ;;  %v9309_v10 = vor.u32 %v10864_v55, %v9306_v56  ;;  %v9301_v8 = vor.u32 %v10862_v14, %v9298_v35  ;;  %v10882_v55 = vld [vmem:[%s15452_s2 + $0x224] sm:$0xf]  ;;  %v9378_v56 = vld [vmem:[%s15452_s2 + $0x228] sm:$0xf0]  ;;  %v10880_v13 = vld [vmem:[%s15452_s2 + $0x214] sm:$0xf] }
 0x627   : > { %v3809_v18 = vunpack.c.l.b16 %v3786_v11  ;;  %v3810_v26 = vunpack.c.h.b16 %v3786_v11  ;;  %v9413_v11 = vor.u32 %v10890_v62, %v9410_v0  ;;  %v9402_v15 = vld [vmem:[%s15452_s2 + $0x258] sm:$0xf0]  ;;  %v9389_v53 = vor.u32 %v10884_v29, %v9386_v47  ;;  %v10916_v62 = vld [vmem:[%s15452_s2 + $0x334] sm:$0xf]  ;;  %v10910_v59 = vld [vmem:[%s15452_s2 + $0x304] sm:$0xf] }
 0x628   : > { %4722 = vmatpush.bf16.msrb.mxu2 %v9269_v16  ;;  %4735 = vmatpush.bf16.msra.mxu3 %v9333_v19  ;;  %v9546_v16 = vld [vmem:[%s15452_s2 + $0x378] sm:$0xf0]  ;;  %v10940_v19 = vld [vmem:[%s15452_s2 + $0x3f4] sm:$0xf]  ;;  %v9490_v34 = vld [vmem:[%s15452_s2 + $0x308] sm:$0xf0] }
 0x629   : > { %v13769_v32 = vpack.c.b16 %v3809_v18, %v3809_v18  ;;  %v13771_v33 = vpack.c.b16 %v3810_v26, %v3810_v26  ;;  %v3771_v23 = vpop.f32.mrf.mxu2  ;;  %v9549_v3 = vor.u32 %v10924_v50, %v9546_v16  ;;  %v9613_v18 = vor.u32 %v10940_v19, %v9610_v9  ;;  %v10922_v26 = vld [vmem:[%s15452_s2 + $0x364] sm:$0xf]  ;;  %v9514_v0 = vld [vmem:[%s15452_s2 + $0x338] sm:$0xf0]  ;;  %v10896_v14 = vld [vmem:[%s15452_s2 + $0x294] sm:$0xf] }
 0x62a   : > { %4698 = vmatpush.bf16.msrb.mxu0 %v9125_v21  ;;  %4711 = vmatpush.bf16.msra.mxu1 %v9189_v25  ;;  %v10904_v21 = vld [vmem:[%s15452_s2 + $0x2d4] sm:$0xf]  ;;  %v9466_v25 = vld [vmem:[%s15452_s2 + $0x2d8] sm:$0xf0]  ;;  %v9541_v36 = vor.u32 %v10922_v26, %v9538_v28  ;;  %v9517_v50 = vor.u32 %v10916_v62, %v9514_v0  ;;  %v10914_v19 = vld [vmem:[%s15452_s2 + $0x324] sm:$0xf] }
 0x62b   : > { %4675 = vmatmul.bf16.vlgmr.msra.gmra.mxu2 %v13769_v32  ;;  %4688 = vmatmul.bf16.vlgmr.msrb.gmra.mxu3 %v13771_v33  ;;  %v9469_v39 = vor.u32 %v10904_v21, %v9466_v25  ;;  %v9434_v35 = vld [vmem:[%s15452_s2 + $0x298] sm:$0xf0]  ;;  %v9506_v9 = vld [vmem:[%s15452_s2 + $0x328] sm:$0xf0]  ;;  %v10894_v21 = vld [vmem:[%s15452_s2 + $0x284] sm:$0xf] }
 0x62c   : > { %4723 = vmatpush.bf16.msrb.mxu2 %v9261_v43  ;;  %4736 = vmatpush.bf16.msra.mxu3 %v9325_v30  ;;  %v3784_v2 = vpop.f32.mrf.mxu3  ;;  %v10886_v43 = vld [vmem:[%s15452_s2 + $0x244] sm:$0xf]  ;;  %v9394_v30 = vld [vmem:[%s15452_s2 + $0x248] sm:$0xf0]  ;;  %v10912_v26 = vld [vmem:[%s15452_s2 + $0x314] sm:$0xf] }
 0x62d   : > { %v9397_v46 = vor.u32 %v10886_v43, %v9394_v30  ;;  %v9597_v2 = vor.u32 %v10936_v41, %v9594_v49  ;;  %v9426_v25 = vld [vmem:[%s15452_s2 + $0x288] sm:$0xf0]  ;;  %v9498_v28 = vld [vmem:[%s15452_s2 + $0x318] sm:$0xf0]  ;;  %v4803_v41 = vld [vmem:[%s15454_s1 + $0x30] sm:$0xff] }
 0x62e   : > { %4699 = vmatpush.bf16.msrb.mxu0 %v9117_v38  ;;  %4712 = vmatpush.bf16.msra.mxu1 %v9181_v40  ;;  %v10920_v38 = vld [vmem:[%s15452_s2 + $0x354] sm:$0xf]  ;;  %v9530_v40 = vld [vmem:[%s15452_s2 + $0x358] sm:$0xf0]  ;;  %v9501_v43 = vor.u32 %v10912_v26, %v9498_v28 }
 0x62f   : > { %v9533_v23 = vor.u32 %v10920_v38, %v9530_v40  ;;  %v9493_v38 = vor.u32 %v10910_v59, %v9490_v34 }
 0x630   : > { %4724 = vmatpush.bf16.msrb.mxu2 %v9253_v48  ;;  %4737 = vmatpush.bf16.msra.mxu3 %v9317_v22  ;;  %v10900_v48 = vld [vmem:[%s15452_s2 + $0x2b4] sm:$0xf]  ;;  %v9450_v22 = vld [vmem:[%s15452_s2 + $0x2b8] sm:$0xf0] }
 0x631   : > { %v9453_v54 = vor.u32 %v10900_v48, %v9450_v22  ;;  %v4797_v48 = vld [vmem:[%s15454_s1] sm:$0xff] }
 0x632   : > { %4700 = vmatpush.bf16.msrb.mxu0 %v9109_v45  ;;  %4713 = vmatpush.bf16.msra.mxu1 %v9173_v58  ;;  %v10898_v45 = vld [vmem:[%s15452_s2 + $0x2a4] sm:$0xf]  ;;  %v9442_v58 = vld [vmem:[%s15452_s2 + $0x2a8] sm:$0xf0] }
 0x633   : > { %v9445_v12 = vor.u32 %v10898_v45, %v9442_v58 }
 0x634   : > { %4725 = vmatpush.bf16.msrb.mxu2 %v9245_v5  ;;  %4738 = vmatpush.bf16.msra.mxu3 %v9309_v10  ;;  %v9578_v5 = vld [vmem:[%s15452_s2 + $0x3b8] sm:$0xf0]  ;;  %v9381_v10 = vor.u32 %v10882_v55, %v9378_v56 }
 0x635   : > { %4701 = vmatmul.bf16.vlgmr.msrb.gmra.mxu0 %v13619_v6  ;;  %4714 = vmatmul.bf16.vlgmr.msra.gmra.mxu1 %v13621_v63  ;;  %v9602_v6 = vld [vmem:[%s15452_s2 + $0x3e8] sm:$0xf0]  ;;  %v9405_v63 = vor.u32 %v10888_v20, %v9402_v15  ;;  %v9581_v16 = vor.u32 %v10932_v1, %v9578_v5  ;;  %v9373_v20 = vor.u32 %v10880_v13, %v9370_v24 }
 0x636   : > { %4745 = vmatpush.bf16.msra.mxu0 %v9421_v60  ;;  %4758 = vmatpush.bf16.msrb.mxu1 %v9485_v61  ;;  %v9605_v37 = vor.u32 %v10938_v57, %v9602_v6  ;;  %v9589_v61 = vor.u32 %v10934_v51, %v9586_v52  ;;  %v9362_v15 = vld [vmem:[%s15452_s2 + $0x208] sm:$0xf0]  ;;  %v10928_v57 = vld [vmem:[%s15452_s2 + $0x394] sm:$0xf]  ;;  %v9562_v6 = vld [vmem:[%s15452_s2 + $0x398] sm:$0xf0] }
 0x637   : > { %v9565_v30 = vor.u32 %v10928_v57, %v9562_v6 }
 0x638   : > { %4726 = vmatpush.bf16.msrb.mxu2 %v9237_v7  ;;  %4739 = vmatpush.bf16.msra.mxu3 %v9301_v8  ;;  %v9437_v7 = vor.u32 %v10896_v14, %v9434_v35  ;;  %v10878_v8 = vld [vmem:[%s15452_s2 + $0x204] sm:$0xf] }
 0x63a   : > { %4746 = vmatpush.bf16.msra.mxu0 %v9413_v11  ;;  %4759 = vmatpush.bf16.msrb.mxu1 %v9477_v17  ;;  %v10930_v11 = vld [vmem:[%s15452_s2 + $0x3a4] sm:$0xf]  ;;  %v9570_v17 = vld [vmem:[%s15452_s2 + $0x3a8] sm:$0xf0] }
 0x63b   : > { %4727 = vmatmul.bf16.vlgmr.msrb.gmra.mxu2 %v13664_v44  ;;  %4740 = vmatmul.bf16.vlgmr.msra.gmra.mxu3 %v13666_v42  ;;  %v10918_v44 = vld [vmem:[%s15452_s2 + $0x344] sm:$0xf]  ;;  %v9522_v42 = vld [vmem:[%s15452_s2 + $0x348] sm:$0xf0] }
 0x63c   : > { %4771 = vmatpush.bf16.msra.mxu2 %v9549_v3  ;;  %4784 = vmatpush.bf16.msrb.mxu3 %v9613_v18  ;;  %v9525_v60 = vor.u32 %v10918_v44, %v9522_v42  ;;  %v9509_v3 = vor.u32 %v10914_v19, %v9506_v9  ;;  %v9573_v18 = vor.u32 %v10930_v11, %v9570_v17  ;;  %v4804_v9 = vld [vmem:[%s15454_s1 + $0x38] sm:$0xff] }
 0x63e   : > { %4747 = vmatpush.bf16.msra.mxu0 %v9405_v63  ;;  %4760 = vmatpush.bf16.msrb.mxu1 %v9469_v39  ;;  %v9365_v63 = vor.u32 %v10878_v8, %v9362_v15  ;;  %v9429_v39 = vor.u32 %v10894_v21, %v9426_v25  ;;  %v4800_v8 = vld [vmem:[%s15454_s1 + $0x18] sm:$0xff] }
 0x640   : > { %4772 = vmatpush.bf16.msra.mxu2 %v9541_v36  ;;  %4785 = vmatpush.bf16.msrb.mxu3 %v9605_v37  ;;  %v10926_v36 = vld [vmem:[%s15452_s2 + $0x384] sm:$0xf]  ;;  %v9554_v37 = vld [vmem:[%s15452_s2 + $0x388] sm:$0xf0] }
 0x641   : > { %v9557_v40 = vor.u32 %v10926_v36, %v9554_v37 }
 0x642   : > { %4748 = vmatpush.bf16.msra.mxu0 %v9397_v46  ;;  %4761 = vmatpush.bf16.msrb.mxu1 %v9461_v27 }
 0x644   : > { %4773 = vmatpush.bf16.msra.mxu2 %v9533_v23  ;;  %4786 = vmatpush.bf16.msrb.mxu3 %v9597_v2 }
 0x646   : > { %4749 = vmatpush.bf16.msra.mxu0 %v9389_v53  ;;  %4762 = vmatpush.bf16.msrb.mxu1 %v9453_v54 }
 0x648   : > { %4774 = vmatpush.bf16.msra.mxu2 %v9525_v60  ;;  %4787 = vmatpush.bf16.msrb.mxu3 %v9589_v61 }
 0x64a   : > { %4750 = vmatpush.bf16.msra.mxu0 %v9381_v10  ;;  %4763 = vmatpush.bf16.msrb.mxu1 %v9445_v12 }
 0x64c   : > { %4775 = vmatpush.bf16.msra.mxu2 %v9517_v50  ;;  %4788 = vmatpush.bf16.msrb.mxu3 %v9581_v16 }
 0x64e   : > { %4751 = vmatpush.bf16.msra.mxu0 %v9373_v20  ;;  %4764 = vmatpush.bf16.msrb.mxu1 %v9437_v7  ;;  %v4802_v7 = vld [vmem:[%s15454_s1 + $0x28] sm:$0xff] }
 0x650   : > { %4776 = vmatpush.bf16.msra.mxu2 %v9509_v3  ;;  %4789 = vmatpush.bf16.msrb.mxu3 %v9573_v18  ;;  %v4798_v3 = vld [vmem:[%s15454_s1 + $0x8] sm:$0xff] }
 0x652   : > { %4752 = vmatpush.bf16.msra.mxu0 %v9365_v63  ;;  %4765 = vmatpush.bf16.msrb.mxu1 %v9429_v39 }
 0x654   : > { %4777 = vmatpush.bf16.msra.mxu2 %v9501_v43  ;;  %4790 = vmatpush.bf16.msrb.mxu3 %v9565_v30 }
 0x655   : > { %4753 = vmatmul.bf16.vlgmr.msra.gmra.mxu0 %v13724_v4  ;;  %4766 = vmatmul.bf16.vlgmr.msrb.gmra.mxu1 %v13726_v31  ;;  %v14026_v4 = vld [vmem:[%s15455_s3] sm:$0x3]  ;;  %s15456_s3 = sld [smem:[#allocation25_spill]] }
 0x656   : > { %4829 = vmatpush.xpose.msrb.mxu0 %v4803_v41  ;;  %v4801_v31 = vld [vmem:[%s15454_s1 + $0x20] sm:$0xff]  ;;  %4849 = vmatpush.xpose.msra.mxu1 %v4804_v9  ;;  %v3946_v15 = vperm.slane %v14026_v4, 1 }
 0x658   : > { %4778 = vmatpush.bf16.msra.mxu2 %v9493_v38  ;;  %4791 = vmatpush.bf16.msrb.mxu3 %v9557_v40 }
 0x65a   : > { %4830 = vmatpush.xpose.msrb.mxu0 %v4801_v31  ;;  %4850 = vmatpush.xpose.msra.mxu1 %v4802_v7 }
 0x65b   : > { %4779 = vmatmul.bf16.vlgmr.msra.gmra.mxu2 %v13769_v32  ;;  %4792 = vmatmul.bf16.vlgmr.msrb.gmra.mxu3 %v13771_v33  ;;  %v3945_v32 = vperm.slane %v14026_v4, 0  ;;  %v4799_v33 = vld [vmem:[%s15454_s1 + $0x10] sm:$0xff]  ;;  %s15457_s5 = smov %s15456_s3 }
 0x65c   : > { %4873 = vmatpush.msrb.mxu2 %v4803_v41  ;;  %4893 = vmatpush.msra.mxu3 %v4804_v9 }
 0x65e   : > { %4874 = vmatpush.msrb.mxu2 %v4801_v31  ;;  %4831 = vmatpush.xpose.msrb.mxu0 %v4799_v33 }
 0x65f   : > { %4894 = vmatpush.msra.mxu3 %v4802_v7  ;;  %4851 = vmatpush.xpose.msra.mxu1 %v4800_v8 }
 0x660   : > { %4875 = vmatpush.msrb.mxu2 %v4799_v33 }
 0x661   : > { %4895 = vmatpush.msra.mxu3 %v4800_v8 }
 0x662   : > { %4832 = vmatpush.xpose.msrb.mxu0 %v4797_v48  ;;  %4876 = vmatpush.msrb.mxu2 %v4797_v48 }
 0x663   : > { %4852 = vmatpush.xpose.msra.mxu1 %v4798_v3  ;;  %4896 = vmatpush.msra.mxu3 %v4798_v3 }
 0x664   : > { %4986 = vmatpush.msra.mxu2 %v4803_v41 }
 0x665   : > { %5006 = vmatpush.msrb.mxu3 %v4804_v9 }
 0x666   : > { %4931 = vmatpush.xpose.msra.mxu0 %v4803_v41  ;;  %4987 = vmatpush.msra.mxu2 %v4801_v31 }
 0x667   : > { %4951 = vmatpush.xpose.msrb.mxu1 %v4804_v9  ;;  %5007 = vmatpush.msrb.mxu3 %v4802_v7 }
 0x668   : > { %4988 = vmatpush.msra.mxu2 %v4799_v33 }
 0x669   : > { %5008 = vmatpush.msrb.mxu3 %v4800_v8 }
 0x66a   : > { %4932 = vmatpush.xpose.msra.mxu0 %v4801_v31  ;;  %4989 = vmatpush.msra.mxu2 %v4797_v48 }
 0x66b   : > { %4952 = vmatpush.xpose.msrb.mxu1 %v4802_v7  ;;  %5009 = vmatpush.msrb.mxu3 %v4798_v3 }
 0x66e   : > { %4933 = vmatpush.xpose.msra.mxu0 %v4799_v33 }
 0x66f   : > { %4953 = vmatpush.xpose.msrb.mxu1 %v4800_v8 }
 0x672   : > { %4934 = vmatpush.xpose.msra.mxu0 %v4797_v48 }
 0x673   : > { %4954 = vmatpush.xpose.msrb.mxu1 %v4798_v3 }
 0x692   : > { %v4598_v49 = vpop.f32.mrf.mxu0  ;;  %v4611_v46 = vpop.f32.mrf.mxu1 }
 0x693   : > { %v4599_v47 = vadd.f32 %v4598_v49, %v3945_v32 }
 0x695   : > { %v4612_v2 = vadd.f32 %v4611_v46, %v4599_v47 }
 0x69a   : > { %v4600_v27 = vpop.f32.mrf.mxu0  ;;  %v4613_v29 = vpop.f32.mrf.mxu1 }
 0x69e   : > { %v4624_v22 = vpop.f32.mrf.mxu2  ;;  %v4637_v23 = vpop.f32.mrf.mxu3 }
 0x69f   : > { %v4625_v44 = vadd.f32 %v4624_v22, %v4612_v2 }
 0x6a1   : > { %v4638_v52 = vadd.f32 %v4637_v23, %v4625_v44 }
 0x6a2   : > { %v4650_v42 = vpop.f32.mrf.mxu0  ;;  %v4663_v51 = vpop.f32.mrf.mxu1 }
 0x6a3   : > { %v4651_v55 = vadd.f32 %v4650_v42, %v4638_v52 }
 0x6a5   : > { %v4664_v58 = vadd.f32 %v4663_v51, %v4651_v55 }
 0x6a6   : > { %v4626_v53 = vpop.f32.mrf.mxu2  ;;  %v4639_v54 = vpop.f32.mrf.mxu3 }
 0x6aa   : > { %v4652_v56 = vpop.f32.mrf.mxu0  ;;  %v4665_v45 = vpop.f32.mrf.mxu1 }
 0x6ae   : > { %v4676_v60 = vpop.f32.mrf.mxu2  ;;  %v4689_v61 = vpop.f32.mrf.mxu3 }
 0x6af   : > { %v4677_v62 = vadd.f32 %v4676_v60, %v4664_v58 }
 0x6b1   : > { %v14038_v0 = vadd.f32 %v4689_v61, %v4677_v62 }
 0x6b2   : > { %v4702_v1 = vpop.f32.mrf.mxu0  ;;  %v4715_v5 = vpop.f32.mrf.mxu1 }
 0x6b3   : > { %v4805_v10 = vrot.slane %v14038_v0, 4  ;;  %v4703_v18 = vadd.f32 %v4702_v1, %v3946_v15 }
 0x6b5   : > { %v4806_v12 = vadd.f32 %v4805_v10, %v14038_v0  ;;  %v4716_v26 = vadd.f32 %v4715_v5, %v4703_v18 }
 0x6b6   : > { %v4678_v13 = vpop.f32.mrf.mxu2  ;;  %v4691_v24 = vpop.f32.mrf.mxu3 }
 0x6b7   : > { %v4807_v14 = vrot.slane %v4806_v12, 2 }
 0x6b9   : > { %v4808_v35 = vadd.f32 %v4807_v14, %v4806_v12 }
 0x6ba   : > { %v4704_v50 = vpop.f32.mrf.mxu0  ;;  %v4717_v16 = vpop.f32.mrf.mxu1 }
 0x6bb   : > { %v4809_v19 = vrot.slane %v4808_v35, 1 }
 0x6bd   : > { %v4810_v11 = vadd.f32 %v4809_v19, %v4808_v35 }
 0x6be   : > { %v4728_v17 = vpop.f32.mrf.mxu2  ;;  %v4741_v20 = vpop.f32.mrf.mxu3 }
 0x6bf   : > { %4833 = vmatmul.f32.vlgmr.msrb.gmra.mxu0 %v4810_v11  ;;  %v4729_v6 = vadd.f32 %v4728_v17, %v4716_v26 }
 0x6c1   : > { %v4742_v63 = vadd.f32 %v4741_v20, %v4729_v6 }
 0x6c6   : > { %v4730_v21 = vpop.f32.mrf.mxu2  ;;  %v4743_v25 = vpop.f32.mrf.mxu3 }
 0x6d2   : > { %v4754_v28 = vpop.f32.mrf.mxu0  ;;  %v4767_v57 = vpop.f32.mrf.mxu1 }
 0x6d3   : > { %v4755_v39 = vadd.f32 %v4754_v28, %v4742_v63 }
 0x6d5   : > { %v4768_v59 = vadd.f32 %v4767_v57, %v4755_v39  ;;  %v9815_v39 = vld [vmem:[%s15379_s13 + $0x170] sm:$0xf] }
 0x6da   : > { %v4756_v43 = vpop.f32.mrf.mxu0  ;;  %v4769_v30 = vpop.f32.mrf.mxu1 }
 0x6db   : > { %v10989_v43 = vld [vmem:[%s15379_s13 + $0x174] sm:$0xf0]  ;;  %v9879_v30 = vld [vmem:[%s15379_s13 + $0x1f0] sm:$0xf] }
 0x6de   : > { %v4780_v34 = vpop.f32.mrf.mxu2  ;;  %v4793_v36 = vpop.f32.mrf.mxu3 }
 0x6df   : > { %v4781_v37 = vadd.f32 %v4780_v34, %v4768_v59 }
 0x6e1   : > { %v4794_v38 = vadd.f32 %v4793_v36, %v4781_v37  ;;  %v11005_v36 = vld [vmem:[%s15379_s13 + $0x1f4] sm:$0xf0]  ;;  %v9687_v37 = vld [vmem:[%s15379_s13 + $0x70] sm:$0xf] }
 0x6e3   : > { %v4811_v40 = vrot.slane %v4794_v38, 4 }
 0x6e5   : > { %v4812_v41 = vadd.f32 %v4811_v40, %v4794_v38  ;;  %v9751_v40 = vld [vmem:[%s15379_s13 + $0xf0] sm:$0xf] }
 0x6e6   : > { %v4782_v49 = vpop.f32.mrf.mxu2  ;;  %v4795_v46 = vpop.f32.mrf.mxu3 }
 0x6e7   : > { %v4813_v4 = vrot.slane %v4812_v41, 2  ;;  %v5026_v49 = vld [vmem:[%s15456_s3] sm:$0x3]  ;;  %v9620_v46 = vld [vmem:[%s15457_s5 + $0x2] sm:$0x3] }
 0x6e9   : > { %v4814_v31 = vadd.f32 %v4813_v4, %v4812_v41  ;;  %v10973_v41 = vld [vmem:[%s15379_s13 + $0xf4] sm:$0xf0]  ;;  %v9816_v4 = vor.u32 %v10989_v43, %v9815_v39  ;;  %v9775_v39 = vld [vmem:[%s15379_s13 + $0x120] sm:$0xf]  ;;  %v10979_v43 = vld [vmem:[%s15379_s13 + $0x124] sm:$0xf0] }
 0x6eb   : > { %v4815_v32 = vrot.slane %v4814_v31, 1 }
 0x6ed   : > { %v4816_v33 = vadd.f32 %v4815_v32, %v4814_v31  ;;  %v9880_v31 = vor.u32 %v11005_v36, %v9879_v30  ;;  %v9807_v32 = vld [vmem:[%s15379_s13 + $0x160] sm:$0xf] }
 0x6ee   : > { %v9839_v30 = vld [vmem:[%s15379_s13 + $0x1a0] sm:$0xf] }
 0x6ef   : > { %4853 = vmatmul.f32.vlgmr.msra.gmra.mxu1 %v4816_v33  ;;  %v10987_v33 = vld [vmem:[%s15379_s13 + $0x164] sm:$0xf0] }
 0x73c   : > { %v4834_v27 = vpop.f32.mrf.mxu0 }
 0x76c   : > { %v4854_v29 = vpop.f32.mrf.mxu1 }
 0x76d   : > { %v4855_v47 = vadd.f32 %v4854_v29, %v4834_v27  ;;  %v9871_v27 = vld [vmem:[%s15379_s13 + $0x1e0] sm:$0xf]  ;;  %v11003_v29 = vld [vmem:[%s15379_s13 + $0x1e4] sm:$0xf0] }
 0x76f   : > { %v4857_v48 = vmul.f32 0.015625, %v4855_v47 }
 0x771   : > { %9614 = vmatmul.msk.f32.vlgmr.msrb.gmra.mxu2 %vm867_vm0, %v4857_v48  ;;  %9615 = vmatmul.msk.f32.vlgmr.msra.gmra.mxu3 %vm867_vm0, %v4857_v48  ;;  %v9752_v48 = vor.u32 %v10973_v41, %v9751_v40  ;;  %v9711_v40 = vld [vmem:[%s15379_s13 + $0xa0] sm:$0xf]  ;;  %v10963_v41 = vld [vmem:[%s15379_s13 + $0xa4] sm:$0xf0] }
 0x7f4   : > { %v4878_v22 = vpop.f32.mrf.mxu2  ;;  %v4898_v23 = vpop.f32.mrf.mxu3 }
 0x7f5   : > { %v4901_v2 = vperm.slane %v4878_v22, 0  ;;  %v4902_v44 = vperm.slane %v4898_v23, 0  ;;  %v9679_v22 = vld [vmem:[%s15379_s13 + $0x60] sm:$0xf]  ;;  %v10955_v23 = vld [vmem:[%s15379_s13 + $0x64] sm:$0xf0] }
 0x7f7   : > { %v4903_v42 = vsub.f32 %v14038_v0, %v4901_v2  ;;  %v4904_v51 = vsub.f32 %v4794_v38, %v4902_v44  ;;  %v10957_v38 = vld [vmem:[%s15379_s13 + $0x74] sm:$0xf0]  ;;  %v9743_v2 = vld [vmem:[%s15379_s13 + $0xe0] sm:$0xf]  ;;  %v10971_v44 = vld [vmem:[%s15379_s13 + $0xe4] sm:$0xf0] }
 0x7f8   : > { %v9688_v47 = vor.u32 %v10957_v38, %v9687_v37  ;;  %v9647_v37 = vld [vmem:[%s15379_s13 + $0x20] sm:$0xf]  ;;  %v10947_v38 = vld [vmem:[%s15379_s13 + $0x24] sm:$0xf0] }
 0x7f9   : > { %v4905_v52 = vmul.f32 %v4903_v42, %v4903_v42  ;;  %v4906_v53 = vmul.f32 %v4904_v51, %v4904_v51 }
 0x7fb   : > { %v4907_v54 = vrot.slane %v4905_v52, 4  ;;  %v4913_v55 = vrot.slane %v4906_v53, 4 }
 0x7fd   : > { %v4908_v56 = vadd.f32 %v4907_v54, %v4905_v52  ;;  %v4914_v45 = vadd.f32 %v4913_v55, %v4906_v53  ;;  %v9799_v52 = vld [vmem:[%s15379_s13 + $0x150] sm:$0xf]  ;;  %v10985_v53 = vld [vmem:[%s15379_s13 + $0x154] sm:$0xf0] }
 0x7fe   : > { %v9863_v54 = vld [vmem:[%s15379_s13 + $0x1d0] sm:$0xf]  ;;  %v11001_v55 = vld [vmem:[%s15379_s13 + $0x1d4] sm:$0xf0] }
 0x7ff   : > { %v4909_v58 = vrot.slane %v4908_v56, 2  ;;  %v4915_v60 = vrot.slane %v4914_v45, 2 }
 0x801   : > { %v4910_v61 = vadd.f32 %v4909_v58, %v4908_v56  ;;  %v4916_v62 = vadd.f32 %v4915_v60, %v4914_v45  ;;  %v9680_v56 = vor.u32 %v10955_v23, %v9679_v22  ;;  %v9744_v45 = vor.u32 %v10971_v44, %v9743_v2  ;;  %v9671_v58 = vld [vmem:[%s15379_s13 + $0x50] sm:$0xf]  ;;  %v10953_v60 = vld [vmem:[%s15379_s13 + $0x54] sm:$0xf0]  ;;  %v9759_v2 = vld [vmem:[%s15379_s13 + $0x100] sm:$0xf] }
 0x802   : > { %v9703_v22 = vld [vmem:[%s15379_s13 + $0x90] sm:$0xf]  ;;  %v10961_v23 = vld [vmem:[%s15379_s13 + $0x94] sm:$0xf0] }
 0x803   : > { %v4911_v1 = vrot.slane %v4910_v61, 1  ;;  %v4917_v5 = vrot.slane %v4916_v62, 1 }
 0x805   : > { %v4912_v10 = vadd.f32 %v4911_v1, %v4910_v61  ;;  %v4918_v12 = vadd.f32 %v4917_v5, %v4916_v62  ;;  %v9735_v61 = vld [vmem:[%s15379_s13 + $0xd0] sm:$0xf]  ;;  %v10969_v62 = vld [vmem:[%s15379_s13 + $0xd4] sm:$0xf0]  ;;  %v9800_v1 = vor.u32 %v10985_v53, %v9799_v52  ;;  %v9864_v5 = vor.u32 %v11001_v55, %v9863_v54  ;;  %v9823_v52 = vld [vmem:[%s15379_s13 + $0x180] sm:$0xf] }
 0x806   : > { %v10991_v53 = vld [vmem:[%s15379_s13 + $0x184] sm:$0xf0]  ;;  %v10071_v54 = vld [vmem:[%s15379_s13 + $0x370] sm:$0xf]  ;;  %v11053_v55 = vld [vmem:[%s15379_s13 + $0x374] sm:$0xf0] }
 0x807   : > { %4935 = vmatmul.f32.vlgmr.msra.gmra.mxu0 %v4912_v10  ;;  %4955 = vmatmul.f32.vlgmr.msrb.gmra.mxu1 %v4918_v12  ;;  %v9791_v10 = vld [vmem:[%s15379_s13 + $0x140] sm:$0xf]  ;;  %v10983_v12 = vld [vmem:[%s15379_s13 + $0x144] sm:$0xf0] }
 0x884   : > { %v4936_v13 = vpop.f32.mrf.mxu0  ;;  %v4956_v24 = vpop.f32.mrf.mxu1 }
 0x885   : > { %v4957_v0 = vadd.f32 %v4956_v24, %v4936_v13  ;;  %v9855_v13 = vld [vmem:[%s15379_s13 + $0x1c0] sm:$0xf]  ;;  %v10999_v24 = vld [vmem:[%s15379_s13 + $0x1c4] sm:$0xf0] }
 0x887   : > { %v4959_v14 = vmul.f32 0.015625, %v4957_v0  ;;  %v9672_v0 = vor.u32 %v10953_v60, %v9671_v58  ;;  %v9704_v58 = vor.u32 %v10961_v23, %v9703_v22  ;;  %v11069_v60 = vld [vmem:[%s15379_s13 + $0x3f4] sm:$0xf0]  ;;  %v10039_v22 = vld [vmem:[%s15379_s13 + $0x330] sm:$0xf] }
 0x888   : > { %v11045_v23 = vld [vmem:[%s15379_s13 + $0x334] sm:$0xf0] }
 0x889   : > { %v4960_v35 = vadd.f32 1e-05, %v4959_v14  ;;  %v9736_v14 = vor.u32 %v10969_v62, %v9735_v61  ;;  %v9631_v61 = vld [vmem:[%s15379_s13] sm:$0xf]  ;;  %v10943_v62 = vld [vmem:[%s15379_s13 + $0x4] sm:$0xf0] }
 0x88b   : > { %11224 = vrsqrt.f32 %v4960_v35  ;;  %vm4967_vm3 = vweird.f32 %v4960_v35 }
 0x891   : > { %v11225_v50 = vpop.eup %11224 }
 0x892   : > { %v4962_v16 = vmul.f32 %v11225_v50, %v4960_v35  ;;  %vm4968_vm2 = vweird.f32 %v11225_v50  ;;  %v9663_v35 = vld [vmem:[%s15379_s13 + $0x40] sm:$0xf] }
 0x893   : > { %vm4969_vm4 = vmor %vm4967_vm3, %vm4968_vm2 }
 0x894   : > { %v4963_v19 = vmul.f32 %v11225_v50, %v4962_v16  ;;  %v9727_v16 = vld [vmem:[%s15379_s13 + $0xc0] sm:$0xf] }
 0x896   : > { %v4964_v9 = vmul.f32 0.5, %v4963_v19  ;;  %v10967_v19 = vld [vmem:[%s15379_s13 + $0xc4] sm:$0xf0] }
 0x898   : > { %v4965_v11 = vsub.f32 1.5, %v4964_v9  ;;  %v9792_v9 = vor.u32 %v10983_v12, %v9791_v10  ;;  %v9943_v10 = vld [vmem:[%s15379_s13 + $0x270] sm:$0xf] }
 0x89a   : > { %v4966_v17 = vmul.f32 %v11225_v50, %v4965_v11  ;;  %v9856_v11 = vor.u32 %v10999_v24, %v9855_v13  ;;  %v9824_v13 = vor.u32 %v10991_v53, %v9823_v52  ;;  %v11021_v24 = vld [vmem:[%s15379_s13 + $0x274] sm:$0xf0]  ;;  %v10040_v52 = vor.u32 %v11045_v23, %v10039_v22 }
 0x89c   : > { %v4970_v20 = vsel %vm4969_vm4, %v11225_v50, %v4966_v17  ;;  %v10951_v50 = vld [vmem:[%s15379_s13 + $0x44] sm:$0xf0]  ;;  %v9783_v17 = vld [vmem:[%s15379_s13 + $0x130] sm:$0xf] }
 0x89d   : > { %9616 = vmatmul.msk.f32.vlgmr.msra.gmra.mxu2 %vm867_vm0, %v4970_v20  ;;  %9617 = vmatmul.msk.f32.vlgmr.msrb.gmra.mxu3 %vm867_vm0, %v4970_v20  ;;  %v10981_v20 = vld [vmem:[%s15379_s13 + $0x134] sm:$0xf0] }
 0x920   : > { %v4991_v7 = vpop.f32.mrf.mxu2  ;;  %v5011_v8 = vpop.f32.mrf.mxu3 }
 0x921   : > { %v5014_v15 = vperm.slane %v4991_v7, 0  ;;  %v5015_v21 = vperm.slane %v5011_v8, 0  ;;  %v9847_v7 = vld [vmem:[%s15379_s13 + $0x1b0] sm:$0xf]  ;;  %v10997_v8 = vld [vmem:[%s15379_s13 + $0x1b4] sm:$0xf0] }
 0x923   : > { %v5016_v25 = vmul.f32 %v5014_v15, %v4903_v42  ;;  %v5017_v3 = vmul.f32 %v5015_v21, %v4904_v51  ;;  %v9808_v42 = vor.u32 %v10987_v33, %v9807_v32  ;;  %v9872_v51 = vor.u32 %v11003_v29, %v9871_v27  ;;  %v9831_v32 = vld [vmem:[%s15379_s13 + $0x190] sm:$0xf]  ;;  %v10993_v33 = vld [vmem:[%s15379_s13 + $0x194] sm:$0xf0] }
 0x924   : > { %v9664_v15 = vor.u32 %v10951_v50, %v9663_v35  ;;  %v9728_v21 = vor.u32 %v10967_v19, %v9727_v16  ;;  %v9648_v27 = vor.u32 %v10947_v38, %v9647_v37  ;;  %v9712_v29 = vor.u32 %v10963_v41, %v9711_v40  ;;  %v10063_v16 = vld [vmem:[%s15379_s13 + $0x360] sm:$0xf]  ;;  %v11051_v19 = vld [vmem:[%s15379_s13 + $0x364] sm:$0xf0] }
 0x925   : > { %v5020_v18 = vmul.f32 0.2, %v5016_v25  ;;  %v5021_v26 = vmul.f32 0.2, %v5017_v3  ;;  %vm5018_vm5 = vcmp.ge.f32.partialorder %v5016_v25, 0.0  ;;  %vm5019_vm6 = vcmp.ge.f32.partialorder %v5017_v3, 0.0 }
 0x926   : > { %v10072_v35 = vor.u32 %v11053_v55, %v10071_v54  ;;  %v10047_v40 = vld [vmem:[%s15379_s13 + $0x340] sm:$0xf]  ;;  %v11047_v41 = vld [vmem:[%s15379_s13 + $0x344] sm:$0xf0] }
 0x927   : > { %v5022_v28 = vsel %vm5018_vm5, %v5016_v25, %v5020_v18  ;;  %v5023_v57 = vsel %vm5019_vm6, %v5017_v3, %v5021_v26  ;;  %v9655_v25 = vld [vmem:[%s15379_s13 + $0x30] sm:$0xf]  ;;  %v10949_v3 = vld [vmem:[%s15379_s13 + $0x34] sm:$0xf0]  ;;  %v10031_v54 = vld [vmem:[%s15379_s13 + $0x320] sm:$0xf] }
 0x928   : > { %v5024_v6 = vpack.c.bf16 %v5022_v28, %v5022_v28  ;;  %v5025_v63 = vpack.c.bf16 %v5023_v57, %v5023_v57  ;;  %v9719_v18 = vld [vmem:[%s15379_s13 + $0xb0] sm:$0xf]  ;;  %v10965_v26 = vld [vmem:[%s15379_s13 + $0xb4] sm:$0xf0]  ;;  %v9623_v28 = vld [vmem:[%s15457_s5 + $0x4] sm:$0x3] }
 0x929   : > { %v9626_v57 = vld [vmem:[%s15457_s5 + $0x6] sm:$0x3]  ;;  %v9720_v36 = vor.u32 %v10965_v26, %v9719_v18  ;;  %v10064_v18 = vor.u32 %v11051_v19, %v10063_v16  ;;  %v11043_v55 = vld [vmem:[%s15379_s13 + $0x324] sm:$0xf0]  ;;  %v9903_v16 = vld [vmem:[%s15379_s13 + $0x220] sm:$0xf] }
 0x92a   : > { %v5033_v59 = vsel %vm5031_vm7, %v5024_v6, 0  ;;  %v5036_v34 = vsel %vm5031_vm7, %v5025_v63, 0  ;;  %v9784_v6 = vor.u32 %v10981_v20, %v9783_v17  ;;  %v9848_v63 = vor.u32 %v10997_v8, %v9847_v7  ;;  %v11011_v19 = vld [vmem:[%s15379_s13 + $0x224] sm:$0xf0] }
 0x92b   : > { %5045 = vmatpush.bf16.msrb.mxu2 %v5033_v59  ;;  %5058 = vmatpush.bf16.msra.mxu3 %v5036_v34  ;;  %v9632_v17 = vor.u32 %v10943_v62, %v9631_v61  ;;  %v9944_v7 = vor.u32 %v11021_v24, %v9943_v10  ;;  %v9911_v61 = vld [vmem:[%s15379_s13 + $0x230] sm:$0xf]  ;;  %v11013_v62 = vld [vmem:[%s15379_s13 + $0x234] sm:$0xf0] }
 0x92c   : > { %5077 = vmatpush.bf16.msrb.mxu0 %v5033_v59  ;;  %5090 = vmatpush.bf16.msra.mxu1 %v5036_v34  ;;  %v11029_v10 = vld [vmem:[%s15379_s13 + $0x2b4] sm:$0xf0] }
 0x92d   : > { %v11041_v24 = vld [vmem:[%s15379_s13 + $0x314] sm:$0xf0] }
 0x92e   : > { %9618 = vmatmul.msk.bf16.vlgmr.msrb.gmra.mxu2 %vm5027_vm8, %v5026_v49  ;;  %9619 = vmatmul.msk.bf16.vlgmr.msra.gmra.mxu3 %vm5027_vm8, %v5026_v49  ;;  %v9776_v49 = vor.u32 %v10979_v43, %v9775_v39 }
 0x92f   : > { %5109 = vmatpush.bf16.msra.mxu2 %v5033_v59  ;;  %5122 = vmatpush.bf16.msrb.mxu3 %v5036_v34 }
 0x930   : > { %5141 = vmatpush.bf16.msra.mxu0 %v5033_v59  ;;  %5154 = vmatpush.bf16.msrb.mxu1 %v5036_v34  ;;  %v10995_v59 = vld [vmem:[%s15379_s13 + $0x1a4] sm:$0xf0]  ;;  %v9656_v34 = vor.u32 %v10949_v3, %v9655_v25  ;;  %v9999_v25 = vld [vmem:[%s15379_s13 + $0x2e0] sm:$0xf] }
 0x931   : > { %9621 = vmatmul.msk.bf16.vlgmr.msrb.gmra.mxu0 %vm5027_vm8, %v9620_v46  ;;  %9622 = vmatmul.msk.bf16.vlgmr.msra.gmra.mxu1 %vm5027_vm8, %v9620_v46  ;;  %v9840_v46 = vor.u32 %v10995_v59, %v9839_v30  ;;  %v11035_v3 = vld [vmem:[%s15379_s13 + $0x2e4] sm:$0xf0]  ;;  %v9927_v30 = vld [vmem:[%s15379_s13 + $0x250] sm:$0xf]  ;;  %v11017_v59 = vld [vmem:[%s15379_s13 + $0x254] sm:$0xf0] }
 0x932   : > { %v10000_v43 = vor.u32 %v11035_v3, %v9999_v25  ;;  %v11055_v25 = vld [vmem:[%s15379_s13 + $0x384] sm:$0xf0] }
 0x933   : > { %5963 = vmatpush.bf16.msrb.mxu2 %v9688_v47  ;;  %5976 = vmatpush.bf16.msra.mxu3 %v9752_v48  ;;  %v9639_v47 = vld [vmem:[%s15379_s13 + $0x10] sm:$0xf]  ;;  %v10945_v48 = vld [vmem:[%s15379_s13 + $0x14] sm:$0xf0] }
 0x934   : > { %5989 = vmatpush.bf16.msrb.mxu0 %v9816_v4  ;;  %6002 = vmatpush.bf16.msra.mxu1 %v9880_v31  ;;  %v9767_v4 = vld [vmem:[%s15379_s13 + $0x110] sm:$0xf]  ;;  %v10977_v31 = vld [vmem:[%s15379_s13 + $0x114] sm:$0xf0] }
 0x935   : > { %v9768_v44 = vor.u32 %v10977_v31, %v9767_v4  ;;  %v9928_v4 = vor.u32 %v11017_v59, %v9927_v30  ;;  %v9951_v59 = vld [vmem:[%s15379_s13 + $0x280] sm:$0xf] }
 0x937   : > { %5964 = vmatpush.bf16.msrb.mxu2 %v9680_v56  ;;  %5977 = vmatpush.bf16.msra.mxu3 %v9744_v45  ;;  %v10135_v56 = vld [vmem:[%s15379_s13 + $0x3f0] sm:$0xf]  ;;  %v9640_v45 = vor.u32 %v10945_v48, %v9639_v47  ;;  %v10048_v47 = vor.u32 %v11047_v41, %v10047_v40  ;;  %v10988_v40 = vld [vmem:[%s15379_s13 + $0x174] sm:$0xf] }
 0x938   : > { %5990 = vmatpush.bf16.msrb.mxu0 %v9808_v42  ;;  %6003 = vmatpush.bf16.msra.mxu1 %v9872_v51  ;;  %v9832_v42 = vor.u32 %v10993_v33, %v9831_v32  ;;  %v10975_v51 = vld [vmem:[%s15379_s13 + $0x104] sm:$0xf0]  ;;  %v10136_v50 = vor.u32 %v11069_v60, %v10135_v56  ;;  %v9919_v32 = vld [vmem:[%s15379_s13 + $0x240] sm:$0xf] }
 0x939   : > { %v9760_v12 = vor.u32 %v10975_v51, %v9759_v2  ;;  %v11015_v33 = vld [vmem:[%s15379_s13 + $0x244] sm:$0xf0]  ;;  %v10103_v2 = vld [vmem:[%s15379_s13 + $0x3b0] sm:$0xf]  ;;  %v10095_v56 = vld [vmem:[%s15379_s13 + $0x3a0] sm:$0xf] }
 0x93b   : > { %5965 = vmatpush.bf16.msrb.mxu2 %v9672_v0  ;;  %5978 = vmatpush.bf16.msra.mxu3 %v9736_v14  ;;  %v10007_v0 = vld [vmem:[%s15379_s13 + $0x2f0] sm:$0xf]  ;;  %v11037_v14 = vld [vmem:[%s15379_s13 + $0x2f4] sm:$0xf0] }
 0x93c   : > { %5991 = vmatpush.bf16.msrb.mxu0 %v9800_v1  ;;  %6004 = vmatpush.bf16.msra.mxu1 %v9864_v5  ;;  %v9695_v1 = vld [vmem:[%s15379_s13 + $0x80] sm:$0xf]  ;;  %v10959_v5 = vld [vmem:[%s15379_s13 + $0x84] sm:$0xf0]  ;;  %v10008_v8 = vor.u32 %v11037_v14, %v10007_v0  ;;  %v10087_v0 = vld [vmem:[%s15379_s13 + $0x390] sm:$0xf] }
 0x93d   : > { %v9696_v20 = vor.u32 %v10959_v5, %v9695_v1  ;;  %v9975_v1 = vld [vmem:[%s15379_s13 + $0x2b0] sm:$0xf]  ;;  %v9912_v5 = vor.u32 %v11013_v62, %v9911_v61 }
 0x93e   : > { %9624 = vmatmul.msk.bf16.vlgmr.msra.gmra.mxu2 %vm5027_vm8, %v9623_v28  ;;  %9625 = vmatmul.msk.bf16.vlgmr.msrb.gmra.mxu3 %vm5027_vm8, %v9623_v28  ;;  %v10055_v28 = vld [vmem:[%s15379_s13 + $0x350] sm:$0xf] }
 0x93f   : > { %5966 = vmatpush.bf16.msrb.mxu2 %v9664_v15  ;;  %5979 = vmatpush.bf16.msra.mxu3 %v9728_v21  ;;  %v9935_v15 = vld [vmem:[%s15379_s13 + $0x260] sm:$0xf]  ;;  %v11019_v21 = vld [vmem:[%s15379_s13 + $0x264] sm:$0xf0] }
 0x940   : > { %5992 = vmatpush.bf16.msrb.mxu0 %v9792_v9  ;;  %6005 = vmatpush.bf16.msra.mxu1 %v9856_v11  ;;  %v10127_v9 = vld [vmem:[%s15379_s13 + $0x3e0] sm:$0xf]  ;;  %v11067_v11 = vld [vmem:[%s15379_s13 + $0x3e4] sm:$0xf0]  ;;  %v9936_v39 = vor.u32 %v11019_v21, %v9935_v15 }
 0x941   : > { %9627 = vmatmul.msk.bf16.vlgmr.msra.gmra.mxu0 %vm5027_vm8, %v9626_v57  ;;  %9628 = vmatmul.msk.bf16.vlgmr.msrb.gmra.mxu1 %vm5027_vm8, %v9626_v57  ;;  %v10128_v26 = vor.u32 %v11067_v11, %v10127_v9  ;;  %v11049_v57 = vld [vmem:[%s15379_s13 + $0x354] sm:$0xf0]  ;;  %v9967_v9 = vld [vmem:[%s15379_s13 + $0x2a0] sm:$0xf]  ;;  %v9904_v11 = vor.u32 %v11011_v19, %v9903_v16  ;;  %v10970_v16 = vld [vmem:[%s15379_s13 + $0xe4] sm:$0xf] }
 0x942   : > { %v10056_v37 = vor.u32 %v11049_v57, %v10055_v28  ;;  %v10079_v15 = vld [vmem:[%s15379_s13 + $0x380] sm:$0xf]  ;;  %v9959_v28 = vld [vmem:[%s15379_s13 + $0x290] sm:$0xf]  ;;  %v9745_v19 = vld [vmem:[%s15379_s13 + $0xe8] sm:$0xf0] }
 0x943   : > { %5967 = vmatpush.bf16.msrb.mxu2 %v9656_v34  ;;  %5980 = vmatpush.bf16.msra.mxu3 %v9720_v36  ;;  %v9991_v34 = vld [vmem:[%s15379_s13 + $0x2d0] sm:$0xf]  ;;  %v11033_v36 = vld [vmem:[%s15379_s13 + $0x2d4] sm:$0xf0]  ;;  %v10080_v3 = vor.u32 %v11055_v25, %v10079_v15  ;;  %v10998_v15 = vld [vmem:[%s15379_s13 + $0x1c4] sm:$0xf] }
 0x944   : > { %5993 = vmatpush.bf16.msrb.mxu0 %v9784_v6  ;;  %6006 = vmatpush.bf16.msra.mxu1 %v9848_v63  ;;  %v10119_v6 = vld [vmem:[%s15379_s13 + $0x3d0] sm:$0xf]  ;;  %v11065_v63 = vld [vmem:[%s15379_s13 + $0x3d4] sm:$0xf0]  ;;  %v9992_v31 = vor.u32 %v11033_v36, %v9991_v34  ;;  %v11023_v34 = vld [vmem:[%s15379_s13 + $0x284] sm:$0xf0] }
 0x945   : > { %v10120_v38 = vor.u32 %v11065_v63, %v10119_v6  ;;  %v11025_v6 = vld [vmem:[%s15379_s13 + $0x294] sm:$0xf0]  ;;  %v9952_v36 = vor.u32 %v11023_v34, %v9951_v59  ;;  %v9785_v34 = vld [vmem:[%s15379_s13 + $0x138] sm:$0xf0] }
 0x946   : > { %v9960_v63 = vor.u32 %v11025_v6, %v9959_v28  ;;  %v10968_v28 = vld [vmem:[%s15379_s13 + $0xd4] sm:$0xf] }
 0x947   : > { %5968 = vmatpush.bf16.msrb.mxu2 %v9648_v27  ;;  %5981 = vmatpush.bf16.msra.mxu3 %v9712_v29  ;;  %v9983_v27 = vld [vmem:[%s15379_s13 + $0x2c0] sm:$0xf]  ;;  %v11031_v29 = vld [vmem:[%s15379_s13 + $0x2c4] sm:$0xf0] }
 0x948   : > { %5994 = vmatpush.bf16.msrb.mxu0 %v9776_v49  ;;  %6007 = vmatpush.bf16.msra.mxu1 %v9840_v46  ;;  %v10111_v49 = vld [vmem:[%s15379_s13 + $0x3c0] sm:$0xf]  ;;  %v11063_v46 = vld [vmem:[%s15379_s13 + $0x3c4] sm:$0xf0]  ;;  %v9984_v51 = vor.u32 %v11031_v29, %v9983_v27  ;;  %v10986_v29 = vld [vmem:[%s15379_s13 + $0x164] sm:$0xf] }
 0x949   : > { %v10112_v48 = vor.u32 %v11063_v46, %v10111_v49  ;;  %v9817_v49 = vld [vmem:[%s15379_s13 + $0x178] sm:$0xf0]  ;;  %v11004_v46 = vld [vmem:[%s15379_s13 + $0x1f4] sm:$0xf] }
 0x94b   : > { %5969 = vmatpush.bf16.msrb.mxu2 %v9640_v45  ;;  %5982 = vmatpush.bf16.msra.mxu3 %v9704_v58  ;;  %v11059_v45 = vld [vmem:[%s15379_s13 + $0x3a4] sm:$0xf0]  ;;  %v10032_v58 = vor.u32 %v11043_v55, %v10031_v54  ;;  %v10972_v54 = vld [vmem:[%s15379_s13 + $0xf4] sm:$0xf]  ;;  %v9753_v55 = vld [vmem:[%s15379_s13 + $0xf8] sm:$0xf0] }
 0x94c   : > { %5995 = vmatpush.bf16.msrb.mxu0 %v9768_v44  ;;  %6008 = vmatpush.bf16.msra.mxu1 %v9832_v42  ;;  %v11061_v44 = vld [vmem:[%s15379_s13 + $0x3b4] sm:$0xf0]  ;;  %v9920_v42 = vor.u32 %v11015_v33, %v9919_v32  ;;  %v10096_v60 = vor.u32 %v11059_v45, %v10095_v56  ;;  %v9820_v33 = vor.u32 %v10988_v40, %v9817_v49 }
 0x94d   : > { %v10104_v53 = vor.u32 %v11061_v44, %v10103_v2  ;;  %v9809_v2 = vld [vmem:[%s15379_s13 + $0x168] sm:$0xf0]  ;;  %v11002_v44 = vld [vmem:[%s15379_s13 + $0x1e4] sm:$0xf] }
 0x94e   : > { %v9812_v61 = vor.u32 %v10986_v29, %v9809_v2  ;;  %v10978_v29 = vld [vmem:[%s15379_s13 + $0x124] sm:$0xf] }
 0x94f   : > { %5970 = vmatpush.bf16.msrb.mxu2 %v9632_v17  ;;  %5983 = vmatpush.bf16.msra.mxu3 %v9696_v20  ;;  %v11027_v17 = vld [vmem:[%s15379_s13 + $0x2a4] sm:$0xf0] }
 0x950   : > { %5996 = vmatpush.bf16.msrb.mxu0 %v9760_v12  ;;  %6009 = vmatpush.bf16.msra.mxu1 %v9824_v13  ;;  %v9976_v12 = vor.u32 %v11029_v10, %v9975_v1  ;;  %v10023_v13 = vld [vmem:[%s15379_s13 + $0x310] sm:$0xf]  ;;  %v9968_v20 = vor.u32 %v11027_v17, %v9967_v9  ;;  %v10984_v1 = vld [vmem:[%s15379_s13 + $0x154] sm:$0xf]  ;;  %v10982_v17 = vld [vmem:[%s15379_s13 + $0x144] sm:$0xf] }
 0x951   : > { %v10024_v14 = vor.u32 %v11041_v24, %v10023_v13  ;;  %v11000_v10 = vld [vmem:[%s15379_s13 + $0x1d4] sm:$0xf] }
 0x953   : > { %6015 = vmatpush.bf16.msra.mxu2 %v9944_v7  ;;  %6028 = vmatpush.bf16.msrb.mxu3 %v10008_v8  ;;  %v10015_v7 = vld [vmem:[%s15379_s13 + $0x300] sm:$0xf]  ;;  %v11039_v8 = vld [vmem:[%s15379_s13 + $0x304] sm:$0xf0] }
 0x954   : > { %6041 = vmatpush.bf16.msra.mxu0 %v10072_v35  ;;  %6054 = vmatpush.bf16.msrb.mxu1 %v10136_v50  ;;  %v11057_v35 = vld [vmem:[%s15379_s13 + $0x394] sm:$0xf0]  ;;  %v10016_v21 = vor.u32 %v11039_v8, %v10015_v7  ;;  %v9793_v8 = vld [vmem:[%s15379_s13 + $0x148] sm:$0xf0] }
 0x955   : > { %v10088_v50 = vor.u32 %v11057_v35, %v10087_v0  ;;  %v10954_v35 = vld [vmem:[%s15379_s13 + $0x64] sm:$0xf] }
 0x957   : > { %6016 = vmatpush.bf16.msra.mxu2 %v9936_v39  ;;  %6029 = vmatpush.bf16.msrb.mxu3 %v10000_v43  ;;  %v9887_v39 = vld [vmem:[%s15379_s13 + $0x200] sm:$0xf]  ;;  %v11007_v43 = vld [vmem:[%s15379_s13 + $0x204] sm:$0xf0] }
 0x958   : > { %6042 = vmatpush.bf16.msra.mxu0 %v10064_v18  ;;  %6055 = vmatpush.bf16.msrb.mxu1 %v10128_v26  ;;  %v9895_v18 = vld [vmem:[%s15379_s13 + $0x210] sm:$0xf]  ;;  %v11009_v26 = vld [vmem:[%s15379_s13 + $0x214] sm:$0xf0]  ;;  %v9888_v30 = vor.u32 %v11007_v43, %v9887_v39  ;;  %v9796_v39 = vor.u32 %v10982_v17, %v9793_v8  ;;  %v10946_v17 = vld [vmem:[%s15379_s13 + $0x24] sm:$0xf] }
 0x959   : > { %v9896_v57 = vor.u32 %v11009_v26, %v9895_v18  ;;  %v10952_v18 = vld [vmem:[%s15379_s13 + $0x54] sm:$0xf]  ;;  %v9673_v26 = vld [vmem:[%s15379_s13 + $0x58] sm:$0xf0]  ;;  %v9713_v8 = vld [vmem:[%s15379_s13 + $0xa8] sm:$0xf0] }
 0x95b   : > { %6017 = vmatpush.bf16.msra.mxu2 %v9928_v4  ;;  %6030 = vmatpush.bf16.msrb.mxu3 %v9992_v31  ;;  %v9881_v4 = vld [vmem:[%s15379_s13 + $0x1f8] sm:$0xf0] }
 0x95c   : > { %6043 = vmatpush.bf16.msra.mxu0 %v10056_v37  ;;  %6056 = vmatpush.bf16.msrb.mxu1 %v10120_v38  ;;  %v9884_v27 = vor.u32 %v11004_v46, %v9881_v4  ;;  %v9665_v4 = vld [vmem:[%s15379_s13 + $0x48] sm:$0xf0] }
 0x95f   : > { %6018 = vmatpush.bf16.msra.mxu2 %v9920_v42  ;;  %6031 = vmatpush.bf16.msrb.mxu3 %v9984_v51  ;;  %v9873_v42 = vld [vmem:[%s15379_s13 + $0x1e8] sm:$0xf0] }
 0x960   : > { %6044 = vmatpush.bf16.msra.mxu0 %v10048_v47  ;;  %6057 = vmatpush.bf16.msrb.mxu1 %v10112_v48  ;;  %v9876_v62 = vor.u32 %v11002_v44, %v9873_v42  ;;  %v9777_v42 = vld [vmem:[%s15379_s13 + $0x128] sm:$0xf0] }
 0x963   : > { %6019 = vmatpush.bf16.msra.mxu2 %v9912_v5  ;;  %6032 = vmatpush.bf16.msrb.mxu3 %v9976_v12  ;;  %v9801_v5 = vld [vmem:[%s15379_s13 + $0x158] sm:$0xf0] }
 0x964   : > { %6045 = vmatpush.bf16.msra.mxu0 %v10040_v52  ;;  %6058 = vmatpush.bf16.msrb.mxu1 %v10104_v53  ;;  %v10956_v52 = vld [vmem:[%s15379_s13 + $0x74] sm:$0xf]  ;;  %v9689_v53 = vld [vmem:[%s15379_s13 + $0x78] sm:$0xf0]  ;;  %v9804_v9 = vor.u32 %v10984_v1, %v9801_v5  ;;  %v9780_v1 = vor.u32 %v10978_v29, %v9777_v42  ;;  %v10129_v29 = vld [vmem:[%s15379_s13 + $0x3e8] sm:$0xf0] }
 0x965   : > { %v9865_v12 = vld [vmem:[%s15379_s13 + $0x1d8] sm:$0xf0]  ;;  %v9692_v0 = vor.u32 %v10956_v52, %v9689_v53  ;;  %v9841_v52 = vld [vmem:[%s15379_s13 + $0x1a8] sm:$0xf0]  ;;  %v10958_v42 = vld [vmem:[%s15379_s13 + $0x84] sm:$0xf] }
 0x967   : > { %6020 = vmatpush.bf16.msra.mxu2 %v9904_v11  ;;  %6033 = vmatpush.bf16.msrb.mxu3 %v9968_v20  ;;  %v9868_v11 = vor.u32 %v11000_v10, %v9865_v12  ;;  %v10976_v10 = vld [vmem:[%s15379_s13 + $0x114] sm:$0xf] }
 0x968   : > { %6046 = vmatpush.bf16.msra.mxu0 %v10032_v58  ;;  %6059 = vmatpush.bf16.msrb.mxu1 %v10096_v60 }
 0x96b   : > { %6021 = vmatpush.bf16.msra.mxu2 %v9896_v57  ;;  %6034 = vmatpush.bf16.msrb.mxu3 %v9960_v63  ;;  %v9737_v57 = vld [vmem:[%s15379_s13 + $0xd8] sm:$0xf0] }
 0x96c   : > { %6047 = vmatpush.bf16.msra.mxu0 %v10024_v14  ;;  %6060 = vmatpush.bf16.msrb.mxu1 %v10088_v50  ;;  %v9756_v14 = vor.u32 %v10972_v54, %v9753_v55  ;;  %v9681_v50 = vld [vmem:[%s15379_s13 + $0x68] sm:$0xf0]  ;;  %v9740_v40 = vor.u32 %v10968_v28, %v9737_v57 }
 0x96d   : > { %v9684_v25 = vor.u32 %v10954_v35, %v9681_v50  ;;  %v9769_v35 = vld [vmem:[%s15379_s13 + $0x118] sm:$0xf0]  ;;  %v10992_v50 = vld [vmem:[%s15379_s13 + $0x194] sm:$0xf]  ;;  %v9825_v57 = vld [vmem:[%s15379_s13 + $0x188] sm:$0xf0] }
 0x96f   : > { %6022 = vmatpush.bf16.msra.mxu2 %v9888_v30  ;;  %6035 = vmatpush.bf16.msrb.mxu3 %v9952_v36  ;;  %v10980_v30 = vld [vmem:[%s15379_s13 + $0x134] sm:$0xf] }
 0x970   : > { %6048 = vmatpush.bf16.msra.mxu0 %v10016_v21  ;;  %6061 = vmatpush.bf16.msrb.mxu1 %v10080_v3  ;;  %v9857_v21 = vld [vmem:[%s15379_s13 + $0x1c8] sm:$0xf0]  ;;  %v9748_v3 = vor.u32 %v10970_v16, %v9745_v19  ;;  %v10996_v36 = vld [vmem:[%s15379_s13 + $0x1b4] sm:$0xf]  ;;  %v9833_v16 = vld [vmem:[%s15379_s13 + $0x198] sm:$0xf0] }
 0x971   : > { %v9860_v43 = vor.u32 %v10998_v15, %v9857_v21  ;;  %v9772_v15 = vor.u32 %v10976_v10, %v9769_v35  ;;  %v9836_v21 = vor.u32 %v10992_v50, %v9833_v16  ;;  %v11034_v35 = vld [vmem:[%s15379_s13 + $0x2e4] sm:$0xf] }
 0x972   : > { %v11046_v16 = vld [vmem:[%s15379_s13 + $0x344] sm:$0xf] }
 0x9ae   : > { %v5079_v37 = vpop.f32.mrf.mxu0  ;;  %v5092_v38 = vpop.f32.mrf.mxu1 }
 0x9af   : > { %v5096_v41 = vpack.c.bf16 %v5092_v38, %v5079_v37  ;;  %v9849_v37 = vld [vmem:[%s15379_s13 + $0x1b8] sm:$0xf0]  ;;  %v9676_v38 = vor.u32 %v10952_v18, %v9673_v26  ;;  %v10990_v18 = vld [vmem:[%s15379_s13 + $0x184] sm:$0xf] }
 0x9b1   : > { %v5169_v31 = vunpack.c.l.b16 %v5096_v41  ;;  %v5170_v32 = vunpack.c.h.b16 %v5096_v41  ;;  %v5047_v22 = vpop.f32.mrf.mxu2  ;;  %v5060_v23 = vpop.f32.mrf.mxu3  ;;  %v10950_v41 = vld [vmem:[%s15379_s13 + $0x44] sm:$0xf] }
 0x9b2   : > { %v5064_v51 = vpack.c.bf16 %v5060_v23, %v5047_v22  ;;  %v9668_v54 = vor.u32 %v10950_v41, %v9665_v4  ;;  %v9828_v41 = vor.u32 %v10990_v18, %v9825_v57  ;;  %v11050_v4 = vld [vmem:[%s15379_s13 + $0x364] sm:$0xf]  ;;  %v10041_v57 = vld [vmem:[%s15379_s13 + $0x338] sm:$0xf0] }
 0x9b3   : > { %v14481_v47 = vpack.c.b16 %v5169_v31, %v5169_v31  ;;  %v14483_v48 = vpack.c.b16 %v5170_v32, %v5170_v32  ;;  %v10966_v31 = vld [vmem:[%s15379_s13 + $0xc4] sm:$0xf]  ;;  %v9729_v32 = vld [vmem:[%s15379_s13 + $0xc8] sm:$0xf0] }
 0x9b4   : > { %v5162_v56 = vunpack.c.l.b16 %v5064_v51  ;;  %v5163_v45 = vunpack.c.h.b16 %v5064_v51  ;;  %v10994_v51 = vld [vmem:[%s15379_s13 + $0x1a4] sm:$0xf]  ;;  %v9732_v55 = vor.u32 %v10966_v31, %v9729_v32  ;;  %v10065_v31 = vld [vmem:[%s15379_s13 + $0x368] sm:$0xf0] }
 0x9b5   : > { %5997 = vmatmul.bf16.vlgmr.msrb.gmra.mxu0 %v14481_v47  ;;  %6010 = vmatmul.bf16.vlgmr.msra.gmra.mxu1 %v14483_v48  ;;  %v9844_v5 = vor.u32 %v10994_v51, %v9841_v52  ;;  %v11066_v32 = vld [vmem:[%s15379_s13 + $0x3e4] sm:$0xf]  ;;  %v9697_v51 = vld [vmem:[%s15379_s13 + $0x88] sm:$0xf0]  ;;  %v11020_v52 = vld [vmem:[%s15379_s13 + $0x274] sm:$0xf] }
 0x9b6   : > { %6093 = vmatpush.bf16.msrb.mxu0 %v9820_v33  ;;  %6106 = vmatpush.bf16.msra.mxu1 %v9884_v27  ;;  %v5081_v58 = vpop.f32.mrf.mxu0  ;;  %v5094_v60 = vpop.f32.mrf.mxu1  ;;  %v14520_v13 = vpack.c.b16 %v5162_v56, %v5162_v56  ;;  %v14522_v24 = vpack.c.b16 %v5163_v45, %v5163_v45  ;;  %v9788_v33 = vor.u32 %v10980_v30, %v9785_v34  ;;  %v10948_v56 = vld [vmem:[%s15379_s13 + $0x34] sm:$0xf]  ;;  %v9657_v45 = vld [vmem:[%s15379_s13 + $0x38] sm:$0xf0] }
 0x9b7   : > { %v9852_v27 = vor.u32 %v10996_v36, %v9849_v37  ;;  %v10964_v58 = vld [vmem:[%s15379_s13 + $0xb4] sm:$0xf]  ;;  %v9721_v60 = vld [vmem:[%s15379_s13 + $0xb8] sm:$0xf0] }
 0x9b8   : > { %5971 = vmatmul.bf16.vlgmr.msrb.gmra.mxu2 %v14520_v13  ;;  %5984 = vmatmul.bf16.vlgmr.msra.gmra.mxu3 %v14522_v24  ;;  %v11068_v30 = vld [vmem:[%s15379_s13 + $0x3f4] sm:$0xf]  ;;  %v9641_v36 = vld [vmem:[%s15379_s13 + $0x18] sm:$0xf0] }
 0x9b9   : > { %v5049_v20 = vpop.f32.mrf.mxu2  ;;  %v5062_v7 = vpop.f32.mrf.mxu3  ;;  %6067 = vmatpush.bf16.msrb.mxu2 %v9692_v0  ;;  %6080 = vmatpush.bf16.msra.mxu3 %v9756_v14  ;;  %v9660_v14 = vor.u32 %v10948_v56, %v9657_v45  ;;  %v10944_v34 = vld [vmem:[%s15379_s13 + $0x14] sm:$0xf]  ;;  %v10068_v56 = vor.u32 %v11050_v4, %v10065_v31  ;;  %v10132_v45 = vor.u32 %v11066_v32, %v10129_v29  ;;  %v9913_v31 = vld [vmem:[%s15379_s13 + $0x238] sm:$0xf0] }
 0x9ba   : > { %6094 = vmatpush.bf16.msrb.mxu0 %v9812_v61  ;;  %6107 = vmatpush.bf16.msra.mxu1 %v9876_v62  ;;  %v9649_v20 = vld [vmem:[%s15379_s13 + $0x28] sm:$0xf0]  ;;  %v10962_v7 = vld [vmem:[%s15379_s13 + $0xa4] sm:$0xf]  ;;  %v10960_v37 = vld [vmem:[%s15379_s13 + $0x94] sm:$0xf] }
 0x9bb   : > { %v11012_v4 = vld [vmem:[%s15379_s13 + $0x234] sm:$0xf] }
 0x9bc   : > { %v11028_v32 = vld [vmem:[%s15379_s13 + $0x2b4] sm:$0xf] }
 0x9bd   : > { %6068 = vmatpush.bf16.msrb.mxu2 %v9684_v25  ;;  %6081 = vmatpush.bf16.msra.mxu3 %v9748_v3  ;;  %v10974_v25 = vld [vmem:[%s15379_s13 + $0x104] sm:$0xf]  ;;  %v9761_v3 = vld [vmem:[%s15379_s13 + $0x108] sm:$0xf0] }
 0x9be   : > { %6095 = vmatpush.bf16.msrb.mxu0 %v9804_v9  ;;  %6108 = vmatpush.bf16.msra.mxu1 %v9868_v11  ;;  %v5143_v6 = vpop.f32.mrf.mxu0  ;;  %v5156_v63 = vpop.f32.mrf.mxu1  ;;  %v9724_v11 = vor.u32 %v10964_v58, %v9721_v60  ;;  %v11048_v58 = vld [vmem:[%s15379_s13 + $0x354] sm:$0xf] }
 0x9bf   : > { %v5160_v59 = vpack.c.bf16 %v5156_v63, %v5143_v6  ;;  %v11052_v6 = vld [vmem:[%s15379_s13 + $0x374] sm:$0xf]  ;;  %v10073_v63 = vld [vmem:[%s15379_s13 + $0x378] sm:$0xf0] }
 0x9c1   : > { %v5183_v49 = vunpack.c.l.b16 %v5160_v59  ;;  %v5184_v46 = vunpack.c.h.b16 %v5160_v59  ;;  %v5111_v2 = vpop.f32.mrf.mxu2  ;;  %v5124_v44 = vpop.f32.mrf.mxu3  ;;  %6069 = vmatpush.bf16.msrb.mxu2 %v9676_v38  ;;  %6082 = vmatpush.bf16.msra.mxu3 %v9740_v40  ;;  %v10137_v59 = vld [vmem:[%s15379_s13 + $0x3f8] sm:$0xf0]  ;;  %v9764_v40 = vor.u32 %v10974_v25, %v9761_v3  ;;  %v11032_v25 = vld [vmem:[%s15379_s13 + $0x2d4] sm:$0xf] }
 0x9c2   : > { %6096 = vmatpush.bf16.msrb.mxu0 %v9796_v39  ;;  %6109 = vmatpush.bf16.msra.mxu1 %v9860_v43  ;;  %v5128_v53 = vpack.c.bf16 %v5124_v44, %v5111_v2  ;;  %v9652_v39 = vor.u32 %v10946_v17, %v9649_v20  ;;  %v9716_v43 = vor.u32 %v10962_v7, %v9713_v8  ;;  %v9705_v38 = vld [vmem:[%s15379_s13 + $0x98] sm:$0xf0]  ;;  %v10942_v2 = vld [vmem:[%s15379_s13 + $0x4] sm:$0xf]  ;;  %v9633_v44 = vld [vmem:[%s15379_s13 + $0x8] sm:$0xf0] }
 0x9c3   : > { %v14589_v22 = vpack.c.b16 %v5183_v49, %v5183_v49  ;;  %v14591_v23 = vpack.c.b16 %v5184_v46, %v5184_v46  ;;  %v10076_v49 = vor.u32 %v11052_v6, %v10073_v63  ;;  %v10140_v46 = vor.u32 %v11068_v30, %v10137_v59  ;;  %v11062_v17 = vld [vmem:[%s15379_s13 + $0x3c4] sm:$0xf]  ;;  %v10113_v20 = vld [vmem:[%s15379_s13 + $0x3c8] sm:$0xf0]  ;;  %v9993_v3 = vld [vmem:[%s15379_s13 + $0x2d8] sm:$0xf0] }
 0x9c4   : > { %v5176_v61 = vunpack.c.l.b16 %v5128_v53  ;;  %v5177_v62 = vunpack.c.h.b16 %v5128_v53  ;;  %v9945_v53 = vld [vmem:[%s15379_s13 + $0x278] sm:$0xf0]  ;;  %v9636_v60 = vor.u32 %v10942_v2, %v9633_v44  ;;  %v11060_v6 = vld [vmem:[%s15379_s13 + $0x3b4] sm:$0xf]  ;;  %v11030_v30 = vld [vmem:[%s15379_s13 + $0x2c4] sm:$0xf] }
 0x9c5   : > { %6049 = vmatmul.bf16.vlgmr.msra.gmra.mxu0 %v14589_v22  ;;  %6062 = vmatmul.bf16.vlgmr.msrb.gmra.mxu1 %v14591_v23  ;;  %v9948_v10 = vor.u32 %v11020_v52, %v9945_v53  ;;  %v10105_v63 = vld [vmem:[%s15379_s13 + $0x3b8] sm:$0xf0]  ;;  %v9985_v59 = vld [vmem:[%s15379_s13 + $0x2c8] sm:$0xf0]  ;;  %v11040_v2 = vld [vmem:[%s15379_s13 + $0x314] sm:$0xf]  ;;  %v9916_v52 = vor.u32 %v11012_v4, %v9913_v31 }
 0x9c6   : > { %6097 = vmatpush.bf16.msrb.mxu0 %v9788_v33  ;;  %6110 = vmatpush.bf16.msra.mxu1 %v9852_v27  ;;  %v5145_v12 = vpop.f32.mrf.mxu0  ;;  %v5158_v0 = vpop.f32.mrf.mxu1  ;;  %v14628_v19 = vpack.c.b16 %v5176_v61, %v5176_v61  ;;  %v14630_v9 = vpack.c.b16 %v5177_v62, %v5177_v62  ;;  %v9644_v33 = vor.u32 %v10944_v34, %v9641_v36  ;;  %v10057_v62 = vld [vmem:[%s15379_s13 + $0x358] sm:$0xf0] }
 0x9c7   : > { %6070 = vmatpush.bf16.msrb.mxu2 %v9668_v54  ;;  %6083 = vmatpush.bf16.msra.mxu3 %v9732_v55  ;;  %v9708_v27 = vor.u32 %v10960_v37, %v9705_v38  ;;  %v11036_v54 = vld [vmem:[%s15379_s13 + $0x2f4] sm:$0xf]  ;;  %v10009_v55 = vld [vmem:[%s15379_s13 + $0x2f8] sm:$0xf0]  ;;  %v9700_v61 = vor.u32 %v10958_v42, %v9697_v51  ;;  %v11018_v0 = vld [vmem:[%s15379_s13 + $0x264] sm:$0xf]  ;;  %v10108_v36 = vor.u32 %v11060_v6, %v10105_v63 }
 0x9c8   : > { %6023 = vmatmul.bf16.vlgmr.msra.gmra.mxu2 %v14628_v19  ;;  %6036 = vmatmul.bf16.vlgmr.msrb.gmra.mxu3 %v14630_v9  ;;  %v10012_v12 = vor.u32 %v11036_v54, %v10009_v55  ;;  %v11042_v37 = vld [vmem:[%s15379_s13 + $0x324] sm:$0xf]  ;;  %v10033_v38 = vld [vmem:[%s15379_s13 + $0x328] sm:$0xf0]  ;;  %v10025_v44 = vld [vmem:[%s15379_s13 + $0x318] sm:$0xf0] }
 0x9c9   : > { %v5113_v26 = vpop.f32.mrf.mxu2  ;;  %v5126_v28 = vpop.f32.mrf.mxu3  ;;  %v11056_v42 = vld [vmem:[%s15379_s13 + $0x394] sm:$0xf]  ;;  %v10089_v51 = vld [vmem:[%s15379_s13 + $0x398] sm:$0xf0]  ;;  %v11010_v54 = vld [vmem:[%s15379_s13 + $0x224] sm:$0xf] }
 0x9ca   : > { %6098 = vmatpush.bf16.msrb.mxu0 %v9780_v1  ;;  %6111 = vmatpush.bf16.msra.mxu1 %v9844_v5  ;;  %v11064_v1 = vld [vmem:[%s15379_s13 + $0x3d4] sm:$0xf]  ;;  %v10121_v5 = vld [vmem:[%s15379_s13 + $0x3d8] sm:$0xf0]  ;;  %v10116_v26 = vor.u32 %v11062_v17, %v10113_v20  ;;  %v9905_v55 = vld [vmem:[%s15379_s13 + $0x228] sm:$0xf0] }
 0x9cb   : > { %6071 = vmatpush.bf16.msrb.mxu2 %v9660_v14  ;;  %6084 = vmatpush.bf16.msra.mxu3 %v9724_v11  ;;  %v9937_v14 = vld [vmem:[%s15379_s13 + $0x268] sm:$0xf0]  ;;  %v10124_v50 = vor.u32 %v11064_v1, %v10121_v5  ;;  %v11044_v28 = vld [vmem:[%s15379_s13 + $0x334] sm:$0xf]  ;;  %v11054_v1 = vld [vmem:[%s15379_s13 + $0x384] sm:$0xf] }
 0x9cc   : > { %v10049_v11 = vld [vmem:[%s15379_s13 + $0x348] sm:$0xf0]  ;;  %v9940_v7 = vor.u32 %v11018_v0, %v9937_v14  ;;  %v10044_v34 = vor.u32 %v11044_v28, %v10041_v57  ;;  %v11008_v0 = vld [vmem:[%s15379_s13 + $0x214] sm:$0xf]  ;;  %v9897_v14 = vld [vmem:[%s15379_s13 + $0x218] sm:$0xf0] }
 0x9cd   : > { %v10052_v18 = vor.u32 %v11046_v16, %v10049_v11  ;;  %v10081_v5 = vld [vmem:[%s15379_s13 + $0x388] sm:$0xf0]  ;;  %v9900_v16 = vor.u32 %v11008_v0, %v9897_v14  ;;  %v11006_v17 = vld [vmem:[%s15379_s13 + $0x204] sm:$0xf]  ;;  %v14903_v6 = vld [vmem:[%s15380_s14] sm:$0x3] }
 0x9ce   : > { %6099 = vmatpush.bf16.msrb.mxu0 %v9772_v15  ;;  %6112 = vmatpush.bf16.msra.mxu1 %v9836_v21  ;;  %v11016_v15 = vld [vmem:[%s15379_s13 + $0x254] sm:$0xf]  ;;  %v9929_v21 = vld [vmem:[%s15379_s13 + $0x258] sm:$0xf0]  ;;  %v9889_v20 = vld [vmem:[%s15379_s13 + $0x208] sm:$0xf0] }
 0x9cf   : > { %6072 = vmatpush.bf16.msrb.mxu2 %v9652_v39  ;;  %6085 = vmatpush.bf16.msra.mxu3 %v9716_v43  ;;  %v9932_v39 = vor.u32 %v11016_v15, %v9929_v21  ;;  %v9996_v43 = vor.u32 %v11032_v25, %v9993_v3  ;;  %v9892_v15 = vor.u32 %v11006_v17, %v9889_v20  ;;  %v6185_v25 = vld [vmem:[%s15381_s15 + $0x70] sm:$0xff]  ;;  %v6183_v3 = vld [vmem:[%s15381_s15 + $0x60] sm:$0xff]  ;;  %v5319_v63 = vperm.slane %v14903_v6, 0  ;;  %v6178_v0 = vld [vmem:[%s15381_s15 + $0x38] sm:$0xff] }
 0x9d2   : > { %6100 = vmatpush.bf16.msrb.mxu0 %v9764_v40  ;;  %6113 = vmatpush.bf16.msra.mxu1 %v9828_v41  ;;  %v11058_v40 = vld [vmem:[%s15379_s13 + $0x3a4] sm:$0xf]  ;;  %v10097_v41 = vld [vmem:[%s15379_s13 + $0x3a8] sm:$0xf0] }
 0x9d3   : > { %6073 = vmatpush.bf16.msrb.mxu2 %v9644_v33  ;;  %6086 = vmatpush.bf16.msra.mxu3 %v9708_v27  ;;  %v9977_v33 = vld [vmem:[%s15379_s13 + $0x2b8] sm:$0xf0]  ;;  %v10036_v27 = vor.u32 %v11042_v37, %v10033_v38  ;;  %v10100_v29 = vor.u32 %v11058_v40, %v10097_v41 }
 0x9d4   : > { %v9980_v53 = vor.u32 %v11028_v32, %v9977_v33  ;;  %v6186_v33 = vld [vmem:[%s15381_s15 + $0x78] sm:$0xff] }
 0x9d5   : > { %6101 = vmatmul.bf16.vlgmr.msrb.gmra.mxu0 %v14481_v47  ;;  %6114 = vmatmul.bf16.vlgmr.msra.gmra.mxu1 %v14483_v48  ;;  %v10001_v47 = vld [vmem:[%s15379_s13 + $0x2e8] sm:$0xf0]  ;;  %v10060_v48 = vor.u32 %v11048_v58, %v10057_v62  ;;  %v10028_v58 = vor.u32 %v11040_v2, %v10025_v44 }
 0x9d6   : > { %6145 = vmatpush.bf16.msra.mxu0 %v10076_v49  ;;  %6158 = vmatpush.bf16.msrb.mxu1 %v10140_v46  ;;  %v10004_v8 = vor.u32 %v11034_v35, %v10001_v47  ;;  %v9988_v46 = vor.u32 %v11030_v30, %v9985_v59  ;;  %v10017_v62 = vld [vmem:[%s15379_s13 + $0x308] sm:$0xf0]  ;;  %v11024_v35 = vld [vmem:[%s15379_s13 + $0x294] sm:$0xf]  ;;  %v9961_v47 = vld [vmem:[%s15379_s13 + $0x298] sm:$0xf0] }
 0x9d7   : > { %6074 = vmatpush.bf16.msrb.mxu2 %v9636_v60  ;;  %6087 = vmatpush.bf16.msra.mxu3 %v9700_v61  ;;  %v10092_v60 = vor.u32 %v11056_v42, %v10089_v51  ;;  %v11038_v61 = vld [vmem:[%s15379_s13 + $0x304] sm:$0xf]  ;;  %v9964_v11 = vor.u32 %v11024_v35, %v9961_v47  ;;  %v6176_v35 = vld [vmem:[%s15381_s15 + $0x28] sm:$0xff] }
 0x9d8   : > { %v6171_v30 = vld [vmem:[%s15381_s15] sm:$0xff] }
 0x9da   : > { %6146 = vmatpush.bf16.msra.mxu0 %v10068_v56  ;;  %6159 = vmatpush.bf16.msrb.mxu1 %v10132_v45  ;;  %v11026_v56 = vld [vmem:[%s15379_s13 + $0x2a4] sm:$0xf]  ;;  %v9969_v45 = vld [vmem:[%s15379_s13 + $0x2a8] sm:$0xf0] }
 0x9db   : > { %6119 = vmatpush.bf16.msra.mxu2 %v9948_v10  ;;  %6132 = vmatpush.bf16.msrb.mxu3 %v10012_v12  ;;  %v9908_v10 = vor.u32 %v11010_v54, %v9905_v55  ;;  %v9972_v12 = vor.u32 %v11026_v56, %v9969_v45  ;;  %v6182_v55 = vld [vmem:[%s15381_s15 + $0x58] sm:$0xff] }
 0x9dc   : > { %6075 = vmatmul.bf16.vlgmr.msrb.gmra.mxu2 %v14520_v13  ;;  %6088 = vmatmul.bf16.vlgmr.msra.gmra.mxu3 %v14522_v24  ;;  %v11014_v13 = vld [vmem:[%s15379_s13 + $0x244] sm:$0xf]  ;;  %v9921_v24 = vld [vmem:[%s15379_s13 + $0x248] sm:$0xf0] }
 0x9dd   : > { %v9924_v49 = vor.u32 %v11014_v13, %v9921_v24 }
 0x9de   : > { %6147 = vmatpush.bf16.msra.mxu0 %v10060_v48  ;;  %6160 = vmatpush.bf16.msrb.mxu1 %v10124_v50  ;;  %v10020_v48 = vor.u32 %v11038_v61, %v10017_v62  ;;  %v10084_v50 = vor.u32 %v11054_v1, %v10081_v5  ;;  %v6180_v62 = vld [vmem:[%s15381_s15 + $0x48] sm:$0xff] }
 0x9df   : > { %6120 = vmatpush.bf16.msra.mxu2 %v9940_v7  ;;  %6133 = vmatpush.bf16.msrb.mxu3 %v10004_v8  ;;  %v11022_v7 = vld [vmem:[%s15379_s13 + $0x284] sm:$0xf]  ;;  %v9953_v8 = vld [vmem:[%s15379_s13 + $0x288] sm:$0xf0] }
 0x9e0   : > { %v9956_v21 = vor.u32 %v11022_v7, %v9953_v8 }
 0x9e2   : > { %6148 = vmatpush.bf16.msra.mxu0 %v10052_v18  ;;  %6161 = vmatpush.bf16.msrb.mxu1 %v10116_v26  ;;  %v6177_v18 = vld [vmem:[%s15381_s15 + $0x30] sm:$0xff]  ;;  %v6175_v26 = vld [vmem:[%s15381_s15 + $0x20] sm:$0xff] }
 0x9e3   : > { %6121 = vmatpush.bf16.msra.mxu2 %v9932_v39  ;;  %6134 = vmatpush.bf16.msrb.mxu3 %v9996_v43  ;;  %v6173_v39 = vld [vmem:[%s15381_s15 + $0x10] sm:$0xff] }
 0x9e6   : > { %6149 = vmatpush.bf16.msra.mxu0 %v10044_v34  ;;  %6162 = vmatpush.bf16.msrb.mxu1 %v10108_v36 }
 0x9e7   : > { %6122 = vmatpush.bf16.msra.mxu2 %v9924_v49  ;;  %6135 = vmatpush.bf16.msrb.mxu3 %v9988_v46 }
 0x9ea   : > { %6150 = vmatpush.bf16.msra.mxu0 %v10036_v27  ;;  %6163 = vmatpush.bf16.msrb.mxu1 %v10100_v29  ;;  %v6184_v29 = vld [vmem:[%s15381_s15 + $0x68] sm:$0xff] }
 0x9eb   : > { %6123 = vmatpush.bf16.msra.mxu2 %v9916_v52  ;;  %6136 = vmatpush.bf16.msrb.mxu3 %v9980_v53 }
 0x9ee   : > { %6151 = vmatpush.bf16.msra.mxu0 %v10028_v58  ;;  %6164 = vmatpush.bf16.msrb.mxu1 %v10092_v60 }
 0x9ef   : > { %6124 = vmatpush.bf16.msra.mxu2 %v9908_v10  ;;  %6137 = vmatpush.bf16.msrb.mxu3 %v9972_v12 }
 0x9f2   : > { %6152 = vmatpush.bf16.msra.mxu0 %v10020_v48  ;;  %6165 = vmatpush.bf16.msrb.mxu1 %v10084_v50  ;;  %v6174_v50 = vld [vmem:[%s15381_s15 + $0x18] sm:$0xff] }
 0x9f3   : > { %6125 = vmatpush.bf16.msra.mxu2 %v9900_v16  ;;  %6138 = vmatpush.bf16.msrb.mxu3 %v9964_v11  ;;  %v5320_v16 = vperm.slane %v14903_v6, 1  ;;  %v6172_v11 = vld [vmem:[%s15381_s15 + $0x8] sm:$0xff] }
 0x9f5   : > { %6153 = vmatmul.bf16.vlgmr.msra.gmra.mxu0 %v14589_v22  ;;  %6166 = vmatmul.bf16.vlgmr.msrb.gmra.mxu1 %v14591_v23  ;;  %v6181_v22 = vld [vmem:[%s15381_s15 + $0x50] sm:$0xff]  ;;  %v6179_v23 = vld [vmem:[%s15381_s15 + $0x40] sm:$0xff] }
 0x9f6   : > { %6254 = vmatpush.msrb.mxu0 %v6185_v25  ;;  %6274 = vmatpush.msra.mxu1 %v6186_v33 }
 0x9f7   : > { %6126 = vmatpush.bf16.msra.mxu2 %v9892_v15  ;;  %6139 = vmatpush.bf16.msrb.mxu3 %v9956_v21 }
 0x9f8   : > { %6255 = vmatpush.msrb.mxu0 %v6183_v3  ;;  %6275 = vmatpush.msra.mxu1 %v6184_v29 }
 0x9fa   : > { %6127 = vmatmul.bf16.vlgmr.msra.gmra.mxu2 %v14628_v19  ;;  %6140 = vmatmul.bf16.vlgmr.msrb.gmra.mxu3 %v14630_v9 }
 0x9fb   : > { %6209 = vmatpush.xpose.msrb.mxu2 %v6185_v25  ;;  %6256 = vmatpush.msrb.mxu0 %v6181_v22 }
 0x9fc   : > { %6229 = vmatpush.xpose.msra.mxu3 %v6186_v33  ;;  %6276 = vmatpush.msra.mxu1 %v6182_v55 }
 0x9fd   : > { %6257 = vmatpush.msrb.mxu0 %v6179_v23 }
 0x9fe   : > { %6277 = vmatpush.msra.mxu1 %v6180_v62 }
 0x9ff   : > { %6210 = vmatpush.xpose.msrb.mxu2 %v6183_v3  ;;  %6258 = vmatpush.msrb.mxu0 %v6177_v18 }
 0xa00   : > { %6230 = vmatpush.xpose.msra.mxu3 %v6184_v29  ;;  %6278 = vmatpush.msra.mxu1 %v6178_v0 }
 0xa01   : > { %6259 = vmatpush.msrb.mxu0 %v6175_v26 }
 0xa02   : > { %6279 = vmatpush.msra.mxu1 %v6176_v35 }
 0xa03   : > { %6211 = vmatpush.xpose.msrb.mxu2 %v6181_v22  ;;  %6260 = vmatpush.msrb.mxu0 %v6173_v39 }
 0xa04   : > { %6231 = vmatpush.xpose.msra.mxu3 %v6182_v55  ;;  %6280 = vmatpush.msra.mxu1 %v6174_v50 }
 0xa05   : > { %6261 = vmatpush.msrb.mxu0 %v6171_v30 }
 0xa06   : > { %6281 = vmatpush.msra.mxu1 %v6172_v11 }
 0xa07   : > { %6212 = vmatpush.xpose.msrb.mxu2 %v6179_v23  ;;  %6314 = vmatpush.xpose.msra.mxu0 %v6185_v25 }
 0xa08   : > { %6232 = vmatpush.xpose.msra.mxu3 %v6180_v62  ;;  %6334 = vmatpush.xpose.msrb.mxu1 %v6186_v33 }
 0xa0b   : > { %6213 = vmatpush.xpose.msrb.mxu2 %v6177_v18  ;;  %6315 = vmatpush.xpose.msra.mxu0 %v6183_v3 }
 0xa0c   : > { %6233 = vmatpush.xpose.msra.mxu3 %v6178_v0  ;;  %6335 = vmatpush.xpose.msrb.mxu1 %v6184_v29 }
 0xa0f   : > { %6214 = vmatpush.xpose.msrb.mxu2 %v6175_v26  ;;  %6316 = vmatpush.xpose.msra.mxu0 %v6181_v22 }
 0xa10   : > { %6234 = vmatpush.xpose.msra.mxu3 %v6176_v35  ;;  %6336 = vmatpush.xpose.msrb.mxu1 %v6182_v55 }
 0xa13   : > { %6215 = vmatpush.xpose.msrb.mxu2 %v6173_v39  ;;  %6317 = vmatpush.xpose.msra.mxu0 %v6179_v23 }
 0xa14   : > { %6235 = vmatpush.xpose.msra.mxu3 %v6174_v50  ;;  %6337 = vmatpush.xpose.msrb.mxu1 %v6180_v62 }
 0xa17   : > { %6216 = vmatpush.xpose.msrb.mxu2 %v6171_v30  ;;  %6318 = vmatpush.xpose.msra.mxu0 %v6177_v18 }
 0xa18   : > { %6236 = vmatpush.xpose.msra.mxu3 %v6172_v11  ;;  %6338 = vmatpush.xpose.msrb.mxu1 %v6178_v0 }
 0xa1b   : > { %6369 = vmatpush.msra.mxu2 %v6185_v25  ;;  %6319 = vmatpush.xpose.msra.mxu0 %v6175_v26 }
 0xa1c   : > { %6389 = vmatpush.msrb.mxu3 %v6186_v33  ;;  %6339 = vmatpush.xpose.msrb.mxu1 %v6176_v35 }
 0xa1d   : > { %6370 = vmatpush.msra.mxu2 %v6183_v3 }
 0xa1e   : > { %6390 = vmatpush.msrb.mxu3 %v6184_v29 }
 0xa1f   : > { %6371 = vmatpush.msra.mxu2 %v6181_v22  ;;  %6320 = vmatpush.xpose.msra.mxu0 %v6173_v39 }
 0xa20   : > { %6391 = vmatpush.msrb.mxu3 %v6182_v55  ;;  %6340 = vmatpush.xpose.msrb.mxu1 %v6174_v50 }
 0xa21   : > { %6372 = vmatpush.msra.mxu2 %v6179_v23 }
 0xa22   : > { %6392 = vmatpush.msrb.mxu3 %v6180_v62 }
 0xa23   : > { %6373 = vmatpush.msra.mxu2 %v6177_v18  ;;  %6321 = vmatpush.xpose.msra.mxu0 %v6171_v30 }
 0xa24   : > { %6393 = vmatpush.msrb.mxu3 %v6178_v0  ;;  %6341 = vmatpush.xpose.msrb.mxu1 %v6172_v11 }
 0xa25   : > { %6374 = vmatpush.msra.mxu2 %v6175_v26 }
 0xa26   : > { %6394 = vmatpush.msrb.mxu3 %v6176_v35 }
 0xa27   : > { %6375 = vmatpush.msra.mxu2 %v6173_v39 }
 0xa28   : > { %6395 = vmatpush.msrb.mxu3 %v6174_v50  ;;  %v11073_v50 = vld [vmem:[%s15382_s16 + $0x18] sm:$0xff] }
 0xa29   : > { %6376 = vmatpush.msra.mxu2 %v6171_v30 }
 0xa2a   : > { %6396 = vmatpush.msrb.mxu3 %v6172_v11 }
 0xa32   : > { %v5998_v19 = vpop.f32.mrf.mxu0  ;;  %v6011_v9 = vpop.f32.mrf.mxu1 }
 0xa3a   : > { %v6000_v28 = vpop.f32.mrf.mxu0  ;;  %v6013_v57 = vpop.f32.mrf.mxu1 }
 0xa3b   : > { %v5972_v43 = vpop.f32.mrf.mxu2  ;;  %v5985_v13 = vpop.f32.mrf.mxu3 }
 0xa3c   : > { %v5973_v24 = vadd.f32 %v5972_v43, %v5319_v63 }
 0xa3e   : > { %v5986_v36 = vadd.f32 %v5985_v13, %v5973_v24 }
 0xa40   : > { %v5999_v40 = vadd.f32 %v5998_v19, %v5986_v36 }
 0xa42   : > { %v6050_v59 = vpop.f32.mrf.mxu0  ;;  %v6063_v34 = vpop.f32.mrf.mxu1  ;;  %v6012_v46 = vadd.f32 %v6011_v9, %v5999_v40 }
 0xa43   : > { %v5974_v37 = vpop.f32.mrf.mxu2  ;;  %v5987_v38 = vpop.f32.mrf.mxu3 }
 0xa4a   : > { %v6052_v41 = vpop.f32.mrf.mxu0  ;;  %v6065_v49 = vpop.f32.mrf.mxu1 }
 0xa4b   : > { %v6024_v4 = vpop.f32.mrf.mxu2  ;;  %v6037_v31 = vpop.f32.mrf.mxu3 }
 0xa4c   : > { %v6025_v32 = vadd.f32 %v6024_v4, %v6012_v46 }
 0xa4e   : > { %v6038_v27 = vadd.f32 %v6037_v31, %v6025_v32 }
 0xa50   : > { %v6051_v42 = vadd.f32 %v6050_v59, %v6038_v27 }
 0xa52   : > { %v6102_v2 = vpop.f32.mrf.mxu0  ;;  %v6115_v44 = vpop.f32.mrf.mxu1  ;;  %v14918_v51 = vadd.f32 %v6063_v34, %v6051_v42 }
 0xa53   : > { %v6026_v52 = vpop.f32.mrf.mxu2  ;;  %v6039_v53 = vpop.f32.mrf.mxu3 }
 0xa54   : > { %v6187_v54 = vsel %vm5031_vm7, %v14918_v51, 0.0 }
 0xa55   : > { %v6188_v56 = vrot.slane %v6187_v54, 4 }
 0xa57   : > { %v6189_v45 = vadd.f32 %v6188_v56, %v6187_v54 }
 0xa59   : > { %v6190_v61 = vrot.slane %v6189_v45, 2 }
 0xa5a   : > { %v6104_v58 = vpop.f32.mrf.mxu0  ;;  %v6117_v60 = vpop.f32.mrf.mxu1 }
 0xa5b   : > { %v6191_v1 = vadd.f32 %v6190_v61, %v6189_v45 }
 0xa5d   : > { %v6192_v12 = vrot.slane %v6191_v1, 1 }
 0xa5f   : > { %v6076_v5 = vpop.f32.mrf.mxu2  ;;  %v6089_v10 = vpop.f32.mrf.mxu3  ;;  %v6193_v14 = vadd.f32 %v6192_v12, %v6191_v1 }
 0xa60   : > { %v6077_v17 = vadd.f32 %v6076_v5, %v5320_v16 }
 0xa61   : > { %6217 = vmatmul.f32.vlgmr.msrb.gmra.mxu2 %v6193_v14 }
 0xa62   : > { %v6090_v8 = vadd.f32 %v6089_v10, %v6077_v17  ;;  %6467 = vmatpush.bf16.msrb.mxu2 %v11073_v50 }
 0xa64   : > { %v6103_v15 = vadd.f32 %v6102_v2, %v6090_v8 }
 0xa66   : > { %v6116_v3 = vadd.f32 %v6115_v44, %v6103_v15 }
 0xa67   : > { %v6078_v47 = vpop.f32.mrf.mxu2  ;;  %v6091_v48 = vpop.f32.mrf.mxu3 }
 0xa72   : > { %v6154_v20 = vpop.f32.mrf.mxu0  ;;  %v6167_v7 = vpop.f32.mrf.mxu1 }
 0xa7a   : > { %v6156_v21 = vpop.f32.mrf.mxu0  ;;  %v6169_v25 = vpop.f32.mrf.mxu1 }
 0xa7d   : > { %v6128_v22 = vpop.f32.mrf.mxu2  ;;  %v6141_v23 = vpop.f32.mrf.mxu3 }
 0xa7e   : > { %v6129_v19 = vadd.f32 %v6128_v22, %v6116_v3 }
 0xa80   : > { %v6142_v9 = vadd.f32 %v6141_v23, %v6129_v19  ;;  %v11072_v19 = vld [vmem:[%s15382_s16 + $0x10] sm:$0xff] }
 0xa81   : > { %6468 = vmatpush.bf16.msrb.mxu2 %v11072_v19  ;;  %v11219_v19 = vld [vmem:[%s15385_s19] ss:$0 sm:$0xff] }
 0xa82   : > { %v6155_v18 = vadd.f32 %v6154_v20, %v6142_v9  ;;  %v11071_v9 = vld [vmem:[%s15382_s16 + $0x8] sm:$0xff] }
 0xa84   : > { %v6168_v26 = vadd.f32 %v6167_v7, %v6155_v18  ;;  %v11070_v18 = vld [vmem:[%s15382_s16] sm:$0xff] }
 0xa85   : > { %v6130_v28 = vpop.f32.mrf.mxu2  ;;  %v6143_v57 = vpop.f32.mrf.mxu3  ;;  %6469 = vmatpush.bf16.msrb.mxu2 %v11071_v9 }
 0xa86   : > { %v6194_v6 = vsel %vm5031_vm7, %v6168_v26, 0.0 }
 0xa87   : > { %v6195_v63 = vrot.slane %v6194_v6, 4 }
 0xa89   : > { %v6196_v39 = vadd.f32 %v6195_v63, %v6194_v6  ;;  %6470 = vmatpush.bf16.msrb.mxu2 %v11070_v18 }
 0xa8b   : > { %v6197_v43 = vrot.slane %v6196_v39, 2 }
 0xa8d   : > { %v6198_v13 = vadd.f32 %v6197_v43, %v6196_v39  ;;  %v11217_v43 = vld [vmem:[%s15383_s17] ss:$0 sm:$0xff] }
 0xa8f   : > { %v6199_v24 = vrot.slane %v6198_v13, 1 }
 0xa91   : > { %v6200_v30 = vadd.f32 %v6199_v24, %v6198_v13 }
 0xa93   : > { %6237 = vmatmul.f32.vlgmr.msra.gmra.mxu3 %v6200_v30 }
 0xae4   : > { %v6218_v59 = vpop.f32.mrf.mxu2 }
 0xb16   : > { %v6238_v34 = vpop.f32.mrf.mxu3 }
 0xb17   : > { %v6239_v36 = vadd.f32 %v6238_v34, %v6218_v59 }
 0xb19   : > { %v6241_v37 = vmul.f32 0.0625, %v6239_v36 }
 0xb1b   : > { %10141 = vmatmul.msk.f32.vlgmr.msrb.gmra.mxu0 %vm6242_vm10, %v6241_v37  ;;  %10142 = vmatmul.msk.f32.vlgmr.msra.gmra.mxu1 %vm6242_vm10, %v6241_v37 }
 0xb98   : > { %v6263_v38 = vpop.f32.mrf.mxu0  ;;  %v6283_v40 = vpop.f32.mrf.mxu1 }
 0xb99   : > { %v6286_v41 = vperm.slane %v6263_v38, 0  ;;  %v6287_v49 = vperm.slane %v6283_v40, 0 }
 0xb9b   : > { %v6288_v46 = vsub.f32 %v14918_v51, %v6286_v41  ;;  %v6289_v4 = vsub.f32 %v6168_v26, %v6287_v49 }
 0xb9d   : > { %v6290_v31 = vmul.f32 %v6288_v46, %v6288_v46  ;;  %v6291_v32 = vmul.f32 %v6289_v4, %v6289_v4 }
 0xb9f   : > { %v6292_v33 = vsel %vm5031_vm7, %v6290_v31, 0.0  ;;  %v6299_v27 = vsel %vm5031_vm7, %v6291_v32, 0.0 }
 0xba0   : > { %v6293_v29 = vrot.slane %v6292_v33, 4  ;;  %v6300_v2 = vrot.slane %v6299_v27, 4 }
 0xba2   : > { %v6294_v44 = vadd.f32 %v6293_v29, %v6292_v33  ;;  %v6301_v42 = vadd.f32 %v6300_v2, %v6299_v27 }
 0xba4   : > { %v6295_v52 = vrot.slane %v6294_v44, 2  ;;  %v6302_v53 = vrot.slane %v6301_v42, 2 }
 0xba6   : > { %v6296_v54 = vadd.f32 %v6295_v52, %v6294_v44  ;;  %v6303_v55 = vadd.f32 %v6302_v53, %v6301_v42 }
 0xba8   : > { %v6297_v56 = vrot.slane %v6296_v54, 1  ;;  %v6304_v45 = vrot.slane %v6303_v55, 1 }
 0xbaa   : > { %v6298_v58 = vadd.f32 %v6297_v56, %v6296_v54  ;;  %v6305_v60 = vadd.f32 %v6304_v45, %v6303_v55 }
 0xbac   : > { %6322 = vmatmul.f32.vlgmr.msra.gmra.mxu0 %v6298_v58  ;;  %6342 = vmatmul.f32.vlgmr.msrb.gmra.mxu1 %v6305_v60 }
 0xc29   : > { %v6323_v51 = vpop.f32.mrf.mxu0  ;;  %v6343_v61 = vpop.f32.mrf.mxu1 }
 0xc2a   : > { %v6344_v62 = vadd.f32 %v6343_v61, %v6323_v51 }
 0xc2c   : > { %v6346_v1 = vmul.f32 0.0625, %v6344_v62 }
 0xc2e   : > { %v6347_v5 = vadd.f32 1e-05, %v6346_v1 }
 0xc30   : > { %11226 = vrsqrt.f32 %v6347_v5  ;;  %vm6354_vm12 = vweird.f32 %v6347_v5 }
 0xc36   : > { %v11227_v10 = vpop.eup %11226 }
 0xc37   : > { %v6349_v12 = vmul.f32 %v11227_v10, %v6347_v5  ;;  %vm6355_vm11 = vweird.f32 %v11227_v10 }
 0xc38   : > { %vm6356_vm13 = vmor %vm6354_vm12, %vm6355_vm11 }
 0xc39   : > { %v6350_v0 = vmul.f32 %v11227_v10, %v6349_v12 }
 0xc3b   : > { %v6351_v14 = vmul.f32 0.5, %v6350_v0 }
 0xc3d   : > { %v6352_v35 = vsub.f32 1.5, %v6351_v14 }
 0xc3f   : > { %v6353_v47 = vmul.f32 %v11227_v10, %v6352_v35 }
 0xc41   : > { %v6357_v48 = vsel %vm6356_vm13, %v11227_v10, %v6353_v47  ;;  %vm7435_vm13 = vcmask 780288  }
 0xc42   : > { %10143 = vmatmul.msk.f32.vlgmr.msra.gmra.mxu2 %vm6242_vm10, %v6357_v48  ;;  %10144 = vmatmul.msk.f32.vlgmr.msrb.gmra.mxu3 %vm6242_vm10, %v6357_v48 }
 0xcc5   : > { %v6378_v16 = vpop.f32.mrf.mxu2  ;;  %v6398_v11 = vpop.f32.mrf.mxu3 }
 0xcc6   : > { %v6401_v17 = vperm.slane %v6378_v16, 0  ;;  %v6402_v20 = vperm.slane %v6398_v11, 0 }
 0xcc8   : > { %v6403_v7 = vmul.f32 %v6401_v17, %v6288_v46  ;;  %v6404_v8 = vmul.f32 %v6402_v20, %v6289_v4 }
 0xcca   : > { %vm6405_vm14 = vcmp.ge.f32.partialorder %v6403_v7, 0.0  ;;  %v6407_v15 = vmul.f32 0.2, %v6403_v7  ;;  %v6408_v3 = vmul.f32 0.2, %v6404_v8  ;;  %vm6406_vm15 = vcmp.ge.f32.partialorder %v6404_v8, 0.0 }
 0xccc   : > { %v6409_v21 = vsel %vm6405_vm14, %v6403_v7, %v6407_v15  ;;  %v6410_v22 = vsel %vm6406_vm15, %v6404_v8, %v6408_v3  ;;  %v6598_v8 = vld [vmem:[%s15384_s18] sm:$0xf] }
 0xccd   : > { %v6412_v25 = vrot.slane %v6409_v21, 4  ;;  %v6417_v23 = vrot.slane %v6410_v22, 4  ;;  %v6607_v15 = vsel %vm5031_vm7, %v6598_v8, 0  ;;  %v11082_v8 = vld [vmem:[%s15388_s22 + $0x40] sm:$0xff] }
 0xcce   : > { %6616 = vmatpush.bf16.msra.mxu1 %v6607_v15  ;;  %v11098_v15 = vld [vmem:[%s15388_s22 + $0xc0] sm:$0xff] }
 0xccf   : > { %6413 = vrot.lane.b32.xlu0 %v6412_v25, %s11302_s10  ;;  %v11305_v25 = vmov 0  }
 0xcd0   : > { %11215 = vset.pattern.permute.xlu2 %v11305_v25  ;;  %11216 = vset.pattern.permute.xlu0 %v11305_v25  ;;  %v11137_v25 = vld [vmem:[%s15388_s22 + $0x1f8] sm:$0xff] }
 0xcd7   : > { %6418 = vrot.lane.b32.xlu0 %v6417_v23, %s11302_s10 }
 0xd41   : > { %v6414_v26 = vpop.permute.xlu0 %6413 }
 0xd42   : > { %v14964_v57 = vsel %vm5031_vm7, %v6409_v21, %v6414_v26  ;;  %v11218_v21 = vld [vmem:[#allocation2] ss:$0 sm:$0xff] }
 0xd49   : > { %v6419_v28 = vpop.permute.xlu0 %6418 }
 0xd4a   : > { %v14967_v6 = vsel %vm5031_vm7, %v6410_v22, %v6419_v28  ;;  %vm6649_vm7 = vcmask 31744  }
 0xd4b   : > { %v6423_v63 = vpack.c.bf16 %v14967_v6, %v14964_v57 }
 0xd4d   : > { %10161 = vmatmul.msk.bf16.vlgmr.msrb.gmra.mxu2 %vm6242_vm10, %v6423_v63 }
 0xdd0   : > { %v6472_v39 = vpop.f32.mrf.mxu2 }
 0xdd1   : > { %v6473_v30 = vadd.f32 %v11217_v43, %v6472_v39 }
 0xdd8   : > { %v6474_v13 = vpop.f32.mrf.mxu2 }
 0xdd9   : > { %v6475_v24 = vadd.f32 %v11217_v43, %v6474_v13 }
 0xddb   : > { %6481 = vrot.lane.b32.xlu1 %v6475_v24, %s11303_s6  ;;  %v11210_v41 = vpack.i.bf16 %v6473_v30, %v6475_v24 }
 0xde3   : > { %6479 = vrot.lane.b32.xlu1 %v6473_v30, %s11303_s6  ;;  %s838_s6 = sand.u32 1, %s11292_s30  }
 0xe4d   : > { %v6482_v59 = vpop.permute.xlu1 %6481 }
 0xe4e   : > { %10162 = vmatpush.xpose.msk.msra.mxu3 %vm5027_vm8, %v6482_v59 }
 0xe55   : > { %v6480_v34 = vpop.permute.xlu1 %6479 }
 0xe56   : > { %10163 = vmatpush.xpose.msk.msra.mxu3 %vm5027_vm8, %v6480_v34 }
 0xe59   : > { %10164 = vmatmul.msk.f32.vlgmr.msra.gmra.mxu3 %vm5027_vm8, %v6473_v30 }
 0xe61   : > { %10165 = vmatmul.msk.f32.gmra.mxu3 %vm5027_vm8, %v6475_v24 }
 0xedc   : > { %v6508_v36 = vpop.f32.mrf.mxu3 }
 0xedd   : > { %v6514_v37 = vsel %vm3477_vm9, %v6508_v36, -inf }
 0xede   : > { %6515 = vmax.xlane.f32.xlu2 %v6514_v37 }
 0xee4   : > { %v6511_v38 = vpop.f32.mrf.mxu3 }
 0xee5   : > { %v6517_v40 = vsel %vm3477_vm9, %v6511_v38, -inf }
 0xee6   : > { %6518 = vmax.xlane.f32.xlu2 %v6517_v40  ;;  %v11081_v40 = vld [vmem:[%s15388_s22 + $0x38] sm:$0xff] }
 0xefe   : > { %11211 = vrot.lane.b32.xlu2 %v11210_v41, %s11304_s0  ;;  %v11097_v41 = vld [vmem:[%s15388_s22 + $0xb8] sm:$0xff]  ;;  %s8000_s0 = sshll.u32 %s838_s6, 1 }
 0xf06   : > { %6627 = vperm.xlu2 %11215, %v11218_v21   ;;  %v11121_v21 = vld [vmem:[%s15388_s22 + $0x178] sm:$0xff] }
 0xf51   : > { %v6516_v49 = vpop.xlane.xlu2 %6515 }
 0xf52   : > { %v6520_v46 = vsub.f32 %v6508_v36, %v6516_v49 }
 0xf54   : > { %v6522_v4 = vmul.f32 1.442695, %v6520_v46 }
 0xf56   : > { %11228 = vpow2.f32 %v6522_v4 }
 0xf59   : > { %v6519_v31 = vpop.xlane.xlu2 %6518 }
 0xf5a   : > { %v6521_v32 = vsub.f32 %v6511_v38, %v6519_v31  ;;  %v11080_v31 = vld [vmem:[%s15388_s22 + $0x30] sm:$0xff] }
 0xf5c   : > { %v11229_v33 = vpop.eup %11228  ;;  %v6524_v27 = vmul.f32 1.442695, %v6521_v32  ;;  %v11096_v32 = vld [vmem:[%s15388_s22 + $0xb0] sm:$0xff] }
 0xf5d   : > { %v6526_v29 = vsel %vm3477_vm9, %v11229_v33, 0.0 }
 0xf5e   : > { %11230 = vpow2.f32 %v6524_v27  ;;  %6527 = vadd.xlane.f32.xlu0 %v6526_v29  ;;  %v11089_v27 = vld [vmem:[%s15388_s22 + $0x78] sm:$0xff] }
 0xf5f   : > { %v11105_v29 = vld [vmem:[%s15388_s22 + $0xf8] sm:$0xff] }
 0xf61   : > { %v11212_v2 = vpop.permute.xlu2 %11211 }
 0xf62   : > { %v11213_v44 = vunpack.i.l.bf16 %v11212_v2  ;;  %v11214_v52 = vunpack.i.h.bf16 %v11212_v2  ;;  %v11079_v2 = vld [vmem:[%s15388_s22 + $0x28] sm:$0xff] }
 0xf64   : > { %v11231_v42 = vpop.eup %11230  ;;  %6588 = vmatpush.msrb.mxu0 %v11213_v44  ;;  %v11095_v44 = vld [vmem:[%s15388_s22 + $0xa8] sm:$0xff] }
 0xf65   : > { %v6529_v53 = vsel %vm3477_vm9, %v11231_v42, 0.0 }
 0xf66   : > { %6530 = vadd.xlane.f32.xlu1 %v6529_v53  ;;  %6589 = vmatpush.msrb.mxu0 %v11214_v52  ;;  %v11104_v52 = vld [vmem:[%s15388_s22 + $0xf0] sm:$0xff]  ;;  %v11078_v53 = vld [vmem:[%s15388_s22 + $0x20] sm:$0xff] }
 0xf69   : > { %v6628_v18 = vpop.permute.xlu2 %6627 }
 0xfd1   : > { %v6528_v54 = vpop.xlane.xlu0 %6527 }
 0xfd2   : > { %11232 = vrcp.f32 %v6528_v54  ;;  %v6543_v60 = vand.u32 2147483648, %v6528_v54  ;;  %v6541_v61 = vand.u32 2147483647, %v6528_v54  ;;  %vm6537_vm2 = vweird.f32 %v6528_v54 }
 0xfd4   : > { %v6544_v5 = vor.u32 1.1754944e-38, %v6543_v60  ;;  %vm6542_vm4 = vcmp.eq.f32.partialorder %v6541_v61, 8.507059e+37  ;;  %v11077_v60 = vld [vmem:[%s15388_s22 + $0x18] sm:$0xff]  ;;  %v11086_v61 = vld [vmem:[%s15388_s22 + $0x60] sm:$0xff] }
 0xfd8   : > { %v11233_v55 = vpop.eup %11232 }
 0xfd9   : > { %v6533_v56 = vmul.f32 %v11233_v55, %v6528_v54  ;;  %v6531_v45 = vpop.xlane.xlu1 %6530  ;;  %vm6538_vm1 = vweird.f32 %v11233_v55  ;;  %v11094_v54 = vld [vmem:[%s15388_s22 + $0xa0] sm:$0xff] }
 0xfda   : > { %11234 = vrcp.f32 %v6531_v45  ;;  %vm6539_vm3 = vmor %vm6537_vm2, %vm6538_vm1  ;;  %v6558_v47 = vand.u32 2147483648, %v6531_v45  ;;  %v6556_v50 = vand.u32 2147483647, %v6531_v45  ;;  %vm6552_vm6 = vweird.f32 %v6531_v45 }
 0xfdb   : > { %v6534_v58 = vsub.f32 1.0, %v6533_v56  ;;  %v10177_v56 = vld [vmem:[%s15387_s21 + $0x6] sm:$0x3]  ;;  %vm7582_vm2 = vcmask 1040384  }
 0xfdc   : > { %v6559_v11 = vor.u32 1.1754944e-38, %v6558_v47  ;;  %vm6557_vm12 = vcmp.eq.f32.partialorder %v6556_v50, 8.507059e+37  ;;  %v11100_v47 = vld [vmem:[%s15388_s22 + $0xd0] sm:$0xff]  ;;  %v11090_v50 = vld [vmem:[%s15388_s22 + $0x80] sm:$0xff] }
 0xfdd   : > { %v6535_v51 = vmul.f32 %v11233_v55, %v6534_v58  ;;  %v11103_v58 = vld [vmem:[%s15388_s22 + $0xe8] sm:$0xff] }
 0xfdf   : > { %v6536_v62 = vadd.f32 %v11233_v55, %v6535_v51  ;;  %v11093_v51 = vld [vmem:[%s15388_s22 + $0x98] sm:$0xff] }
 0xfe0   : > { %v11235_v1 = vpop.eup %11234 }
 0xfe1   : > { %v6540_v10 = vsel %vm6539_vm3, %v11233_v55, %v6536_v62  ;;  %v6548_v12 = vmul.f32 %v11235_v1, %v6531_v45  ;;  %vm6553_vm5 = vweird.f32 %v11235_v1  ;;  %v10174_v55 = vld [vmem:[%s15387_s21 + $0x4] sm:$0x3]  ;;  %v11087_v45 = vld [vmem:[%s15388_s22 + $0x68] sm:$0xff] }
 0xfe2   : > { %v6545_v0 = vsel %vm6542_vm4, %v6544_v5, %v6540_v10  ;;  %vm6554_vm11 = vmor %vm6552_vm6, %vm6553_vm5  ;;  %v11102_v62 = vld [vmem:[%s15388_s22 + $0xe0] sm:$0xff]  ;;  %v11092_v5 = vld [vmem:[%s15388_s22 + $0x90] sm:$0xff]  ;;  %vm7578_vm4 = vcmask 23552  }
 0xfe3   : > { %v6546_v14 = vmul.f32 %v11229_v33, %v6545_v0  ;;  %v6549_v35 = vsub.f32 1.0, %v6548_v12  ;;  %v11085_v10 = vld [vmem:[%s15388_s22 + $0x58] sm:$0xff]  ;;  %v11075_v0 = vld [vmem:[%s15388_s22 + $0x8] sm:$0xff] }
 0xfe4   : > { %v11101_v12 = vld [vmem:[%s15388_s22 + $0xd8] sm:$0xff] }
 0xfe5   : > { %v6550_v48 = vmul.f32 %v11235_v1, %v6549_v35  ;;  %10166 = vmatmul.msk.f32.vlgmr.msrb.gmra.mxu0 %vm3477_vm9, %v6546_v14  ;;  %v11091_v14 = vld [vmem:[%s15388_s22 + $0x88] sm:$0xff]  ;;  %v11084_v35 = vld [vmem:[%s15388_s22 + $0x50] sm:$0xff] }
 0xfe7   : > { %v6551_v16 = vadd.f32 %v11235_v1, %v6550_v48  ;;  %v11074_v48 = vld [vmem:[%s15388_s22] sm:$0xff] }
 0xfe9   : > { %v6555_v17 = vsel %vm6554_vm11, %v11235_v1, %v6551_v16  ;;  %v11076_v1 = vld [vmem:[%s15388_s22 + $0x10] sm:$0xff]  ;;  %v11113_v16 = vld [vmem:[%s15388_s22 + $0x138] sm:$0xff] }
 0xfea   : > { %v6560_v20 = vsel %vm6557_vm12, %v6559_v11, %v6555_v17  ;;  %v11129_v11 = vld [vmem:[%s15388_s22 + $0x1b8] sm:$0xff]  ;;  %v11083_v17 = vld [vmem:[%s15388_s22 + $0x48] sm:$0xff] }
 0xfeb   : > { %v6561_v7 = vmul.f32 %v11231_v42, %v6560_v20  ;;  %v11088_v42 = vld [vmem:[%s15388_s22 + $0x70] sm:$0xff]  ;;  %v11099_v20 = vld [vmem:[%s15388_s22 + $0xc8] sm:$0xff] }
 0xfed   : > { %10167 = vmatmul.msk.f32.gmra.mxu0 %vm3477_vm9, %v6561_v7  ;;  %vm6653_vm9 = vcmask 1041408   ;;  %v11112_v7 = vld [vmem:[%s15388_s22 + $0x130] sm:$0xff] }
0x1062   : > { %v6591_v3 = vpop.f32.mrf.mxu0 }
0x106a   : > { %v6594_v22 = vpop.f32.mrf.mxu0 }
0x106b   : > { %v6597_v23 = vpack.c.bf16 %v6594_v22, %v6591_v3  ;;  %v11120_v3 = vld [vmem:[%s15388_s22 + $0x170] sm:$0xff]  ;;  %v11111_v22 = vld [vmem:[%s15388_s22 + $0x128] sm:$0xff] }
0x106d   : > { %10168 = vmatmul.msk.bf16.vlgmr.msra.gmra.mxu1 %vm5027_vm8, %v6597_v23  ;;  %v11119_v23 = vld [vmem:[%s15388_s22 + $0x168] sm:$0xff]  ;;  %vm7443_vm8 = vcmask 785408  }
0x10ea   : > { %v6618_v9 = vpop.f32.mrf.mxu1 }
0x10eb   : > { %v6619_v26 = vadd.f32 %v11219_v19, %v6618_v9  ;;  %v11136_v9 = vld [vmem:[%s15388_s22 + $0x1f0] sm:$0xff] }
0x10ed   : > { %v6630_v28 = vmul.f32 %v6628_v18, %v6619_v26  ;;  %v11118_v26 = vld [vmem:[%s15388_s22 + $0x160] sm:$0xff] }
0x10ef   : > { %v6632_v63 = vadd.f32 %v6630_v28, %v14964_v57  ;;  %v6648_v57 = vld [vmem:[%s15387_s21] sm:$0x3]  ;;  %v11127_v28 = vld [vmem:[%s15388_s22 + $0x1a8] sm:$0xff] }
0x10f1   : > { %v6635_v39 = vrot.slane %v6632_v63, 4 }
0x10f2   : > { %v6620_v43 = vpop.f32.mrf.mxu1 }
0x10f3   : > { %v6621_v13 = vadd.f32 %v11219_v19, %v6620_v43  ;;  %6636 = vrot.lane.b32.xlu2 %v6635_v39, %s11302_s10  ;;  %v11128_v19 = vld [vmem:[%s15388_s22 + $0x1b0] sm:$0xff]  ;;  %v11109_v39 = vld [vmem:[%s15388_s22 + $0x118] sm:$0xff] }
0x10f4   : > { %v11117_v43 = vld [vmem:[%s15388_s22 + $0x158] sm:$0xff] }
0x10f5   : > { %v6631_v24 = vmul.f32 %v6628_v18, %v6621_v13  ;;  %v11110_v18 = vld [vmem:[%s15388_s22 + $0x120] sm:$0xff] }
0x10f6   : > { %v11126_v13 = vld [vmem:[%s15388_s22 + $0x1a0] sm:$0xff] }
0x10f7   : > { %v6633_v30 = vadd.f32 %v6631_v24, %v14967_v6  ;;  %v10171_v6 = vld [vmem:[%s15387_s21 + $0x2] sm:$0x3] }
0x10f8   : > { %v11134_v24 = vld [vmem:[%s15388_s22 + $0x1e0] sm:$0xff] }
0x10f9   : > { %v6640_v59 = vrot.slane %v6633_v30, 4 }
0x10fb   : > { %6641 = vrot.lane.b32.xlu2 %v6640_v59, %s11302_s10  ;;  %v11116_v59 = vld [vmem:[%s15388_s22 + $0x150] sm:$0xff] }
0x114d   : > { %v6637_v34 = vpop.permute.xlu2 %6636 }
0x114e   : > { %v6644_v36 = vsel %vm6242_vm10, %v6632_v63, %v6637_v34  ;;  %v11135_v63 = vld [vmem:[%s15388_s22 + $0x1e8] sm:$0xff]  ;;  %v11125_v34 = vld [vmem:[%s15388_s22 + $0x198] sm:$0xff] }
0x114f   : > { %v6646_v37 = vpack.c.bf16 %v6644_v36, %v6644_v36  ;;  %v11133_v36 = vld [vmem:[%s15388_s22 + $0x1d8] sm:$0xff] }
0x1151   : > { %v6655_v38 = vsel %vm6653_vm9, %v6646_v37, 0  ;;  %v11107_v37 = vld [vmem:[%s15388_s22 + $0x108] sm:$0xff] }
0x1152   : > { %6667 = vmatpush.bf16.msrb.mxu3 %v6655_v38  ;;  %6699 = vmatpush.bf16.msrb.mxu1 %v6655_v38 }
0x1155   : > { %v6642_v49 = vpop.permute.xlu2 %6641  ;;  %10169 = vmatmul.msk.bf16.vlgmr.msrb.gmra.mxu3 %vm6649_vm7, %v6648_v57  ;;  %10172 = vmatmul.msk.bf16.vlgmr.msrb.gmra.mxu1 %vm6649_vm7, %v10171_v6 }
0x1156   : > { %6731 = vmatpush.bf16.msra.mxu3 %v6655_v38  ;;  %6763 = vmatpush.bf16.msra.mxu1 %v6655_v38  ;;  %v6645_v46 = vsel %vm6242_vm10, %v6633_v30, %v6642_v49  ;;  %v11108_v30 = vld [vmem:[%s15388_s22 + $0x110] sm:$0xff]  ;;  %v11115_v38 = vld [vmem:[%s15388_s22 + $0x148] sm:$0xff] }
0x1157   : > { %v6647_v4 = vpack.c.bf16 %v6645_v46, %v6645_v46  ;;  %v11123_v49 = vld [vmem:[%s15388_s22 + $0x188] sm:$0xff] }
0x1158   : > { %v11131_v46 = vld [vmem:[%s15388_s22 + $0x1c8] sm:$0xff] }
0x1159   : > { %v6658_v33 = vsel %vm6653_vm9, %v6647_v4, 0 }
0x115a   : > { %7327 = vmatpush.bf16.msrb.mxu3 %v11081_v40  ;;  %7353 = vmatpush.bf16.msrb.mxu1 %v11097_v41  ;;  %v11106_v40 = vld [vmem:[%s15388_s22 + $0x100] sm:$0xff] }
0x115b   : > { %6680 = vmatpush.bf16.msra.mxu0 %v6658_v33  ;;  %6712 = vmatpush.bf16.msra.mxu2 %v6658_v33  ;;  %v11114_v41 = vld [vmem:[%s15388_s22 + $0x140] sm:$0xff] }
0x115e   : > { %7328 = vmatpush.bf16.msrb.mxu3 %v11080_v31  ;;  %7354 = vmatpush.bf16.msrb.mxu1 %v11096_v32  ;;  %v11122_v31 = vld [vmem:[%s15388_s22 + $0x180] sm:$0xff] }
0x115f   : > { %6744 = vmatpush.bf16.msrb.mxu0 %v6658_v33  ;;  %6776 = vmatpush.bf16.msrb.mxu2 %v6658_v33  ;;  %v11130_v32 = vld [vmem:[%s15388_s22 + $0x1c0] sm:$0xff] }
0x1160   : > { %10170 = vmatmul.msk.bf16.vlgmr.msra.gmra.mxu0 %vm6649_vm7, %v6648_v57  ;;  %10173 = vmatmul.msk.bf16.vlgmr.msra.gmra.mxu2 %vm6649_vm7, %v10171_v6  ;;  %v11124_v57 = vld [vmem:[%s15388_s22 + $0x190] sm:$0xff] }
0x1161   : > { %v11132_v6 = vld [vmem:[%s15388_s22 + $0x1d0] sm:$0xff] }
0x1162   : > { %7329 = vmatpush.bf16.msrb.mxu3 %v11079_v2  ;;  %7355 = vmatpush.bf16.msrb.mxu1 %v11095_v44 }
0x1163   : > { %7340 = vmatpush.bf16.msra.mxu0 %v11089_v27  ;;  %7366 = vmatpush.bf16.msra.mxu2 %v11105_v29 }
0x1165   : > { %10175 = vmatmul.msk.bf16.vlgmr.msra.gmra.mxu3 %vm6649_vm7, %v10174_v55  ;;  %10178 = vmatmul.msk.bf16.vlgmr.msra.gmra.mxu1 %vm6649_vm7, %v10177_v56 }
0x1166   : > { %7330 = vmatpush.bf16.msrb.mxu3 %v11078_v53  ;;  %7356 = vmatpush.bf16.msrb.mxu1 %v11094_v54 }
0x1167   : > { %7341 = vmatpush.bf16.msra.mxu0 %v11088_v42  ;;  %7367 = vmatpush.bf16.msra.mxu2 %v11104_v52 }
0x116a   : > { %7331 = vmatpush.bf16.msrb.mxu3 %v11077_v60  ;;  %7357 = vmatpush.bf16.msrb.mxu1 %v11093_v51 }
0x116b   : > { %7342 = vmatpush.bf16.msra.mxu0 %v11087_v45  ;;  %7368 = vmatpush.bf16.msra.mxu2 %v11103_v58 }
0x116e   : > { %7332 = vmatpush.bf16.msrb.mxu3 %v11076_v1  ;;  %7358 = vmatpush.bf16.msrb.mxu1 %v11092_v5 }
0x116f   : > { %7343 = vmatpush.bf16.msra.mxu0 %v11086_v61  ;;  %7369 = vmatpush.bf16.msra.mxu2 %v11102_v62 }
0x1170   : > { %10176 = vmatmul.msk.bf16.vlgmr.msrb.gmra.mxu0 %vm6649_vm7, %v10174_v55  ;;  %10179 = vmatmul.msk.bf16.vlgmr.msrb.gmra.mxu2 %vm6649_vm7, %v10177_v56 }
0x1172   : > { %7333 = vmatpush.bf16.msrb.mxu3 %v11075_v0  ;;  %7359 = vmatpush.bf16.msrb.mxu1 %v11091_v14 }
0x1173   : > { %7344 = vmatpush.bf16.msra.mxu0 %v11085_v10  ;;  %7370 = vmatpush.bf16.msra.mxu2 %v11101_v12 }
0x1176   : > { %7334 = vmatpush.bf16.msrb.mxu3 %v11074_v48  ;;  %7360 = vmatpush.bf16.msrb.mxu1 %v11090_v50 }
0x1177   : > { %7345 = vmatpush.bf16.msra.mxu0 %v11084_v35  ;;  %7371 = vmatpush.bf16.msra.mxu2 %v11100_v47 }
0x117a   : > { %7379 = vmatpush.bf16.msra.mxu3 %v11113_v16  ;;  %7405 = vmatpush.bf16.msra.mxu1 %v11129_v11 }
0x117b   : > { %7346 = vmatpush.bf16.msra.mxu0 %v11083_v17  ;;  %7372 = vmatpush.bf16.msra.mxu2 %v11099_v20 }
0x117e   : > { %7380 = vmatpush.bf16.msra.mxu3 %v11112_v7  ;;  %7406 = vmatpush.bf16.msra.mxu1 %v11128_v19  ;;  %v11220_v19 = vld [vmem:[%s15389_s23] ss:$0 sm:$0xff] }
0x117f   : > { %7347 = vmatpush.bf16.msra.mxu0 %v11082_v8  ;;  %7373 = vmatpush.bf16.msra.mxu2 %v11098_v15 }
0x1182   : > { %7381 = vmatpush.bf16.msra.mxu3 %v11111_v22  ;;  %7407 = vmatpush.bf16.msra.mxu1 %v11127_v28  ;;  %v7433_v22 = vld [vmem:[%s15390_s24 + $0x10] sm:$0xff]  ;;  %v7431_v28 = vld [vmem:[%s15390_s24] sm:$0xff] }
0x1183   : > { %7392 = vmatpush.bf16.msrb.mxu0 %v11121_v21  ;;  %7418 = vmatpush.bf16.msrb.mxu2 %v11137_v25  ;;  %v7434_v25 = vld [vmem:[%s15390_s24 + $0x18] sm:$0xff] }
0x1186   : > { %7382 = vmatpush.bf16.msra.mxu3 %v11110_v18  ;;  %7408 = vmatpush.bf16.msra.mxu1 %v11126_v13 }
0x1187   : > { %7393 = vmatpush.bf16.msrb.mxu0 %v11120_v3  ;;  %7419 = vmatpush.bf16.msrb.mxu2 %v11136_v9 }
0x118a   : > { %7383 = vmatpush.bf16.msra.mxu3 %v11109_v39  ;;  %7409 = vmatpush.bf16.msra.mxu1 %v11125_v34 }
0x118b   : > { %7394 = vmatpush.bf16.msrb.mxu0 %v11119_v23  ;;  %7420 = vmatpush.bf16.msrb.mxu2 %v11135_v63  ;;  %v7432_v23 = vld [vmem:[%s15390_s24 + $0x8] sm:$0xff] }
0x118e   : > { %7384 = vmatpush.bf16.msra.mxu3 %v11108_v30  ;;  %7410 = vmatpush.bf16.msra.mxu1 %v11124_v57 }
0x118f   : > { %7395 = vmatpush.bf16.msrb.mxu0 %v11118_v26  ;;  %7421 = vmatpush.bf16.msrb.mxu2 %v11134_v24 }
0x1192   : > { %7385 = vmatpush.bf16.msra.mxu3 %v11107_v37  ;;  %7411 = vmatpush.bf16.msra.mxu1 %v11123_v49 }
0x1193   : > { %7396 = vmatpush.bf16.msrb.mxu0 %v11117_v43  ;;  %7422 = vmatpush.bf16.msrb.mxu2 %v11133_v36 }
0x1196   : > { %7386 = vmatpush.bf16.msra.mxu3 %v11106_v40  ;;  %7412 = vmatpush.bf16.msra.mxu1 %v11122_v31 }
0x1197   : > { %7397 = vmatpush.bf16.msrb.mxu0 %v11116_v59  ;;  %7423 = vmatpush.bf16.msrb.mxu2 %v11132_v6 }
0x119b   : > { %7398 = vmatpush.bf16.msrb.mxu0 %v11115_v38  ;;  %7424 = vmatpush.bf16.msrb.mxu2 %v11131_v46 }
0x119f   : > { %7399 = vmatpush.bf16.msrb.mxu0 %v11114_v41  ;;  %7425 = vmatpush.bf16.msrb.mxu2 %v11130_v32 }
0x11d2   : > { %v6701_v4 = vpop.f32.mrf.mxu1 }
0x11d8   : > { %v6669_v33 = vpop.f32.mrf.mxu3 }
0x11da   : > { %v6703_v29 = vpop.f32.mrf.mxu1 }
0x11dd   : > { %v6682_v27 = vpop.f32.mrf.mxu0 }
0x11de   : > { %v6686_v2 = vpack.c.bf16 %v6682_v27, %v6669_v33 }
0x11e0   : > { %v6784_v44 = vunpack.c.l.b16 %v6686_v2  ;;  %v6785_v42 = vunpack.c.h.b16 %v6686_v2  ;;  %v6671_v55 = vpop.f32.mrf.mxu3 }
0x11e2   : > { %v6786_v52 = vpack.c.b16 %v6784_v44, %v6784_v44  ;;  %v6787_v53 = vpack.c.b16 %v6785_v42, %v6785_v42  ;;  %v6765_v58 = vpop.f32.mrf.mxu1 }
0x11e3   : > { %v6714_v54 = vpop.f32.mrf.mxu2 }
0x11e4   : > { %v6718_v56 = vpack.c.bf16 %v6714_v54, %v6701_v4  ;;  %7335 = vmatmul.bf16.vlgmr.msrb.gmra.mxu3 %v6786_v52  ;;  %7348 = vmatmul.bf16.vlgmr.msra.gmra.mxu0 %v6787_v53 }
0x11e5   : > { %v6684_v45 = vpop.f32.mrf.mxu0  ;;  %10436 = vmatpush.xpose.msk.msrb.mxu3 %vm7443_vm8, %v7434_v25  ;;  %7495 = vmatpush.msra.mxu0 %v7434_v25 }
0x11e6   : > { %v6791_v60 = vunpack.c.l.b16 %v6718_v56  ;;  %v6792_v51 = vunpack.c.h.b16 %v6718_v56 }
0x11e7   : > { %7496 = vmatpush.msra.mxu0 %v7433_v22 }
0x11e8   : > { %v6793_v61 = vpack.c.b16 %v6791_v60, %v6791_v60  ;;  %v6794_v62 = vpack.c.b16 %v6792_v51, %v6792_v51  ;;  %v6733_v5 = vpop.f32.mrf.mxu3 }
0x11e9   : > { %10437 = vmatpush.xpose.msk.msrb.mxu3 %vm7443_vm8, %v7433_v22  ;;  %7497 = vmatpush.msra.mxu0 %v7432_v23 }
0x11ea   : > { %7361 = vmatmul.bf16.vlgmr.msrb.gmra.mxu1 %v6793_v61  ;;  %7374 = vmatmul.bf16.vlgmr.msra.gmra.mxu2 %v6794_v62  ;;  %v6767_v12 = vpop.f32.mrf.mxu1 }
0x11eb   : > { %v6716_v1 = vpop.f32.mrf.mxu2  ;;  %10442 = vmatpush.xpose.msk.msrb.mxu1 %vm7443_vm8, %v7434_v25  ;;  %7563 = vmatpush.msra.mxu2 %v7434_v25 }
0x11ec   : > { %7498 = vmatpush.msra.mxu0 %v7431_v28 }
0x11ed   : > { %v6746_v10 = vpop.f32.mrf.mxu0  ;;  %7564 = vmatpush.msra.mxu2 %v7433_v22  ;;  %10438 = vmatpush.xpose.msk.msrb.mxu3 %vm7443_vm8, %v7432_v23 }
0x11ee   : > { %v6750_v0 = vpack.c.bf16 %v6746_v10, %v6733_v5 }
0x11ef   : > { %10443 = vmatpush.xpose.msk.msrb.mxu1 %vm7443_vm8, %v7433_v22  ;;  %7565 = vmatpush.msra.mxu2 %v7432_v23 }
0x11f0   : > { %v6798_v14 = vunpack.c.l.b16 %v6750_v0  ;;  %v6799_v35 = vunpack.c.h.b16 %v6750_v0  ;;  %v6735_v16 = vpop.f32.mrf.mxu3 }
0x11f1   : > { %10439 = vmatpush.xpose.msk.msrb.mxu3 %vm7443_vm8, %v7431_v28  ;;  %7566 = vmatpush.msra.mxu2 %v7431_v28 }
0x11f2   : > { %v6800_v47 = vpack.c.b16 %v6798_v14, %v6798_v14  ;;  %v6801_v48 = vpack.c.b16 %v6799_v35, %v6799_v35 }
0x11f3   : > { %v6778_v50 = vpop.f32.mrf.mxu2  ;;  %10444 = vmatpush.xpose.msk.msrb.mxu1 %vm7443_vm8, %v7432_v23 }
0x11f4   : > { %v6782_v11 = vpack.c.bf16 %v6778_v50, %v6765_v58  ;;  %7387 = vmatmul.bf16.vlgmr.msra.gmra.mxu3 %v6800_v47  ;;  %7400 = vmatmul.bf16.vlgmr.msrb.gmra.mxu0 %v6801_v48 }
0x11f5   : > { %v6748_v17 = vpop.f32.mrf.mxu0 }
0x11f6   : > { %v6805_v20 = vunpack.c.l.b16 %v6782_v11  ;;  %v6806_v7 = vunpack.c.h.b16 %v6782_v11 }
0x11f7   : > { %10445 = vmatpush.xpose.msk.msrb.mxu1 %vm7443_vm8, %v7431_v28  ;;  %v10453_v28 = vld [vmem:[%s15391_s25 + $0x3] sm:$0x1] }
0x11f8   : > { %v6807_v8 = vpack.c.b16 %v6805_v20, %v6805_v20  ;;  %v6808_v15 = vpack.c.b16 %v6806_v7, %v6806_v7 }
0x11fa   : > { %7413 = vmatmul.bf16.vlgmr.msra.gmra.mxu1 %v6807_v8  ;;  %7426 = vmatmul.bf16.vlgmr.msrb.gmra.mxu2 %v6808_v15  ;;  %v11306_v15 = vmov 65535  }
0x11fb   : > { %v6780_v21 = vpop.f32.mrf.mxu2 }
0x11fc   : > { %v7583_v21 = vsel %vm7582_vm2, 4294967295, %v11306_v15 }
0x1261   : > { %v7349_v3 = vpop.f32.mrf.mxu0 }
0x1267   : > { %v7336_v9 = vpop.f32.mrf.mxu3  ;;  %v7362_v18 = vpop.f32.mrf.mxu1 }
0x1268   : > { %v7337_v63 = vadd.f32 %v11220_v19, %v7336_v9  ;;  %v10449_v9 = vld [vmem:[%s15391_s25 + $0x1] sm:$0x1] }
0x1269   : > { %v7351_v26 = vpop.f32.mrf.mxu0 }
0x126a   : > { %v7350_v43 = vadd.f32 %v7349_v3, %v7337_v63  ;;  %v7584_v3 = vsel %vm6653_vm9, %v7583_v21, 0  ;;  %v10451_v26 = vld [vmem:[%s15391_s25 + $0x2] sm:$0x1]  ;;  %v11145_v63 = vld [vmem:[%s15392_s26 + $0x38] sm:$0xff] }
0x126c   : > { %v7363_v59 = vadd.f32 %v7362_v18, %v7350_v43  ;;  %v7577_v18 = vld [vmem:[%s15391_s25] sm:$0x1]  ;;  %v11161_v43 = vld [vmem:[%s15392_s26 + $0xb8] sm:$0xff] }
0x126d   : > { %v7375_v39 = vpop.f32.mrf.mxu2 }
0x126e   : > { %v7376_v36 = vadd.f32 %v7375_v39, %v7363_v59  ;;  %v11153_v39 = vld [vmem:[%s15392_s26 + $0x78] sm:$0xff]  ;;  %v11143_v59 = vld [vmem:[%s15392_s26 + $0x28] sm:$0xff] }
0x126f   : > { %v7338_v13 = vpop.f32.mrf.mxu3  ;;  %v7364_v24 = vpop.f32.mrf.mxu1 }
0x1270   : > { %v11144_v13 = vld [vmem:[%s15392_s26 + $0x30] sm:$0xff] }
0x1271   : > { %v7401_v30 = vpop.f32.mrf.mxu0  ;;  %v11152_v24 = vld [vmem:[%s15392_s26 + $0x70] sm:$0xff] }
0x1275   : > { %v7377_v34 = vpop.f32.mrf.mxu2 }
0x1276   : > { %v11151_v34 = vld [vmem:[%s15392_s26 + $0x68] sm:$0xff] }
0x1277   : > { %v7388_v37 = vpop.f32.mrf.mxu3  ;;  %v7414_v38 = vpop.f32.mrf.mxu1 }
0x1278   : > { %v7389_v57 = vadd.f32 %v7388_v37, %v7376_v36  ;;  %v11159_v36 = vld [vmem:[%s15392_s26 + $0xa8] sm:$0xff]  ;;  %v11142_v37 = vld [vmem:[%s15392_s26 + $0x20] sm:$0xff] }
0x1279   : > { %v7403_v6 = vpop.f32.mrf.mxu0 }
0x127a   : > { %v7402_v40 = vadd.f32 %v7401_v30, %v7389_v57  ;;  %v11160_v30 = vld [vmem:[%s15392_s26 + $0xb0] sm:$0xff]  ;;  %v11158_v57 = vld [vmem:[%s15392_s26 + $0xa0] sm:$0xff]  ;;  %v11141_v6 = vld [vmem:[%s15392_s26 + $0x18] sm:$0xff] }
0x127c   : > { %v7415_v41 = vadd.f32 %v7414_v38, %v7402_v40  ;;  %v11150_v38 = vld [vmem:[%s15392_s26 + $0x60] sm:$0xff]  ;;  %v11149_v40 = vld [vmem:[%s15392_s26 + $0x58] sm:$0xff] }
0x127d   : > { %v7427_v49 = vpop.f32.mrf.mxu2 }
0x127e   : > { %v7428_v46 = vadd.f32 %v7427_v49, %v7415_v41  ;;  %v11157_v41 = vld [vmem:[%s15392_s26 + $0x98] sm:$0xff] }
0x127f   : > { %v7390_v4 = vpop.f32.mrf.mxu3  ;;  %v7416_v31 = vpop.f32.mrf.mxu1 }
0x1280   : > { %v7436_v32 = vsel %vm7435_vm13, %v7428_v46, 0.0  ;;  %v11140_v31 = vld [vmem:[%s15392_s26 + $0x10] sm:$0xff] }
0x1281   : > { %v7437_v33 = vrot.slane %v7436_v32, 4 }
0x1283   : > { %v7438_v27 = vadd.f32 %v7437_v33, %v7436_v32  ;;  %v11148_v32 = vld [vmem:[%s15392_s26 + $0x50] sm:$0xff] }
0x1285   : > { %v7439_v29 = vrot.slane %v7438_v27, 2  ;;  %v7429_v2 = vpop.f32.mrf.mxu2 }
0x1287   : > { %v7440_v44 = vadd.f32 %v7439_v29, %v7438_v27  ;;  %v11156_v27 = vld [vmem:[%s15392_s26 + $0x90] sm:$0xff] }
0x1289   : > { %v7441_v42 = vrot.slane %v7440_v44, 1 }
0x128b   : > { %v7442_v52 = vadd.f32 %v7441_v42, %v7440_v44  ;;  %v11139_v42 = vld [vmem:[%s15392_s26 + $0x8] sm:$0xff] }
0x128d   : > { %10440 = vmatmul.msk.f32.vlgmr.msrb.gmra.mxu3 %vm7443_vm8, %v7442_v52  ;;  %v11147_v52 = vld [vmem:[%s15392_s26 + $0x48] sm:$0xff] }
0x1310   : > { %v7476_v53 = vpop.f32.mrf.mxu3 }
0x1311   : > { %v7479_v54 = vmul.f32 0.11111111, %v7476_v53 }
0x1313   : > { %10441 = vmatmul.msk.f32.vlgmr.msra.gmra.mxu0 %vm867_vm0, %v7479_v54 }
0x1390   : > { %v7500_v55 = vpop.f32.mrf.mxu0 }
0x1391   : > { %v7503_v56 = vperm.slane %v7500_v55, 0 }
0x1393   : > { %v7504_v45 = vsub.f32 %v7428_v46, %v7503_v56 }
0x1395   : > { %v7505_v58 = vmul.f32 %v7504_v45, %v7504_v45 }
0x1397   : > { %v7506_v60 = vsel %vm7435_vm13, %v7505_v58, 0.0 }
0x1398   : > { %v7507_v51 = vrot.slane %v7506_v60, 4 }
0x139a   : > { %v7508_v61 = vadd.f32 %v7507_v51, %v7506_v60  ;;  %v11138_v60 = vld [vmem:[%s15392_s26] sm:$0xff] }
0x139b   : > { %v11146_v51 = vld [vmem:[%s15392_s26 + $0x40] sm:$0xff] }
0x139c   : > { %v7509_v62 = vrot.slane %v7508_v61, 2 }
0x139e   : > { %v7510_v1 = vadd.f32 %v7509_v62, %v7508_v61 }
0x13a0   : > { %v7511_v5 = vrot.slane %v7510_v1, 1 }
0x13a2   : > { %v7512_v10 = vadd.f32 %v7511_v5, %v7510_v1 }
0x13a4   : > { %10446 = vmatmul.msk.f32.vlgmr.msrb.gmra.mxu1 %vm7443_vm8, %v7512_v10  ;;  %v11155_v10 = vld [vmem:[%s15392_s26 + $0x88] sm:$0xff] }
0x1421   : > { %v7533_v12 = vpop.f32.mrf.mxu1 }
0x1422   : > { %v7536_v0 = vmul.f32 0.11111111, %v7533_v12  ;;  %v11154_v12 = vld [vmem:[%s15392_s26 + $0x80] sm:$0xff] }
0x1424   : > { %v7537_v14 = vadd.f32 1e-05, %v7536_v0 }
0x1426   : > { %11236 = vrsqrt.f32 %v7537_v14  ;;  %vm7544_vm15 = vweird.f32 %v7537_v14 }
0x142c   : > { %v11237_v35 = vpop.eup %11236 }
0x142d   : > { %v7539_v47 = vmul.f32 %v11237_v35, %v7537_v14  ;;  %vm7545_vm14 = vweird.f32 %v11237_v35 }
0x142e   : > { %vm7546_vm1 = vmor %vm7544_vm15, %vm7545_vm14 }
0x142f   : > { %v7540_v48 = vmul.f32 %v11237_v35, %v7539_v47 }
0x1431   : > { %v7541_v50 = vmul.f32 0.5, %v7540_v48 }
0x1433   : > { %v7542_v16 = vsub.f32 1.5, %v7541_v50 }
0x1435   : > { %v7543_v11 = vmul.f32 %v11237_v35, %v7542_v16 }
0x1437   : > { %v7547_v17 = vsel %vm7546_vm1, %v11237_v35, %v7543_v11 }
0x1438   : > { %10447 = vmatmul.msk.f32.vlgmr.msra.gmra.mxu2 %vm867_vm0, %v7547_v17 }
0x14bb   : > { %v7568_v20 = vpop.f32.mrf.mxu2 }
0x14bc   : > { %v7571_v7 = vperm.slane %v7568_v20, 0  ;;  %v11221_v20 = vld [vmem:[%s15393_s27] ss:$0 sm:$0xff] }
0x14be   : > { %v7572_v8 = vmul.f32 %v7571_v7, %v7504_v45 }
0x14c0   : > { %vm7573_vm3 = vcmp.ge.f32.partialorder %v7572_v8, 0.0  ;;  %v7574_v25 = vmul.f32 0.2, %v7572_v8 }
0x14c2   : > { %v7575_v22 = vsel %vm7573_vm3, %v7572_v8, %v7574_v25 }
0x14c3   : > { %v7576_v23 = vpack.c.bf16 %v7575_v22, %v7575_v22 }
0x14c5   : > { %v7586_v19 = vand.u32 %v7584_v3, %v7576_v23 }
0x14c7   : > { %7595 = vmatpush.bf16.msra.mxu3 %v7586_v19  ;;  %7614 = vmatpush.bf16.msrb.mxu0 %v7586_v19 }
0x14c8   : > { %7633 = vmatpush.bf16.msra.mxu1 %v7586_v19  ;;  %7652 = vmatpush.bf16.msrb.mxu2 %v7586_v19 }
0x14ca   : > { %10450 = vmatmul.msk.bf16.vlgmr.msrb.gmra.mxu0 %vm7578_vm4, %v10449_v9  ;;  %10448 = vmatmul.msk.bf16.vlgmr.msra.gmra.mxu3 %vm7578_vm4, %v7577_v18 }
0x14cb   : > { %10452 = vmatmul.msk.bf16.vlgmr.msra.gmra.mxu1 %vm7578_vm4, %v10451_v26  ;;  %10454 = vmatmul.msk.bf16.vlgmr.msrb.gmra.mxu2 %vm7578_vm4, %v10453_v28 }
0x14cc   : > { %7880 = vmatpush.bf16.msrb.mxu3 %v11145_v63  ;;  %7893 = vmatpush.bf16.msra.mxu0 %v11153_v39 }
0x14cd   : > { %7906 = vmatpush.bf16.msrb.mxu1 %v11161_v43 }
0x14d0   : > { %7881 = vmatpush.bf16.msrb.mxu3 %v11144_v13  ;;  %7894 = vmatpush.bf16.msra.mxu0 %v11152_v24 }
0x14d1   : > { %7907 = vmatpush.bf16.msrb.mxu1 %v11160_v30 }
0x14d4   : > { %7882 = vmatpush.bf16.msrb.mxu3 %v11143_v59  ;;  %7895 = vmatpush.bf16.msra.mxu0 %v11151_v34 }
0x14d5   : > { %7908 = vmatpush.bf16.msrb.mxu1 %v11159_v36 }
0x14d8   : > { %7883 = vmatpush.bf16.msrb.mxu3 %v11142_v37  ;;  %7896 = vmatpush.bf16.msra.mxu0 %v11150_v38 }
0x14d9   : > { %7909 = vmatpush.bf16.msrb.mxu1 %v11158_v57 }
0x14dc   : > { %7884 = vmatpush.bf16.msrb.mxu3 %v11141_v6  ;;  %7897 = vmatpush.bf16.msra.mxu0 %v11149_v40 }
0x14dd   : > { %7910 = vmatpush.bf16.msrb.mxu1 %v11157_v41 }
0x14e0   : > { %7885 = vmatpush.bf16.msrb.mxu3 %v11140_v31  ;;  %7898 = vmatpush.bf16.msra.mxu0 %v11148_v32 }
0x14e1   : > { %7911 = vmatpush.bf16.msrb.mxu1 %v11156_v27 }
0x14e4   : > { %7886 = vmatpush.bf16.msrb.mxu3 %v11139_v42  ;;  %7899 = vmatpush.bf16.msra.mxu0 %v11147_v52 }
0x14e5   : > { %7912 = vmatpush.bf16.msrb.mxu1 %v11155_v10 }
0x14e8   : > { %7887 = vmatpush.bf16.msrb.mxu3 %v11138_v60  ;;  %7900 = vmatpush.bf16.msra.mxu0 %v11146_v51 }
0x14e9   : > { %7913 = vmatpush.bf16.msrb.mxu1 %v11154_v12 }
0x1547   : > { %v7616_v49 = vpop.f32.mrf.mxu0 }
0x1548   : > { %v7620_v46 = vpack.c.bf16 %v7616_v49, %v7616_v49  ;;  %v7635_v4 = vpop.f32.mrf.mxu1 }
0x1549   : > { %v7639_v33 = vpack.c.bf16 %v7635_v4, %v7635_v4 }
0x154a   : > { %v7660_v29 = vunpack.c.l.b16 %v7620_v46 }
0x154b   : > { %v7665_v2 = vunpack.c.l.b16 %v7639_v33 }
0x154c   : > { %v7661_v44 = vpack.c.b16 %v7660_v29, %v7660_v29 }
0x154d   : > { %v7666_v53 = vpack.c.b16 %v7665_v2, %v7665_v2  ;;  %v7597_v54 = vpop.f32.mrf.mxu3 }
0x154e   : > { %7662 = vrot.lane.b32.xlu0 %v7661_v44, %s11307_s7  ;;  %v7654_v55 = vpop.f32.mrf.mxu2  ;;  %v7601_v0 = vpack.c.bf16 %v7597_v54, %v7597_v54  ;;  %s10552_s7 = sshll.u32 %s11478_s20, 1  ;;  %s7922_s20 = scalar_lea.sflag [#allocation4], %s838_s6 }
0x154f   : > { %7667 = vrot.lane.b32.xlu1 %v7666_v53, %s11302_s10  ;;  %v7618_v56 = vpop.f32.mrf.mxu0  ;;  %v7658_v45 = vpack.c.bf16 %v7654_v55, %v7654_v55  ;;  %s840_s10 = scalar_lea.vmem [#allocation3], %s8000_s0 }
0x1550   : > { %v7637_v58 = vpop.f32.mrf.mxu1  ;;  %s7934_s2 = sshll.u32 %s840_s10, 4  ;;  %s7935_s2 = int_to_ptr.vmem [resolvable:$true] %s7934_s2 }
0x1551   : > { %v7670_v61 = vunpack.c.l.b16 %v7658_v45 }
0x1553   : > { %v7671_v62 = vpack.c.b16 %v7670_v61, %v7670_v61 }
0x1555   : > { %7672 = vrot.lane.b32.xlu2 %v7671_v62, %s11308_s9  ;;  %v7599_v1 = vpop.f32.mrf.mxu3  ;;  %s7932_s9 = scalar_lea.hbm %s15394_s28, %s10552_s7 }
0x1556   : > { %v7656_v5 = vpop.f32.mrf.mxu2  ;;  %s7936_s8 = sshll.u32 %s7932_s9, 4  ;;  %s7937_s8 = int_to_ptr.hbm [resolvable:$true] %s7936_s8 }
0x1557   : > { %s11252_s3 = sshra.s32 %s7937_s8, 4  ;;  %s11253_s3 = int_to_ptr.hbm [resolvable:$true] %s11252_s3 }
0x1558   : > { %s11254_s29 = scalar_lea.hbm %s11253_s3, 2  ;;  %p11259_p0 = scmp.lt.s32.totalorder %s11253_s3, %s15394_s28 }
0x1559   : > { %p11255_p11 = scmp.ne.s32.totalorder %s11253_s3, %s11254_s29  ;;  %p11260_p1 = scmp.lt.s32.totalorder %s11258_s12, %s11254_s29 }
0x155b   : > { %p11256_p12 = pnand %p11255_p11, %p11495_p5  ;;  %p11261_p2 = por %p11260_p1, %p11259_p0 }
0x155d   : > { %p11257_p13 = pneg %p11256_p12 }
0x155f   : > { %p11262_p3 = pnand %p11261_p2, %p11257_p13 }
0x15af   : > { %v7673_v14 = vpop.permute.xlu2 %7672 }
0x15c0   : > { %v7663_v35 = vpop.permute.xlu0 %7662 }
0x15c1   : > { %v7668_v47 = vpop.permute.xlu1 %7667  ;;  %v7676_v48 = vsel %vm7443_vm8, %v7601_v0, %v7663_v35 }
0x15c2   : > { %v7679_v50 = vsel %vm6242_vm10, %v7663_v35, %v7668_v47  ;;  %7888 = vmatmul.bf16.vlgmr.msrb.gmra.mxu3 %v7676_v48  ;;  %v7682_v16 = vsel %vm867_vm0, %v7668_v47, %v7673_v14  ;;  %vm7919_vm0 = vcmask 9216  }
0x15c3   : > { %7901 = vmatmul.bf16.vlgmr.msra.gmra.mxu0 %v7679_v50  ;;  %7914 = vmatmul.bf16.vlgmr.msrb.gmra.mxu1 %v7682_v16 }
0x1640   : > { %v7902_v11 = vpop.f32.mrf.mxu0  ;;  %v7915_v17 = vpop.f32.mrf.mxu1 }
0x1645   : > { %v7889_v7 = vpop.f32.mrf.mxu3 }
0x1646   : > { %v7890_v8 = vadd.f32 %v11221_v20, %v7889_v7 }
0x1648   : > { %v7903_v15 = vadd.f32 %v7902_v11, %v7890_v8  ;;  %v7904_v21 = vpop.f32.mrf.mxu0  ;;  %v7917_v25 = vpop.f32.mrf.mxu1 }
0x164a   : > { %v7916_v3 = vadd.f32 %v7915_v17, %v7903_v15 }
0x164c   : > { %7920 = vst.msk [vmem:[%s840_s10] sm:$0x3] %vm7919_vm0, %v7916_v3 }
0x164d   : > { %v7891_v22 = vpop.f32.mrf.mxu3 }
0x164e   : > { %11265 = shalt.err (!%p11262_p3)
}
0x164f   : > { %11164 = dma.vmem_to_hbm [thread:$0]  (%p11495_p5), %s7935_s2, 32, %s7937_s8, %s7922_s20  }
0x1650 PF: > { %s15459_s6 = sld [smem:[#allocation8_spill]] }
0x1651   : > { %s15460_s10 = sld [smem:[#allocation6_spill]] }
0x1656   : > { %p11170_p4 = scmp.ge.s32.totalorder %s15459_s6, 2 }
0x1657   : > { %s7948_s5 = sand.u32 1, %s15460_s10  }
0x1658   : > { %p11167_p7 = pnand %p11170_p4, %p11499_p6  ;;  %s7949_s0 = scalar_lea.sflag [#allocation4], %s7948_s5 }
0x165a   : > { %p11168_p8 = pneg %p11167_p7 }
0x165c   : > { %11283 = dma.done.wait (%p11168_p8), %s7949_s0, 32  }
0x165d   : > { %11285 = vsyncadd (%p11168_p8), %s7949_s0, 4294967264  ;;  %s15462_s6 = sld [smem:[#allocation9_spill]]  ;;  %s15465_s9 = smov %s11292_s30 }
0x165e   : > { %s15463_s3 = sld [smem:[#allocation7_spill]] }
0x165f   : > { %s15464_s29 = sld [smem:[#allocation10_spill]] }
0x1663   : > { %p40_p9 = scmp.ge.s32.totalorder %s15462_s6, 4  }
0x1664   : > { %s15466_s30 = smov %s15463_s3 }
0x1665   : > { %s15467_s3 = smov %s15464_s29  ;;  %42 = sbr.rel (!%p40_p9) target bundleno = 17 (0x11), region = 188 }
0x166a   :  { %7955 = vsyncpa [#allocation4], 1 }
0x166b   :  { %7957 = vsyncpa [#allocation4 + $0x1], 1 }

</bundles_post_ra>
